<compile_context>
chip_gen: v6e
topology: v6e:2x2x1
jax: 0.10.0
libtpu: 0.0.40
codegen_flags: <defaults>
</compile_context>

<pallas_src>
import functools

import jax
import jax.numpy as jnp
from jax.experimental import pallas as pl
from jax.experimental.pallas import tpu as pltpu


def _lka_kernel(xf_ref, mask_ref, w0_ref, b0_ref, w1_ref, b1_ref, w2_ref,
                b2_ref, o_ref, canvas_ref, *,
                Bt, C, H, W, k0, p0, k1, p1, dil, WpU, PADN, use_mxu):
    """One grid step: Bt images, fused conv0 -> conv_spatial -> 1x1 -> gate.

    Layout: every per-image tensor is 2-D (C, lanes) -- channels on sublanes,
    flattened pixels on lanes.  `canvas_ref` is a single zero-bordered flat
    canvas with row stride WpU = W + 2*p1, shared by both depthwise convs.
    """
    f32 = jnp.float32
    N = H * W
    base = p1 * WpU + p1           # flat canvas offset of pixel (0, 0)

    # ---- per-grid-step init: zero the whole canvas (halo must be zero).
    # NOT gated on program_id -> correct under "parallel"/megacore sharding.
    canvas_ref[...] = jnp.zeros(canvas_ref.shape, f32)

    # ---- hoisted parameter loads (one vld each, not one per tap) -----------
    maskv = mask_ref[...].astype(f32)                  # (1, PADN): 1 = valid
    w0v = w0_ref[...].astype(f32)                      # (C, k0*k0)
    w1v = w1_ref[...].astype(f32)                      # (C, k1*k1)
    b0v = b0_ref[...].astype(f32)                      # (C, 1)
    b1v = b1_ref[...].astype(f32)
    b2v = b2_ref[...].astype(f32)
    w2v = w2_ref[...].astype(f32)                      # (C, C)
    # per-tap (C,1) weight columns sliced once; the cheap lane-splat happens
    # at the FMA (C sits on sublanes, so it is a ~k-lane-tile splat, not a
    # full (C,H,W) broadcast_in_dim as before).
    w0c = [w0v[:, t:t + 1] for t in range(k0 * k0)]
    w1c = [w1v[:, t:t + 1] for t in range(k1 * k1)]

    for b in range(Bt):                                # small static unroll
        xb = xf_ref[b].astype(f32)                     # (C, N) lane-dense

        # -- stage A: scatter image rows into the canvas interior ------------
        for h in range(H):
            dst = (p1 + h) * WpU + p1
            canvas_ref[:, dst:dst + W] = xb[:, h * W:h * W + W]

        # -- stage B: conv0 (depthwise k0 x k0, padding p0) -------------------
        # tap (ki,kj) of output pixel (h,w) reads canvas[(p1-p0)+ki+h,
        # (p1-p0)+kj+w]; one slab load per ki, lane-shifted per kj.
        off0 = p1 - p0
        acc = jnp.zeros((C, PADN), f32)
        for ki in range(k0):
            s = (off0 + ki) * WpU + off0
            slab = canvas_ref[:, s:s + PADN + (k0 - 1)]
            for kj in range(k0):
                acc = acc + slab[:, kj:kj + PADN] * w0c[ki * k0 + kj]
        # bias, then zero the out-of-row junk lanes so they land as zeros.
        acc = (acc + b0v) * maskv

        # -- stage C: write conv0 output back into the canvas ----------------
        # Single contiguous store; the masked junk lanes land exactly in the
        # left/right halos and refresh them with zeros each image.
        canvas_ref[:, base:base + PADN] = acc

        # -- stage D: conv_spatial (depthwise k1 x k1, dilation dil, pad p1) --
        acc = jnp.zeros((C, PADN), f32)
        for ki in range(k1):
            s = ki * dil * WpU
            slab = canvas_ref[:, s:s + PADN + (k1 - 1) * dil]
            for kj in range(k1):
                acc = acc + slab[:, kj * dil:kj * dil + PADN] * w1c[ki * k1 + kj]

        # -- stage E: drop junk lanes -> dense (C, N), 1x1 mix, gate, store --
        attn = jnp.concatenate(
            [acc[:, h * WpU:h * WpU + W] for h in range(H)], axis=1) + b1v
        if use_mxu:
            f = jnp.dot(w2v, attn, precision=jax.lax.Precision.HIGHEST,
                        preferred_element_type=f32)
        else:                                          # tiny C: VPU is cheaper
            f = jnp.zeros((C, N), f32)
            for ci in range(C):
                f = f + attn[ci:ci + 1, :] * w2v[:, ci:ci + 1]
        f = f + b2v
        # lane-dense, unmasked store of the gated output
        o_ref[b] = (f * xb).astype(o_ref.dtype)


def _pick_block_batch(B):
    """Images per grid step: coarsen blocks to amortize per-step overhead."""
    for bt in (4, 3, 2, 1):
        if B % bt == 0:
            return bt
    return 1


def temporal_attention_pallas(x, params, kernel_size=21, dilation=3):
    """x: (B, C, H, W); params = (w0(C,k0,k0), b0(C,), w1(C,k1,k1), b1(C,),
    w2(C,C), b2(C,)).  Returns conv1(conv_spatial(conv0(x))) * x."""
    w0, b0, w1, b1, w2, b2 = params
    B, C, H, W = x.shape
    d_k = 2 * dilation - 1
    d_p = (d_k - 1) // 2
    dd_k = kernel_size // dilation + (kernel_size // dilation % 2 - 1)
    dd_p = dilation * (dd_k - 1) // 2
    assert w0.shape == (C, d_k, d_k) and w1.shape == (C, dd_k, dd_k)
    assert w2.shape == (C, C)
    assert dd_p >= d_p, "unified canvas assumes the dilated conv has the larger halo"

    N = H * W
    WpU = W + 2 * dd_p                      # unified padded row stride
    HpU = H + 2 * dd_p
    PADN = H * WpU                          # padded-stride slab length
    # extra zero slack so the widest (dilated) tap slab stays in bounds on
    # the (ignored) junk lanes of the last row.
    CLEN = HpU * WpU + (dd_k - 1) * dilation

    Bt = _pick_block_batch(B)
    grid = (B // Bt,)

    # 1.0 on valid columns of a padded row, 0.0 on junk lanes (XLA-side, tiny)
    mask = (jnp.arange(PADN, dtype=jnp.int32) % WpU < W).astype(jnp.float32)
    mask = mask.reshape(1, PADN)

    x_flat = x.reshape(B, C, N)             # free metadata reshape, lane-dense

    kernel = functools.partial(
        _lka_kernel, Bt=Bt, C=C, H=H, W=W, k0=d_k, p0=d_p, k1=dd_k, p1=dd_p,
        dil=dilation, WpU=WpU, PADN=PADN, use_mxu=(C > 16))

    out_flat = pl.pallas_call(
        kernel,
        out_shape=jax.ShapeDtypeStruct((B, C, N), x.dtype),
        grid=grid,
        in_specs=[
            pl.BlockSpec((Bt, C, N), lambda g: (g, 0, 0)),      # x (lane-dense)
            pl.BlockSpec((1, PADN), lambda g: (0, 0)),          # junk-lane mask
            pl.BlockSpec((C, d_k * d_k), lambda g: (0, 0)),     # conv0 weight
            pl.BlockSpec((C, 1), lambda g: (0, 0)),             # conv0 bias
            pl.BlockSpec((C, dd_k * dd_k), lambda g: (0, 0)),   # conv_spatial w
            pl.BlockSpec((C, 1), lambda g: (0, 0)),             # conv_spatial b
            pl.BlockSpec((C, C), lambda g: (0, 0)),             # 1x1 weight
            pl.BlockSpec((C, 1), lambda g: (0, 0)),             # 1x1 bias
        ],
        out_specs=pl.BlockSpec((Bt, C, N), lambda g: (g, 0, 0)),
        scratch_shapes=[pltpu.VMEM((C, CLEN), jnp.float32)],
        compiler_params=pltpu.CompilerParams(
            dimension_semantics=("parallel",),
            # Blocks here are tiny (<< 32 MiB even double-buffered).  Budget
            # was re-derived for v7x (64 MiB physical / 32 MiB scoped) and the
            # limit is raised explicitly so larger Bt / v5e's 16 MiB scoped
            # default are not the first thing to break.
            vmem_limit_bytes=32 * 1024 * 1024),
    )(x_flat, mask, w0.reshape(C, d_k * d_k), b0.reshape(C, 1),
      w1.reshape(C, dd_k * dd_k), b1.reshape(C, 1), w2, b2.reshape(C, 1))

    return out_flat.reshape(B, C, H, W)


def temporal_attention_reference(x, params, kernel_size=21, dilation=3):
    """Plain-JAX reference matching the PyTorch forward (f_x * u)."""
    w0, b0, w1, b1, w2, b2 = params
    B, C, H, W = x.shape
    d_k = 2 * dilation - 1
    d_p = (d_k - 1) // 2
    dd_k = kernel_size // dilation + (kernel_size // dilation % 2 - 1)
    dd_p = dilation * (dd_k - 1) // 2
    dn = ("NCHW", "OIHW", "NCHW")
    hi = jax.lax.Precision.HIGHEST
    attn = jax.lax.conv_general_dilated(
        x, w0.reshape(C, 1, d_k, d_k), (1, 1), [(d_p, d_p), (d_p, d_p)],
        dimension_numbers=dn, feature_group_count=C, precision=hi)
    attn = attn + b0[None, :, None, None]
    attn = jax.lax.conv_general_dilated(
        attn, w1.reshape(C, 1, dd_k, dd_k), (1, 1), [(dd_p, dd_p), (dd_p, dd_p)],
        rhs_dilation=(dilation, dilation), dimension_numbers=dn,
        feature_group_count=C, precision=hi)
    attn = attn + b1[None, :, None, None]
    f_x = jnp.einsum("oi,bihw->bohw", w2, attn, precision=hi)
    f_x = f_x + b2[None, :, None, None]
    return f_x * x


if __name__ == "__main__":
    def run_case(B, dim, H, W, kernel_size=21, dilation=3):
        d_k = 2 * dilation - 1
        dd_k = kernel_size // dilation + (kernel_size // dilation % 2 - 1)
        key = jax.random.PRNGKey(0)
        ks = jax.random.split(key, 7)
        x = jax.random.normal(ks[0], (B, dim, H, W), dtype=jnp.float32)
        w0 = 0.1 * jax.random.normal(ks[1], (dim, d_k, d_k), dtype=jnp.float32)
        b0 = 0.1 * jax.random.normal(ks[2], (dim,), dtype=jnp.float32)
        w1 = 0.1 * jax.random.normal(ks[3], (dim, dd_k, dd_k), dtype=jnp.float32)
        b1 = 0.1 * jax.random.normal(ks[4], (dim,), dtype=jnp.float32)
        w2 = 0.1 * jax.random.normal(ks[5], (dim, dim), dtype=jnp.float32)
        b2 = 0.1 * jax.random.normal(ks[6], (dim,), dtype=jnp.float32)
        params = (w0, b0, w1, b1, w2, b2)

        y = jax.block_until_ready(
            temporal_attention_pallas(x, params, kernel_size, dilation))
        y_ref = temporal_attention_reference(x, params, kernel_size, dilation)
        assert y.shape == (B, dim, H, W)
        err = float(jnp.max(jnp.abs(y - y_ref)))
        assert jnp.allclose(y, y_ref, atol=1e-4, rtol=1e-4), f"max abs err {err}"

    # Small config from the spec: VPU 1x1 path (tiny C), Bt=2, grid=(1,).
    run_case(B=2, dim=8, H=16, W=16)
    # Larger-C config: MXU 1x1 path, Bt=4, grid=(2,) (exercises multi-step
    # canvas re-zeroing and the megacore-safe init).
    run_case(B=8, dim=32, H=16, W=16)

    print("KERNEL_OK")
</pallas_src>

<mosaic_0001>
module attributes {stable_mosaic.version = 11 : i64} {
  func.func @_lka_kernel(%arg0: i32, %arg1: memref<2x8x256xf32, #tpu.memory_space<vmem>>, %arg2: memref<1x544xf32, #tpu.memory_space<vmem>>, %arg3: memref<8x25xf32, #tpu.memory_space<vmem>>, %arg4: memref<8x1xf32, #tpu.memory_space<vmem>>, %arg5: memref<8x49xf32, #tpu.memory_space<vmem>>, %arg6: memref<8x1xf32, #tpu.memory_space<vmem>>, %arg7: memref<8x8xf32, #tpu.memory_space<vmem>>, %arg8: memref<8x1xf32, #tpu.memory_space<vmem>>, %arg9: memref<2x8x256xf32, #tpu.memory_space<vmem>>, %arg10: memref<8x1174xf32, #tpu.memory_space<vmem>>) attributes {dimension_semantics = [#tpu.dimension_semantics<parallel>], iteration_bounds = array<i64: 1>, scalar_prefetch = 0 : i64, scratch_operands = 1 : i64, tpu.core_type = #tpu.core_type<tc>, window_params = [{transform_indices = @transform_0, window_bounds = array<i64: 2, 8, 256>}, {pipeline_mode = #tpu.pipeline_mode<synchronous>, transform_indices = @transform_1, window_bounds = array<i64: 1, 544>}, {pipeline_mode = #tpu.pipeline_mode<synchronous>, transform_indices = @transform_2, window_bounds = array<i64: 8, 25>}, {pipeline_mode = #tpu.pipeline_mode<synchronous>, transform_indices = @transform_3, window_bounds = array<i64: 8, 1>}, {pipeline_mode = #tpu.pipeline_mode<synchronous>, transform_indices = @transform_4, window_bounds = array<i64: 8, 49>}, {pipeline_mode = #tpu.pipeline_mode<synchronous>, transform_indices = @transform_5, window_bounds = array<i64: 8, 1>}, {pipeline_mode = #tpu.pipeline_mode<synchronous>, transform_indices = @transform_6, window_bounds = array<i64: 8, 8>}, {pipeline_mode = #tpu.pipeline_mode<synchronous>, transform_indices = @transform_7, window_bounds = array<i64: 8, 1>}, {transform_indices = @transform_8, window_bounds = array<i64: 2, 8, 256>}]} {
    %cst = arith.constant 0.000000e+00 : f32
    %0 = vector.broadcast %cst : f32 to vector<8x1174xf32>
    %c0 = arith.constant 0 : index
    %c0_0 = arith.constant 0 : index
    %1 = vector.load %arg10[%c0, %c0_0] : memref<8x1174xf32, #tpu.memory_space<vmem>>, vector<8x1174xf32>
    tpu.vector_store %arg10[%c0, %c0_0], %0 {strides = array<i32>} : memref<8x1174xf32, #tpu.memory_space<vmem>>, vector<8x1174xf32>,
    %c0_1 = arith.constant 0 : index
    %c0_2 = arith.constant 0 : index
    %2 = vector.load %arg2[%c0_1, %c0_2] : memref<1x544xf32, #tpu.memory_space<vmem>>, vector<1x544xf32>
    %c0_3 = arith.constant 0 : index
    %c0_4 = arith.constant 0 : index
    %3 = vector.load %arg3[%c0_3, %c0_4] : memref<8x25xf32, #tpu.memory_space<vmem>>, vector<8x25xf32>
    %c0_5 = arith.constant 0 : index
    %c0_6 = arith.constant 0 : index
    %4 = vector.load %arg5[%c0_5, %c0_6] : memref<8x49xf32, #tpu.memory_space<vmem>>, vector<8x49xf32>
    %c0_7 = arith.constant 0 : index
    %c0_8 = arith.constant 0 : index
    %5 = vector.load %arg4[%c0_7, %c0_8] : memref<8x1xf32, #tpu.memory_space<vmem>>, vector<8x1xf32>
    %c0_9 = arith.constant 0 : index
    %c0_10 = arith.constant 0 : index
    %6 = vector.load %arg6[%c0_9, %c0_10] : memref<8x1xf32, #tpu.memory_space<vmem>>, vector<8x1xf32>
    %c0_11 = arith.constant 0 : index
    %c0_12 = arith.constant 0 : index
    %7 = vector.load %arg8[%c0_11, %c0_12] : memref<8x1xf32, #tpu.memory_space<vmem>>, vector<8x1xf32>
    %c0_13 = arith.constant 0 : index
    %c0_14 = arith.constant 0 : index
    %8 = vector.load %arg7[%c0_13, %c0_14] : memref<8x8xf32, #tpu.memory_space<vmem>>, vector<8x8xf32>
    %9 = vector.extract_strided_slice %3 {offsets = [0, 0], sizes = [8, 1], strides = [1, 1]} : vector<8x25xf32> to vector<8x1xf32>
    %10 = vector.extract_strided_slice %3 {offsets = [0, 1], sizes = [8, 1], strides = [1, 1]} : vector<8x25xf32> to vector<8x1xf32>
    %11 = vector.extract_strided_slice %3 {offsets = [0, 2], sizes = [8, 1], strides = [1, 1]} : vector<8x25xf32> to vector<8x1xf32>
    %12 = vector.extract_strided_slice %3 {offsets = [0, 3], sizes = [8, 1], strides = [1, 1]} : vector<8x25xf32> to vector<8x1xf32>
    %13 = vector.extract_strided_slice %3 {offsets = [0, 4], sizes = [8, 1], strides = [1, 1]} : vector<8x25xf32> to vector<8x1xf32>
    %14 = vector.extract_strided_slice %3 {offsets = [0, 5], sizes = [8, 1], strides = [1, 1]} : vector<8x25xf32> to vector<8x1xf32>
    %15 = vector.extract_strided_slice %3 {offsets = [0, 6], sizes = [8, 1], strides = [1, 1]} : vector<8x25xf32> to vector<8x1xf32>
    %16 = vector.extract_strided_slice %3 {offsets = [0, 7], sizes = [8, 1], strides = [1, 1]} : vector<8x25xf32> to vector<8x1xf32>
    %17 = vector.extract_strided_slice %3 {offsets = [0, 8], sizes = [8, 1], strides = [1, 1]} : vector<8x25xf32> to vector<8x1xf32>
    %18 = vector.extract_strided_slice %3 {offsets = [0, 9], sizes = [8, 1], strides = [1, 1]} : vector<8x25xf32> to vector<8x1xf32>
    %19 = vector.extract_strided_slice %3 {offsets = [0, 10], sizes = [8, 1], strides = [1, 1]} : vector<8x25xf32> to vector<8x1xf32>
    %20 = vector.extract_strided_slice %3 {offsets = [0, 11], sizes = [8, 1], strides = [1, 1]} : vector<8x25xf32> to vector<8x1xf32>
    %21 = vector.extract_strided_slice %3 {offsets = [0, 12], sizes = [8, 1], strides = [1, 1]} : vector<8x25xf32> to vector<8x1xf32>
    %22 = vector.extract_strided_slice %3 {offsets = [0, 13], sizes = [8, 1], strides = [1, 1]} : vector<8x25xf32> to vector<8x1xf32>
    %23 = vector.extract_strided_slice %3 {offsets = [0, 14], sizes = [8, 1], strides = [1, 1]} : vector<8x25xf32> to vector<8x1xf32>
    %24 = vector.extract_strided_slice %3 {offsets = [0, 15], sizes = [8, 1], strides = [1, 1]} : vector<8x25xf32> to vector<8x1xf32>
    %25 = vector.extract_strided_slice %3 {offsets = [0, 16], sizes = [8, 1], strides = [1, 1]} : vector<8x25xf32> to vector<8x1xf32>
    %26 = vector.extract_strided_slice %3 {offsets = [0, 17], sizes = [8, 1], strides = [1, 1]} : vector<8x25xf32> to vector<8x1xf32>
    %27 = vector.extract_strided_slice %3 {offsets = [0, 18], sizes = [8, 1], strides = [1, 1]} : vector<8x25xf32> to vector<8x1xf32>
    %28 = vector.extract_strided_slice %3 {offsets = [0, 19], sizes = [8, 1], strides = [1, 1]} : vector<8x25xf32> to vector<8x1xf32>
    %29 = vector.extract_strided_slice %3 {offsets = [0, 20], sizes = [8, 1], strides = [1, 1]} : vector<8x25xf32> to vector<8x1xf32>
    %30 = vector.extract_strided_slice %3 {offsets = [0, 21], sizes = [8, 1], strides = [1, 1]} : vector<8x25xf32> to vector<8x1xf32>
    %31 = vector.extract_strided_slice %3 {offsets = [0, 22], sizes = [8, 1], strides = [1, 1]} : vector<8x25xf32> to vector<8x1xf32>
    %32 = vector.extract_strided_slice %3 {offsets = [0, 23], sizes = [8, 1], strides = [1, 1]} : vector<8x25xf32> to vector<8x1xf32>
    %33 = vector.extract_strided_slice %3 {offsets = [0, 24], sizes = [8, 1], strides = [1, 1]} : vector<8x25xf32> to vector<8x1xf32>
    %34 = vector.extract_strided_slice %4 {offsets = [0, 0], sizes = [8, 1], strides = [1, 1]} : vector<8x49xf32> to vector<8x1xf32>
    %35 = vector.extract_strided_slice %4 {offsets = [0, 1], sizes = [8, 1], strides = [1, 1]} : vector<8x49xf32> to vector<8x1xf32>
    %36 = vector.extract_strided_slice %4 {offsets = [0, 2], sizes = [8, 1], strides = [1, 1]} : vector<8x49xf32> to vector<8x1xf32>
    %37 = vector.extract_strided_slice %4 {offsets = [0, 3], sizes = [8, 1], strides = [1, 1]} : vector<8x49xf32> to vector<8x1xf32>
    %38 = vector.extract_strided_slice %4 {offsets = [0, 4], sizes = [8, 1], strides = [1, 1]} : vector<8x49xf32> to vector<8x1xf32>
    %39 = vector.extract_strided_slice %4 {offsets = [0, 5], sizes = [8, 1], strides = [1, 1]} : vector<8x49xf32> to vector<8x1xf32>
    %40 = vector.extract_strided_slice %4 {offsets = [0, 6], sizes = [8, 1], strides = [1, 1]} : vector<8x49xf32> to vector<8x1xf32>
    %41 = vector.extract_strided_slice %4 {offsets = [0, 7], sizes = [8, 1], strides = [1, 1]} : vector<8x49xf32> to vector<8x1xf32>
    %42 = vector.extract_strided_slice %4 {offsets = [0, 8], sizes = [8, 1], strides = [1, 1]} : vector<8x49xf32> to vector<8x1xf32>
    %43 = vector.extract_strided_slice %4 {offsets = [0, 9], sizes = [8, 1], strides = [1, 1]} : vector<8x49xf32> to vector<8x1xf32>
    %44 = vector.extract_strided_slice %4 {offsets = [0, 10], sizes = [8, 1], strides = [1, 1]} : vector<8x49xf32> to vector<8x1xf32>
    %45 = vector.extract_strided_slice %4 {offsets = [0, 11], sizes = [8, 1], strides = [1, 1]} : vector<8x49xf32> to vector<8x1xf32>
    %46 = vector.extract_strided_slice %4 {offsets = [0, 12], sizes = [8, 1], strides = [1, 1]} : vector<8x49xf32> to vector<8x1xf32>
    %47 = vector.extract_strided_slice %4 {offsets = [0, 13], sizes = [8, 1], strides = [1, 1]} : vector<8x49xf32> to vector<8x1xf32>
    %48 = vector.extract_strided_slice %4 {offsets = [0, 14], sizes = [8, 1], strides = [1, 1]} : vector<8x49xf32> to vector<8x1xf32>
    %49 = vector.extract_strided_slice %4 {offsets = [0, 15], sizes = [8, 1], strides = [1, 1]} : vector<8x49xf32> to vector<8x1xf32>
    %50 = vector.extract_strided_slice %4 {offsets = [0, 16], sizes = [8, 1], strides = [1, 1]} : vector<8x49xf32> to vector<8x1xf32>
    %51 = vector.extract_strided_slice %4 {offsets = [0, 17], sizes = [8, 1], strides = [1, 1]} : vector<8x49xf32> to vector<8x1xf32>
    %52 = vector.extract_strided_slice %4 {offsets = [0, 18], sizes = [8, 1], strides = [1, 1]} : vector<8x49xf32> to vector<8x1xf32>
    %53 = vector.extract_strided_slice %4 {offsets = [0, 19], sizes = [8, 1], strides = [1, 1]} : vector<8x49xf32> to vector<8x1xf32>
    %54 = vector.extract_strided_slice %4 {offsets = [0, 20], sizes = [8, 1], strides = [1, 1]} : vector<8x49xf32> to vector<8x1xf32>
    %55 = vector.extract_strided_slice %4 {offsets = [0, 21], sizes = [8, 1], strides = [1, 1]} : vector<8x49xf32> to vector<8x1xf32>
    %56 = vector.extract_strided_slice %4 {offsets = [0, 22], sizes = [8, 1], strides = [1, 1]} : vector<8x49xf32> to vector<8x1xf32>
    %57 = vector.extract_strided_slice %4 {offsets = [0, 23], sizes = [8, 1], strides = [1, 1]} : vector<8x49xf32> to vector<8x1xf32>
    %58 = vector.extract_strided_slice %4 {offsets = [0, 24], sizes = [8, 1], strides = [1, 1]} : vector<8x49xf32> to vector<8x1xf32>
    %59 = vector.extract_strided_slice %4 {offsets = [0, 25], sizes = [8, 1], strides = [1, 1]} : vector<8x49xf32> to vector<8x1xf32>
    %60 = vector.extract_strided_slice %4 {offsets = [0, 26], sizes = [8, 1], strides = [1, 1]} : vector<8x49xf32> to vector<8x1xf32>
    %61 = vector.extract_strided_slice %4 {offsets = [0, 27], sizes = [8, 1], strides = [1, 1]} : vector<8x49xf32> to vector<8x1xf32>
    %62 = vector.extract_strided_slice %4 {offsets = [0, 28], sizes = [8, 1], strides = [1, 1]} : vector<8x49xf32> to vector<8x1xf32>
    %63 = vector.extract_strided_slice %4 {offsets = [0, 29], sizes = [8, 1], strides = [1, 1]} : vector<8x49xf32> to vector<8x1xf32>
    %64 = vector.extract_strided_slice %4 {offsets = [0, 30], sizes = [8, 1], strides = [1, 1]} : vector<8x49xf32> to vector<8x1xf32>
    %65 = vector.extract_strided_slice %4 {offsets = [0, 31], sizes = [8, 1], strides = [1, 1]} : vector<8x49xf32> to vector<8x1xf32>
    %66 = vector.extract_strided_slice %4 {offsets = [0, 32], sizes = [8, 1], strides = [1, 1]} : vector<8x49xf32> to vector<8x1xf32>
    %67 = vector.extract_strided_slice %4 {offsets = [0, 33], sizes = [8, 1], strides = [1, 1]} : vector<8x49xf32> to vector<8x1xf32>
    %68 = vector.extract_strided_slice %4 {offsets = [0, 34], sizes = [8, 1], strides = [1, 1]} : vector<8x49xf32> to vector<8x1xf32>
    %69 = vector.extract_strided_slice %4 {offsets = [0, 35], sizes = [8, 1], strides = [1, 1]} : vector<8x49xf32> to vector<8x1xf32>
    %70 = vector.extract_strided_slice %4 {offsets = [0, 36], sizes = [8, 1], strides = [1, 1]} : vector<8x49xf32> to vector<8x1xf32>
    %71 = vector.extract_strided_slice %4 {offsets = [0, 37], sizes = [8, 1], strides = [1, 1]} : vector<8x49xf32> to vector<8x1xf32>
    %72 = vector.extract_strided_slice %4 {offsets = [0, 38], sizes = [8, 1], strides = [1, 1]} : vector<8x49xf32> to vector<8x1xf32>
    %73 = vector.extract_strided_slice %4 {offsets = [0, 39], sizes = [8, 1], strides = [1, 1]} : vector<8x49xf32> to vector<8x1xf32>
    %74 = vector.extract_strided_slice %4 {offsets = [0, 40], sizes = [8, 1], strides = [1, 1]} : vector<8x49xf32> to vector<8x1xf32>
    %75 = vector.extract_strided_slice %4 {offsets = [0, 41], sizes = [8, 1], strides = [1, 1]} : vector<8x49xf32> to vector<8x1xf32>
    %76 = vector.extract_strided_slice %4 {offsets = [0, 42], sizes = [8, 1], strides = [1, 1]} : vector<8x49xf32> to vector<8x1xf32>
    %77 = vector.extract_strided_slice %4 {offsets = [0, 43], sizes = [8, 1], strides = [1, 1]} : vector<8x49xf32> to vector<8x1xf32>
    %78 = vector.extract_strided_slice %4 {offsets = [0, 44], sizes = [8, 1], strides = [1, 1]} : vector<8x49xf32> to vector<8x1xf32>
    %79 = vector.extract_strided_slice %4 {offsets = [0, 45], sizes = [8, 1], strides = [1, 1]} : vector<8x49xf32> to vector<8x1xf32>
    %80 = vector.extract_strided_slice %4 {offsets = [0, 46], sizes = [8, 1], strides = [1, 1]} : vector<8x49xf32> to vector<8x1xf32>
    %81 = vector.extract_strided_slice %4 {offsets = [0, 47], sizes = [8, 1], strides = [1, 1]} : vector<8x49xf32> to vector<8x1xf32>
    %82 = vector.extract_strided_slice %4 {offsets = [0, 48], sizes = [8, 1], strides = [1, 1]} : vector<8x49xf32> to vector<8x1xf32>
    %c0_15 = arith.constant 0 : index
    %c0_16 = arith.constant 0 : index
    %c0_17 = arith.constant 0 : index
    %83 = vector.load %arg1[%c0_15, %c0_16, %c0_17] : memref<2x8x256xf32, #tpu.memory_space<vmem>>, vector<1x8x256xf32>
    %84 = vector.shape_cast %83 : vector<1x8x256xf32> to vector<8x256xf32>
    %85 = vector.extract_strided_slice %84 {offsets = [0, 0], sizes = [8, 16], strides = [1, 1]} : vector<8x256xf32> to vector<8x16xf32>
    %c0_18 = arith.constant 0 : index
    %c315 = arith.constant 315 : index
    %86 = vector.load %arg10[%c0_18, %c315] : memref<8x1174xf32, #tpu.memory_space<vmem>>, vector<8x16xf32>
    tpu.vector_store %arg10[%c0_18, %c315], %85 {strides = array<i32>} : memref<8x1174xf32, #tpu.memory_space<vmem>>, vector<8x16xf32>,
    %87 = vector.extract_strided_slice %84 {offsets = [0, 16], sizes = [8, 16], strides = [1, 1]} : vector<8x256xf32> to vector<8x16xf32>
    %c0_19 = arith.constant 0 : index
    %c349 = arith.constant 349 : index
    %88 = vector.load %arg10[%c0_19, %c349] : memref<8x1174xf32, #tpu.memory_space<vmem>>, vector<8x16xf32>
    tpu.vector_store %arg10[%c0_19, %c349], %87 {strides = array<i32>} : memref<8x1174xf32, #tpu.memory_space<vmem>>, vector<8x16xf32>,
    %89 = vector.extract_strided_slice %84 {offsets = [0, 32], sizes = [8, 16], strides = [1, 1]} : vector<8x256xf32> to vector<8x16xf32>
    %c0_20 = arith.constant 0 : index
    %c383 = arith.constant 383 : index
    %90 = vector.load %arg10[%c0_20, %c383] : memref<8x1174xf32, #tpu.memory_space<vmem>>, vector<8x16xf32>
    tpu.vector_store %arg10[%c0_20, %c383], %89 {strides = array<i32>} : memref<8x1174xf32, #tpu.memory_space<vmem>>, vector<8x16xf32>,
    %91 = vector.extract_strided_slice %84 {offsets = [0, 48], sizes = [8, 16], strides = [1, 1]} : vector<8x256xf32> to vector<8x16xf32>
    %c0_21 = arith.constant 0 : index
    %c417 = arith.constant 417 : index
    %92 = vector.load %arg10[%c0_21, %c417] : memref<8x1174xf32, #tpu.memory_space<vmem>>, vector<8x16xf32>
    tpu.vector_store %arg10[%c0_21, %c417], %91 {strides = array<i32>} : memref<8x1174xf32, #tpu.memory_space<vmem>>, vector<8x16xf32>,
    %93 = vector.extract_strided_slice %84 {offsets = [0, 64], sizes = [8, 16], strides = [1, 1]} : vector<8x256xf32> to vector<8x16xf32>
    %c0_22 = arith.constant 0 : index
    %c451 = arith.constant 451 : index
    %94 = vector.load %arg10[%c0_22, %c451] : memref<8x1174xf32, #tpu.memory_space<vmem>>, vector<8x16xf32>
    tpu.vector_store %arg10[%c0_22, %c451], %93 {strides = array<i32>} : memref<8x1174xf32, #tpu.memory_space<vmem>>, vector<8x16xf32>,
    %95 = vector.extract_strided_slice %84 {offsets = [0, 80], sizes = [8, 16], strides = [1, 1]} : vector<8x256xf32> to vector<8x16xf32>
    %c0_23 = arith.constant 0 : index
    %c485 = arith.constant 485 : index
    %96 = vector.load %arg10[%c0_23, %c485] : memref<8x1174xf32, #tpu.memory_space<vmem>>, vector<8x16xf32>
    tpu.vector_store %arg10[%c0_23, %c485], %95 {strides = array<i32>} : memref<8x1174xf32, #tpu.memory_space<vmem>>, vector<8x16xf32>,
    %97 = vector.extract_strided_slice %84 {offsets = [0, 96], sizes = [8, 16], strides = [1, 1]} : vector<8x256xf32> to vector<8x16xf32>
    %c0_24 = arith.constant 0 : index
    %c519 = arith.constant 519 : index
    %98 = vector.load %arg10[%c0_24, %c519] : memref<8x1174xf32, #tpu.memory_space<vmem>>, vector<8x16xf32>
    tpu.vector_store %arg10[%c0_24, %c519], %97 {strides = array<i32>} : memref<8x1174xf32, #tpu.memory_space<vmem>>, vector<8x16xf32>,
    %99 = vector.extract_strided_slice %84 {offsets = [0, 112], sizes = [8, 16], strides = [1, 1]} : vector<8x256xf32> to vector<8x16xf32>
    %c0_25 = arith.constant 0 : index
    %c553 = arith.constant 553 : index
    %100 = vector.load %arg10[%c0_25, %c553] : memref<8x1174xf32, #tpu.memory_space<vmem>>, vector<8x16xf32>
    tpu.vector_store %arg10[%c0_25, %c553], %99 {strides = array<i32>} : memref<8x1174xf32, #tpu.memory_space<vmem>>, vector<8x16xf32>,
    %101 = vector.extract_strided_slice %84 {offsets = [0, 128], sizes = [8, 16], strides = [1, 1]} : vector<8x256xf32> to vector<8x16xf32>
    %c0_26 = arith.constant 0 : index
    %c587 = arith.constant 587 : index
    %102 = vector.load %arg10[%c0_26, %c587] : memref<8x1174xf32, #tpu.memory_space<vmem>>, vector<8x16xf32>
    tpu.vector_store %arg10[%c0_26, %c587], %101 {strides = array<i32>} : memref<8x1174xf32, #tpu.memory_space<vmem>>, vector<8x16xf32>,
    %103 = vector.extract_strided_slice %84 {offsets = [0, 144], sizes = [8, 16], strides = [1, 1]} : vector<8x256xf32> to vector<8x16xf32>
    %c0_27 = arith.constant 0 : index
    %c621 = arith.constant 621 : index
    %104 = vector.load %arg10[%c0_27, %c621] : memref<8x1174xf32, #tpu.memory_space<vmem>>, vector<8x16xf32>
    tpu.vector_store %arg10[%c0_27, %c621], %103 {strides = array<i32>} : memref<8x1174xf32, #tpu.memory_space<vmem>>, vector<8x16xf32>,
    %105 = vector.extract_strided_slice %84 {offsets = [0, 160], sizes = [8, 16], strides = [1, 1]} : vector<8x256xf32> to vector<8x16xf32>
    %c0_28 = arith.constant 0 : index
    %c655 = arith.constant 655 : index
    %106 = vector.load %arg10[%c0_28, %c655] : memref<8x1174xf32, #tpu.memory_space<vmem>>, vector<8x16xf32>
    tpu.vector_store %arg10[%c0_28, %c655], %105 {strides = array<i32>} : memref<8x1174xf32, #tpu.memory_space<vmem>>, vector<8x16xf32>,
    %107 = vector.extract_strided_slice %84 {offsets = [0, 176], sizes = [8, 16], strides = [1, 1]} : vector<8x256xf32> to vector<8x16xf32>
    %c0_29 = arith.constant 0 : index
    %c689 = arith.constant 689 : index
    %108 = vector.load %arg10[%c0_29, %c689] : memref<8x1174xf32, #tpu.memory_space<vmem>>, vector<8x16xf32>
    tpu.vector_store %arg10[%c0_29, %c689], %107 {strides = array<i32>} : memref<8x1174xf32, #tpu.memory_space<vmem>>, vector<8x16xf32>,
    %109 = vector.extract_strided_slice %84 {offsets = [0, 192], sizes = [8, 16], strides = [1, 1]} : vector<8x256xf32> to vector<8x16xf32>
    %c0_30 = arith.constant 0 : index
    %c723 = arith.constant 723 : index
    %110 = vector.load %arg10[%c0_30, %c723] : memref<8x1174xf32, #tpu.memory_space<vmem>>, vector<8x16xf32>
    tpu.vector_store %arg10[%c0_30, %c723], %109 {strides = array<i32>} : memref<8x1174xf32, #tpu.memory_space<vmem>>, vector<8x16xf32>,
    %111 = vector.extract_strided_slice %84 {offsets = [0, 208], sizes = [8, 16], strides = [1, 1]} : vector<8x256xf32> to vector<8x16xf32>
    %c0_31 = arith.constant 0 : index
    %c757 = arith.constant 757 : index
    %112 = vector.load %arg10[%c0_31, %c757] : memref<8x1174xf32, #tpu.memory_space<vmem>>, vector<8x16xf32>
    tpu.vector_store %arg10[%c0_31, %c757], %111 {strides = array<i32>} : memref<8x1174xf32, #tpu.memory_space<vmem>>, vector<8x16xf32>,
    %113 = vector.extract_strided_slice %84 {offsets = [0, 224], sizes = [8, 16], strides = [1, 1]} : vector<8x256xf32> to vector<8x16xf32>
    %c0_32 = arith.constant 0 : index
    %c791 = arith.constant 791 : index
    %114 = vector.load %arg10[%c0_32, %c791] : memref<8x1174xf32, #tpu.memory_space<vmem>>, vector<8x16xf32>
    tpu.vector_store %arg10[%c0_32, %c791], %113 {strides = array<i32>} : memref<8x1174xf32, #tpu.memory_space<vmem>>, vector<8x16xf32>,
    %115 = vector.extract_strided_slice %84 {offsets = [0, 240], sizes = [8, 16], strides = [1, 1]} : vector<8x256xf32> to vector<8x16xf32>
    %c0_33 = arith.constant 0 : index
    %c825 = arith.constant 825 : index
    %116 = vector.load %arg10[%c0_33, %c825] : memref<8x1174xf32, #tpu.memory_space<vmem>>, vector<8x16xf32>
    tpu.vector_store %arg10[%c0_33, %c825], %115 {strides = array<i32>} : memref<8x1174xf32, #tpu.memory_space<vmem>>, vector<8x16xf32>,
    %cst_34 = arith.constant 0.000000e+00 : f32
    %117 = vector.broadcast %cst_34 : f32 to vector<8x544xf32>
    %c0_35 = arith.constant 0 : index
    %c245 = arith.constant 245 : index
    %118 = vector.load %arg10[%c0_35, %c245] : memref<8x1174xf32, #tpu.memory_space<vmem>>, vector<8x548xf32>
    %119 = vector.extract_strided_slice %118 {offsets = [0, 0], sizes = [8, 544], strides = [1, 1]} : vector<8x548xf32> to vector<8x544xf32>
    %120 = vector.broadcast %9 : vector<8x1xf32> to vector<8x544xf32>
    %121 = arith.mulf %119, %120 : vector<8x544xf32>
    %122 = arith.addf %117, %121 : vector<8x544xf32>
    %123 = vector.extract_strided_slice %118 {offsets = [0, 1], sizes = [8, 544], strides = [1, 1]} : vector<8x548xf32> to vector<8x544xf32>
    %124 = vector.broadcast %10 : vector<8x1xf32> to vector<8x544xf32>
    %125 = arith.mulf %123, %124 : vector<8x544xf32>
    %126 = arith.addf %122, %125 : vector<8x544xf32>
    %127 = vector.extract_strided_slice %118 {offsets = [0, 2], sizes = [8, 544], strides = [1, 1]} : vector<8x548xf32> to vector<8x544xf32>
    %128 = vector.broadcast %11 : vector<8x1xf32> to vector<8x544xf32>
    %129 = arith.mulf %127, %128 : vector<8x544xf32>
    %130 = arith.addf %126, %129 : vector<8x544xf32>
    %131 = vector.extract_strided_slice %118 {offsets = [0, 3], sizes = [8, 544], strides = [1, 1]} : vector<8x548xf32> to vector<8x544xf32>
    %132 = vector.broadcast %12 : vector<8x1xf32> to vector<8x544xf32>
    %133 = arith.mulf %131, %132 : vector<8x544xf32>
    %134 = arith.addf %130, %133 : vector<8x544xf32>
    %135 = vector.extract_strided_slice %118 {offsets = [0, 4], sizes = [8, 544], strides = [1, 1]} : vector<8x548xf32> to vector<8x544xf32>
    %136 = vector.broadcast %13 : vector<8x1xf32> to vector<8x544xf32>
    %137 = arith.mulf %135, %136 : vector<8x544xf32>
    %138 = arith.addf %134, %137 : vector<8x544xf32>
    %c0_36 = arith.constant 0 : index
    %c279 = arith.constant 279 : index
    %139 = vector.load %arg10[%c0_36, %c279] : memref<8x1174xf32, #tpu.memory_space<vmem>>, vector<8x548xf32>
    %140 = vector.extract_strided_slice %139 {offsets = [0, 0], sizes = [8, 544], strides = [1, 1]} : vector<8x548xf32> to vector<8x544xf32>
    %141 = vector.broadcast %14 : vector<8x1xf32> to vector<8x544xf32>
    %142 = arith.mulf %140, %141 : vector<8x544xf32>
    %143 = arith.addf %138, %142 : vector<8x544xf32>
    %144 = vector.extract_strided_slice %139 {offsets = [0, 1], sizes = [8, 544], strides = [1, 1]} : vector<8x548xf32> to vector<8x544xf32>
    %145 = vector.broadcast %15 : vector<8x1xf32> to vector<8x544xf32>
    %146 = arith.mulf %144, %145 : vector<8x544xf32>
    %147 = arith.addf %143, %146 : vector<8x544xf32>
    %148 = vector.extract_strided_slice %139 {offsets = [0, 2], sizes = [8, 544], strides = [1, 1]} : vector<8x548xf32> to vector<8x544xf32>
    %149 = vector.broadcast %16 : vector<8x1xf32> to vector<8x544xf32>
    %150 = arith.mulf %148, %149 : vector<8x544xf32>
    %151 = arith.addf %147, %150 : vector<8x544xf32>
    %152 = vector.extract_strided_slice %139 {offsets = [0, 3], sizes = [8, 544], strides = [1, 1]} : vector<8x548xf32> to vector<8x544xf32>
    %153 = vector.broadcast %17 : vector<8x1xf32> to vector<8x544xf32>
    %154 = arith.mulf %152, %153 : vector<8x544xf32>
    %155 = arith.addf %151, %154 : vector<8x544xf32>
    %156 = vector.extract_strided_slice %139 {offsets = [0, 4], sizes = [8, 544], strides = [1, 1]} : vector<8x548xf32> to vector<8x544xf32>
    %157 = vector.broadcast %18 : vector<8x1xf32> to vector<8x544xf32>
    %158 = arith.mulf %156, %157 : vector<8x544xf32>
    %159 = arith.addf %155, %158 : vector<8x544xf32>
    %c0_37 = arith.constant 0 : index
    %c313 = arith.constant 313 : index
    %160 = vector.load %arg10[%c0_37, %c313] : memref<8x1174xf32, #tpu.memory_space<vmem>>, vector<8x548xf32>
    %161 = vector.extract_strided_slice %160 {offsets = [0, 0], sizes = [8, 544], strides = [1, 1]} : vector<8x548xf32> to vector<8x544xf32>
    %162 = vector.broadcast %19 : vector<8x1xf32> to vector<8x544xf32>
    %163 = arith.mulf %161, %162 : vector<8x544xf32>
    %164 = arith.addf %159, %163 : vector<8x544xf32>
    %165 = vector.extract_strided_slice %160 {offsets = [0, 1], sizes = [8, 544], strides = [1, 1]} : vector<8x548xf32> to vector<8x544xf32>
    %166 = vector.broadcast %20 : vector<8x1xf32> to vector<8x544xf32>
    %167 = arith.mulf %165, %166 : vector<8x544xf32>
    %168 = arith.addf %164, %167 : vector<8x544xf32>
    %169 = vector.extract_strided_slice %160 {offsets = [0, 2], sizes = [8, 544], strides = [1, 1]} : vector<8x548xf32> to vector<8x544xf32>
    %170 = vector.broadcast %21 : vector<8x1xf32> to vector<8x544xf32>
    %171 = arith.mulf %169, %170 : vector<8x544xf32>
    %172 = arith.addf %168, %171 : vector<8x544xf32>
    %173 = vector.extract_strided_slice %160 {offsets = [0, 3], sizes = [8, 544], strides = [1, 1]} : vector<8x548xf32> to vector<8x544xf32>
    %174 = vector.broadcast %22 : vector<8x1xf32> to vector<8x544xf32>
    %175 = arith.mulf %173, %174 : vector<8x544xf32>
    %176 = arith.addf %172, %175 : vector<8x544xf32>
    %177 = vector.extract_strided_slice %160 {offsets = [0, 4], sizes = [8, 544], strides = [1, 1]} : vector<8x548xf32> to vector<8x544xf32>
    %178 = vector.broadcast %23 : vector<8x1xf32> to vector<8x544xf32>
    %179 = arith.mulf %177, %178 : vector<8x544xf32>
    %180 = arith.addf %176, %179 : vector<8x544xf32>
    %c0_38 = arith.constant 0 : index
    %c347 = arith.constant 347 : index
    %181 = vector.load %arg10[%c0_38, %c347] : memref<8x1174xf32, #tpu.memory_space<vmem>>, vector<8x548xf32>
    %182 = vector.extract_strided_slice %181 {offsets = [0, 0], sizes = [8, 544], strides = [1, 1]} : vector<8x548xf32> to vector<8x544xf32>
    %183 = vector.broadcast %24 : vector<8x1xf32> to vector<8x544xf32>
    %184 = arith.mulf %182, %183 : vector<8x544xf32>
    %185 = arith.addf %180, %184 : vector<8x544xf32>
    %186 = vector.extract_strided_slice %181 {offsets = [0, 1], sizes = [8, 544], strides = [1, 1]} : vector<8x548xf32> to vector<8x544xf32>
    %187 = vector.broadcast %25 : vector<8x1xf32> to vector<8x544xf32>
    %188 = arith.mulf %186, %187 : vector<8x544xf32>
    %189 = arith.addf %185, %188 : vector<8x544xf32>
    %190 = vector.extract_strided_slice %181 {offsets = [0, 2], sizes = [8, 544], strides = [1, 1]} : vector<8x548xf32> to vector<8x544xf32>
    %191 = vector.broadcast %26 : vector<8x1xf32> to vector<8x544xf32>
    %192 = arith.mulf %190, %191 : vector<8x544xf32>
    %193 = arith.addf %189, %192 : vector<8x544xf32>
    %194 = vector.extract_strided_slice %181 {offsets = [0, 3], sizes = [8, 544], strides = [1, 1]} : vector<8x548xf32> to vector<8x544xf32>
    %195 = vector.broadcast %27 : vector<8x1xf32> to vector<8x544xf32>
    %196 = arith.mulf %194, %195 : vector<8x544xf32>
    %197 = arith.addf %193, %196 : vector<8x544xf32>
    %198 = vector.extract_strided_slice %181 {offsets = [0, 4], sizes = [8, 544], strides = [1, 1]} : vector<8x548xf32> to vector<8x544xf32>
    %199 = vector.broadcast %28 : vector<8x1xf32> to vector<8x544xf32>
    %200 = arith.mulf %198, %199 : vector<8x544xf32>
    %201 = arith.addf %197, %200 : vector<8x544xf32>
    %c0_39 = arith.constant 0 : index
    %c381 = arith.constant 381 : index
    %202 = vector.load %arg10[%c0_39, %c381] : memref<8x1174xf32, #tpu.memory_space<vmem>>, vector<8x548xf32>
    %203 = vector.extract_strided_slice %202 {offsets = [0, 0], sizes = [8, 544], strides = [1, 1]} : vector<8x548xf32> to vector<8x544xf32>
    %204 = vector.broadcast %29 : vector<8x1xf32> to vector<8x544xf32>
    %205 = arith.mulf %203, %204 : vector<8x544xf32>
    %206 = arith.addf %201, %205 : vector<8x544xf32>
    %207 = vector.extract_strided_slice %202 {offsets = [0, 1], sizes = [8, 544], strides = [1, 1]} : vector<8x548xf32> to vector<8x544xf32>
    %208 = vector.broadcast %30 : vector<8x1xf32> to vector<8x544xf32>
    %209 = arith.mulf %207, %208 : vector<8x544xf32>
    %210 = arith.addf %206, %209 : vector<8x544xf32>
    %211 = vector.extract_strided_slice %202 {offsets = [0, 2], sizes = [8, 544], strides = [1, 1]} : vector<8x548xf32> to vector<8x544xf32>
    %212 = vector.broadcast %31 : vector<8x1xf32> to vector<8x544xf32>
    %213 = arith.mulf %211, %212 : vector<8x544xf32>
    %214 = arith.addf %210, %213 : vector<8x544xf32>
    %215 = vector.extract_strided_slice %202 {offsets = [0, 3], sizes = [8, 544], strides = [1, 1]} : vector<8x548xf32> to vector<8x544xf32>
    %216 = vector.broadcast %32 : vector<8x1xf32> to vector<8x544xf32>
    %217 = arith.mulf %215, %216 : vector<8x544xf32>
    %218 = arith.addf %214, %217 : vector<8x544xf32>
    %219 = vector.extract_strided_slice %202 {offsets = [0, 4], sizes = [8, 544], strides = [1, 1]} : vector<8x548xf32> to vector<8x544xf32>
    %220 = vector.broadcast %33 : vector<8x1xf32> to vector<8x544xf32>
    %221 = arith.mulf %219, %220 : vector<8x544xf32>
    %222 = arith.addf %218, %221 : vector<8x544xf32>
    %223 = vector.broadcast %5 : vector<8x1xf32> to vector<8x544xf32>
    %224 = arith.addf %222, %223 : vector<8x544xf32>
    %225 = vector.broadcast %2 : vector<1x544xf32> to vector<8x544xf32>
    %226 = arith.mulf %224, %225 : vector<8x544xf32>
    %c0_40 = arith.constant 0 : index
    %c315_41 = arith.constant 315 : index
    %227 = vector.load %arg10[%c0_40, %c315_41] : memref<8x1174xf32, #tpu.memory_space<vmem>>, vector<8x544xf32>
    tpu.vector_store %arg10[%c0_40, %c315_41], %226 {strides = array<i32>} : memref<8x1174xf32, #tpu.memory_space<vmem>>, vector<8x544xf32>,
    %cst_42 = arith.constant 0.000000e+00 : f32
    %228 = vector.broadcast %cst_42 : f32 to vector<8x544xf32>
    %c0_43 = arith.constant 0 : index
    %c0_44 = arith.constant 0 : index
    %229 = vector.load %arg10[%c0_43, %c0_44] : memref<8x1174xf32, #tpu.memory_space<vmem>>, vector<8x562xf32>
    %230 = vector.extract_strided_slice %229 {offsets = [0, 0], sizes = [8, 544], strides = [1, 1]} : vector<8x562xf32> to vector<8x544xf32>
    %231 = vector.broadcast %34 : vector<8x1xf32> to vector<8x544xf32>
    %232 = arith.mulf %230, %231 : vector<8x544xf32>
    %233 = arith.addf %228, %232 : vector<8x544xf32>
    %234 = vector.extract_strided_slice %229 {offsets = [0, 3], sizes = [8, 544], strides = [1, 1]} : vector<8x562xf32> to vector<8x544xf32>
    %235 = vector.broadcast %35 : vector<8x1xf32> to vector<8x544xf32>
    %236 = arith.mulf %234, %235 : vector<8x544xf32>
    %237 = arith.addf %233, %236 : vector<8x544xf32>
    %238 = vector.extract_strided_slice %229 {offsets = [0, 6], sizes = [8, 544], strides = [1, 1]} : vector<8x562xf32> to vector<8x544xf32>
    %239 = vector.broadcast %36 : vector<8x1xf32> to vector<8x544xf32>
    %240 = arith.mulf %238, %239 : vector<8x544xf32>
    %241 = arith.addf %237, %240 : vector<8x544xf32>
    %242 = vector.extract_strided_slice %229 {offsets = [0, 9], sizes = [8, 544], strides = [1, 1]} : vector<8x562xf32> to vector<8x544xf32>
    %243 = vector.broadcast %37 : vector<8x1xf32> to vector<8x544xf32>
    %244 = arith.mulf %242, %243 : vector<8x544xf32>
    %245 = arith.addf %241, %244 : vector<8x544xf32>
    %246 = vector.extract_strided_slice %229 {offsets = [0, 12], sizes = [8, 544], strides = [1, 1]} : vector<8x562xf32> to vector<8x544xf32>
    %247 = vector.broadcast %38 : vector<8x1xf32> to vector<8x544xf32>
    %248 = arith.mulf %246, %247 : vector<8x544xf32>
    %249 = arith.addf %245, %248 : vector<8x544xf32>
    %250 = vector.extract_strided_slice %229 {offsets = [0, 15], sizes = [8, 544], strides = [1, 1]} : vector<8x562xf32> to vector<8x544xf32>
    %251 = vector.broadcast %39 : vector<8x1xf32> to vector<8x544xf32>
    %252 = arith.mulf %250, %251 : vector<8x544xf32>
    %253 = arith.addf %249, %252 : vector<8x544xf32>
    %254 = vector.extract_strided_slice %229 {offsets = [0, 18], sizes = [8, 544], strides = [1, 1]} : vector<8x562xf32> to vector<8x544xf32>
    %255 = vector.broadcast %40 : vector<8x1xf32> to vector<8x544xf32>
    %256 = arith.mulf %254, %255 : vector<8x544xf32>
    %257 = arith.addf %253, %256 : vector<8x544xf32>
    %c0_45 = arith.constant 0 : index
    %c102 = arith.constant 102 : index
    %258 = vector.load %arg10[%c0_45, %c102] : memref<8x1174xf32, #tpu.memory_space<vmem>>, vector<8x562xf32>
    %259 = vector.extract_strided_slice %258 {offsets = [0, 0], sizes = [8, 544], strides = [1, 1]} : vector<8x562xf32> to vector<8x544xf32>
    %260 = vector.broadcast %41 : vector<8x1xf32> to vector<8x544xf32>
    %261 = arith.mulf %259, %260 : vector<8x544xf32>
    %262 = arith.addf %257, %261 : vector<8x544xf32>
    %263 = vector.extract_strided_slice %258 {offsets = [0, 3], sizes = [8, 544], strides = [1, 1]} : vector<8x562xf32> to vector<8x544xf32>
    %264 = vector.broadcast %42 : vector<8x1xf32> to vector<8x544xf32>
    %265 = arith.mulf %263, %264 : vector<8x544xf32>
    %266 = arith.addf %262, %265 : vector<8x544xf32>
    %267 = vector.extract_strided_slice %258 {offsets = [0, 6], sizes = [8, 544], strides = [1, 1]} : vector<8x562xf32> to vector<8x544xf32>
    %268 = vector.broadcast %43 : vector<8x1xf32> to vector<8x544xf32>
    %269 = arith.mulf %267, %268 : vector<8x544xf32>
    %270 = arith.addf %266, %269 : vector<8x544xf32>
    %271 = vector.extract_strided_slice %258 {offsets = [0, 9], sizes = [8, 544], strides = [1, 1]} : vector<8x562xf32> to vector<8x544xf32>
    %272 = vector.broadcast %44 : vector<8x1xf32> to vector<8x544xf32>
    %273 = arith.mulf %271, %272 : vector<8x544xf32>
    %274 = arith.addf %270, %273 : vector<8x544xf32>
    %275 = vector.extract_strided_slice %258 {offsets = [0, 12], sizes = [8, 544], strides = [1, 1]} : vector<8x562xf32> to vector<8x544xf32>
    %276 = vector.broadcast %45 : vector<8x1xf32> to vector<8x544xf32>
    %277 = arith.mulf %275, %276 : vector<8x544xf32>
    %278 = arith.addf %274, %277 : vector<8x544xf32>
    %279 = vector.extract_strided_slice %258 {offsets = [0, 15], sizes = [8, 544], strides = [1, 1]} : vector<8x562xf32> to vector<8x544xf32>
    %280 = vector.broadcast %46 : vector<8x1xf32> to vector<8x544xf32>
    %281 = arith.mulf %279, %280 : vector<8x544xf32>
    %282 = arith.addf %278, %281 : vector<8x544xf32>
    %283 = vector.extract_strided_slice %258 {offsets = [0, 18], sizes = [8, 544], strides = [1, 1]} : vector<8x562xf32> to vector<8x544xf32>
    %284 = vector.broadcast %47 : vector<8x1xf32> to vector<8x544xf32>
    %285 = arith.mulf %283, %284 : vector<8x544xf32>
    %286 = arith.addf %282, %285 : vector<8x544xf32>
    %c0_46 = arith.constant 0 : index
    %c204 = arith.constant 204 : index
    %287 = vector.load %arg10[%c0_46, %c204] : memref<8x1174xf32, #tpu.memory_space<vmem>>, vector<8x562xf32>
    %288 = vector.extract_strided_slice %287 {offsets = [0, 0], sizes = [8, 544], strides = [1, 1]} : vector<8x562xf32> to vector<8x544xf32>
    %289 = vector.broadcast %48 : vector<8x1xf32> to vector<8x544xf32>
    %290 = arith.mulf %288, %289 : vector<8x544xf32>
    %291 = arith.addf %286, %290 : vector<8x544xf32>
    %292 = vector.extract_strided_slice %287 {offsets = [0, 3], sizes = [8, 544], strides = [1, 1]} : vector<8x562xf32> to vector<8x544xf32>
    %293 = vector.broadcast %49 : vector<8x1xf32> to vector<8x544xf32>
    %294 = arith.mulf %292, %293 : vector<8x544xf32>
    %295 = arith.addf %291, %294 : vector<8x544xf32>
    %296 = vector.extract_strided_slice %287 {offsets = [0, 6], sizes = [8, 544], strides = [1, 1]} : vector<8x562xf32> to vector<8x544xf32>
    %297 = vector.broadcast %50 : vector<8x1xf32> to vector<8x544xf32>
    %298 = arith.mulf %296, %297 : vector<8x544xf32>
    %299 = arith.addf %295, %298 : vector<8x544xf32>
    %300 = vector.extract_strided_slice %287 {offsets = [0, 9], sizes = [8, 544], strides = [1, 1]} : vector<8x562xf32> to vector<8x544xf32>
    %301 = vector.broadcast %51 : vector<8x1xf32> to vector<8x544xf32>
    %302 = arith.mulf %300, %301 : vector<8x544xf32>
    %303 = arith.addf %299, %302 : vector<8x544xf32>
    %304 = vector.extract_strided_slice %287 {offsets = [0, 12], sizes = [8, 544], strides = [1, 1]} : vector<8x562xf32> to vector<8x544xf32>
    %305 = vector.broadcast %52 : vector<8x1xf32> to vector<8x544xf32>
    %306 = arith.mulf %304, %305 : vector<8x544xf32>
    %307 = arith.addf %303, %306 : vector<8x544xf32>
    %308 = vector.extract_strided_slice %287 {offsets = [0, 15], sizes = [8, 544], strides = [1, 1]} : vector<8x562xf32> to vector<8x544xf32>
    %309 = vector.broadcast %53 : vector<8x1xf32> to vector<8x544xf32>
    %310 = arith.mulf %308, %309 : vector<8x544xf32>
    %311 = arith.addf %307, %310 : vector<8x544xf32>
    %312 = vector.extract_strided_slice %287 {offsets = [0, 18], sizes = [8, 544], strides = [1, 1]} : vector<8x562xf32> to vector<8x544xf32>
    %313 = vector.broadcast %54 : vector<8x1xf32> to vector<8x544xf32>
    %314 = arith.mulf %312, %313 : vector<8x544xf32>
    %315 = arith.addf %311, %314 : vector<8x544xf32>
    %c0_47 = arith.constant 0 : index
    %c306 = arith.constant 306 : index
    %316 = vector.load %arg10[%c0_47, %c306] : memref<8x1174xf32, #tpu.memory_space<vmem>>, vector<8x562xf32>
    %317 = vector.extract_strided_slice %316 {offsets = [0, 0], sizes = [8, 544], strides = [1, 1]} : vector<8x562xf32> to vector<8x544xf32>
    %318 = vector.broadcast %55 : vector<8x1xf32> to vector<8x544xf32>
    %319 = arith.mulf %317, %318 : vector<8x544xf32>
    %320 = arith.addf %315, %319 : vector<8x544xf32>
    %321 = vector.extract_strided_slice %316 {offsets = [0, 3], sizes = [8, 544], strides = [1, 1]} : vector<8x562xf32> to vector<8x544xf32>
    %322 = vector.broadcast %56 : vector<8x1xf32> to vector<8x544xf32>
    %323 = arith.mulf %321, %322 : vector<8x544xf32>
    %324 = arith.addf %320, %323 : vector<8x544xf32>
    %325 = vector.extract_strided_slice %316 {offsets = [0, 6], sizes = [8, 544], strides = [1, 1]} : vector<8x562xf32> to vector<8x544xf32>
    %326 = vector.broadcast %57 : vector<8x1xf32> to vector<8x544xf32>
    %327 = arith.mulf %325, %326 : vector<8x544xf32>
    %328 = arith.addf %324, %327 : vector<8x544xf32>
    %329 = vector.extract_strided_slice %316 {offsets = [0, 9], sizes = [8, 544], strides = [1, 1]} : vector<8x562xf32> to vector<8x544xf32>
    %330 = vector.broadcast %58 : vector<8x1xf32> to vector<8x544xf32>
    %331 = arith.mulf %329, %330 : vector<8x544xf32>
    %332 = arith.addf %328, %331 : vector<8x544xf32>
    %333 = vector.extract_strided_slice %316 {offsets = [0, 12], sizes = [8, 544], strides = [1, 1]} : vector<8x562xf32> to vector<8x544xf32>
    %334 = vector.broadcast %59 : vector<8x1xf32> to vector<8x544xf32>
    %335 = arith.mulf %333, %334 : vector<8x544xf32>
    %336 = arith.addf %332, %335 : vector<8x544xf32>
    %337 = vector.extract_strided_slice %316 {offsets = [0, 15], sizes = [8, 544], strides = [1, 1]} : vector<8x562xf32> to vector<8x544xf32>
    %338 = vector.broadcast %60 : vector<8x1xf32> to vector<8x544xf32>
    %339 = arith.mulf %337, %338 : vector<8x544xf32>
    %340 = arith.addf %336, %339 : vector<8x544xf32>
    %341 = vector.extract_strided_slice %316 {offsets = [0, 18], sizes = [8, 544], strides = [1, 1]} : vector<8x562xf32> to vector<8x544xf32>
    %342 = vector.broadcast %61 : vector<8x1xf32> to vector<8x544xf32>
    %343 = arith.mulf %341, %342 : vector<8x544xf32>
    %344 = arith.addf %340, %343 : vector<8x544xf32>
    %c0_48 = arith.constant 0 : index
    %c408 = arith.constant 408 : index
    %345 = vector.load %arg10[%c0_48, %c408] : memref<8x1174xf32, #tpu.memory_space<vmem>>, vector<8x562xf32>
    %346 = vector.extract_strided_slice %345 {offsets = [0, 0], sizes = [8, 544], strides = [1, 1]} : vector<8x562xf32> to vector<8x544xf32>
    %347 = vector.broadcast %62 : vector<8x1xf32> to vector<8x544xf32>
    %348 = arith.mulf %346, %347 : vector<8x544xf32>
    %349 = arith.addf %344, %348 : vector<8x544xf32>
    %350 = vector.extract_strided_slice %345 {offsets = [0, 3], sizes = [8, 544], strides = [1, 1]} : vector<8x562xf32> to vector<8x544xf32>
    %351 = vector.broadcast %63 : vector<8x1xf32> to vector<8x544xf32>
    %352 = arith.mulf %350, %351 : vector<8x544xf32>
    %353 = arith.addf %349, %352 : vector<8x544xf32>
    %354 = vector.extract_strided_slice %345 {offsets = [0, 6], sizes = [8, 544], strides = [1, 1]} : vector<8x562xf32> to vector<8x544xf32>
    %355 = vector.broadcast %64 : vector<8x1xf32> to vector<8x544xf32>
    %356 = arith.mulf %354, %355 : vector<8x544xf32>
    %357 = arith.addf %353, %356 : vector<8x544xf32>
    %358 = vector.extract_strided_slice %345 {offsets = [0, 9], sizes = [8, 544], strides = [1, 1]} : vector<8x562xf32> to vector<8x544xf32>
    %359 = vector.broadcast %65 : vector<8x1xf32> to vector<8x544xf32>
    %360 = arith.mulf %358, %359 : vector<8x544xf32>
    %361 = arith.addf %357, %360 : vector<8x544xf32>
    %362 = vector.extract_strided_slice %345 {offsets = [0, 12], sizes = [8, 544], strides = [1, 1]} : vector<8x562xf32> to vector<8x544xf32>
    %363 = vector.broadcast %66 : vector<8x1xf32> to vector<8x544xf32>
    %364 = arith.mulf %362, %363 : vector<8x544xf32>
    %365 = arith.addf %361, %364 : vector<8x544xf32>
    %366 = vector.extract_strided_slice %345 {offsets = [0, 15], sizes = [8, 544], strides = [1, 1]} : vector<8x562xf32> to vector<8x544xf32>
    %367 = vector.broadcast %67 : vector<8x1xf32> to vector<8x544xf32>
    %368 = arith.mulf %366, %367 : vector<8x544xf32>
    %369 = arith.addf %365, %368 : vector<8x544xf32>
    %370 = vector.extract_strided_slice %345 {offsets = [0, 18], sizes = [8, 544], strides = [1, 1]} : vector<8x562xf32> to vector<8x544xf32>
    %371 = vector.broadcast %68 : vector<8x1xf32> to vector<8x544xf32>
    %372 = arith.mulf %370, %371 : vector<8x544xf32>
    %373 = arith.addf %369, %372 : vector<8x544xf32>
    %c0_49 = arith.constant 0 : index
    %c510 = arith.constant 510 : index
    %374 = vector.load %arg10[%c0_49, %c510] : memref<8x1174xf32, #tpu.memory_space<vmem>>, vector<8x562xf32>
    %375 = vector.extract_strided_slice %374 {offsets = [0, 0], sizes = [8, 544], strides = [1, 1]} : vector<8x562xf32> to vector<8x544xf32>
    %376 = vector.broadcast %69 : vector<8x1xf32> to vector<8x544xf32>
    %377 = arith.mulf %375, %376 : vector<8x544xf32>
    %378 = arith.addf %373, %377 : vector<8x544xf32>
    %379 = vector.extract_strided_slice %374 {offsets = [0, 3], sizes = [8, 544], strides = [1, 1]} : vector<8x562xf32> to vector<8x544xf32>
    %380 = vector.broadcast %70 : vector<8x1xf32> to vector<8x544xf32>
    %381 = arith.mulf %379, %380 : vector<8x544xf32>
    %382 = arith.addf %378, %381 : vector<8x544xf32>
    %383 = vector.extract_strided_slice %374 {offsets = [0, 6], sizes = [8, 544], strides = [1, 1]} : vector<8x562xf32> to vector<8x544xf32>
    %384 = vector.broadcast %71 : vector<8x1xf32> to vector<8x544xf32>
    %385 = arith.mulf %383, %384 : vector<8x544xf32>
    %386 = arith.addf %382, %385 : vector<8x544xf32>
    %387 = vector.extract_strided_slice %374 {offsets = [0, 9], sizes = [8, 544], strides = [1, 1]} : vector<8x562xf32> to vector<8x544xf32>
    %388 = vector.broadcast %72 : vector<8x1xf32> to vector<8x544xf32>
    %389 = arith.mulf %387, %388 : vector<8x544xf32>
    %390 = arith.addf %386, %389 : vector<8x544xf32>
    %391 = vector.extract_strided_slice %374 {offsets = [0, 12], sizes = [8, 544], strides = [1, 1]} : vector<8x562xf32> to vector<8x544xf32>
    %392 = vector.broadcast %73 : vector<8x1xf32> to vector<8x544xf32>
    %393 = arith.mulf %391, %392 : vector<8x544xf32>
    %394 = arith.addf %390, %393 : vector<8x544xf32>
    %395 = vector.extract_strided_slice %374 {offsets = [0, 15], sizes = [8, 544], strides = [1, 1]} : vector<8x562xf32> to vector<8x544xf32>
    %396 = vector.broadcast %74 : vector<8x1xf32> to vector<8x544xf32>
    %397 = arith.mulf %395, %396 : vector<8x544xf32>
    %398 = arith.addf %394, %397 : vector<8x544xf32>
    %399 = vector.extract_strided_slice %374 {offsets = [0, 18], sizes = [8, 544], strides = [1, 1]} : vector<8x562xf32> to vector<8x544xf32>
    %400 = vector.broadcast %75 : vector<8x1xf32> to vector<8x544xf32>
    %401 = arith.mulf %399, %400 : vector<8x544xf32>
    %402 = arith.addf %398, %401 : vector<8x544xf32>
    %c0_50 = arith.constant 0 : index
    %c612 = arith.constant 612 : index
    %403 = vector.load %arg10[%c0_50, %c612] : memref<8x1174xf32, #tpu.memory_space<vmem>>, vector<8x562xf32>
    %404 = vector.extract_strided_slice %403 {offsets = [0, 0], sizes = [8, 544], strides = [1, 1]} : vector<8x562xf32> to vector<8x544xf32>
    %405 = vector.broadcast %76 : vector<8x1xf32> to vector<8x544xf32>
    %406 = arith.mulf %404, %405 : vector<8x544xf32>
    %407 = arith.addf %402, %406 : vector<8x544xf32>
    %408 = vector.extract_strided_slice %403 {offsets = [0, 3], sizes = [8, 544], strides = [1, 1]} : vector<8x562xf32> to vector<8x544xf32>
    %409 = vector.broadcast %77 : vector<8x1xf32> to vector<8x544xf32>
    %410 = arith.mulf %408, %409 : vector<8x544xf32>
    %411 = arith.addf %407, %410 : vector<8x544xf32>
    %412 = vector.extract_strided_slice %403 {offsets = [0, 6], sizes = [8, 544], strides = [1, 1]} : vector<8x562xf32> to vector<8x544xf32>
    %413 = vector.broadcast %78 : vector<8x1xf32> to vector<8x544xf32>
    %414 = arith.mulf %412, %413 : vector<8x544xf32>
    %415 = arith.addf %411, %414 : vector<8x544xf32>
    %416 = vector.extract_strided_slice %403 {offsets = [0, 9], sizes = [8, 544], strides = [1, 1]} : vector<8x562xf32> to vector<8x544xf32>
    %417 = vector.broadcast %79 : vector<8x1xf32> to vector<8x544xf32>
    %418 = arith.mulf %416, %417 : vector<8x544xf32>
    %419 = arith.addf %415, %418 : vector<8x544xf32>
    %420 = vector.extract_strided_slice %403 {offsets = [0, 12], sizes = [8, 544], strides = [1, 1]} : vector<8x562xf32> to vector<8x544xf32>
    %421 = vector.broadcast %80 : vector<8x1xf32> to vector<8x544xf32>
    %422 = arith.mulf %420, %421 : vector<8x544xf32>
    %423 = arith.addf %419, %422 : vector<8x544xf32>
    %424 = vector.extract_strided_slice %403 {offsets = [0, 15], sizes = [8, 544], strides = [1, 1]} : vector<8x562xf32> to vector<8x544xf32>
    %425 = vector.broadcast %81 : vector<8x1xf32> to vector<8x544xf32>
    %426 = arith.mulf %424, %425 : vector<8x544xf32>
    %427 = arith.addf %423, %426 : vector<8x544xf32>
    %428 = vector.extract_strided_slice %403 {offsets = [0, 18], sizes = [8, 544], strides = [1, 1]} : vector<8x562xf32> to vector<8x544xf32>
    %429 = vector.broadcast %82 : vector<8x1xf32> to vector<8x544xf32>
    %430 = arith.mulf %428, %429 : vector<8x544xf32>
    %431 = arith.addf %427, %430 : vector<8x544xf32>
    %432 = vector.extract_strided_slice %431 {offsets = [0, 0], sizes = [8, 16], strides = [1, 1]} : vector<8x544xf32> to vector<8x16xf32>
    %433 = vector.extract_strided_slice %431 {offsets = [0, 34], sizes = [8, 16], strides = [1, 1]} : vector<8x544xf32> to vector<8x16xf32>
    %434 = vector.extract_strided_slice %431 {offsets = [0, 68], sizes = [8, 16], strides = [1, 1]} : vector<8x544xf32> to vector<8x16xf32>
    %435 = vector.extract_strided_slice %431 {offsets = [0, 102], sizes = [8, 16], strides = [1, 1]} : vector<8x544xf32> to vector<8x16xf32>
    %436 = vector.extract_strided_slice %431 {offsets = [0, 136], sizes = [8, 16], strides = [1, 1]} : vector<8x544xf32> to vector<8x16xf32>
    %437 = vector.extract_strided_slice %431 {offsets = [0, 170], sizes = [8, 16], strides = [1, 1]} : vector<8x544xf32> to vector<8x16xf32>
    %438 = vector.extract_strided_slice %431 {offsets = [0, 204], sizes = [8, 16], strides = [1, 1]} : vector<8x544xf32> to vector<8x16xf32>
    %439 = vector.extract_strided_slice %431 {offsets = [0, 238], sizes = [8, 16], strides = [1, 1]} : vector<8x544xf32> to vector<8x16xf32>
    %440 = vector.extract_strided_slice %431 {offsets = [0, 272], sizes = [8, 16], strides = [1, 1]} : vector<8x544xf32> to vector<8x16xf32>
    %441 = vector.extract_strided_slice %431 {offsets = [0, 306], sizes = [8, 16], strides = [1, 1]} : vector<8x544xf32> to vector<8x16xf32>
    %442 = vector.extract_strided_slice %431 {offsets = [0, 340], sizes = [8, 16], strides = [1, 1]} : vector<8x544xf32> to vector<8x16xf32>
    %443 = vector.extract_strided_slice %431 {offsets = [0, 374], sizes = [8, 16], strides = [1, 1]} : vector<8x544xf32> to vector<8x16xf32>
    %444 = vector.extract_strided_slice %431 {offsets = [0, 408], sizes = [8, 16], strides = [1, 1]} : vector<8x544xf32> to vector<8x16xf32>
    %445 = vector.extract_strided_slice %431 {offsets = [0, 442], sizes = [8, 16], strides = [1, 1]} : vector<8x544xf32> to vector<8x16xf32>
    %446 = vector.extract_strided_slice %431 {offsets = [0, 476], sizes = [8, 16], strides = [1, 1]} : vector<8x544xf32> to vector<8x16xf32>
    %447 = vector.extract_strided_slice %431 {offsets = [0, 510], sizes = [8, 16], strides = [1, 1]} : vector<8x544xf32> to vector<8x16xf32>
    %448 = tpu.concatenate %432, %433, %434, %435, %436, %437, %438, %439, %440, %441, %442, %443, %444, %445, %446, %447 in 1 : vector<8x16xf32>, vector<8x16xf32>, vector<8x16xf32>, vector<8x16xf32>, vector<8x16xf32>, vector<8x16xf32>, vector<8x16xf32>, vector<8x16xf32>, vector<8x16xf32>, vector<8x16xf32>, vector<8x16xf32>, vector<8x16xf32>, vector<8x16xf32>, vector<8x16xf32>, vector<8x16xf32>, vector<8x16xf32> -> vector<8x256xf32>
    %449 = vector.broadcast %6 : vector<8x1xf32> to vector<8x256xf32>
    %450 = arith.addf %448, %449 : vector<8x256xf32>
    %cst_51 = arith.constant 0.000000e+00 : f32
    %451 = vector.broadcast %cst_51 : f32 to vector<8x256xf32>
    %452 = vector.extract_strided_slice %450 {offsets = [0, 0], sizes = [1, 256], strides = [1, 1]} : vector<8x256xf32> to vector<1x256xf32>
    %453 = vector.extract_strided_slice %8 {offsets = [0, 0], sizes = [8, 1], strides = [1, 1]} : vector<8x8xf32> to vector<8x1xf32>
    %454 = vector.broadcast %452 : vector<1x256xf32> to vector<8x256xf32>
    %455 = vector.broadcast %453 : vector<8x1xf32> to vector<8x256xf32>
    %456 = arith.mulf %454, %455 : vector<8x256xf32>
    %457 = arith.addf %451, %456 : vector<8x256xf32>
    %458 = vector.extract_strided_slice %450 {offsets = [1, 0], sizes = [1, 256], strides = [1, 1]} : vector<8x256xf32> to vector<1x256xf32>
    %459 = vector.extract_strided_slice %8 {offsets = [0, 1], sizes = [8, 1], strides = [1, 1]} : vector<8x8xf32> to vector<8x1xf32>
    %460 = vector.broadcast %458 : vector<1x256xf32> to vector<8x256xf32>
    %461 = vector.broadcast %459 : vector<8x1xf32> to vector<8x256xf32>
    %462 = arith.mulf %460, %461 : vector<8x256xf32>
    %463 = arith.addf %457, %462 : vector<8x256xf32>
    %464 = vector.extract_strided_slice %450 {offsets = [2, 0], sizes = [1, 256], strides = [1, 1]} : vector<8x256xf32> to vector<1x256xf32>
    %465 = vector.extract_strided_slice %8 {offsets = [0, 2], sizes = [8, 1], strides = [1, 1]} : vector<8x8xf32> to vector<8x1xf32>
    %466 = vector.broadcast %464 : vector<1x256xf32> to vector<8x256xf32>
    %467 = vector.broadcast %465 : vector<8x1xf32> to vector<8x256xf32>
    %468 = arith.mulf %466, %467 : vector<8x256xf32>
    %469 = arith.addf %463, %468 : vector<8x256xf32>
    %470 = vector.extract_strided_slice %450 {offsets = [3, 0], sizes = [1, 256], strides = [1, 1]} : vector<8x256xf32> to vector<1x256xf32>
    %471 = vector.extract_strided_slice %8 {offsets = [0, 3], sizes = [8, 1], strides = [1, 1]} : vector<8x8xf32> to vector<8x1xf32>
    %472 = vector.broadcast %470 : vector<1x256xf32> to vector<8x256xf32>
    %473 = vector.broadcast %471 : vector<8x1xf32> to vector<8x256xf32>
    %474 = arith.mulf %472, %473 : vector<8x256xf32>
    %475 = arith.addf %469, %474 : vector<8x256xf32>
    %476 = vector.extract_strided_slice %450 {offsets = [4, 0], sizes = [1, 256], strides = [1, 1]} : vector<8x256xf32> to vector<1x256xf32>
    %477 = vector.extract_strided_slice %8 {offsets = [0, 4], sizes = [8, 1], strides = [1, 1]} : vector<8x8xf32> to vector<8x1xf32>
    %478 = vector.broadcast %476 : vector<1x256xf32> to vector<8x256xf32>
    %479 = vector.broadcast %477 : vector<8x1xf32> to vector<8x256xf32>
    %480 = arith.mulf %478, %479 : vector<8x256xf32>
    %481 = arith.addf %475, %480 : vector<8x256xf32>
    %482 = vector.extract_strided_slice %450 {offsets = [5, 0], sizes = [1, 256], strides = [1, 1]} : vector<8x256xf32> to vector<1x256xf32>
    %483 = vector.extract_strided_slice %8 {offsets = [0, 5], sizes = [8, 1], strides = [1, 1]} : vector<8x8xf32> to vector<8x1xf32>
    %484 = vector.broadcast %482 : vector<1x256xf32> to vector<8x256xf32>
    %485 = vector.broadcast %483 : vector<8x1xf32> to vector<8x256xf32>
    %486 = arith.mulf %484, %485 : vector<8x256xf32>
    %487 = arith.addf %481, %486 : vector<8x256xf32>
    %488 = vector.extract_strided_slice %450 {offsets = [6, 0], sizes = [1, 256], strides = [1, 1]} : vector<8x256xf32> to vector<1x256xf32>
    %489 = vector.extract_strided_slice %8 {offsets = [0, 6], sizes = [8, 1], strides = [1, 1]} : vector<8x8xf32> to vector<8x1xf32>
    %490 = vector.broadcast %488 : vector<1x256xf32> to vector<8x256xf32>
    %491 = vector.broadcast %489 : vector<8x1xf32> to vector<8x256xf32>
    %492 = arith.mulf %490, %491 : vector<8x256xf32>
    %493 = arith.addf %487, %492 : vector<8x256xf32>
    %494 = vector.extract_strided_slice %450 {offsets = [7, 0], sizes = [1, 256], strides = [1, 1]} : vector<8x256xf32> to vector<1x256xf32>
    %495 = vector.extract_strided_slice %8 {offsets = [0, 7], sizes = [8, 1], strides = [1, 1]} : vector<8x8xf32> to vector<8x1xf32>
    %496 = vector.broadcast %494 : vector<1x256xf32> to vector<8x256xf32>
    %497 = vector.broadcast %495 : vector<8x1xf32> to vector<8x256xf32>
    %498 = arith.mulf %496, %497 : vector<8x256xf32>
    %499 = arith.addf %493, %498 : vector<8x256xf32>
    %500 = vector.broadcast %7 : vector<8x1xf32> to vector<8x256xf32>
    %501 = arith.addf %499, %500 : vector<8x256xf32>
    %502 = arith.mulf %501, %84 : vector<8x256xf32>
    %c0_52 = arith.constant 0 : index
    %c0_53 = arith.constant 0 : index
    %c0_54 = arith.constant 0 : index
    %503 = vector.load %arg9[%c0_52, %c0_53, %c0_54] : memref<2x8x256xf32, #tpu.memory_space<vmem>>, vector<1x8x256xf32>
    %504 = vector.shape_cast %503 : vector<1x8x256xf32> to vector<8x256xf32>
    %505 = vector.shape_cast %502 : vector<8x256xf32> to vector<1x8x256xf32>
    tpu.vector_store %arg9[%c0_52, %c0_53, %c0_54], %505 {strides = array<i32>} : memref<2x8x256xf32, #tpu.memory_space<vmem>>, vector<1x8x256xf32>,
    %c1 = arith.constant 1 : index
    %c0_55 = arith.constant 0 : index
    %c0_56 = arith.constant 0 : index
    %506 = vector.load %arg1[%c1, %c0_55, %c0_56] : memref<2x8x256xf32, #tpu.memory_space<vmem>>, vector<1x8x256xf32>
    %507 = vector.shape_cast %506 : vector<1x8x256xf32> to vector<8x256xf32>
    %508 = vector.extract_strided_slice %507 {offsets = [0, 0], sizes = [8, 16], strides = [1, 1]} : vector<8x256xf32> to vector<8x16xf32>
    %c0_57 = arith.constant 0 : index
    %c315_58 = arith.constant 315 : index
    %509 = vector.load %arg10[%c0_57, %c315_58] : memref<8x1174xf32, #tpu.memory_space<vmem>>, vector<8x16xf32>
    tpu.vector_store %arg10[%c0_57, %c315_58], %508 {strides = array<i32>} : memref<8x1174xf32, #tpu.memory_space<vmem>>, vector<8x16xf32>,
    %510 = vector.extract_strided_slice %507 {offsets = [0, 16], sizes = [8, 16], strides = [1, 1]} : vector<8x256xf32> to vector<8x16xf32>
    %c0_59 = arith.constant 0 : index
    %c349_60 = arith.constant 349 : index
    %511 = vector.load %arg10[%c0_59, %c349_60] : memref<8x1174xf32, #tpu.memory_space<vmem>>, vector<8x16xf32>
    tpu.vector_store %arg10[%c0_59, %c349_60], %510 {strides = array<i32>} : memref<8x1174xf32, #tpu.memory_space<vmem>>, vector<8x16xf32>,
    %512 = vector.extract_strided_slice %507 {offsets = [0, 32], sizes = [8, 16], strides = [1, 1]} : vector<8x256xf32> to vector<8x16xf32>
    %c0_61 = arith.constant 0 : index
    %c383_62 = arith.constant 383 : index
    %513 = vector.load %arg10[%c0_61, %c383_62] : memref<8x1174xf32, #tpu.memory_space<vmem>>, vector<8x16xf32>
    tpu.vector_store %arg10[%c0_61, %c383_62], %512 {strides = array<i32>} : memref<8x1174xf32, #tpu.memory_space<vmem>>, vector<8x16xf32>,
    %514 = vector.extract_strided_slice %507 {offsets = [0, 48], sizes = [8, 16], strides = [1, 1]} : vector<8x256xf32> to vector<8x16xf32>
    %c0_63 = arith.constant 0 : index
    %c417_64 = arith.constant 417 : index
    %515 = vector.load %arg10[%c0_63, %c417_64] : memref<8x1174xf32, #tpu.memory_space<vmem>>, vector<8x16xf32>
    tpu.vector_store %arg10[%c0_63, %c417_64], %514 {strides = array<i32>} : memref<8x1174xf32, #tpu.memory_space<vmem>>, vector<8x16xf32>,
    %516 = vector.extract_strided_slice %507 {offsets = [0, 64], sizes = [8, 16], strides = [1, 1]} : vector<8x256xf32> to vector<8x16xf32>
    %c0_65 = arith.constant 0 : index
    %c451_66 = arith.constant 451 : index
    %517 = vector.load %arg10[%c0_65, %c451_66] : memref<8x1174xf32, #tpu.memory_space<vmem>>, vector<8x16xf32>
    tpu.vector_store %arg10[%c0_65, %c451_66], %516 {strides = array<i32>} : memref<8x1174xf32, #tpu.memory_space<vmem>>, vector<8x16xf32>,
    %518 = vector.extract_strided_slice %507 {offsets = [0, 80], sizes = [8, 16], strides = [1, 1]} : vector<8x256xf32> to vector<8x16xf32>
    %c0_67 = arith.constant 0 : index
    %c485_68 = arith.constant 485 : index
    %519 = vector.load %arg10[%c0_67, %c485_68] : memref<8x1174xf32, #tpu.memory_space<vmem>>, vector<8x16xf32>
    tpu.vector_store %arg10[%c0_67, %c485_68], %518 {strides = array<i32>} : memref<8x1174xf32, #tpu.memory_space<vmem>>, vector<8x16xf32>,
    %520 = vector.extract_strided_slice %507 {offsets = [0, 96], sizes = [8, 16], strides = [1, 1]} : vector<8x256xf32> to vector<8x16xf32>
    %c0_69 = arith.constant 0 : index
    %c519_70 = arith.constant 519 : index
    %521 = vector.load %arg10[%c0_69, %c519_70] : memref<8x1174xf32, #tpu.memory_space<vmem>>, vector<8x16xf32>
    tpu.vector_store %arg10[%c0_69, %c519_70], %520 {strides = array<i32>} : memref<8x1174xf32, #tpu.memory_space<vmem>>, vector<8x16xf32>,
    %522 = vector.extract_strided_slice %507 {offsets = [0, 112], sizes = [8, 16], strides = [1, 1]} : vector<8x256xf32> to vector<8x16xf32>
    %c0_71 = arith.constant 0 : index
    %c553_72 = arith.constant 553 : index
    %523 = vector.load %arg10[%c0_71, %c553_72] : memref<8x1174xf32, #tpu.memory_space<vmem>>, vector<8x16xf32>
    tpu.vector_store %arg10[%c0_71, %c553_72], %522 {strides = array<i32>} : memref<8x1174xf32, #tpu.memory_space<vmem>>, vector<8x16xf32>,
    %524 = vector.extract_strided_slice %507 {offsets = [0, 128], sizes = [8, 16], strides = [1, 1]} : vector<8x256xf32> to vector<8x16xf32>
    %c0_73 = arith.constant 0 : index
    %c587_74 = arith.constant 587 : index
    %525 = vector.load %arg10[%c0_73, %c587_74] : memref<8x1174xf32, #tpu.memory_space<vmem>>, vector<8x16xf32>
    tpu.vector_store %arg10[%c0_73, %c587_74], %524 {strides = array<i32>} : memref<8x1174xf32, #tpu.memory_space<vmem>>, vector<8x16xf32>,
    %526 = vector.extract_strided_slice %507 {offsets = [0, 144], sizes = [8, 16], strides = [1, 1]} : vector<8x256xf32> to vector<8x16xf32>
    %c0_75 = arith.constant 0 : index
    %c621_76 = arith.constant 621 : index
    %527 = vector.load %arg10[%c0_75, %c621_76] : memref<8x1174xf32, #tpu.memory_space<vmem>>, vector<8x16xf32>
    tpu.vector_store %arg10[%c0_75, %c621_76], %526 {strides = array<i32>} : memref<8x1174xf32, #tpu.memory_space<vmem>>, vector<8x16xf32>,
    %528 = vector.extract_strided_slice %507 {offsets = [0, 160], sizes = [8, 16], strides = [1, 1]} : vector<8x256xf32> to vector<8x16xf32>
    %c0_77 = arith.constant 0 : index
    %c655_78 = arith.constant 655 : index
    %529 = vector.load %arg10[%c0_77, %c655_78] : memref<8x1174xf32, #tpu.memory_space<vmem>>, vector<8x16xf32>
    tpu.vector_store %arg10[%c0_77, %c655_78], %528 {strides = array<i32>} : memref<8x1174xf32, #tpu.memory_space<vmem>>, vector<8x16xf32>,
    %530 = vector.extract_strided_slice %507 {offsets = [0, 176], sizes = [8, 16], strides = [1, 1]} : vector<8x256xf32> to vector<8x16xf32>
    %c0_79 = arith.constant 0 : index
    %c689_80 = arith.constant 689 : index
    %531 = vector.load %arg10[%c0_79, %c689_80] : memref<8x1174xf32, #tpu.memory_space<vmem>>, vector<8x16xf32>
    tpu.vector_store %arg10[%c0_79, %c689_80], %530 {strides = array<i32>} : memref<8x1174xf32, #tpu.memory_space<vmem>>, vector<8x16xf32>,
    %532 = vector.extract_strided_slice %507 {offsets = [0, 192], sizes = [8, 16], strides = [1, 1]} : vector<8x256xf32> to vector<8x16xf32>
    %c0_81 = arith.constant 0 : index
    %c723_82 = arith.constant 723 : index
    %533 = vector.load %arg10[%c0_81, %c723_82] : memref<8x1174xf32, #tpu.memory_space<vmem>>, vector<8x16xf32>
    tpu.vector_store %arg10[%c0_81, %c723_82], %532 {strides = array<i32>} : memref<8x1174xf32, #tpu.memory_space<vmem>>, vector<8x16xf32>,
    %534 = vector.extract_strided_slice %507 {offsets = [0, 208], sizes = [8, 16], strides = [1, 1]} : vector<8x256xf32> to vector<8x16xf32>
    %c0_83 = arith.constant 0 : index
    %c757_84 = arith.constant 757 : index
    %535 = vector.load %arg10[%c0_83, %c757_84] : memref<8x1174xf32, #tpu.memory_space<vmem>>, vector<8x16xf32>
    tpu.vector_store %arg10[%c0_83, %c757_84], %534 {strides = array<i32>} : memref<8x1174xf32, #tpu.memory_space<vmem>>, vector<8x16xf32>,
    %536 = vector.extract_strided_slice %507 {offsets = [0, 224], sizes = [8, 16], strides = [1, 1]} : vector<8x256xf32> to vector<8x16xf32>
    %c0_85 = arith.constant 0 : index
    %c791_86 = arith.constant 791 : index
    %537 = vector.load %arg10[%c0_85, %c791_86] : memref<8x1174xf32, #tpu.memory_space<vmem>>, vector<8x16xf32>
    tpu.vector_store %arg10[%c0_85, %c791_86], %536 {strides = array<i32>} : memref<8x1174xf32, #tpu.memory_space<vmem>>, vector<8x16xf32>,
    %538 = vector.extract_strided_slice %507 {offsets = [0, 240], sizes = [8, 16], strides = [1, 1]} : vector<8x256xf32> to vector<8x16xf32>
    %c0_87 = arith.constant 0 : index
    %c825_88 = arith.constant 825 : index
    %539 = vector.load %arg10[%c0_87, %c825_88] : memref<8x1174xf32, #tpu.memory_space<vmem>>, vector<8x16xf32>
    tpu.vector_store %arg10[%c0_87, %c825_88], %538 {strides = array<i32>} : memref<8x1174xf32, #tpu.memory_space<vmem>>, vector<8x16xf32>,
    %cst_89 = arith.constant 0.000000e+00 : f32
    %540 = vector.broadcast %cst_89 : f32 to vector<8x544xf32>
    %c0_90 = arith.constant 0 : index
    %c245_91 = arith.constant 245 : index
    %541 = vector.load %arg10[%c0_90, %c245_91] : memref<8x1174xf32, #tpu.memory_space<vmem>>, vector<8x548xf32>
    %542 = vector.extract_strided_slice %541 {offsets = [0, 0], sizes = [8, 544], strides = [1, 1]} : vector<8x548xf32> to vector<8x544xf32>
    %543 = vector.broadcast %9 : vector<8x1xf32> to vector<8x544xf32>
    %544 = arith.mulf %542, %543 : vector<8x544xf32>
    %545 = arith.addf %540, %544 : vector<8x544xf32>
    %546 = vector.extract_strided_slice %541 {offsets = [0, 1], sizes = [8, 544], strides = [1, 1]} : vector<8x548xf32> to vector<8x544xf32>
    %547 = vector.broadcast %10 : vector<8x1xf32> to vector<8x544xf32>
    %548 = arith.mulf %546, %547 : vector<8x544xf32>
    %549 = arith.addf %545, %548 : vector<8x544xf32>
    %550 = vector.extract_strided_slice %541 {offsets = [0, 2], sizes = [8, 544], strides = [1, 1]} : vector<8x548xf32> to vector<8x544xf32>
    %551 = vector.broadcast %11 : vector<8x1xf32> to vector<8x544xf32>
    %552 = arith.mulf %550, %551 : vector<8x544xf32>
    %553 = arith.addf %549, %552 : vector<8x544xf32>
    %554 = vector.extract_strided_slice %541 {offsets = [0, 3], sizes = [8, 544], strides = [1, 1]} : vector<8x548xf32> to vector<8x544xf32>
    %555 = vector.broadcast %12 : vector<8x1xf32> to vector<8x544xf32>
    %556 = arith.mulf %554, %555 : vector<8x544xf32>
    %557 = arith.addf %553, %556 : vector<8x544xf32>
    %558 = vector.extract_strided_slice %541 {offsets = [0, 4], sizes = [8, 544], strides = [1, 1]} : vector<8x548xf32> to vector<8x544xf32>
    %559 = vector.broadcast %13 : vector<8x1xf32> to vector<8x544xf32>
    %560 = arith.mulf %558, %559 : vector<8x544xf32>
    %561 = arith.addf %557, %560 : vector<8x544xf32>
    %c0_92 = arith.constant 0 : index
    %c279_93 = arith.constant 279 : index
    %562 = vector.load %arg10[%c0_92, %c279_93] : memref<8x1174xf32, #tpu.memory_space<vmem>>, vector<8x548xf32>
    %563 = vector.extract_strided_slice %562 {offsets = [0, 0], sizes = [8, 544], strides = [1, 1]} : vector<8x548xf32> to vector<8x544xf32>
    %564 = vector.broadcast %14 : vector<8x1xf32> to vector<8x544xf32>
    %565 = arith.mulf %563, %564 : vector<8x544xf32>
    %566 = arith.addf %561, %565 : vector<8x544xf32>
    %567 = vector.extract_strided_slice %562 {offsets = [0, 1], sizes = [8, 544], strides = [1, 1]} : vector<8x548xf32> to vector<8x544xf32>
    %568 = vector.broadcast %15 : vector<8x1xf32> to vector<8x544xf32>
    %569 = arith.mulf %567, %568 : vector<8x544xf32>
    %570 = arith.addf %566, %569 : vector<8x544xf32>
    %571 = vector.extract_strided_slice %562 {offsets = [0, 2], sizes = [8, 544], strides = [1, 1]} : vector<8x548xf32> to vector<8x544xf32>
    %572 = vector.broadcast %16 : vector<8x1xf32> to vector<8x544xf32>
    %573 = arith.mulf %571, %572 : vector<8x544xf32>
    %574 = arith.addf %570, %573 : vector<8x544xf32>
    %575 = vector.extract_strided_slice %562 {offsets = [0, 3], sizes = [8, 544], strides = [1, 1]} : vector<8x548xf32> to vector<8x544xf32>
    %576 = vector.broadcast %17 : vector<8x1xf32> to vector<8x544xf32>
    %577 = arith.mulf %575, %576 : vector<8x544xf32>
    %578 = arith.addf %574, %577 : vector<8x544xf32>
    %579 = vector.extract_strided_slice %562 {offsets = [0, 4], sizes = [8, 544], strides = [1, 1]} : vector<8x548xf32> to vector<8x544xf32>
    %580 = vector.broadcast %18 : vector<8x1xf32> to vector<8x544xf32>
    %581 = arith.mulf %579, %580 : vector<8x544xf32>
    %582 = arith.addf %578, %581 : vector<8x544xf32>
    %c0_94 = arith.constant 0 : index
    %c313_95 = arith.constant 313 : index
    %583 = vector.load %arg10[%c0_94, %c313_95] : memref<8x1174xf32, #tpu.memory_space<vmem>>, vector<8x548xf32>
    %584 = vector.extract_strided_slice %583 {offsets = [0, 0], sizes = [8, 544], strides = [1, 1]} : vector<8x548xf32> to vector<8x544xf32>
    %585 = vector.broadcast %19 : vector<8x1xf32> to vector<8x544xf32>
    %586 = arith.mulf %584, %585 : vector<8x544xf32>
    %587 = arith.addf %582, %586 : vector<8x544xf32>
    %588 = vector.extract_strided_slice %583 {offsets = [0, 1], sizes = [8, 544], strides = [1, 1]} : vector<8x548xf32> to vector<8x544xf32>
    %589 = vector.broadcast %20 : vector<8x1xf32> to vector<8x544xf32>
    %590 = arith.mulf %588, %589 : vector<8x544xf32>
    %591 = arith.addf %587, %590 : vector<8x544xf32>
    %592 = vector.extract_strided_slice %583 {offsets = [0, 2], sizes = [8, 544], strides = [1, 1]} : vector<8x548xf32> to vector<8x544xf32>
    %593 = vector.broadcast %21 : vector<8x1xf32> to vector<8x544xf32>
    %594 = arith.mulf %592, %593 : vector<8x544xf32>
    %595 = arith.addf %591, %594 : vector<8x544xf32>
    %596 = vector.extract_strided_slice %583 {offsets = [0, 3], sizes = [8, 544], strides = [1, 1]} : vector<8x548xf32> to vector<8x544xf32>
    %597 = vector.broadcast %22 : vector<8x1xf32> to vector<8x544xf32>
    %598 = arith.mulf %596, %597 : vector<8x544xf32>
    %599 = arith.addf %595, %598 : vector<8x544xf32>
    %600 = vector.extract_strided_slice %583 {offsets = [0, 4], sizes = [8, 544], strides = [1, 1]} : vector<8x548xf32> to vector<8x544xf32>
    %601 = vector.broadcast %23 : vector<8x1xf32> to vector<8x544xf32>
    %602 = arith.mulf %600, %601 : vector<8x544xf32>
    %603 = arith.addf %599, %602 : vector<8x544xf32>
    %c0_96 = arith.constant 0 : index
    %c347_97 = arith.constant 347 : index
    %604 = vector.load %arg10[%c0_96, %c347_97] : memref<8x1174xf32, #tpu.memory_space<vmem>>, vector<8x548xf32>
    %605 = vector.extract_strided_slice %604 {offsets = [0, 0], sizes = [8, 544], strides = [1, 1]} : vector<8x548xf32> to vector<8x544xf32>
    %606 = vector.broadcast %24 : vector<8x1xf32> to vector<8x544xf32>
    %607 = arith.mulf %605, %606 : vector<8x544xf32>
    %608 = arith.addf %603, %607 : vector<8x544xf32>
    %609 = vector.extract_strided_slice %604 {offsets = [0, 1], sizes = [8, 544], strides = [1, 1]} : vector<8x548xf32> to vector<8x544xf32>
    %610 = vector.broadcast %25 : vector<8x1xf32> to vector<8x544xf32>
    %611 = arith.mulf %609, %610 : vector<8x544xf32>
    %612 = arith.addf %608, %611 : vector<8x544xf32>
    %613 = vector.extract_strided_slice %604 {offsets = [0, 2], sizes = [8, 544], strides = [1, 1]} : vector<8x548xf32> to vector<8x544xf32>
    %614 = vector.broadcast %26 : vector<8x1xf32> to vector<8x544xf32>
    %615 = arith.mulf %613, %614 : vector<8x544xf32>
    %616 = arith.addf %612, %615 : vector<8x544xf32>
    %617 = vector.extract_strided_slice %604 {offsets = [0, 3], sizes = [8, 544], strides = [1, 1]} : vector<8x548xf32> to vector<8x544xf32>
    %618 = vector.broadcast %27 : vector<8x1xf32> to vector<8x544xf32>
    %619 = arith.mulf %617, %618 : vector<8x544xf32>
    %620 = arith.addf %616, %619 : vector<8x544xf32>
    %621 = vector.extract_strided_slice %604 {offsets = [0, 4], sizes = [8, 544], strides = [1, 1]} : vector<8x548xf32> to vector<8x544xf32>
    %622 = vector.broadcast %28 : vector<8x1xf32> to vector<8x544xf32>
    %623 = arith.mulf %621, %622 : vector<8x544xf32>
    %624 = arith.addf %620, %623 : vector<8x544xf32>
    %c0_98 = arith.constant 0 : index
    %c381_99 = arith.constant 381 : index
    %625 = vector.load %arg10[%c0_98, %c381_99] : memref<8x1174xf32, #tpu.memory_space<vmem>>, vector<8x548xf32>
    %626 = vector.extract_strided_slice %625 {offsets = [0, 0], sizes = [8, 544], strides = [1, 1]} : vector<8x548xf32> to vector<8x544xf32>
    %627 = vector.broadcast %29 : vector<8x1xf32> to vector<8x544xf32>
    %628 = arith.mulf %626, %627 : vector<8x544xf32>
    %629 = arith.addf %624, %628 : vector<8x544xf32>
    %630 = vector.extract_strided_slice %625 {offsets = [0, 1], sizes = [8, 544], strides = [1, 1]} : vector<8x548xf32> to vector<8x544xf32>
    %631 = vector.broadcast %30 : vector<8x1xf32> to vector<8x544xf32>
    %632 = arith.mulf %630, %631 : vector<8x544xf32>
    %633 = arith.addf %629, %632 : vector<8x544xf32>
    %634 = vector.extract_strided_slice %625 {offsets = [0, 2], sizes = [8, 544], strides = [1, 1]} : vector<8x548xf32> to vector<8x544xf32>
    %635 = vector.broadcast %31 : vector<8x1xf32> to vector<8x544xf32>
    %636 = arith.mulf %634, %635 : vector<8x544xf32>
    %637 = arith.addf %633, %636 : vector<8x544xf32>
    %638 = vector.extract_strided_slice %625 {offsets = [0, 3], sizes = [8, 544], strides = [1, 1]} : vector<8x548xf32> to vector<8x544xf32>
    %639 = vector.broadcast %32 : vector<8x1xf32> to vector<8x544xf32>
    %640 = arith.mulf %638, %639 : vector<8x544xf32>
    %641 = arith.addf %637, %640 : vector<8x544xf32>
    %642 = vector.extract_strided_slice %625 {offsets = [0, 4], sizes = [8, 544], strides = [1, 1]} : vector<8x548xf32> to vector<8x544xf32>
    %643 = vector.broadcast %33 : vector<8x1xf32> to vector<8x544xf32>
    %644 = arith.mulf %642, %643 : vector<8x544xf32>
    %645 = arith.addf %641, %644 : vector<8x544xf32>
    %646 = vector.broadcast %5 : vector<8x1xf32> to vector<8x544xf32>
    %647 = arith.addf %645, %646 : vector<8x544xf32>
    %648 = vector.broadcast %2 : vector<1x544xf32> to vector<8x544xf32>
    %649 = arith.mulf %647, %648 : vector<8x544xf32>
    %c0_100 = arith.constant 0 : index
    %c315_101 = arith.constant 315 : index
    %650 = vector.load %arg10[%c0_100, %c315_101] : memref<8x1174xf32, #tpu.memory_space<vmem>>, vector<8x544xf32>
    tpu.vector_store %arg10[%c0_100, %c315_101], %649 {strides = array<i32>} : memref<8x1174xf32, #tpu.memory_space<vmem>>, vector<8x544xf32>,
    %cst_102 = arith.constant 0.000000e+00 : f32
    %651 = vector.broadcast %cst_102 : f32 to vector<8x544xf32>
    %c0_103 = arith.constant 0 : index
    %c0_104 = arith.constant 0 : index
    %652 = vector.load %arg10[%c0_103, %c0_104] : memref<8x1174xf32, #tpu.memory_space<vmem>>, vector<8x562xf32>
    %653 = vector.extract_strided_slice %652 {offsets = [0, 0], sizes = [8, 544], strides = [1, 1]} : vector<8x562xf32> to vector<8x544xf32>
    %654 = vector.broadcast %34 : vector<8x1xf32> to vector<8x544xf32>
    %655 = arith.mulf %653, %654 : vector<8x544xf32>
    %656 = arith.addf %651, %655 : vector<8x544xf32>
    %657 = vector.extract_strided_slice %652 {offsets = [0, 3], sizes = [8, 544], strides = [1, 1]} : vector<8x562xf32> to vector<8x544xf32>
    %658 = vector.broadcast %35 : vector<8x1xf32> to vector<8x544xf32>
    %659 = arith.mulf %657, %658 : vector<8x544xf32>
    %660 = arith.addf %656, %659 : vector<8x544xf32>
    %661 = vector.extract_strided_slice %652 {offsets = [0, 6], sizes = [8, 544], strides = [1, 1]} : vector<8x562xf32> to vector<8x544xf32>
    %662 = vector.broadcast %36 : vector<8x1xf32> to vector<8x544xf32>
    %663 = arith.mulf %661, %662 : vector<8x544xf32>
    %664 = arith.addf %660, %663 : vector<8x544xf32>
    %665 = vector.extract_strided_slice %652 {offsets = [0, 9], sizes = [8, 544], strides = [1, 1]} : vector<8x562xf32> to vector<8x544xf32>
    %666 = vector.broadcast %37 : vector<8x1xf32> to vector<8x544xf32>
    %667 = arith.mulf %665, %666 : vector<8x544xf32>
    %668 = arith.addf %664, %667 : vector<8x544xf32>
    %669 = vector.extract_strided_slice %652 {offsets = [0, 12], sizes = [8, 544], strides = [1, 1]} : vector<8x562xf32> to vector<8x544xf32>
    %670 = vector.broadcast %38 : vector<8x1xf32> to vector<8x544xf32>
    %671 = arith.mulf %669, %670 : vector<8x544xf32>
    %672 = arith.addf %668, %671 : vector<8x544xf32>
    %673 = vector.extract_strided_slice %652 {offsets = [0, 15], sizes = [8, 544], strides = [1, 1]} : vector<8x562xf32> to vector<8x544xf32>
    %674 = vector.broadcast %39 : vector<8x1xf32> to vector<8x544xf32>
    %675 = arith.mulf %673, %674 : vector<8x544xf32>
    %676 = arith.addf %672, %675 : vector<8x544xf32>
    %677 = vector.extract_strided_slice %652 {offsets = [0, 18], sizes = [8, 544], strides = [1, 1]} : vector<8x562xf32> to vector<8x544xf32>
    %678 = vector.broadcast %40 : vector<8x1xf32> to vector<8x544xf32>
    %679 = arith.mulf %677, %678 : vector<8x544xf32>
    %680 = arith.addf %676, %679 : vector<8x544xf32>
    %c0_105 = arith.constant 0 : index
    %c102_106 = arith.constant 102 : index
    %681 = vector.load %arg10[%c0_105, %c102_106] : memref<8x1174xf32, #tpu.memory_space<vmem>>, vector<8x562xf32>
    %682 = vector.extract_strided_slice %681 {offsets = [0, 0], sizes = [8, 544], strides = [1, 1]} : vector<8x562xf32> to vector<8x544xf32>
    %683 = vector.broadcast %41 : vector<8x1xf32> to vector<8x544xf32>
    %684 = arith.mulf %682, %683 : vector<8x544xf32>
    %685 = arith.addf %680, %684 : vector<8x544xf32>
    %686 = vector.extract_strided_slice %681 {offsets = [0, 3], sizes = [8, 544], strides = [1, 1]} : vector<8x562xf32> to vector<8x544xf32>
    %687 = vector.broadcast %42 : vector<8x1xf32> to vector<8x544xf32>
    %688 = arith.mulf %686, %687 : vector<8x544xf32>
    %689 = arith.addf %685, %688 : vector<8x544xf32>
    %690 = vector.extract_strided_slice %681 {offsets = [0, 6], sizes = [8, 544], strides = [1, 1]} : vector<8x562xf32> to vector<8x544xf32>
    %691 = vector.broadcast %43 : vector<8x1xf32> to vector<8x544xf32>
    %692 = arith.mulf %690, %691 : vector<8x544xf32>
    %693 = arith.addf %689, %692 : vector<8x544xf32>
    %694 = vector.extract_strided_slice %681 {offsets = [0, 9], sizes = [8, 544], strides = [1, 1]} : vector<8x562xf32> to vector<8x544xf32>
    %695 = vector.broadcast %44 : vector<8x1xf32> to vector<8x544xf32>
    %696 = arith.mulf %694, %695 : vector<8x544xf32>
    %697 = arith.addf %693, %696 : vector<8x544xf32>
    %698 = vector.extract_strided_slice %681 {offsets = [0, 12], sizes = [8, 544], strides = [1, 1]} : vector<8x562xf32> to vector<8x544xf32>
    %699 = vector.broadcast %45 : vector<8x1xf32> to vector<8x544xf32>
    %700 = arith.mulf %698, %699 : vector<8x544xf32>
    %701 = arith.addf %697, %700 : vector<8x544xf32>
    %702 = vector.extract_strided_slice %681 {offsets = [0, 15], sizes = [8, 544], strides = [1, 1]} : vector<8x562xf32> to vector<8x544xf32>
    %703 = vector.broadcast %46 : vector<8x1xf32> to vector<8x544xf32>
    %704 = arith.mulf %702, %703 : vector<8x544xf32>
    %705 = arith.addf %701, %704 : vector<8x544xf32>
    %706 = vector.extract_strided_slice %681 {offsets = [0, 18], sizes = [8, 544], strides = [1, 1]} : vector<8x562xf32> to vector<8x544xf32>
    %707 = vector.broadcast %47 : vector<8x1xf32> to vector<8x544xf32>
    %708 = arith.mulf %706, %707 : vector<8x544xf32>
    %709 = arith.addf %705, %708 : vector<8x544xf32>
    %c0_107 = arith.constant 0 : index
    %c204_108 = arith.constant 204 : index
    %710 = vector.load %arg10[%c0_107, %c204_108] : memref<8x1174xf32, #tpu.memory_space<vmem>>, vector<8x562xf32>
    %711 = vector.extract_strided_slice %710 {offsets = [0, 0], sizes = [8, 544], strides = [1, 1]} : vector<8x562xf32> to vector<8x544xf32>
    %712 = vector.broadcast %48 : vector<8x1xf32> to vector<8x544xf32>
    %713 = arith.mulf %711, %712 : vector<8x544xf32>
    %714 = arith.addf %709, %713 : vector<8x544xf32>
    %715 = vector.extract_strided_slice %710 {offsets = [0, 3], sizes = [8, 544], strides = [1, 1]} : vector<8x562xf32> to vector<8x544xf32>
    %716 = vector.broadcast %49 : vector<8x1xf32> to vector<8x544xf32>
    %717 = arith.mulf %715, %716 : vector<8x544xf32>
    %718 = arith.addf %714, %717 : vector<8x544xf32>
    %719 = vector.extract_strided_slice %710 {offsets = [0, 6], sizes = [8, 544], strides = [1, 1]} : vector<8x562xf32> to vector<8x544xf32>
    %720 = vector.broadcast %50 : vector<8x1xf32> to vector<8x544xf32>
    %721 = arith.mulf %719, %720 : vector<8x544xf32>
    %722 = arith.addf %718, %721 : vector<8x544xf32>
    %723 = vector.extract_strided_slice %710 {offsets = [0, 9], sizes = [8, 544], strides = [1, 1]} : vector<8x562xf32> to vector<8x544xf32>
    %724 = vector.broadcast %51 : vector<8x1xf32> to vector<8x544xf32>
    %725 = arith.mulf %723, %724 : vector<8x544xf32>
    %726 = arith.addf %722, %725 : vector<8x544xf32>
    %727 = vector.extract_strided_slice %710 {offsets = [0, 12], sizes = [8, 544], strides = [1, 1]} : vector<8x562xf32> to vector<8x544xf32>
    %728 = vector.broadcast %52 : vector<8x1xf32> to vector<8x544xf32>
    %729 = arith.mulf %727, %728 : vector<8x544xf32>
    %730 = arith.addf %726, %729 : vector<8x544xf32>
    %731 = vector.extract_strided_slice %710 {offsets = [0, 15], sizes = [8, 544], strides = [1, 1]} : vector<8x562xf32> to vector<8x544xf32>
    %732 = vector.broadcast %53 : vector<8x1xf32> to vector<8x544xf32>
    %733 = arith.mulf %731, %732 : vector<8x544xf32>
    %734 = arith.addf %730, %733 : vector<8x544xf32>
    %735 = vector.extract_strided_slice %710 {offsets = [0, 18], sizes = [8, 544], strides = [1, 1]} : vector<8x562xf32> to vector<8x544xf32>
    %736 = vector.broadcast %54 : vector<8x1xf32> to vector<8x544xf32>
    %737 = arith.mulf %735, %736 : vector<8x544xf32>
    %738 = arith.addf %734, %737 : vector<8x544xf32>
    %c0_109 = arith.constant 0 : index
    %c306_110 = arith.constant 306 : index
    %739 = vector.load %arg10[%c0_109, %c306_110] : memref<8x1174xf32, #tpu.memory_space<vmem>>, vector<8x562xf32>
    %740 = vector.extract_strided_slice %739 {offsets = [0, 0], sizes = [8, 544], strides = [1, 1]} : vector<8x562xf32> to vector<8x544xf32>
    %741 = vector.broadcast %55 : vector<8x1xf32> to vector<8x544xf32>
    %742 = arith.mulf %740, %741 : vector<8x544xf32>
    %743 = arith.addf %738, %742 : vector<8x544xf32>
    %744 = vector.extract_strided_slice %739 {offsets = [0, 3], sizes = [8, 544], strides = [1, 1]} : vector<8x562xf32> to vector<8x544xf32>
    %745 = vector.broadcast %56 : vector<8x1xf32> to vector<8x544xf32>
    %746 = arith.mulf %744, %745 : vector<8x544xf32>
    %747 = arith.addf %743, %746 : vector<8x544xf32>
    %748 = vector.extract_strided_slice %739 {offsets = [0, 6], sizes = [8, 544], strides = [1, 1]} : vector<8x562xf32> to vector<8x544xf32>
    %749 = vector.broadcast %57 : vector<8x1xf32> to vector<8x544xf32>
    %750 = arith.mulf %748, %749 : vector<8x544xf32>
    %751 = arith.addf %747, %750 : vector<8x544xf32>
    %752 = vector.extract_strided_slice %739 {offsets = [0, 9], sizes = [8, 544], strides = [1, 1]} : vector<8x562xf32> to vector<8x544xf32>
    %753 = vector.broadcast %58 : vector<8x1xf32> to vector<8x544xf32>
    %754 = arith.mulf %752, %753 : vector<8x544xf32>
    %755 = arith.addf %751, %754 : vector<8x544xf32>
    %756 = vector.extract_strided_slice %739 {offsets = [0, 12], sizes = [8, 544], strides = [1, 1]} : vector<8x562xf32> to vector<8x544xf32>
    %757 = vector.broadcast %59 : vector<8x1xf32> to vector<8x544xf32>
    %758 = arith.mulf %756, %757 : vector<8x544xf32>
    %759 = arith.addf %755, %758 : vector<8x544xf32>
    %760 = vector.extract_strided_slice %739 {offsets = [0, 15], sizes = [8, 544], strides = [1, 1]} : vector<8x562xf32> to vector<8x544xf32>
    %761 = vector.broadcast %60 : vector<8x1xf32> to vector<8x544xf32>
    %762 = arith.mulf %760, %761 : vector<8x544xf32>
    %763 = arith.addf %759, %762 : vector<8x544xf32>
    %764 = vector.extract_strided_slice %739 {offsets = [0, 18], sizes = [8, 544], strides = [1, 1]} : vector<8x562xf32> to vector<8x544xf32>
    %765 = vector.broadcast %61 : vector<8x1xf32> to vector<8x544xf32>
    %766 = arith.mulf %764, %765 : vector<8x544xf32>
    %767 = arith.addf %763, %766 : vector<8x544xf32>
    %c0_111 = arith.constant 0 : index
    %c408_112 = arith.constant 408 : index
    %768 = vector.load %arg10[%c0_111, %c408_112] : memref<8x1174xf32, #tpu.memory_space<vmem>>, vector<8x562xf32>
    %769 = vector.extract_strided_slice %768 {offsets = [0, 0], sizes = [8, 544], strides = [1, 1]} : vector<8x562xf32> to vector<8x544xf32>
    %770 = vector.broadcast %62 : vector<8x1xf32> to vector<8x544xf32>
    %771 = arith.mulf %769, %770 : vector<8x544xf32>
    %772 = arith.addf %767, %771 : vector<8x544xf32>
    %773 = vector.extract_strided_slice %768 {offsets = [0, 3], sizes = [8, 544], strides = [1, 1]} : vector<8x562xf32> to vector<8x544xf32>
    %774 = vector.broadcast %63 : vector<8x1xf32> to vector<8x544xf32>
    %775 = arith.mulf %773, %774 : vector<8x544xf32>
    %776 = arith.addf %772, %775 : vector<8x544xf32>
    %777 = vector.extract_strided_slice %768 {offsets = [0, 6], sizes = [8, 544], strides = [1, 1]} : vector<8x562xf32> to vector<8x544xf32>
    %778 = vector.broadcast %64 : vector<8x1xf32> to vector<8x544xf32>
    %779 = arith.mulf %777, %778 : vector<8x544xf32>
    %780 = arith.addf %776, %779 : vector<8x544xf32>
    %781 = vector.extract_strided_slice %768 {offsets = [0, 9], sizes = [8, 544], strides = [1, 1]} : vector<8x562xf32> to vector<8x544xf32>
    %782 = vector.broadcast %65 : vector<8x1xf32> to vector<8x544xf32>
    %783 = arith.mulf %781, %782 : vector<8x544xf32>
    %784 = arith.addf %780, %783 : vector<8x544xf32>
    %785 = vector.extract_strided_slice %768 {offsets = [0, 12], sizes = [8, 544], strides = [1, 1]} : vector<8x562xf32> to vector<8x544xf32>
    %786 = vector.broadcast %66 : vector<8x1xf32> to vector<8x544xf32>
    %787 = arith.mulf %785, %786 : vector<8x544xf32>
    %788 = arith.addf %784, %787 : vector<8x544xf32>
    %789 = vector.extract_strided_slice %768 {offsets = [0, 15], sizes = [8, 544], strides = [1, 1]} : vector<8x562xf32> to vector<8x544xf32>
    %790 = vector.broadcast %67 : vector<8x1xf32> to vector<8x544xf32>
    %791 = arith.mulf %789, %790 : vector<8x544xf32>
    %792 = arith.addf %788, %791 : vector<8x544xf32>
    %793 = vector.extract_strided_slice %768 {offsets = [0, 18], sizes = [8, 544], strides = [1, 1]} : vector<8x562xf32> to vector<8x544xf32>
    %794 = vector.broadcast %68 : vector<8x1xf32> to vector<8x544xf32>
    %795 = arith.mulf %793, %794 : vector<8x544xf32>
    %796 = arith.addf %792, %795 : vector<8x544xf32>
    %c0_113 = arith.constant 0 : index
    %c510_114 = arith.constant 510 : index
    %797 = vector.load %arg10[%c0_113, %c510_114] : memref<8x1174xf32, #tpu.memory_space<vmem>>, vector<8x562xf32>
    %798 = vector.extract_strided_slice %797 {offsets = [0, 0], sizes = [8, 544], strides = [1, 1]} : vector<8x562xf32> to vector<8x544xf32>
    %799 = vector.broadcast %69 : vector<8x1xf32> to vector<8x544xf32>
    %800 = arith.mulf %798, %799 : vector<8x544xf32>
    %801 = arith.addf %796, %800 : vector<8x544xf32>
    %802 = vector.extract_strided_slice %797 {offsets = [0, 3], sizes = [8, 544], strides = [1, 1]} : vector<8x562xf32> to vector<8x544xf32>
    %803 = vector.broadcast %70 : vector<8x1xf32> to vector<8x544xf32>
    %804 = arith.mulf %802, %803 : vector<8x544xf32>
    %805 = arith.addf %801, %804 : vector<8x544xf32>
    %806 = vector.extract_strided_slice %797 {offsets = [0, 6], sizes = [8, 544], strides = [1, 1]} : vector<8x562xf32> to vector<8x544xf32>
    %807 = vector.broadcast %71 : vector<8x1xf32> to vector<8x544xf32>
    %808 = arith.mulf %806, %807 : vector<8x544xf32>
    %809 = arith.addf %805, %808 : vector<8x544xf32>
    %810 = vector.extract_strided_slice %797 {offsets = [0, 9], sizes = [8, 544], strides = [1, 1]} : vector<8x562xf32> to vector<8x544xf32>
    %811 = vector.broadcast %72 : vector<8x1xf32> to vector<8x544xf32>
    %812 = arith.mulf %810, %811 : vector<8x544xf32>
    %813 = arith.addf %809, %812 : vector<8x544xf32>
    %814 = vector.extract_strided_slice %797 {offsets = [0, 12], sizes = [8, 544], strides = [1, 1]} : vector<8x562xf32> to vector<8x544xf32>
    %815 = vector.broadcast %73 : vector<8x1xf32> to vector<8x544xf32>
    %816 = arith.mulf %814, %815 : vector<8x544xf32>
    %817 = arith.addf %813, %816 : vector<8x544xf32>
    %818 = vector.extract_strided_slice %797 {offsets = [0, 15], sizes = [8, 544], strides = [1, 1]} : vector<8x562xf32> to vector<8x544xf32>
    %819 = vector.broadcast %74 : vector<8x1xf32> to vector<8x544xf32>
    %820 = arith.mulf %818, %819 : vector<8x544xf32>
    %821 = arith.addf %817, %820 : vector<8x544xf32>
    %822 = vector.extract_strided_slice %797 {offsets = [0, 18], sizes = [8, 544], strides = [1, 1]} : vector<8x562xf32> to vector<8x544xf32>
    %823 = vector.broadcast %75 : vector<8x1xf32> to vector<8x544xf32>
    %824 = arith.mulf %822, %823 : vector<8x544xf32>
    %825 = arith.addf %821, %824 : vector<8x544xf32>
    %c0_115 = arith.constant 0 : index
    %c612_116 = arith.constant 612 : index
    %826 = vector.load %arg10[%c0_115, %c612_116] : memref<8x1174xf32, #tpu.memory_space<vmem>>, vector<8x562xf32>
    %827 = vector.extract_strided_slice %826 {offsets = [0, 0], sizes = [8, 544], strides = [1, 1]} : vector<8x562xf32> to vector<8x544xf32>
    %828 = vector.broadcast %76 : vector<8x1xf32> to vector<8x544xf32>
    %829 = arith.mulf %827, %828 : vector<8x544xf32>
    %830 = arith.addf %825, %829 : vector<8x544xf32>
    %831 = vector.extract_strided_slice %826 {offsets = [0, 3], sizes = [8, 544], strides = [1, 1]} : vector<8x562xf32> to vector<8x544xf32>
    %832 = vector.broadcast %77 : vector<8x1xf32> to vector<8x544xf32>
    %833 = arith.mulf %831, %832 : vector<8x544xf32>
    %834 = arith.addf %830, %833 : vector<8x544xf32>
    %835 = vector.extract_strided_slice %826 {offsets = [0, 6], sizes = [8, 544], strides = [1, 1]} : vector<8x562xf32> to vector<8x544xf32>
    %836 = vector.broadcast %78 : vector<8x1xf32> to vector<8x544xf32>
    %837 = arith.mulf %835, %836 : vector<8x544xf32>
    %838 = arith.addf %834, %837 : vector<8x544xf32>
    %839 = vector.extract_strided_slice %826 {offsets = [0, 9], sizes = [8, 544], strides = [1, 1]} : vector<8x562xf32> to vector<8x544xf32>
    %840 = vector.broadcast %79 : vector<8x1xf32> to vector<8x544xf32>
    %841 = arith.mulf %839, %840 : vector<8x544xf32>
    %842 = arith.addf %838, %841 : vector<8x544xf32>
    %843 = vector.extract_strided_slice %826 {offsets = [0, 12], sizes = [8, 544], strides = [1, 1]} : vector<8x562xf32> to vector<8x544xf32>
    %844 = vector.broadcast %80 : vector<8x1xf32> to vector<8x544xf32>
    %845 = arith.mulf %843, %844 : vector<8x544xf32>
    %846 = arith.addf %842, %845 : vector<8x544xf32>
    %847 = vector.extract_strided_slice %826 {offsets = [0, 15], sizes = [8, 544], strides = [1, 1]} : vector<8x562xf32> to vector<8x544xf32>
    %848 = vector.broadcast %81 : vector<8x1xf32> to vector<8x544xf32>
    %849 = arith.mulf %847, %848 : vector<8x544xf32>
    %850 = arith.addf %846, %849 : vector<8x544xf32>
    %851 = vector.extract_strided_slice %826 {offsets = [0, 18], sizes = [8, 544], strides = [1, 1]} : vector<8x562xf32> to vector<8x544xf32>
    %852 = vector.broadcast %82 : vector<8x1xf32> to vector<8x544xf32>
    %853 = arith.mulf %851, %852 : vector<8x544xf32>
    %854 = arith.addf %850, %853 : vector<8x544xf32>
    %855 = vector.extract_strided_slice %854 {offsets = [0, 0], sizes = [8, 16], strides = [1, 1]} : vector<8x544xf32> to vector<8x16xf32>
    %856 = vector.extract_strided_slice %854 {offsets = [0, 34], sizes = [8, 16], strides = [1, 1]} : vector<8x544xf32> to vector<8x16xf32>
    %857 = vector.extract_strided_slice %854 {offsets = [0, 68], sizes = [8, 16], strides = [1, 1]} : vector<8x544xf32> to vector<8x16xf32>
    %858 = vector.extract_strided_slice %854 {offsets = [0, 102], sizes = [8, 16], strides = [1, 1]} : vector<8x544xf32> to vector<8x16xf32>
    %859 = vector.extract_strided_slice %854 {offsets = [0, 136], sizes = [8, 16], strides = [1, 1]} : vector<8x544xf32> to vector<8x16xf32>
    %860 = vector.extract_strided_slice %854 {offsets = [0, 170], sizes = [8, 16], strides = [1, 1]} : vector<8x544xf32> to vector<8x16xf32>
    %861 = vector.extract_strided_slice %854 {offsets = [0, 204], sizes = [8, 16], strides = [1, 1]} : vector<8x544xf32> to vector<8x16xf32>
    %862 = vector.extract_strided_slice %854 {offsets = [0, 238], sizes = [8, 16], strides = [1, 1]} : vector<8x544xf32> to vector<8x16xf32>
    %863 = vector.extract_strided_slice %854 {offsets = [0, 272], sizes = [8, 16], strides = [1, 1]} : vector<8x544xf32> to vector<8x16xf32>
    %864 = vector.extract_strided_slice %854 {offsets = [0, 306], sizes = [8, 16], strides = [1, 1]} : vector<8x544xf32> to vector<8x16xf32>
    %865 = vector.extract_strided_slice %854 {offsets = [0, 340], sizes = [8, 16], strides = [1, 1]} : vector<8x544xf32> to vector<8x16xf32>
    %866 = vector.extract_strided_slice %854 {offsets = [0, 374], sizes = [8, 16], strides = [1, 1]} : vector<8x544xf32> to vector<8x16xf32>
    %867 = vector.extract_strided_slice %854 {offsets = [0, 408], sizes = [8, 16], strides = [1, 1]} : vector<8x544xf32> to vector<8x16xf32>
    %868 = vector.extract_strided_slice %854 {offsets = [0, 442], sizes = [8, 16], strides = [1, 1]} : vector<8x544xf32> to vector<8x16xf32>
    %869 = vector.extract_strided_slice %854 {offsets = [0, 476], sizes = [8, 16], strides = [1, 1]} : vector<8x544xf32> to vector<8x16xf32>
    %870 = vector.extract_strided_slice %854 {offsets = [0, 510], sizes = [8, 16], strides = [1, 1]} : vector<8x544xf32> to vector<8x16xf32>
    %871 = tpu.concatenate %855, %856, %857, %858, %859, %860, %861, %862, %863, %864, %865, %866, %867, %868, %869, %870 in 1 : vector<8x16xf32>, vector<8x16xf32>, vector<8x16xf32>, vector<8x16xf32>, vector<8x16xf32>, vector<8x16xf32>, vector<8x16xf32>, vector<8x16xf32>, vector<8x16xf32>, vector<8x16xf32>, vector<8x16xf32>, vector<8x16xf32>, vector<8x16xf32>, vector<8x16xf32>, vector<8x16xf32>, vector<8x16xf32> -> vector<8x256xf32>
    %872 = vector.broadcast %6 : vector<8x1xf32> to vector<8x256xf32>
    %873 = arith.addf %871, %872 : vector<8x256xf32>
    %cst_117 = arith.constant 0.000000e+00 : f32
    %874 = vector.broadcast %cst_117 : f32 to vector<8x256xf32>
    %875 = vector.extract_strided_slice %873 {offsets = [0, 0], sizes = [1, 256], strides = [1, 1]} : vector<8x256xf32> to vector<1x256xf32>
    %876 = vector.extract_strided_slice %8 {offsets = [0, 0], sizes = [8, 1], strides = [1, 1]} : vector<8x8xf32> to vector<8x1xf32>
    %877 = vector.broadcast %875 : vector<1x256xf32> to vector<8x256xf32>
    %878 = vector.broadcast %876 : vector<8x1xf32> to vector<8x256xf32>
    %879 = arith.mulf %877, %878 : vector<8x256xf32>
    %880 = arith.addf %874, %879 : vector<8x256xf32>
    %881 = vector.extract_strided_slice %873 {offsets = [1, 0], sizes = [1, 256], strides = [1, 1]} : vector<8x256xf32> to vector<1x256xf32>
    %882 = vector.extract_strided_slice %8 {offsets = [0, 1], sizes = [8, 1], strides = [1, 1]} : vector<8x8xf32> to vector<8x1xf32>
    %883 = vector.broadcast %881 : vector<1x256xf32> to vector<8x256xf32>
    %884 = vector.broadcast %882 : vector<8x1xf32> to vector<8x256xf32>
    %885 = arith.mulf %883, %884 : vector<8x256xf32>
    %886 = arith.addf %880, %885 : vector<8x256xf32>
    %887 = vector.extract_strided_slice %873 {offsets = [2, 0], sizes = [1, 256], strides = [1, 1]} : vector<8x256xf32> to vector<1x256xf32>
    %888 = vector.extract_strided_slice %8 {offsets = [0, 2], sizes = [8, 1], strides = [1, 1]} : vector<8x8xf32> to vector<8x1xf32>
    %889 = vector.broadcast %887 : vector<1x256xf32> to vector<8x256xf32>
    %890 = vector.broadcast %888 : vector<8x1xf32> to vector<8x256xf32>
    %891 = arith.mulf %889, %890 : vector<8x256xf32>
    %892 = arith.addf %886, %891 : vector<8x256xf32>
    %893 = vector.extract_strided_slice %873 {offsets = [3, 0], sizes = [1, 256], strides = [1, 1]} : vector<8x256xf32> to vector<1x256xf32>
    %894 = vector.extract_strided_slice %8 {offsets = [0, 3], sizes = [8, 1], strides = [1, 1]} : vector<8x8xf32> to vector<8x1xf32>
    %895 = vector.broadcast %893 : vector<1x256xf32> to vector<8x256xf32>
    %896 = vector.broadcast %894 : vector<8x1xf32> to vector<8x256xf32>
    %897 = arith.mulf %895, %896 : vector<8x256xf32>
    %898 = arith.addf %892, %897 : vector<8x256xf32>
    %899 = vector.extract_strided_slice %873 {offsets = [4, 0], sizes = [1, 256], strides = [1, 1]} : vector<8x256xf32> to vector<1x256xf32>
    %900 = vector.extract_strided_slice %8 {offsets = [0, 4], sizes = [8, 1], strides = [1, 1]} : vector<8x8xf32> to vector<8x1xf32>
    %901 = vector.broadcast %899 : vector<1x256xf32> to vector<8x256xf32>
    %902 = vector.broadcast %900 : vector<8x1xf32> to vector<8x256xf32>
    %903 = arith.mulf %901, %902 : vector<8x256xf32>
    %904 = arith.addf %898, %903 : vector<8x256xf32>
    %905 = vector.extract_strided_slice %873 {offsets = [5, 0], sizes = [1, 256], strides = [1, 1]} : vector<8x256xf32> to vector<1x256xf32>
    %906 = vector.extract_strided_slice %8 {offsets = [0, 5], sizes = [8, 1], strides = [1, 1]} : vector<8x8xf32> to vector<8x1xf32>
    %907 = vector.broadcast %905 : vector<1x256xf32> to vector<8x256xf32>
    %908 = vector.broadcast %906 : vector<8x1xf32> to vector<8x256xf32>
    %909 = arith.mulf %907, %908 : vector<8x256xf32>
    %910 = arith.addf %904, %909 : vector<8x256xf32>
    %911 = vector.extract_strided_slice %873 {offsets = [6, 0], sizes = [1, 256], strides = [1, 1]} : vector<8x256xf32> to vector<1x256xf32>
    %912 = vector.extract_strided_slice %8 {offsets = [0, 6], sizes = [8, 1], strides = [1, 1]} : vector<8x8xf32> to vector<8x1xf32>
    %913 = vector.broadcast %911 : vector<1x256xf32> to vector<8x256xf32>
    %914 = vector.broadcast %912 : vector<8x1xf32> to vector<8x256xf32>
    %915 = arith.mulf %913, %914 : vector<8x256xf32>
    %916 = arith.addf %910, %915 : vector<8x256xf32>
    %917 = vector.extract_strided_slice %873 {offsets = [7, 0], sizes = [1, 256], strides = [1, 1]} : vector<8x256xf32> to vector<1x256xf32>
    %918 = vector.extract_strided_slice %8 {offsets = [0, 7], sizes = [8, 1], strides = [1, 1]} : vector<8x8xf32> to vector<8x1xf32>
    %919 = vector.broadcast %917 : vector<1x256xf32> to vector<8x256xf32>
    %920 = vector.broadcast %918 : vector<8x1xf32> to vector<8x256xf32>
    %921 = arith.mulf %919, %920 : vector<8x256xf32>
    %922 = arith.addf %916, %921 : vector<8x256xf32>
    %923 = vector.broadcast %7 : vector<8x1xf32> to vector<8x256xf32>
    %924 = arith.addf %922, %923 : vector<8x256xf32>
    %925 = arith.mulf %924, %507 : vector<8x256xf32>
    %c1_118 = arith.constant 1 : index
    %c0_119 = arith.constant 0 : index
    %c0_120 = arith.constant 0 : index
    %926 = vector.load %arg9[%c1_118, %c0_119, %c0_120] : memref<2x8x256xf32, #tpu.memory_space<vmem>>, vector<1x8x256xf32>
    %927 = vector.shape_cast %926 : vector<1x8x256xf32> to vector<8x256xf32>
    %928 = vector.shape_cast %925 : vector<8x256xf32> to vector<1x8x256xf32>
    tpu.vector_store %arg9[%c1_118, %c0_119, %c0_120], %928 {strides = array<i32>} : memref<2x8x256xf32, #tpu.memory_space<vmem>>, vector<1x8x256xf32>,
    return
  }
  func.func @transform_0(%arg0: i32) -> (i32, i32, i32) {
    %c0_i32 = arith.constant 0 : i32
    %c0_i32_0 = arith.constant 0 : i32
    %c0_i32_1 = arith.constant 0 : i32
    return %arg0, %c0_i32, %c0_i32_0 : i32, i32, i32
  }
  func.func @transform_1(%arg0: i32) -> (i32, i32) {
    %c0_i32 = arith.constant 0 : i32
    %c0_i32_0 = arith.constant 0 : i32
    %c0_i32_1 = arith.constant 0 : i32
    return %c0_i32, %c0_i32_0 : i32, i32
  }
  func.func @transform_2(%arg0: i32) -> (i32, i32) {
    %c0_i32 = arith.constant 0 : i32
    %c0_i32_0 = arith.constant 0 : i32
    %c0_i32_1 = arith.constant 0 : i32
    return %c0_i32, %c0_i32_0 : i32, i32
  }
  func.func @transform_3(%arg0: i32) -> (i32, i32) {
    %c0_i32 = arith.constant 0 : i32
    %c0_i32_0 = arith.constant 0 : i32
    %c0_i32_1 = arith.constant 0 : i32
    return %c0_i32, %c0_i32_0 : i32, i32
  }
  func.func @transform_4(%arg0: i32) -> (i32, i32) {
    %c0_i32 = arith.constant 0 : i32
    %c0_i32_0 = arith.constant 0 : i32
    %c0_i32_1 = arith.constant 0 : i32
    return %c0_i32, %c0_i32_0 : i32, i32
  }
  func.func @transform_5(%arg0: i32) -> (i32, i32) {
    %c0_i32 = arith.constant 0 : i32
    %c0_i32_0 = arith.constant 0 : i32
    %c0_i32_1 = arith.constant 0 : i32
    return %c0_i32, %c0_i32_0 : i32, i32
  }
  func.func @transform_6(%arg0: i32) -> (i32, i32) {
    %c0_i32 = arith.constant 0 : i32
    %c0_i32_0 = arith.constant 0 : i32
    %c0_i32_1 = arith.constant 0 : i32
    return %c0_i32, %c0_i32_0 : i32, i32
  }
  func.func @transform_7(%arg0: i32) -> (i32, i32) {
    %c0_i32 = arith.constant 0 : i32
    %c0_i32_0 = arith.constant 0 : i32
    %c0_i32_1 = arith.constant 0 : i32
    return %c0_i32, %c0_i32_0 : i32, i32
  }
  func.func @transform_8(%arg0: i32) -> (i32, i32, i32) {
    %c0_i32 = arith.constant 0 : i32
    %c0_i32_0 = arith.constant 0 : i32
    %c0_i32_1 = arith.constant 0 : i32
    return %arg0, %c0_i32, %c0_i32_0 : i32, i32, i32
  }
}

</mosaic_0001>

<bundles_post_ra>
// kernel: tpu_custom_call.1
= control target key start
LH: loop header
LB: loop body
LE: loop exit
PB: predicated region body
PF: predicated region fallthrough
CT: control target
= control target key end

     0   :  { %13 = vsyncpa [#allocation4], 0  ;;  %s13211_s0 = inlined_call_operand.hbm [shape: f32[2,8,256], index: 0, kind: input, shape index: {}]   ;;  %s13212_s1 = inlined_call_operand.hbm [shape: f32[1,544], index: 1, kind: input, shape index: {}]   ;;  %s13213_s2 = inlined_call_operand.vmem [shape: f32[8,25], index: 2, kind: input, shape index: {}]   ;;  %s13214_s3 = inlined_call_operand.vmem [shape: f32[8,1], index: 3, kind: input, shape index: {}]   ;;  %s13215_s4 = inlined_call_operand.vmem [shape: f32[8,49], index: 4, kind: input, shape index: {}]   ;;  %s13216_s5 = inlined_call_operand.vmem [shape: f32[8,1], index: 5, kind: input, shape index: {}]   ;;  %s13217_s6 = inlined_call_operand.vmem [shape: f32[8,8], index: 6, kind: input, shape index: {}]   ;;  %s13218_s7 = inlined_call_operand.vmem [shape: f32[8,1], index: 7, kind: input, shape index: {}]   ;;  %s13219_s8 = inlined_call_operand.hbm [shape: f32[2,8,256], index: 8, kind: output, shape index: {}]  }
   0x1   :  { %14 = vsyncpa [#allocation7], 0 }
   0x2   :  { %15 = vsyncpa [#allocation5], 0  ;;  %s6763_s27 = smov [#allocation3]  }
   0x3   :  { %s21_s28 = sshll.u32 %s6763_s27, 4  ;;  %s22_s28 = int_to_ptr.vmem [resolvable:$true] %s21_s28 }
   0x4   :  { %s6705_s29 = scalar_lea.vmem %s22_s28, 512  ;;  %p6710_p1 = scmp.lt.s32.totalorder %s22_s28, %s22_s28 }
   0x5   :  { %p6706_p0 = scmp.ne.s32.totalorder %s22_s28, %s6705_s29  ;;  %p6711_p2 = scmp.lt.s32.totalorder %s6705_s29, %s6705_s29 }
   0x7   :  { %p6712_p3 = por %p6711_p2, %p6710_p1 }
   0x9   :  { %p6713_p4 = pnand %p6712_p3, %p6706_p0 }
   0xb   :  { %6716 = shalt.err (!%p6713_p4)
}
   0xc   :  { %s13222_s30 = smov 256   ;;  %s13783_s9 = smov 16  }
   0xd   :  { %27 = dma.hbm_to_vmem [thread:$0]  %s13211_s0, 512, %s22_s28, [#allocation4], %s13222_s30, %s13222_s30, %s13783_s9  }
   0xe   :  { %s6766_s12 = smov [#allocation6]  }
   0xf   :  { %s34_s13 = sshll.u32 %s6766_s12, 4  ;;  %s35_s13 = int_to_ptr.vmem [resolvable:$true] %s34_s13 }
  0x10   :  { %s6725_s14 = scalar_lea.vmem %s35_s13, 80  ;;  %s6729_s15 = scalar_lea.vmem %s35_s13, 96 }
  0x11   :  { %p6726_p5 = scmp.ne.s32.totalorder %s35_s13, %s6725_s14  ;;  %p6730_p6 = scmp.lt.s32.totalorder %s35_s13, %s35_s13 }
  0x12   :  { %p6731_p7 = scmp.lt.s32.totalorder %s6729_s15, %s6725_s14 }
  0x14   :  { %p6732_p8 = por %p6731_p7, %p6730_p6 }
  0x16   :  { %p6733_p9 = pnand %p6732_p8, %p6726_p5 }
  0x18   :  { %6736 = shalt.err (!%p6733_p9)
}
  0x19   :  { %37 = dma.hbm_to_vmem [thread:$0]  %s13212_s1, 80, %s35_s13, [#allocation7]  }
  0x1a   :  { %6757 = dma.done.wait [#allocation4], 512  }
  0x1b   :  { %6758 = vsyncadd [#allocation4], 4294966784 }
  0x1c   :  { %6759 = dma.done.wait [#allocation7], 80  }
  0x1d   :  { %6760 = vsyncadd [#allocation7], 4294967216  ;;  %v13254_v0 = vmov 1   ;;  %v13252_v1 = vmov 0   ;;  %v13256_v2 = vmov 0.0   ;;  %v74_v3 = vld [vmem:[#allocation3] sm:$0xff] }
  0x1e   :  { %6591 = vset.pattern.permute.xlu1 %v13254_v0  ;;  %6590 = vset.pattern.permute.xlu0 %v13252_v1  ;;  %58 = vst [vmem:[#allocation2 + $0x10] sm:$0xff] %v13256_v2  ;;  %56 = vst [vmem:[#allocation2] sm:$0xff] %v13256_v2  ;;  %s6770_s0 = smov 95   ;;  %s6771_s1 = smov 59   ;;  %v75_v4 = vld [vmem:[#allocation3 + $0x8] sm:$0xff]  ;;  %v6972_v5 = vld [vmem:[%s13213_s2] sm:$0xff] }
  0x1f   :  { %59 = vst [vmem:[#allocation2 + $0x18] sm:$0xff] %v13256_v2  ;;  %60 = vst [vmem:[#allocation2 + $0x20] sm:$0xff] %v13256_v2  ;;  %87 = vrot.lane.b32.xlu1 %v74_v3, %s6770_s0  ;;  %77 = vrot.lane.b32.xlu0 %v74_v3, %s6771_s1  ;;  %s6772_s18 = smov 113   ;;  %s13377_s19 = smov 77   ;;  %v13248_v6 = vmov 2   ;;  %v13245_v7 = vmov 3  }
  0x20   :  { %61 = vst [vmem:[#allocation2 + $0x28] sm:$0xff] %v13256_v2  ;;  %62 = vst [vmem:[#allocation2 + $0x30] sm:$0xff] %v13256_v2  ;;  %s13333_s20 = smov 21   ;;  %s13382_s21 = smov 3   ;;  %v13237_v8 = vmov 6   ;;  %v13241_v9 = vmov 4  }
  0x21   :  { %s13266_s22 = smov 57   ;;  %s13381_s23 = smov 39   ;;  %v13234_v10 = vmov 7   ;;  %v13239_v11 = vmov 5   ;;  %v13247_v12 = vmov 8   ;;  %vm13432_vm0 = vcmask 613848  }
  0x22   :  { %s13257_s24 = smov 93   ;;  %s6779_s25 = smov 75   ;;  %vm13431_vm1 = vcmask 121856   ;;  %vm13429_vm2 = vcmask 892648   ;;  %vm13424_vm3 = vcmask 400648   ;;  %vm13427_vm4 = vcmask 1048568  }
  0x23   :  { %94 = vrot.lane.b32.xlu1 %v74_v3, %s6772_s18  ;;  %82 = vrot.lane.b32.xlu0 %v74_v3, %s13377_s19  ;;  %s13250_s26 = smov 1   ;;  %s13372_s27 = smov 111   ;;  %vm13420_vm5 = vcmask 679448   ;;  %vm13416_vm6 = vcmask 958248   ;;  %v13233_v17 = vmov 9   ;;  %vm13430_vm7 = vcmask 187448  }
  0x24   :  { %s6782_s28 = smov 37   ;;  %s6783_s29 = smov 19   ;;  %vm13415_vm8 = vcmask 466248   ;;  %vm13221_vm9 = vcmask 745048   ;;  %vm13220_vm10 = vcmask 1023848   ;;  %vm13422_vm11 = vcmask 253048  }
  0x25   :  { %s13243_s10 = smov 73   ;;  %s13275_s11 = smov 55   ;;  %vm13414_vm12 = vcmask 531848   ;;  %vm13405_vm13 = vcmask 810648   ;;  %vm13401_vm14 = vcmask 39936   ;;  %vm13404_vm15 = vcmask 1048488  }
  0x26   :  { %s6794_s14 = smov 127   ;;  %s13225_s15 = smov 126  }
  0x27   :  { %104 = vrot.lane.b32.xlu1 %v74_v3, %s13333_s20  ;;  %99 = vrot.lane.b32.xlu0 %v74_v3, %s13382_s21  ;;  %s6796_s16 = smov 125   ;;  %s6797_s17 = smov 124  }
  0x28   :  { %s6798_s12 = smov 94   ;;  %s6799_s13 = smov 92  }
  0x29   :  { %s13223_s30 = smov 91   ;;  %s13365_s20 = smov 120  }
  0x2a   :  { %s13534_s19 = smov 117   ;;  %s13450_s21 = smov 122  }
  0x2b   :  { %114 = vrot.lane.b32.xlu1 %v74_v3, %s13266_s22  ;;  %109 = vrot.lane.b32.xlu0 %v74_v3, %s13381_s23  ;;  %s6832_s23 = smov 110  }
  0x2f   :  { %125 = vrot.lane.b32.xlu1 %v75_v4, %s13257_s24  ;;  %120 = vrot.lane.b32.xlu0 %v75_v4, %s6779_s25 }
  0x33   :  { %135 = vrot.lane.b32.xlu1 %v75_v4, %s13250_s26  ;;  %130 = vrot.lane.b32.xlu0 %v75_v4, %s13372_s27  ;;  %s6812_s26 = smov 26   ;;  %s6826_s27 = smov 118  }
  0x37   :  { %145 = vrot.lane.b32.xlu1 %v75_v4, %s6782_s28  ;;  %140 = vrot.lane.b32.xlu0 %v75_v4, %s6783_s29 }
  0x3b   :  { %157 = vrot.lane.b32.xlu1 %v75_v4, %s13243_s10  ;;  %152 = vrot.lane.b32.xlu0 %v75_v4, %s13275_s11  ;;  %s6810_s10 = smov 56   ;;  %s6818_s11 = smov 23  }
  0x3f   :  { %186 = vperm.xlu1 %6591, %v6972_v5   ;;  %170 = vperm.xlu0 %6590, %v6972_v5  }
  0x43   :  { %6592 = vset.pattern.permute.xlu1 %v13248_v6  ;;  %6593 = vset.pattern.permute.xlu0 %v13245_v7 }
  0x44   :  { %232 = vperm.xlu1 %6592, %v6972_v5   ;;  %278 = vperm.xlu0 %6593, %v6972_v5  }
  0x48   :  { %6596 = vset.pattern.permute.xlu1 %v13237_v8  ;;  %6594 = vset.pattern.permute.xlu0 %v13241_v9 }
  0x49   :  { %411 = vperm.xlu1 %6596, %v6972_v5   ;;  %324 = vperm.xlu0 %6594, %v6972_v5  }
  0x4d   :  { %6597 = vset.pattern.permute.xlu1 %v13234_v10  ;;  %6595 = vset.pattern.permute.xlu0 %v13239_v11 }
  0x4e   :  { %452 = vperm.xlu1 %6597, %v6972_v5   ;;  %370 = vperm.xlu0 %6595, %v6972_v5  }
  0x52   :  { %6598 = vset.pattern.permute.xlu1 %v13247_v12 }
  0x53   :  { %493 = vperm.xlu1 %6598, %v6972_v5  }
  0x57   :  { %6599 = vset.pattern.permute.xlu1 %v13233_v17 }
  0x91   :  { %v78_v13 = vpop.permute.xlu0 %77  ;;  %v88_v14 = vpop.permute.xlu1 %87 }
  0x92   :  { %81 = vst.msk [vmem:[#allocation2 + $0x10] sm:$0xff] %vm13432_vm0, %v78_v13  ;;  %vm13747_vm0 = vcmask 949248  }
  0x93   :  { %93 = vst.msk [vmem:[#allocation2 + $0x18] sm:$0xff] %vm13431_vm1, %v88_v14  ;;  %vm13433_vm1 = vcmask 957440  }
  0x95   :  { %v83_v15 = vpop.permute.xlu0 %82  ;;  %v95_v16 = vpop.permute.xlu1 %94 }
  0x96   :  { %86 = vst.msk [vmem:[#allocation2 + $0x10] sm:$0xff] %vm13429_vm2, %v83_v15  ;;  %vm13756_vm2 = vcmask 973824  }
  0x97   :  { %98 = vst.msk [vmem:[#allocation2 + $0x18] sm:$0xff] %vm13424_vm3, %v95_v16  ;;  %vm13766_vm3 = vcmask 211968  }
  0x98   :  { %91 = vst.msk [vmem:[#allocation2 + $0x10] sm:$0xff] %vm13427_vm4, %v88_v14  ;;  %vm13762_vm4 = vcmask 187392  }
  0x99   :  { %v100_v18 = vpop.permute.xlu0 %99  ;;  %v105_v19 = vpop.permute.xlu1 %104 }
  0x9a   :  { %103 = vst.msk [vmem:[#allocation2 + $0x18] sm:$0xff] %vm13420_vm5, %v100_v18  ;;  %vm13423_vm5 = vcmask 482304  }
  0x9b   :  { %108 = vst.msk [vmem:[#allocation2 + $0x18] sm:$0xff] %vm13416_vm6, %v105_v19  ;;  %vm13777_vm6 = vcmask 752640  }
  0x9d   :  { %v110_v20 = vpop.permute.xlu0 %109  ;;  %v115_v21 = vpop.permute.xlu1 %114 }
  0x9e   :  { %113 = vst.msk [vmem:[#allocation2 + $0x20] sm:$0xff] %vm13430_vm7, %v110_v20  ;;  %vm1109_vm7 = vcmask 965632  }
  0x9f   :  { %118 = vst.msk [vmem:[#allocation2 + $0x20] sm:$0xff] %vm13415_vm8, %v115_v21  ;;  %v7023_v37 = vld [vmem:[#allocation2 + $0x10] sm:$0xff]  ;;  %vm13418_vm8 = vcmask 760832  }
  0xa1   :  { %v121_v22 = vpop.permute.xlu0 %120  ;;  %v126_v23 = vpop.permute.xlu1 %125 }
  0xa2   :  { %124 = vst.msk [vmem:[#allocation2 + $0x20] sm:$0xff] %vm13221_vm9, %v121_v22  ;;  %vm13287_vm9 = vcmask 597448   ;;  %v7086_v61 = vld [vmem:[#allocation2 + $0x18] sm:$0xff] }
  0xa3   :  { %129 = vst.msk [vmem:[#allocation2 + $0x20] sm:$0xff] %vm13220_vm10, %v126_v23  ;;  %vm13400_vm10 = vcmask 318648  }
  0xa5   :  { %v131_v24 = vpop.permute.xlu0 %130  ;;  %v136_v25 = vpop.permute.xlu1 %135 }
  0xa6   :  { %134 = vst.msk [vmem:[#allocation2 + $0x28] sm:$0xff] %vm13422_vm11, %v131_v24  ;;  %vm13425_vm11 = vcmask 465920  }
  0xa7   :  { %139 = vst.msk [vmem:[#allocation2 + $0x28] sm:$0xff] %vm13414_vm12, %v136_v25  ;;  %vm13419_vm12 = vcmask 769024  }
  0xa9   :  { %v141_v26 = vpop.permute.xlu0 %140  ;;  %v146_v27 = vpop.permute.xlu1 %145 }
  0xaa   :  { %144 = vst.msk [vmem:[#allocation2 + $0x28] sm:$0xff] %vm13405_vm13, %v141_v26  ;;  %v7083_v60 = vld [vmem:[#allocation2 + $0x20] sm:$0xff]  ;;  %vm351_vm13 = vcmask 1014784  }
  0xab   :  { %151 = vst.msk [vmem:[#allocation2 + $0x30] sm:$0xff] %vm13401_vm14, %v146_v27  ;;  %vm13417_vm14 = vcmask 1031168  }
  0xac   :  { %149 = vst.msk [vmem:[#allocation2 + $0x28] sm:$0xff] %vm13404_vm15, %v146_v27  ;;  %vm305_vm15 = vcmask 1022976  }
  0xad   :  { %v153_v28 = vpop.permute.xlu0 %152  ;;  %v158_v29 = vpop.permute.xlu1 %157 }
  0xae   :  { %156 = vst.msk [vmem:[#allocation2 + $0x30] sm:$0xff] %vm13400_vm10, %v153_v28  ;;  %vm213_vm10 = vcmask 1039360  }
  0xaf   :  { %161 = vst.msk [vmem:[#allocation2 + $0x30] sm:$0xff] %vm13287_vm9, %v158_v29  ;;  %vm65_vm9 = vcmask 179200  }
  0xb3   :  { %v7094_v3 = vld [vmem:[#allocation2 + $0x28] sm:$0xff] }
  0xb6   :  { %v7031_v41 = vld [vmem:[#allocation2 + $0x30] sm:$0xff] }
  0xba   :  { %v7009_v30 = vpop.permute.xlu1 %186  ;;  %v7011_v31 = vpop.permute.xlu0 %170 }
  0xbb   :  { %13977 = vst [vmem:[#allocation12_spill] sm:$0xff] %v7009_v30  ;;  %13978 = vst [vmem:[#allocation13_spill] sm:$0xff] %v7011_v31  ;;  %v189_v32 = vmul.f32 0.0, %v7009_v30  ;;  %v190_v39 = vmul.f32 %v7009_v30, %v7023_v37  ;;  %v194_v42 = vmul.f32 %v7009_v30, %v7031_v41  ;;  %v192_v62 = vmul.f32 %v7009_v30, %v7083_v60 }
  0xbc   :  { %v191_v63 = vmul.f32 %v7009_v30, %v7086_v61  ;;  %v193_v13 = vmul.f32 %v7009_v30, %v7094_v3 }
  0xbd   :  { %201 = vrot.lane.b32.xlu1 %v189_v32, %s6794_s14 }
  0xbf   :  { %v7015_v33 = vpop.permute.xlu1 %232  ;;  %v7017_v34 = vpop.permute.xlu0 %278 }
  0xc0   :  { %13979 = vst [vmem:[#allocation14_spill] sm:$0xff] %v7015_v33  ;;  %13980 = vst [vmem:[#allocation15_spill] sm:$0xff] %v7017_v34  ;;  %v235_v35 = vmul.f32 0.0, %v7015_v33  ;;  %v281_v36 = vmul.f32 0.0, %v7017_v34  ;;  %v236_v44 = vmul.f32 %v7015_v33, %v7023_v37  ;;  %v240_v47 = vmul.f32 %v7015_v33, %v7031_v41 }
  0xc1   :  { %v282_v49 = vmul.f32 %v7017_v34, %v7023_v37  ;;  %v286_v52 = vmul.f32 %v7017_v34, %v7031_v41  ;;  %v237_v4 = vmul.f32 %v7015_v33, %v7086_v61  ;;  %v239_v14 = vmul.f32 %v7015_v33, %v7094_v3 }
  0xc2   :  { %247 = vrot.lane.b32.xlu0 %v235_v35, %s13225_s15  ;;  %293 = vrot.lane.b32.xlu1 %v281_v36, %s6796_s16  ;;  %v238_v15 = vmul.f32 %v7015_v33, %v7083_v60  ;;  %v283_v16 = vmul.f32 %v7017_v34, %v7086_v61  ;;  %v284_v18 = vmul.f32 %v7017_v34, %v7083_v60 }
  0xc3   :  { %v285_v19 = vmul.f32 %v7017_v34, %v7094_v3 }
  0xc4   :  { %v7025_v38 = vpop.permute.xlu0 %324  ;;  %v7044_v46 = vpop.permute.xlu1 %411 }
  0xc5   :  { %13981 = vst [vmem:[#allocation16_spill] sm:$0xff] %v7025_v38  ;;  %v327_v40 = vmul.f32 0.0, %v7025_v38  ;;  %13983 = vst [vmem:[#allocation18_spill] sm:$0xff] %v7044_v46  ;;  %v414_v48 = vmul.f32 %v7044_v46, %v7023_v37  ;;  %v418_v50 = vmul.f32 %v7044_v46, %v7031_v41  ;;  %v328_v54 = vmul.f32 %v7025_v38, %v7023_v37 }
  0xc6   :  { %203 = vrot.lane.b32.xlu0 %v190_v39, %s6794_s14  ;;  %v332_v57 = vmul.f32 %v7025_v38, %v7031_v41  ;;  %v330_v20 = vmul.f32 %v7025_v38, %v7083_v60  ;;  %v329_v21 = vmul.f32 %v7025_v38, %v7086_v61  ;;  %v331_v23 = vmul.f32 %v7025_v38, %v7094_v3 }
  0xc7   :  { %339 = vrot.lane.b32.xlu1 %v327_v40, %s6797_s17  ;;  %v415_v26 = vmul.f32 %v7044_v46, %v7086_v61  ;;  %v416_v27 = vmul.f32 %v7044_v46, %v7083_v60  ;;  %v417_v28 = vmul.f32 %v7044_v46, %v7094_v3 }
  0xc9   :  { %v7036_v43 = vpop.permute.xlu0 %370  ;;  %v7058_v51 = vpop.permute.xlu1 %452 }
  0xca   :  { %13982 = vst [vmem:[#allocation17_spill] sm:$0xff] %v7036_v43  ;;  %211 = vrot.lane.b32.xlu0 %v194_v42, %s6794_s14  ;;  %v377_v45 = vmul.f32 %v7036_v43, %v7031_v41  ;;  %13984 = vst [vmem:[#allocation19_spill] sm:$0xff] %v7058_v51  ;;  %v455_v53 = vmul.f32 %v7058_v51, %v7023_v37  ;;  %v459_v55 = vmul.f32 %v7058_v51, %v7031_v41 }
  0xcb   :  { %249 = vrot.lane.b32.xlu1 %v236_v44, %s13225_s15  ;;  %v373_v59 = vmul.f32 %v7036_v43, %v7023_v37  ;;  %v374_v22 = vmul.f32 %v7036_v43, %v7086_v61  ;;  %v376_v24 = vmul.f32 %v7036_v43, %v7094_v3  ;;  %v375_v25 = vmul.f32 %v7036_v43, %v7083_v60 }
  0xcc   :  { %v457_v29 = vmul.f32 %v7058_v51, %v7083_v60  ;;  %v456_v32 = vmul.f32 %v7058_v51, %v7086_v61  ;;  %v458_v36 = vmul.f32 %v7058_v51, %v7094_v3  ;;  %v13232_v44 = vmov 10  }
  0xce   :  { %391 = vrot.lane.b32.xlu0 %v377_v45, %s6798_s12  ;;  %v7072_v56 = vpop.permute.xlu1 %493 }
  0xcf   :  { %257 = vrot.lane.b32.xlu1 %v240_v47, %s13225_s15  ;;  %13985 = vst [vmem:[#allocation20_spill] sm:$0xff] %v7072_v56  ;;  %v496_v58 = vmul.f32 %v7072_v56, %v7023_v37  ;;  %v498_v35 = vmul.f32 %v7072_v56, %v7083_v60  ;;  %v500_v39 = vmul.f32 %v7072_v56, %v7031_v41 }
  0xd0   :  { %v497_v40 = vmul.f32 %v7072_v56, %v7086_v61  ;;  %v499_v42 = vmul.f32 %v7072_v56, %v7094_v3 }
  0xd2   :  { %424 = vrot.lane.b32.xlu0 %v414_v48, %s13257_s24 }
  0xd3   :  { %295 = vrot.lane.b32.xlu1 %v282_v49, %s6796_s16 }
  0xd6   :  { %432 = vrot.lane.b32.xlu0 %v418_v50, %s13257_s24 }
  0xd7   :  { %303 = vrot.lane.b32.xlu1 %v286_v52, %s6796_s16 }
  0xda   :  { %465 = vrot.lane.b32.xlu0 %v455_v53, %s6799_s13 }
  0xdb   :  { %341 = vrot.lane.b32.xlu1 %v328_v54, %s6797_s17 }
  0xde   :  { %473 = vrot.lane.b32.xlu0 %v459_v55, %s6799_s13 }
  0xdf   :  { %349 = vrot.lane.b32.xlu1 %v332_v57, %s6797_s17 }
  0xe2   :  { %506 = vrot.lane.b32.xlu0 %v496_v58, %s13223_s30 }
  0xe3   :  { %383 = vrot.lane.b32.xlu1 %v373_v59, %s6798_s12 }
  0xe6   :  { %207 = vrot.lane.b32.xlu0 %v192_v62, %s6794_s14 }
  0xe7   :  { %205 = vrot.lane.b32.xlu1 %v191_v63, %s6794_s14 }
  0xea   :  { %251 = vrot.lane.b32.xlu0 %v237_v4, %s13225_s15 }
  0xeb   :  { %209 = vrot.lane.b32.xlu1 %v193_v13, %s6794_s14 }
  0xee   :  { %255 = vrot.lane.b32.xlu0 %v239_v14, %s13225_s15 }
  0xef   :  { %253 = vrot.lane.b32.xlu1 %v238_v15, %s13225_s15  ;;  %s6804_s15 = smov 60  }
  0xf2   :  { %297 = vrot.lane.b32.xlu0 %v283_v16, %s6796_s16 }
  0xf3   :  { %299 = vrot.lane.b32.xlu1 %v284_v18, %s6796_s16 }
  0xf6   :  { %301 = vrot.lane.b32.xlu0 %v285_v19, %s6796_s16 }
  0xf7   :  { %345 = vrot.lane.b32.xlu1 %v330_v20, %s6797_s17 }
  0xfa   :  { %343 = vrot.lane.b32.xlu0 %v329_v21, %s6797_s17 }
  0xfb   :  { %385 = vrot.lane.b32.xlu1 %v374_v22, %s6798_s12 }
  0xfe   :  { %347 = vrot.lane.b32.xlu0 %v331_v23, %s6797_s17 }
  0xff   :  { %389 = vrot.lane.b32.xlu1 %v376_v24, %s6798_s12 }
 0x102   :  { %387 = vrot.lane.b32.xlu0 %v375_v25, %s6798_s12 }
 0x103   :  { %426 = vrot.lane.b32.xlu1 %v415_v26, %s13257_s24 }
 0x106   :  { %428 = vrot.lane.b32.xlu0 %v416_v27, %s13257_s24 }
 0x107   :  { %430 = vrot.lane.b32.xlu1 %v417_v28, %s13257_s24  ;;  %v13228_v28 = vmov 11   ;;  %s6814_s24 = smov 25  }
 0x10a   :  { %469 = vrot.lane.b32.xlu0 %v457_v29, %s6799_s13 }
 0x10b   :  { %467 = vrot.lane.b32.xlu1 %v456_v32, %s6799_s13 }
 0x10e   :  { %510 = vrot.lane.b32.xlu0 %v498_v35, %s13223_s30 }
 0x10f   :  { %471 = vrot.lane.b32.xlu1 %v458_v36, %s6799_s13 }
 0x112   :  { %514 = vrot.lane.b32.xlu0 %v500_v39, %s13223_s30 }
 0x113   :  { %508 = vrot.lane.b32.xlu1 %v497_v40, %s13223_s30 }
 0x117   :  { %512 = vrot.lane.b32.xlu1 %v499_v42, %s13223_s30  ;;  %s13229_s30 = smov 90  }
 0x11b   :  { %534 = vperm.xlu1 %6599, %v6972_v5  }
 0x11f   :  { %6600 = vset.pattern.permute.xlu1 %v13232_v44 }
 0x12f   :  { %v7167_v45 = vpop.permute.xlu1 %201 }
 0x134   :  { %v7169_v47 = vpop.permute.xlu1 %293 }
 0x139   :  { %v7171_v48 = vpop.permute.xlu1 %339 }
 0x13d   :  { %v7173_v49 = vpop.permute.xlu1 %249 }
 0x141   :  { %v7175_v50 = vpop.permute.xlu1 %257 }
 0x145   :  { %v7177_v52 = vpop.permute.xlu1 %295 }
 0x149   :  { %v7179_v53 = vpop.permute.xlu1 %303 }
 0x14d   :  { %v7181_v54 = vpop.permute.xlu1 %341 }
 0x151   :  { %v7183_v55 = vpop.permute.xlu1 %349 }
 0x155   :  { %v7185_v57 = vpop.permute.xlu1 %383 }
 0x159   :  { %v7187_v58 = vpop.permute.xlu1 %205 }
 0x15d   :  { %v7189_v59 = vpop.permute.xlu1 %209 }
 0x161   :  { %v7191_v62 = vpop.permute.xlu1 %253 }
 0x165   :  { %v7193_v63 = vpop.permute.xlu1 %299 }
 0x169   :  { %v7195_v4 = vpop.permute.xlu1 %345 }
 0x16d   :  { %v7197_v13 = vpop.permute.xlu1 %385 }
 0x171   :  { %v7199_v14 = vpop.permute.xlu1 %389 }
 0x175   :  { %v7201_v15 = vpop.permute.xlu1 %426 }
 0x179   :  { %v7203_v16 = vpop.permute.xlu1 %430 }
 0x17d   :  { %v7205_v18 = vpop.permute.xlu1 %467 }
 0x181   :  { %v7207_v19 = vpop.permute.xlu1 %471 }
 0x185   :  { %v7209_v20 = vpop.permute.xlu1 %508 }
 0x189   :  { %v7211_v21 = vpop.permute.xlu1 %512 }
 0x18a   :  { %13986 = vst [vmem:[#allocation21_spill] sm:$0xff] %v7211_v21 }
 0x196   :  { %v7213_v22 = vpop.permute.xlu1 %534 }
 0x197   :  { %13987 = vst [vmem:[#allocation22_spill] sm:$0xff] %v7213_v22  ;;  %v538_v23 = vmul.f32 %v7213_v22, %v7086_v61  ;;  %v537_v24 = vmul.f32 %v7213_v22, %v7023_v37  ;;  %v540_v25 = vmul.f32 %v7213_v22, %v7094_v3  ;;  %v539_v26 = vmul.f32 %v7213_v22, %v7083_v60 }
 0x198   :  { %v541_v27 = vmul.f32 %v7213_v22, %v7031_v41 }
 0x199   :  { %549 = vrot.lane.b32.xlu1 %v538_v23, %s13229_s30  ;;  %547 = vrot.lane.b32.xlu0 %v537_v24, %s13229_s30  ;;  %v13227_v24 = vmov 12  }
 0x19d   :  { %553 = vrot.lane.b32.xlu1 %v540_v25, %s13229_s30  ;;  %551 = vrot.lane.b32.xlu0 %v539_v26, %s13229_s30 }
 0x1a1   :  { %575 = vperm.xlu1 %6600, %v6972_v5   ;;  %555 = vrot.lane.b32.xlu0 %v541_v27, %s13229_s30  ;;  %s6807_s30 = smov 58  }
 0x1a5   :  { %6601 = vset.pattern.permute.xlu1 %v13228_v28 }
 0x20b   :  { %v7232_v29 = vpop.permute.xlu1 %549 }
 0x20c   :  { %13988 = vst [vmem:[#allocation23_spill] sm:$0xff] %v7232_v29 }
 0x20f   :  { %v7234_v32 = vpop.permute.xlu1 %553 }
 0x210   :  { %13989 = vst [vmem:[#allocation24_spill] sm:$0xff] %v7234_v32 }
 0x21c   :  { %v7236_v35 = vpop.permute.xlu1 %575 }
 0x21d   :  { %13990 = vst [vmem:[#allocation25_spill] sm:$0xff] %v7236_v35  ;;  %v579_v36 = vmul.f32 %v7236_v35, %v7086_v61  ;;  %v578_v39 = vmul.f32 %v7236_v35, %v7023_v37  ;;  %v581_v40 = vmul.f32 %v7236_v35, %v7094_v3  ;;  %v580_v42 = vmul.f32 %v7236_v35, %v7083_v60 }
 0x21e   :  { %v582_v23 = vmul.f32 %v7236_v35, %v7031_v41 }
 0x21f   :  { %590 = vrot.lane.b32.xlu1 %v579_v36, %s6804_s15  ;;  %588 = vrot.lane.b32.xlu0 %v578_v39, %s6804_s15 }
 0x223   :  { %594 = vrot.lane.b32.xlu1 %v581_v40, %s6804_s15  ;;  %592 = vrot.lane.b32.xlu0 %v580_v42, %s6804_s15 }
 0x227   :  { %616 = vperm.xlu1 %6601, %v6972_v5   ;;  %596 = vrot.lane.b32.xlu0 %v582_v23, %s6804_s15 }
 0x22b   :  { %6602 = vset.pattern.permute.xlu1 %v13227_v24 }
 0x291   :  { %v7255_v25 = vpop.permute.xlu1 %590 }
 0x292   :  { %13991 = vst [vmem:[#allocation26_spill] sm:$0xff] %v7255_v25 }
 0x295   :  { %v7257_v26 = vpop.permute.xlu1 %594 }
 0x296   :  { %13992 = vst [vmem:[#allocation27_spill] sm:$0xff] %v7257_v26 }
 0x2a2   :  { %v7259_v27 = vpop.permute.xlu1 %616 }
 0x2a3   :  { %13993 = vst [vmem:[#allocation28_spill] sm:$0xff] %v7259_v27  ;;  %v620_v36 = vmul.f32 %v7259_v27, %v7086_v61  ;;  %v619_v39 = vmul.f32 %v7259_v27, %v7023_v37  ;;  %v622_v40 = vmul.f32 %v7259_v27, %v7094_v3  ;;  %v621_v42 = vmul.f32 %v7259_v27, %v7083_v60 }
 0x2a4   :  { %v623_v23 = vmul.f32 %v7259_v27, %v7031_v41 }
 0x2a5   :  { %631 = vrot.lane.b32.xlu1 %v620_v36, %s6771_s1  ;;  %629 = vrot.lane.b32.xlu0 %v619_v39, %s6771_s1  ;;  %v13231_v36 = vmov 13  }
 0x2a9   :  { %635 = vrot.lane.b32.xlu1 %v622_v40, %s6771_s1  ;;  %633 = vrot.lane.b32.xlu0 %v621_v42, %s6771_s1 }
 0x2ad   :  { %657 = vperm.xlu1 %6602, %v6972_v5   ;;  %637 = vrot.lane.b32.xlu0 %v623_v23, %s6771_s1 }
 0x2b1   :  { %6603 = vset.pattern.permute.xlu1 %v13231_v36 }
 0x317   :  { %v7278_v39 = vpop.permute.xlu1 %631 }
 0x318   :  { %13994 = vst [vmem:[#allocation29_spill] sm:$0xff] %v7278_v39 }
 0x31b   :  { %v7280_v24 = vpop.permute.xlu1 %635 }
 0x31c   :  { %13995 = vst [vmem:[#allocation30_spill] sm:$0xff] %v7280_v24 }
 0x328   :  { %v7282_v28 = vpop.permute.xlu1 %657 }
 0x329   :  { %13996 = vst [vmem:[#allocation31_spill] sm:$0xff] %v7282_v28  ;;  %v661_v40 = vmul.f32 %v7282_v28, %v7086_v61  ;;  %v660_v42 = vmul.f32 %v7282_v28, %v7023_v37  ;;  %v663_v23 = vmul.f32 %v7282_v28, %v7094_v3  ;;  %v662_v36 = vmul.f32 %v7282_v28, %v7083_v60 }
 0x32a   :  { %v664_v44 = vmul.f32 %v7282_v28, %v7031_v41 }
 0x32b   :  { %672 = vrot.lane.b32.xlu1 %v661_v40, %s6807_s30  ;;  %670 = vrot.lane.b32.xlu0 %v660_v42, %s6807_s30  ;;  %v13236_v40 = vmov 14  }
 0x32f   :  { %676 = vrot.lane.b32.xlu1 %v663_v23, %s6807_s30  ;;  %674 = vrot.lane.b32.xlu0 %v662_v36, %s6807_s30 }
 0x333   :  { %698 = vperm.xlu1 %6603, %v6972_v5   ;;  %678 = vrot.lane.b32.xlu0 %v664_v44, %s6807_s30 }
 0x337   :  { %6604 = vset.pattern.permute.xlu1 %v13236_v40 }
 0x39d   :  { %v7301_v42 = vpop.permute.xlu1 %672 }
 0x39e   :  { %13997 = vst [vmem:[#allocation32_spill] sm:$0xff] %v7301_v42 }
 0x3a1   :  { %v7303_v17 = vpop.permute.xlu1 %676 }
 0x3a2   :  { %13998 = vst [vmem:[#allocation33_spill] sm:$0xff] %v7303_v17 }
 0x3ae   :  { %v7305_v10 = vpop.permute.xlu1 %698 }
 0x3af   :  { %13999 = vst [vmem:[#allocation34_spill] sm:$0xff] %v7305_v10  ;;  %v702_v23 = vmul.f32 %v7305_v10, %v7086_v61  ;;  %v701_v36 = vmul.f32 %v7305_v10, %v7023_v37  ;;  %v704_v44 = vmul.f32 %v7305_v10, %v7094_v3  ;;  %v703_v40 = vmul.f32 %v7305_v10, %v7083_v60 }
 0x3b0   :  { %v705_v8 = vmul.f32 %v7305_v10, %v7031_v41 }
 0x3b1   :  { %713 = vrot.lane.b32.xlu1 %v702_v23, %s13266_s22  ;;  %711 = vrot.lane.b32.xlu0 %v701_v36, %s13266_s22  ;;  %v13244_v23 = vmov 15  }
 0x3b5   :  { %717 = vrot.lane.b32.xlu1 %v704_v44, %s13266_s22  ;;  %715 = vrot.lane.b32.xlu0 %v703_v40, %s13266_s22 }
 0x3b9   :  { %739 = vperm.xlu1 %6604, %v6972_v5   ;;  %719 = vrot.lane.b32.xlu0 %v705_v8, %s13266_s22  ;;  %s13299_s22 = smov 24  }
 0x3bd   :  { %6605 = vset.pattern.permute.xlu1 %v13244_v23 }
 0x423   :  { %v7324_v36 = vpop.permute.xlu1 %713 }
 0x424   :  { %14000 = vst [vmem:[#allocation35_spill] sm:$0xff] %v7324_v36 }
 0x427   :  { %v7326_v11 = vpop.permute.xlu1 %717 }
 0x428   :  { %14001 = vst [vmem:[#allocation36_spill] sm:$0xff] %v7326_v11 }
 0x434   :  { %v7328_v9 = vpop.permute.xlu1 %739 }
 0x435   :  { %14002 = vst [vmem:[#allocation37_spill] sm:$0xff] %v7328_v9  ;;  %v743_v44 = vmul.f32 %v7328_v9, %v7086_v61  ;;  %v742_v40 = vmul.f32 %v7328_v9, %v7023_v37  ;;  %v745_v8 = vmul.f32 %v7328_v9, %v7094_v3  ;;  %v744_v23 = vmul.f32 %v7328_v9, %v7083_v60 }
 0x436   :  { %v746_v7 = vmul.f32 %v7328_v9, %v7031_v41 }
 0x437   :  { %754 = vrot.lane.b32.xlu1 %v743_v44, %s6810_s10  ;;  %752 = vrot.lane.b32.xlu0 %v742_v40, %s6810_s10  ;;  %v13251_v44 = vmov 16  }
 0x43b   :  { %758 = vrot.lane.b32.xlu1 %v745_v8, %s6810_s10  ;;  %756 = vrot.lane.b32.xlu0 %v744_v23, %s6810_s10 }
 0x43f   :  { %780 = vperm.xlu1 %6605, %v6972_v5   ;;  %760 = vrot.lane.b32.xlu0 %v746_v7, %s6810_s10 }
 0x443   :  { %6606 = vset.pattern.permute.xlu1 %v13251_v44 }
 0x4a9   :  { %v7347_v40 = vpop.permute.xlu1 %754 }
 0x4aa   :  { %14003 = vst [vmem:[#allocation38_spill] sm:$0xff] %v7347_v40 }
 0x4ad   :  { %v7349_v12 = vpop.permute.xlu1 %758 }
 0x4ae   :  { %14004 = vst [vmem:[#allocation39_spill] sm:$0xff] %v7349_v12 }
 0x4ba   :  { %v7351_v6 = vpop.permute.xlu1 %780 }
 0x4bb   :  { %14005 = vst [vmem:[#allocation40_spill] sm:$0xff] %v7351_v6  ;;  %v784_v8 = vmul.f32 %v7351_v6, %v7086_v61  ;;  %v783_v23 = vmul.f32 %v7351_v6, %v7023_v37  ;;  %v786_v7 = vmul.f32 %v7351_v6, %v7094_v3  ;;  %v785_v44 = vmul.f32 %v7351_v6, %v7083_v60 }
 0x4bc   :  { %v787_v1 = vmul.f32 %v7351_v6, %v7031_v41 }
 0x4bd   :  { %795 = vrot.lane.b32.xlu1 %v784_v8, %s6812_s26  ;;  %793 = vrot.lane.b32.xlu0 %v783_v23, %s6812_s26  ;;  %v13259_v8 = vmov 17  }
 0x4c1   :  { %799 = vrot.lane.b32.xlu1 %v786_v7, %s6812_s26  ;;  %797 = vrot.lane.b32.xlu0 %v785_v44, %s6812_s26 }
 0x4c5   :  { %821 = vperm.xlu1 %6606, %v6972_v5   ;;  %801 = vrot.lane.b32.xlu0 %v787_v1, %s6812_s26 }
 0x4c9   :  { %6607 = vset.pattern.permute.xlu1 %v13259_v8 }
 0x52f   :  { %v7370_v23 = vpop.permute.xlu1 %795 }
 0x530   :  { %14006 = vst [vmem:[#allocation41_spill] sm:$0xff] %v7370_v23 }
 0x533   :  { %v7372_v0 = vpop.permute.xlu1 %799 }
 0x534   :  { %14007 = vst [vmem:[#allocation42_spill] sm:$0xff] %v7372_v0 }
 0x540   :  { %v7374_v2 = vpop.permute.xlu1 %821 }
 0x541   :  { %14008 = vst [vmem:[#allocation43_spill] sm:$0xff] %v7374_v2  ;;  %v825_v7 = vmul.f32 %v7374_v2, %v7086_v61  ;;  %v824_v44 = vmul.f32 %v7374_v2, %v7023_v37  ;;  %v827_v1 = vmul.f32 %v7374_v2, %v7094_v3  ;;  %v826_v8 = vmul.f32 %v7374_v2, %v7083_v60 }
 0x542   :  { %v828_v6 = vmul.f32 %v7374_v2, %v7031_v41 }
 0x543   :  { %836 = vrot.lane.b32.xlu1 %v825_v7, %s6814_s24  ;;  %834 = vrot.lane.b32.xlu0 %v824_v44, %s6814_s24  ;;  %v13268_v7 = vmov 18  }
 0x547   :  { %840 = vrot.lane.b32.xlu1 %v827_v1, %s6814_s24  ;;  %838 = vrot.lane.b32.xlu0 %v826_v8, %s6814_s24 }
 0x54b   :  { %862 = vperm.xlu1 %6607, %v6972_v5   ;;  %842 = vrot.lane.b32.xlu0 %v828_v6, %s6814_s24 }
 0x54f   :  { %6608 = vset.pattern.permute.xlu1 %v13268_v7 }
 0x5b5   :  { %v7393_v44 = vpop.permute.xlu1 %836 }
 0x5b6   :  { %14009 = vst [vmem:[#allocation44_spill] sm:$0xff] %v7393_v44 }
 0x5b9   :  { %v7395_v9 = vpop.permute.xlu1 %840 }
 0x5ba   :  { %14010 = vst [vmem:[#allocation45_spill] sm:$0xff] %v7395_v9 }
 0x5c6   :  { %v7397_v10 = vpop.permute.xlu1 %862 }
 0x5c7   :  { %14011 = vst [vmem:[#allocation46_spill] sm:$0xff] %v7397_v10  ;;  %v866_v1 = vmul.f32 %v7397_v10, %v7086_v61  ;;  %v865_v8 = vmul.f32 %v7397_v10, %v7023_v37  ;;  %v868_v6 = vmul.f32 %v7397_v10, %v7094_v3  ;;  %v867_v7 = vmul.f32 %v7397_v10, %v7083_v60 }
 0x5c8   :  { %v869_v2 = vmul.f32 %v7397_v10, %v7031_v41 }
 0x5c9   :  { %877 = vrot.lane.b32.xlu1 %v866_v1, %s13299_s22  ;;  %875 = vrot.lane.b32.xlu0 %v865_v8, %s13299_s22  ;;  %v13276_v1 = vmov 19  }
 0x5cd   :  { %881 = vrot.lane.b32.xlu1 %v868_v6, %s13299_s22  ;;  %879 = vrot.lane.b32.xlu0 %v867_v7, %s13299_s22 }
 0x5d1   :  { %903 = vperm.xlu1 %6608, %v6972_v5   ;;  %883 = vrot.lane.b32.xlu0 %v869_v2, %s13299_s22  ;;  %v7428_v2 = vpop.permute.xlu0 %247  ;;  %s6820_s22 = smov 22  }
 0x5d5   :  { %6609 = vset.pattern.permute.xlu1 %v13276_v1  ;;  %v7438_v22 = vpop.permute.xlu0 %203 }
 0x63b   :  { %v7416_v8 = vpop.permute.xlu1 %877 }
 0x63c   :  { %14012 = vst [vmem:[#allocation47_spill] sm:$0xff] %v7416_v8 }
 0x63f   :  { %v7418_v28 = vpop.permute.xlu1 %881 }
 0x640   :  { %14013 = vst [vmem:[#allocation48_spill] sm:$0xff] %v7418_v28 }
 0x64c   :  { %v7420_v27 = vpop.permute.xlu1 %903 }
 0x64d   :  { %14014 = vst [vmem:[#allocation49_spill] sm:$0xff] %v7420_v27  ;;  %v907_v6 = vmul.f32 %v7420_v27, %v7086_v61  ;;  %v906_v7 = vmul.f32 %v7420_v27, %v7023_v37  ;;  %v909_v1 = vmul.f32 %v7420_v27, %v7094_v3  ;;  %v908_v10 = vmul.f32 %v7420_v27, %v7083_v60 }
 0x64e   :  { %v910_v35 = vmul.f32 %v7420_v27, %v7031_v41  ;;  %v14016_v27 = vmov 0.0  }
 0x64f   :  { %918 = vrot.lane.b32.xlu1 %v907_v6, %s6818_s11  ;;  %916 = vrot.lane.b32.xlu0 %v906_v7, %s6818_s11  ;;  %v13294_v6 = vmov 20   ;;  %v7443_v7 = vpop.permute.xlu0 %211  ;;  %66 = vst.msk [vmem:[#allocation2 + $0x48] sm:$0xff] %vm65_vm9, %v14016_v27 }
 0x653   :  { %922 = vrot.lane.b32.xlu1 %v909_v1, %s6818_s11  ;;  %920 = vrot.lane.b32.xlu0 %v908_v10, %s6818_s11  ;;  %v7445_v56 = vpop.permute.xlu0 %391 }
 0x657   :  { %944 = vperm.xlu1 %6609, %v6972_v5   ;;  %924 = vrot.lane.b32.xlu0 %v910_v35, %s6818_s11  ;;  %v7447_v51 = vpop.permute.xlu0 %424 }
 0x65b   :  { %6610 = vset.pattern.permute.xlu1 %v13294_v6  ;;  %v7449_v1 = vpop.permute.xlu0 %432 }
 0x65f   :  { %v7455_v46 = vpop.permute.xlu0 %465 }
 0x663   :  { %v7459_v43 = vpop.permute.xlu0 %473 }
 0x667   :  { %v7469_v27 = vpop.permute.xlu0 %506 }
 0x6c1   :  { %v7451_v10 = vpop.permute.xlu1 %918 }
 0x6c2   :  { %14015 = vst [vmem:[#allocation50_spill] sm:$0xff] %v7451_v10  ;;  %v7479_v10 = vpop.permute.xlu0 %207 }
 0x6c5   :  { %v7457_v35 = vpop.permute.xlu1 %922 }
 0x6c6   :  { %14017 = vst [vmem:[#allocation51_spill] sm:$0xff] %v7457_v35 }
 0x6d2   :  { %v7461_v6 = vpop.permute.xlu1 %944 }
 0x6d3   :  { %14018 = vst [vmem:[#allocation52_spill] sm:$0xff] %v7461_v6  ;;  %v948_v38 = vmul.f32 %v7461_v6, %v7086_v61  ;;  %v947_v34 = vmul.f32 %v7461_v6, %v7023_v37  ;;  %v950_v33 = vmul.f32 %v7461_v6, %v7094_v3  ;;  %v949_v30 = vmul.f32 %v7461_v6, %v7083_v60 }
 0x6d4   :  { %v951_v35 = vmul.f32 %v7461_v6, %v7031_v41 }
 0x6d5   :  { %959 = vrot.lane.b32.xlu1 %v948_v38, %s6820_s22  ;;  %957 = vrot.lane.b32.xlu0 %v947_v34, %s6820_s22  ;;  %v7483_v34 = vpop.permute.xlu0 %251  ;;  %v13315_v38 = vmov 21  }
 0x6d6   :  { %6611 = vset.pattern.permute.xlu0 %v13315_v38 }
 0x6d9   :  { %963 = vrot.lane.b32.xlu1 %v950_v33, %s6820_s22  ;;  %961 = vrot.lane.b32.xlu0 %v949_v30, %s6820_s22  ;;  %v7486_v28 = vpop.permute.xlu0 %255 }
 0x6dd   :  { %990 = vperm.xlu1 %6610, %v6972_v5   ;;  %965 = vrot.lane.b32.xlu0 %v951_v35, %s6820_s22  ;;  %v7488_v8 = vpop.permute.xlu0 %297 }
 0x6e1   :  { %v7490_v33 = vpop.permute.xlu0 %301 }
 0x6e5   :  { %v7492_v30 = vpop.permute.xlu0 %343 }
 0x6e9   :  { %v7494_v6 = vpop.permute.xlu0 %347 }
 0x6ed   :  { %v7496_v9 = vpop.permute.xlu0 %387 }
 0x6f1   :  { %v7498_v44 = vpop.permute.xlu0 %428 }
 0x6f5   :  { %v7500_v35 = vpop.permute.xlu0 %469 }
 0x6f9   :  { %v7502_v0 = vpop.permute.xlu0 %510 }
 0x6fa   :  { %14019 = vst [vmem:[#allocation53_spill] sm:$0xff] %v7502_v0 }
 0x6fd   :  { %v7504_v23 = vpop.permute.xlu0 %514 }
 0x6fe   :  { %14020 = vst [vmem:[#allocation54_spill] sm:$0xff] %v7504_v23 }
 0x701   :  { %v7506_v38 = vpop.permute.xlu0 %547 }
 0x702   :  { %14021 = vst [vmem:[#allocation55_spill] sm:$0xff] %v7506_v38 }
 0x705   :  { %v7508_v12 = vpop.permute.xlu0 %551 }
 0x706   :  { %14022 = vst [vmem:[#allocation56_spill] sm:$0xff] %v7508_v12 }
 0x709   :  { %v7510_v40 = vpop.permute.xlu0 %555 }
 0x70a   :  { %14023 = vst [vmem:[#allocation57_spill] sm:$0xff] %v7510_v40 }
 0x70d   :  { %v7512_v11 = vpop.permute.xlu0 %588 }
 0x70e   :  { %14024 = vst [vmem:[#allocation58_spill] sm:$0xff] %v7512_v11  ;;  %v7534_v11 = vld [vmem:[#allocation2 + $0x18] sm:$0xff] }
 0x711   :  { %v7514_v36 = vpop.permute.xlu0 %592 }
 0x712   :  { %14025 = vst [vmem:[#allocation59_spill] sm:$0xff] %v7514_v36  ;;  %v7536_v36 = vld [vmem:[#allocation2 + $0x10] sm:$0xff] }
 0x715   :  { %v7516_v17 = vpop.permute.xlu0 %596 }
 0x716   :  { %14026 = vst [vmem:[#allocation60_spill] sm:$0xff] %v7516_v17  ;;  %v7556_v17 = vld [vmem:[#allocation2 + $0x30] sm:$0xff] }
 0x719   :  { %v7518_v42 = vpop.permute.xlu0 %629 }
 0x71a   :  { %14027 = vst [vmem:[#allocation61_spill] sm:$0xff] %v7518_v42 }
 0x71d   :  { %v7520_v24 = vpop.permute.xlu0 %633 }
 0x71e   :  { %14028 = vst [vmem:[#allocation62_spill] sm:$0xff] %v7520_v24 }
 0x721   :  { %v7522_v39 = vpop.permute.xlu0 %637 }
 0x722   :  { %14029 = vst [vmem:[#allocation63_spill] sm:$0xff] %v7522_v39 }
 0x725   :  { %v7526_v25 = vpop.permute.xlu0 %670 }
 0x726   :  { %14031 = vst [vmem:[#allocation65_spill] sm:$0xff] %v7526_v25 }
 0x729   :  { %v7530_v12 = vpop.permute.xlu0 %674 }
 0x72a   :  { %14033 = vst [vmem:[#allocation67_spill] sm:$0xff] %v7530_v12 }
 0x72d   :  { %v7552_v24 = vpop.permute.xlu0 %678 }
 0x72e   :  { %14035 = vst [vmem:[#allocation69_spill] sm:$0xff] %v7552_v24 }
 0x731   :  { %v7561_v38 = vpop.permute.xlu0 %711 }
 0x732   :  { %14036 = vst [vmem:[#allocation70_spill] sm:$0xff] %v7561_v38 }
 0x735   :  { %v7566_v24 = vpop.permute.xlu0 %715 }
 0x736   :  { %14037 = vst [vmem:[#allocation71_spill] sm:$0xff] %v7566_v24 }
 0x747   :  { %v7524_v26 = vpop.permute.xlu1 %959 }
 0x748   :  { %14030 = vst [vmem:[#allocation64_spill] sm:$0xff] %v7524_v26  ;;  %v7546_v26 = vld [vmem:[#allocation2 + $0x20] sm:$0xff] }
 0x74b   :  { %v7528_v32 = vpop.permute.xlu1 %963 }
 0x74c   :  { %14032 = vst [vmem:[#allocation66_spill] sm:$0xff] %v7528_v32  ;;  %v7544_v32 = vld [vmem:[#allocation2 + $0x28] sm:$0xff] }
 0x758   :  { %v7532_v40 = vpop.permute.xlu1 %990 }
 0x759   :  { %14034 = vst [vmem:[#allocation68_spill] sm:$0xff] %v7532_v40  ;;  %v994_v42 = vmul.f32 %v7532_v40, %v7534_v11  ;;  %v993_v39 = vmul.f32 %v7532_v40, %v7536_v36  ;;  %v996_v12 = vmul.f32 %v7532_v40, %v7544_v32  ;;  %v995_v25 = vmul.f32 %v7532_v40, %v7546_v26 }
 0x75b   :  { %1007 = vrot.lane.b32.xlu1 %v994_v42, %s13365_s20  ;;  %1005 = vrot.lane.b32.xlu0 %v993_v39, %s13365_s20  ;;  %v998_v39 = vmul.f32 0.0, %v7532_v40  ;;  %v997_v42 = vmul.f32 %v7532_v40, %v7556_v17 }
 0x75f   :  { %1011 = vrot.lane.b32.xlu1 %v996_v12, %s13365_s20  ;;  %1009 = vrot.lane.b32.xlu0 %v995_v25, %s13365_s20  ;;  %v13350_v12 = vmov 22   ;;  %v7569_v25 = vpop.permute.xlu0 %719 }
 0x760   :  { %14038 = vst [vmem:[#allocation72_spill] sm:$0xff] %v7569_v25 }
 0x763   :  { %1015 = vrot.lane.b32.xlu1 %v998_v39, %s13365_s20  ;;  %1013 = vrot.lane.b32.xlu0 %v997_v42, %s13365_s20  ;;  %v7571_v29 = vpop.permute.xlu0 %752  ;;  %s13578_s20 = smov 119  }
 0x764   :  { %14039 = vst [vmem:[#allocation73_spill] sm:$0xff] %v7571_v29 }
 0x767   :  { %1036 = vperm.xlu0 %6611, %v6972_v5   ;;  %v7573_v23 = vpop.permute.xlu0 %756 }
 0x768   :  { %14040 = vst [vmem:[#allocation74_spill] sm:$0xff] %v7573_v23 }
 0x76b   :  { %6612 = vset.pattern.permute.xlu0 %v13350_v12  ;;  %v7575_v40 = vpop.permute.xlu0 %760 }
 0x76c   :  { %14041 = vst [vmem:[#allocation75_spill] sm:$0xff] %v7575_v40 }
 0x76f   :  { %v7577_v38 = vpop.permute.xlu0 %793 }
 0x770   :  { %14042 = vst [vmem:[#allocation76_spill] sm:$0xff] %v7577_v38 }
 0x773   :  { %v7579_v39 = vpop.permute.xlu0 %797 }
 0x774   :  { %14043 = vst [vmem:[#allocation77_spill] sm:$0xff] %v7579_v39 }
 0x777   :  { %v7581_v42 = vpop.permute.xlu0 %801 }
 0x778   :  { %14044 = vst [vmem:[#allocation78_spill] sm:$0xff] %v7581_v42 }
 0x77b   :  { %v7583_v21 = vpop.permute.xlu0 %834 }
 0x77c   :  { %14045 = vst [vmem:[#allocation79_spill] sm:$0xff] %v7583_v21 }
 0x77f   :  { %v7585_v24 = vpop.permute.xlu0 %838 }
 0x780   :  { %14046 = vst [vmem:[#allocation80_spill] sm:$0xff] %v7585_v24 }
 0x783   :  { %v7587_v0 = vpop.permute.xlu0 %842 }
 0x784   :  { %14047 = vst [vmem:[#allocation81_spill] sm:$0xff] %v7587_v0 }
 0x787   :  { %v7589_v12 = vpop.permute.xlu0 %875 }
 0x788   :  { %14048 = vst [vmem:[#allocation82_spill] sm:$0xff] %v7589_v12 }
 0x78b   :  { %v7591_v25 = vpop.permute.xlu0 %879 }
 0x78c   :  { %14049 = vst [vmem:[#allocation83_spill] sm:$0xff] %v7591_v25 }
 0x78f   :  { %v7593_v29 = vpop.permute.xlu0 %883 }
 0x793   :  { %v7595_v23 = vpop.permute.xlu0 %916 }
 0x794   :  { %14050 = vst [vmem:[#allocation84_spill] sm:$0xff] %v7595_v23 }
 0x797   :  { %v7597_v40 = vpop.permute.xlu0 %920 }
 0x798   :  { %14051 = vst [vmem:[#allocation85_spill] sm:$0xff] %v7597_v40 }
 0x79b   :  { %v7599_v38 = vpop.permute.xlu0 %924 }
 0x79c   :  { %14052 = vst [vmem:[#allocation86_spill] sm:$0xff] %v7599_v38 }
 0x79f   :  { %v7601_v39 = vpop.permute.xlu0 %957 }
 0x7a0   :  { %14053 = vst [vmem:[#allocation87_spill] sm:$0xff] %v7601_v39 }
 0x7a3   :  { %v7603_v42 = vpop.permute.xlu0 %961 }
 0x7a4   :  { %14054 = vst [vmem:[#allocation88_spill] sm:$0xff] %v7603_v42 }
 0x7a7   :  { %v7605_v21 = vpop.permute.xlu0 %965 }
 0x7a8   :  { %14055 = vst [vmem:[#allocation89_spill] sm:$0xff] %v7605_v21 }
 0x7cd   :  { %v7607_v24 = vpop.permute.xlu0 %1005 }
 0x7ce   :  { %14056 = vst [vmem:[#allocation90_spill] sm:$0xff] %v7607_v24  ;;  %v13373_v24 = vmov 23  }
 0x7d1   :  { %v7609_v0 = vpop.permute.xlu0 %1009 }
 0x7d2   :  { %14057 = vst [vmem:[#allocation91_spill] sm:$0xff] %v7609_v0 }
 0x7d5   :  { %v7611_v12 = vpop.permute.xlu0 %1013 }
 0x7d6   :  { %14058 = vst [vmem:[#allocation92_spill] sm:$0xff] %v7611_v12 }
 0x7e2   :  { %v7613_v25 = vpop.permute.xlu0 %1036 }
 0x7e3   :  { %14059 = vst [vmem:[#allocation93_spill] sm:$0xff] %v7613_v25  ;;  %v1041_v23 = vmul.f32 %v7613_v25, %v7546_v26  ;;  %v1039_v38 = vmul.f32 %v7613_v25, %v7536_v36  ;;  %v1043_v21 = vmul.f32 %v7613_v25, %v7556_v17  ;;  %v1040_v0 = vmul.f32 %v7613_v25, %v7534_v11 }
 0x7e4   :  { %v1042_v12 = vmul.f32 %v7613_v25, %v7544_v32 }
 0x7e5   :  { %1055 = vrot.lane.b32.xlu0 %v1041_v23, %s13578_s20  ;;  %1051 = vrot.lane.b32.xlu1 %v1039_v38, %s13578_s20  ;;  %v7631_v23 = vld [vmem:[#allocation2] sm:$0xff] }
 0x7e6   :  { %v1044_v38 = vmul.f32 %v7631_v23, %v7613_v25 }
 0x7e9   :  { %1059 = vrot.lane.b32.xlu0 %v1043_v21, %s13578_s20  ;;  %1053 = vrot.lane.b32.xlu1 %v1040_v0, %s13578_s20 }
 0x7ed   :  { %1082 = vperm.xlu0 %6612, %v6972_v5   ;;  %1057 = vrot.lane.b32.xlu1 %v1042_v12, %s13578_s20 }
 0x7f1   :  { %1061 = vrot.lane.b32.xlu1 %v1044_v38, %s13578_s20  ;;  %6613 = vset.pattern.permute.xlu0 %v13373_v24 }
 0x857   :  { %v7637_v21 = vpop.permute.xlu0 %1055 }
 0x858   :  { %14060 = vst [vmem:[#allocation94_spill] sm:$0xff] %v7637_v21 }
 0x85b   :  { %v7639_v0 = vpop.permute.xlu0 %1059 }
 0x85c   :  { %14061 = vst [vmem:[#allocation95_spill] sm:$0xff] %v7639_v0 }
 0x868   :  { %v7641_v42 = vpop.permute.xlu0 %1082 }
 0x869   :  { %14062 = vst [vmem:[#allocation96_spill] sm:$0xff] %v7641_v42  ;;  %v1087_v39 = vmul.f32 %v7641_v42, %v7546_v26  ;;  %v1085_v12 = vmul.f32 %v7641_v42, %v7536_v36  ;;  %v1089_v38 = vmul.f32 %v7641_v42, %v7556_v17  ;;  %v1086_v24 = vmul.f32 %v7641_v42, %v7534_v11 }
 0x86a   :  { %v1088_v25 = vmul.f32 %v7641_v42, %v7544_v32  ;;  %v1090_v36 = vmul.f32 %v7631_v23, %v7641_v42 }
 0x86b   :  { %1101 = vrot.lane.b32.xlu0 %v1087_v39, %s6826_s27  ;;  %1097 = vrot.lane.b32.xlu1 %v1085_v12, %s6826_s27  ;;  %v14063_v39 = vmov 1   ;;  %v13378_v12 = vmov 24  }
 0x86c   :  { %6614 = vset.pattern.permute.xlu1 %v13378_v12 }
 0x86f   :  { %1105 = vrot.lane.b32.xlu0 %v1089_v38, %s6826_s27  ;;  %1099 = vrot.lane.b32.xlu1 %v1086_v24, %s6826_s27 }
 0x873   :  { %1128 = vperm.xlu0 %6613, %v6972_v5   ;;  %1103 = vrot.lane.b32.xlu1 %v1088_v25, %s6826_s27 }
 0x877   :  { %1107 = vrot.lane.b32.xlu1 %v1090_v36, %s6826_s27  ;;  %6616 = vset.pattern.permute.xlu0 %v14063_v39  ;;  %v7689_v39 = vpop.permute.xlu1 %1007 }
 0x878   :  { %14068 = vst [vmem:[#allocation100_spill] sm:$0xff] %v7689_v39 }
 0x8dd   :  { %v7664_v38 = vpop.permute.xlu0 %1101 }
 0x8de   :  { %14064 = vst [vmem:[#allocation97_spill] sm:$0xff] %v7664_v38 }
 0x8e1   :  { %v7666_v24 = vpop.permute.xlu0 %1105 }
 0x8e2   :  { %14065 = vst [vmem:[#allocation98_spill] sm:$0xff] %v7666_v24  ;;  %v7691_v24 = vpop.permute.xlu1 %1011 }
 0x8e3   :  { %14069 = vst [vmem:[#allocation101_spill] sm:$0xff] %v7691_v24 }
 0x8e6   :  { %v7693_v38 = vpop.permute.xlu1 %1015 }
 0x8e7   :  { %14070 = vst [vmem:[#allocation102_spill] sm:$0xff] %v7693_v38 }
 0x8ee   :  { %v7668_v0 = vpop.permute.xlu0 %1128 }
 0x8ef   :  { %14066 = vst [vmem:[#allocation99_spill] sm:$0xff] %v7668_v0  ;;  %v1133_v5 = vmul.f32 %v7668_v0, %v7544_v32  ;;  %v1131_v25 = vmul.f32 %v7668_v0, %v7534_v11  ;;  %v1135_v36 = vmul.f32 %v7631_v23, %v7668_v0  ;;  %v1132_v12 = vmul.f32 %v7668_v0, %v7546_v26 }
 0x8f0   :  { %v1134_v42 = vmul.f32 %v7668_v0, %v7556_v17 }
 0x8f1   :  { %1145 = vrot.lane.b32.xlu0 %v1133_v5, %s13534_s19  ;;  %1141 = vrot.lane.b32.xlu1 %v1131_v25, %s13534_s19  ;;  %v6676_v5 = vld [vmem:[%s13213_s2] sm:$0xff]  ;;  %v14067_v25 = vmov 0   ;;  %s13462_s2 = smov 116  }
 0x8f5   :  { %1149 = vrot.lane.b32.xlu0 %v1135_v36, %s13534_s19  ;;  %1143 = vrot.lane.b32.xlu1 %v1132_v12, %s13534_s19  ;;  %v7695_v36 = vpop.permute.xlu1 %1051 }
 0x8f6   :  { %14071 = vst [vmem:[#allocation103_spill] sm:$0xff] %v7695_v36  ;;  %v1221_v36 = vlaneseq }
 0x8f9   :  { %1147 = vrot.lane.b32.xlu1 %v1134_v42, %s13534_s19  ;;  %v7697_v12 = vpop.permute.xlu1 %1053 }
 0x8fa   :  { %14072 = vst [vmem:[#allocation104_spill] sm:$0xff] %v7697_v12 }
 0x8fd   :  { %1169 = vperm.xlu1 %6614, %v6676_v5   ;;  %v7699_v0 = vpop.permute.xlu1 %1057 }
 0x8fe   :  { %14073 = vst [vmem:[#allocation105_spill] sm:$0xff] %v7699_v0 }
 0x901   :  { %6615 = vset.pattern.permute.xlu1 %v14067_v25  ;;  %v7701_v42 = vpop.permute.xlu1 %1061 }
 0x902   :  { %14074 = vst [vmem:[#allocation106_spill] sm:$0xff] %v7701_v42 }
 0x905   :  { %v7703_v21 = vpop.permute.xlu1 %1097 }
 0x909   :  { %v7705_v40 = vpop.permute.xlu1 %1099 }
 0x90d   :  { %v7707_v5 = vpop.permute.xlu1 %1103 }
 0x90e   :  { %14075 = vst [vmem:[#allocation107_spill] sm:$0xff] %v7707_v5 }
 0x911   :  { %v7709_v25 = vpop.permute.xlu1 %1107 }
 0x912   :  { %14076 = vst [vmem:[#allocation108_spill] sm:$0xff] %v7709_v25  ;;  %v7725_v25 = vshrl.u32 %v1221_v36, 7  ;;  %v67_v36 = vld [vmem:[#allocation6] sm:$0x1f] }
 0x914   :  { %14081 = vst [vmem:[#allocation113_spill] sm:$0xff] %v7725_v25  ;;  %v7756_v5 = vsub.s32 4, %v7725_v25 }
 0x916   :  { %14086 = vst [vmem:[#allocation118_spill] sm:$0xff] %v7756_v5 }
 0x963   :  { %v7711_v39 = vpop.permute.xlu1 %1141 }
 0x964   :  { %14077 = vst [vmem:[#allocation109_spill] sm:$0xff] %v7711_v39 }
 0x967   :  { %v7713_v24 = vpop.permute.xlu1 %1143 }
 0x968   :  { %14078 = vst [vmem:[#allocation110_spill] sm:$0xff] %v7713_v24 }
 0x96b   :  { %v7715_v38 = vpop.permute.xlu1 %1147 }
 0x96c   :  { %14079 = vst [vmem:[#allocation111_spill] sm:$0xff] %v7715_v38 }
 0x978   :  { %v7717_v12 = vpop.permute.xlu1 %1169 }
 0x979   :  { %14080 = vst [vmem:[#allocation112_spill] sm:$0xff] %v7717_v12  ;;  %v1173_v42 = vmul.f32 %v7717_v12, %v7546_v26  ;;  %v1172_v0 = vmul.f32 %v7717_v12, %v7534_v11  ;;  %v1175_v24 = vmul.f32 %v7717_v12, %v7556_v17  ;;  %v1174_v38 = vmul.f32 %v7717_v12, %v7544_v32 }
 0x97a   :  { %v7734_v26 = vsub.s32 0, %v7725_v25  ;;  %v7737_v11 = vsub.s32 1, %v7725_v25  ;;  %v1176_v17 = vmul.f32 %v7631_v23, %v7717_v12  ;;  %v178_v12 = vmul.f32 %v7011_v31, %v7031_v41 }
 0x97b   :  { %1184 = vrot.lane.b32.xlu1 %v1173_v42, %s13462_s2  ;;  %1182 = vrot.lane.b32.xlu0 %v1172_v0, %s13462_s2  ;;  %v70_v0 = vld [vmem:[%s13214_s3] sm:$0xff]  ;;  %v7751_v42 = vsub.s32 3, %v7725_v25  ;;  %s13456_s3 = smov 70  }
 0x97c   :  { %14082 = vst [vmem:[#allocation114_spill] sm:$0xff] %v7734_v26  ;;  %14083 = vst [vmem:[#allocation115_spill] sm:$0xff] %v7737_v11  ;;  %v1224_v32 = vrot.slane %v67_v36, %v7734_v26 }
 0x97d   :  { %14085 = vst [vmem:[#allocation117_spill] sm:$0xff] %v7751_v42 }
 0x97f   :  { %1188 = vrot.lane.b32.xlu1 %v1175_v24, %s13462_s2  ;;  %1186 = vrot.lane.b32.xlu0 %v1174_v38, %s13462_s2  ;;  %v7747_v38 = vsub.s32 2, %v7725_v25  ;;  %v1228_v24 = vrot.slane %v67_v36, %v7737_v11  ;;  %v352_v25 = vsel %vm351_vm13, %v7171_v48, %v7181_v54 }
 0x981   :  { %14084 = vst [vmem:[#allocation116_spill] sm:$0xff] %v7747_v38  ;;  %v1232_v39 = vrot.slane %v67_v36, %v7747_v38 }
 0x983   :  { %1211 = vperm.xlu1 %6615, %v70_v0   ;;  %1190 = vrot.lane.b32.xlu0 %v1176_v17, %s13462_s2  ;;  %v1236_v0 = vrot.slane %v67_v36, %v7751_v42  ;;  %v1240_v17 = vrot.slane %v67_v36, %v7756_v5  ;;  %v260_v36 = vsel %vm13417_vm14, %v7428_v2, %v7173_v49 }
 0x984   :  { %v215_v2 = vsel %vm213_vm10, %v7438_v22, %v7187_v58 }
 0x987   :  { %1241 = vrot.lane.b32.xlu0 %v1224_v32, %s13534_s19  ;;  %1243 = vrot.lane.b32.xlu1 %v1228_v24, %s13534_s19  ;;  %v214_v32 = vsel %vm213_vm10, %v7167_v45, %v7438_v22  ;;  %v173_v24 = vmul.f32 %v7631_v23, %v7011_v31  ;;  %v306_v45 = vsel %vm305_vm15, %v7169_v47, %v7177_v52 }
 0x988   :  { %v261_v22 = vsel %vm13417_vm14, %v7173_v49, %v7483_v34 }
 0x98b   :  { %1245 = vrot.lane.b32.xlu0 %v1232_v39, %s13534_s19  ;;  %1247 = vrot.lane.b32.xlu1 %v1236_v0, %s13534_s19  ;;  %v230_v39 = vadd.f32 %v7443_v7, %v178_v12  ;;  %v225_v0 = vadd.f32 %v214_v32, %v173_v24  ;;  %v174_v32 = vmul.f32 %v7011_v31, %v7023_v37 }
 0x98c   :  { %v218_v24 = vsel %vm213_vm10, %v7189_v59, %v7443_v7  ;;  %v176_v37 = vmul.f32 %v7011_v31, %v7083_v60  ;;  %v216_v7 = vsel %vm213_vm10, %v7187_v58, %v7479_v10  ;;  %v307_v60 = vsel %vm305_vm15, %v7177_v52, %v7488_v8 }
 0x98d   :  { %v271_v5 = vadd.f32 %v260_v36, %v225_v0  ;;  %v226_v48 = vadd.f32 %v215_v2, %v174_v32  ;;  %v262_v58 = vsel %vm13417_vm14, %v7483_v34, %v7191_v62  ;;  %v353_v52 = vsel %vm351_vm13, %v7181_v54, %v7492_v30 }
 0x98e   :  { %v308_v34 = vsel %vm305_vm15, %v7488_v8, %v7193_v63  ;;  %v354_v2 = vsel %vm351_vm13, %v7492_v30, %v7195_v4  ;;  %v394_v8 = vsel %vm13419_vm12, %v7185_v57, %v7197_v13 }
 0x98f   :  { %1249 = vrot.lane.b32.xlu0 %v1240_v17, %s13534_s19  ;;  %v276_v17 = vadd.f32 %v7175_v50, %v230_v39  ;;  %v317_v12 = vadd.f32 %v306_v45, %v271_v5  ;;  %v177_v5 = vmul.f32 %v7011_v31, %v7094_v3  ;;  %v264_v3 = vsel %vm13417_vm14, %v7486_v28, %v7175_v50  ;;  %s13547_s19 = smov 78  }
 0x990   :  { %v272_v49 = vadd.f32 %v261_v22, %v226_v48  ;;  %v310_v50 = vsel %vm305_vm15, %v7490_v33, %v7179_v53  ;;  %v397_v48 = vsel %vm13419_vm12, %v7199_v14, %v7445_v56 }
 0x991   :  { %v322_v41 = vadd.f32 %v7179_v53, %v276_v17  ;;  %v363_v38 = vadd.f32 %v352_v25, %v317_v12  ;;  %v175_v25 = vmul.f32 %v7011_v31, %v7086_v61  ;;  %v217_v61 = vsel %vm213_vm10, %v7479_v10, %v7189_v59 }
 0x992   :  { %v263_v59 = vsel %vm13417_vm14, %v7191_v62, %v7486_v28  ;;  %v228_v10 = vadd.f32 %v217_v61, %v176_v37  ;;  %v318_v45 = vadd.f32 %v307_v60, %v272_v49  ;;  %v309_v62 = vsel %vm305_vm15, %v7193_v63, %v7490_v33  ;;  %v14087_v60 = vld [vmem:[#allocation53_spill] sm:$0xff] }
 0x993   :  { %v368_v42 = vadd.f32 %v7183_v55, %v322_v41  ;;  %v404_v47 = vadd.f32 %v7185_v57, %v363_v38  ;;  %v229_v38 = vadd.f32 %v218_v24, %v177_v5  ;;  %v227_v0 = vadd.f32 %v216_v7, %v175_v25  ;;  %v14088_v49 = vld [vmem:[#allocation21_spill] sm:$0xff] }
 0x994   :  { %v356_v53 = vsel %vm351_vm13, %v7494_v6, %v7183_v55  ;;  %v274_v12 = vadd.f32 %v263_v59, %v228_v10  ;;  %v364_v32 = vadd.f32 %v353_v52, %v318_v45  ;;  %v355_v63 = vsel %vm351_vm13, %v7195_v4, %v7494_v6  ;;  %v14091_v59 = vld [vmem:[#allocation55_spill] sm:$0xff]  ;;  %v14092_v10 = vld [vmem:[#allocation56_spill] sm:$0xff] }
 0x995   :  { %v409_v39 = vadd.f32 %v7445_v56, %v368_v42  ;;  %v445_v42 = vadd.f32 %v7447_v51, %v404_v47  ;;  %v275_v17 = vadd.f32 %v264_v3, %v229_v38  ;;  %v273_v41 = vadd.f32 %v262_v58, %v227_v0  ;;  %v14089_v58 = vld [vmem:[#allocation54_spill] sm:$0xff]  ;;  %v14090_v0 = vld [vmem:[#allocation23_spill] sm:$0xff] }
 0x996   :  { %vm13776_vm14 = vcmask 744448   ;;  %v320_v55 = vadd.f32 %v309_v62, %v274_v12  ;;  %v395_v24 = vsel %vm13419_vm12, %v7197_v13, %v7496_v9  ;;  %v396_v57 = vsel %vm13419_vm12, %v7496_v9, %v7199_v14 }
 0x997   :  { %v450_v36 = vadd.f32 %v7449_v1, %v409_v39  ;;  %v486_v28 = vadd.f32 %v7455_v46, %v445_v42  ;;  %v321_v54 = vadd.f32 %v310_v50, %v275_v17  ;;  %v319_v47 = vadd.f32 %v308_v34, %v273_v41  ;;  %v14093_v17 = vld [vmem:[#allocation24_spill] sm:$0xff] }
 0x998   :  { %v435_v4 = vsel %vm13418_vm8, %v7447_v51, %v7201_v15  ;;  %v405_v6 = vadd.f32 %v394_v8, %v364_v32  ;;  %v366_v5 = vadd.f32 %v355_v63, %v320_v55  ;;  %v436_v13 = vsel %vm13418_vm8, %v7201_v15, %v7498_v44  ;;  %v14096_v32 = vld [vmem:[#allocation58_spill] sm:$0xff]  ;;  %v14097_v55 = vld [vmem:[#allocation59_spill] sm:$0xff] }
 0x999   :  { %v367_v33 = vadd.f32 %v356_v53, %v321_v54  ;;  %v491_v39 = vadd.f32 %v7459_v43, %v450_v36  ;;  %v365_v30 = vadd.f32 %v354_v2, %v319_v47  ;;  %v527_v25 = vadd.f32 %v7469_v27, %v486_v28  ;;  %v14094_v53 = vld [vmem:[#allocation57_spill] sm:$0xff]  ;;  %v14095_v2 = vld [vmem:[#allocation26_spill] sm:$0xff] }
 0x99a   :  { %v437_v56 = vsel %vm13418_vm8, %v7498_v44, %v7203_v16  ;;  %v438_v9 = vsel %vm13418_vm8, %v7203_v16, %v7449_v1  ;;  %v476_v51 = vsel %vm13777_vm6, %v7455_v46, %v7205_v18  ;;  %v407_v37 = vadd.f32 %v396_v57, %v366_v5 }
 0x99b   :  { %v406_v22 = vadd.f32 %v395_v24, %v365_v30  ;;  %v408_v14 = vadd.f32 %v397_v48, %v367_v33  ;;  %v446_v7 = vadd.f32 %v435_v4, %v405_v6  ;;  %v477_v15 = vsel %vm13777_vm6, %v7205_v18, %v7500_v35  ;;  %v14098_v24 = vld [vmem:[#allocation27_spill] sm:$0xff]  ;;  %v14099_v4 = vld [vmem:[#allocation60_spill] sm:$0xff] }
 0x99c   :  { %v478_v44 = vsel %vm13777_vm6, %v7500_v35, %v7207_v19  ;;  %v479_v16 = vsel %vm13777_vm6, %v7207_v19, %v7459_v43  ;;  %vm13421_vm8 = vcmask 736256   ;;  %v448_v1 = vadd.f32 %v437_v56, %v407_v37  ;;  %v14102_v56 = vld [vmem:[#allocation62_spill] sm:$0xff] }
 0x99d   :  { %v447_v38 = vadd.f32 %v436_v13, %v406_v22  ;;  %v449_v42 = vadd.f32 %v438_v9, %v408_v14  ;;  %v487_v46 = vadd.f32 %v476_v51, %v446_v7  ;;  %v517_v61 = vsel %vm13776_vm14, %v7469_v27, %v7209_v20  ;;  %v14100_v13 = vld [vmem:[#allocation29_spill] sm:$0xff]  ;;  %v14103_v7 = vld [vmem:[#allocation30_spill] sm:$0xff] }
 0x99e   :  { %v518_v18 = vsel %vm13776_vm14, %v7209_v20, %v14087_v60  ;;  %v519_v35 = vsel %vm13776_vm14, %v14087_v60, %v14088_v49  ;;  %v520_v43 = vsel %vm13776_vm14, %v14088_v49, %v14089_v58  ;;  %v489_v19 = vadd.f32 %v478_v44, %v448_v1 }
 0x99f   :  { %v488_v3 = vadd.f32 %v477_v15, %v447_v38  ;;  %v490_v36 = vadd.f32 %v479_v16, %v449_v42  ;;  %v558_v50 = vsel %vm13421_vm8, %v14091_v59, %v14090_v0  ;;  %vm13769_vm12 = vcmask 490496   ;;  %v14104_v16 = vld [vmem:[#allocation63_spill] sm:$0xff] }
 0x9a0   :  { %v532_v27 = vadd.f32 %v14089_v58, %v491_v39  ;;  %v528_v52 = vadd.f32 %v517_v61, %v487_v46  ;;  %v559_v20 = vsel %vm13421_vm8, %v14090_v0, %v14092_v10  ;;  %v560_v45 = vsel %vm13421_vm8, %v14092_v10, %v14093_v17  ;;  %v14105_v61 = vld [vmem:[#allocation32_spill] sm:$0xff] }
 0x9a1   :  { %v529_v34 = vadd.f32 %v518_v18, %v488_v3  ;;  %v530_v41 = vadd.f32 %v519_v35, %v489_v19  ;;  %v531_v62 = vadd.f32 %v520_v43, %v490_v36  ;;  %v561_v28 = vsel %vm13421_vm8, %v14093_v17, %v14094_v53  ;;  %v14106_v3 = vld [vmem:[#allocation65_spill] sm:$0xff]  ;;  %v14107_v18 = vld [vmem:[#allocation67_spill] sm:$0xff] }
 0x9a2   :  { %v568_v12 = vadd.f32 %v14091_v59, %v527_v25  ;;  %v569_v54 = vadd.f32 %v558_v50, %v528_v52  ;;  %v599_v47 = vsel %vm13769_vm12, %v14096_v32, %v14095_v2  ;;  %v600_v33 = vsel %vm13769_vm12, %v14095_v2, %v14097_v55  ;;  %v14101_v25 = vld [vmem:[#allocation61_spill] sm:$0xff]  ;;  %v14111_v52 = vld [vmem:[#allocation70_spill] sm:$0xff] }
 0x9a3   :  { %v570_v8 = vadd.f32 %v559_v20, %v529_v34  ;;  %v571_v63 = vadd.f32 %v560_v45, %v530_v41  ;;  %v601_v39 = vsel %vm13769_vm12, %v14097_v55, %v14098_v24  ;;  %v572_v30 = vadd.f32 %v561_v28, %v531_v62  ;;  %v14108_v43 = vld [vmem:[#allocation33_spill] sm:$0xff]  ;;  %v14112_v45 = vld [vmem:[#allocation71_spill] sm:$0xff]  ;;  %v14113_v41 = vld [vmem:[#allocation36_spill] sm:$0xff] }
 0x9a4   :  { %v573_v48 = vadd.f32 %v14094_v53, %v532_v27  ;;  %v609_v57 = vadd.f32 %v14096_v32, %v568_v12  ;;  %v602_v6 = vsel %vm13769_vm12, %v14098_v24, %v14099_v4  ;;  %v610_v5 = vadd.f32 %v599_v47, %v569_v54  ;;  %v14109_v36 = vld [vmem:[#allocation69_spill] sm:$0xff]  ;;  %v14110_v27 = vld [vmem:[#allocation35_spill] sm:$0xff]  ;;  %v14114_v54 = vld [vmem:[#allocation72_spill] sm:$0xff] }
 0x9a5   :  { %v640_v22 = vsel %vm13423_vm5, %v14101_v25, %v14100_v13  ;;  %v641_v9 = vsel %vm13423_vm5, %v14100_v13, %v14102_v56  ;;  %vm680_vm8 = vcmask 474112   ;;  %v611_v51 = vadd.f32 %v600_v33, %v570_v8  ;;  %v14115_v8 = vld [vmem:[#allocation38_spill] sm:$0xff]  ;;  %v7968_v33 = vpop.permute.xlu0 %1145 }
 0x9a6   :  { %v612_v14 = vadd.f32 %v601_v39, %v571_v63  ;;  %v614_v37 = vadd.f32 %v14099_v4, %v573_v48  ;;  %v642_v15 = vsel %vm13423_vm5, %v14102_v56, %v14103_v7  ;;  %v613_v38 = vadd.f32 %v602_v6, %v572_v30  ;;  %v14116_v63 = vld [vmem:[#allocation73_spill] sm:$0xff]  ;;  %v14117_v30 = vld [vmem:[#allocation74_spill] sm:$0xff] }
 0x9a7   :  { %v650_v44 = vadd.f32 %v14101_v25, %v609_v57  ;;  %v643_v1 = vsel %vm13423_vm5, %v14103_v7, %v14104_v16  ;;  %v651_v42 = vadd.f32 %v640_v22, %v610_v5  ;;  %v652_v46 = vadd.f32 %v641_v9, %v611_v51  ;;  %v14118_v57 = vld [vmem:[#allocation39_spill] sm:$0xff]  ;;  %v14120_v9 = vld [vmem:[#allocation41_spill] sm:$0xff]  ;;  %v14121_v51 = vld [vmem:[#allocation76_spill] sm:$0xff] }
 0x9a8   :  { %v681_v60 = vsel %vm680_vm8, %v14106_v3, %v14105_v61  ;;  %v682_v49 = vsel %vm680_vm8, %v14105_v61, %v14107_v18  ;;  %v653_v35 = vadd.f32 %v642_v15, %v612_v14  ;;  %v655_v58 = vadd.f32 %v14104_v16, %v614_v37  ;;  %v14119_v25 = vld [vmem:[#allocation75_spill] sm:$0xff]  ;;  %v14122_v37 = vld [vmem:[#allocation77_spill] sm:$0xff]  ;;  %v14123_v16 = vld [vmem:[#allocation42_spill] sm:$0xff] }
 0x9a9   :  { %v683_v19 = vsel %vm680_vm8, %v14107_v18, %v14108_v43  ;;  %v684_v0 = vsel %vm680_vm8, %v14108_v43, %v14109_v36  ;;  %v654_v59 = vadd.f32 %v643_v1, %v613_v38  ;;  %v691_v50 = vadd.f32 %v14106_v3, %v650_v44  ;;  %v14124_v61 = vld [vmem:[#allocation78_spill] sm:$0xff]  ;;  %v14127_v43 = vld [vmem:[#allocation80_spill] sm:$0xff] }
 0x9aa   :  { %v722_v10 = vsel %vm13425_vm11, %v14111_v52, %v14110_v27  ;;  %vm13426_vm5 = vcmask 457728   ;;  %v692_v20 = vadd.f32 %v681_v60, %v651_v42  ;;  %v693_v17 = vadd.f32 %v682_v49, %v652_v46  ;;  %v14125_v49 = vld [vmem:[#allocation44_spill] sm:$0xff] }
 0x9ab   :  { %v723_v34 = vsel %vm13425_vm11, %v14110_v27, %v14112_v45  ;;  %v724_v62 = vsel %vm13425_vm11, %v14112_v45, %v14113_v41  ;;  %v694_v53 = vadd.f32 %v683_v19, %v653_v35  ;;  %v695_v28 = vadd.f32 %v684_v0, %v654_v59  ;;  %v14126_v35 = vld [vmem:[#allocation79_spill] sm:$0xff] }
 0x9ac   :  { %v696_v12 = vadd.f32 %v14109_v36, %v655_v58  ;;  %v725_v2 = vsel %vm13425_vm11, %v14113_v41, %v14114_v54  ;;  %v732_v32 = vadd.f32 %v14111_v52, %v691_v50  ;;  %v733_v47 = vadd.f32 %v722_v10, %v692_v20  ;;  %v8001_v36 = vpop.permute.xlu0 %1149  ;;  %v14128_v50 = vld [vmem:[#allocation45_spill] sm:$0xff]  ;;  %v14130_v45 = vld [vmem:[#allocation47_spill] sm:$0xff] }
 0x9ad   :  { %v763_v55 = vsel %vm13426_vm5, %v14116_v63, %v14115_v8  ;;  %v734_v24 = vadd.f32 %v723_v34, %v693_v17  ;;  %v735_v39 = vadd.f32 %v724_v62, %v694_v53  ;;  %v764_v48 = vsel %vm13426_vm5, %v14115_v8, %v14117_v30  ;;  %v14129_v20 = vld [vmem:[#allocation81_spill] sm:$0xff]  ;;  %v14131_v34 = vld [vmem:[#allocation82_spill] sm:$0xff] }
 0x9ae   :  { %v765_v4 = vsel %vm13426_vm5, %v14117_v30, %v14118_v57  ;;  %v736_v6 = vadd.f32 %v725_v2, %v695_v28  ;;  %v737_v5 = vadd.f32 %v14114_v54, %v696_v12  ;;  %v773_v13 = vadd.f32 %v14116_v63, %v732_v32  ;;  %v14132_v28 = vld [vmem:[#allocation83_spill] sm:$0xff]  ;;  %v14133_v54 = vld [vmem:[#allocation48_spill] sm:$0xff]  ;;  %v14134_v63 = vld [vmem:[#allocation50_spill] sm:$0xff] }
 0x9af   :  { %v766_v22 = vsel %vm13426_vm5, %v14118_v57, %v14119_v25  ;;  %v774_v56 = vadd.f32 %v763_v55, %v733_v47  ;;  %v804_v14 = vsel %vm13766_vm3, %v14121_v51, %v14120_v9  ;;  %v805_v7 = vsel %vm13766_vm3, %v14120_v9, %v14122_v37  ;;  %v14135_v55 = vld [vmem:[#allocation84_spill] sm:$0xff] }
 0x9b0   :  { %vm844_vm11 = vcmask 203776   ;;  %v775_v15 = vadd.f32 %v764_v48, %v734_v24  ;;  %v776_v38 = vadd.f32 %v765_v4, %v735_v39  ;;  %v778_v44 = vadd.f32 %v14119_v25, %v737_v5  ;;  %v14136_v4 = vld [vmem:[#allocation85_spill] sm:$0xff]  ;;  %v14137_v25 = vld [vmem:[#allocation51_spill] sm:$0xff] }
 0x9b1   :  { %v806_v1 = vsel %vm13766_vm3, %v14122_v37, %v14123_v16  ;;  %v777_v42 = vadd.f32 %v766_v22, %v736_v6  ;;  %v814_v46 = vadd.f32 %v14121_v51, %v773_v13  ;;  %v807_v3 = vsel %vm13766_vm3, %v14123_v16, %v14124_v61 }
 0x9b2   :  { %vm13428_vm5 = vcmask 195584   ;;  %v815_v60 = vadd.f32 %v804_v14, %v774_v56  ;;  %v816_v18 = vadd.f32 %v805_v7, %v775_v15  ;;  %v845_v58 = vsel %vm844_vm11, %v14126_v35, %v14125_v49  ;;  %v14138_v7 = vld [vmem:[#allocation86_spill] sm:$0xff] }
 0x9b3   :  { %v846_v19 = vsel %vm844_vm11, %v14125_v49, %v14127_v43  ;;  %v817_v0 = vadd.f32 %v806_v1, %v776_v38  ;;  %v819_v59 = vadd.f32 %v14124_v61, %v778_v44  ;;  %v847_v27 = vsel %vm844_vm11, %v14127_v43, %v14128_v50  ;;  %v14139_v38 = vld [vmem:[#allocation64_spill] sm:$0xff]  ;;  %v14140_v44 = vld [vmem:[#allocation87_spill] sm:$0xff]  ;;  %v14142_v61 = vld [vmem:[#allocation66_spill] sm:$0xff] }
 0x9b4   :  { %v818_v52 = vadd.f32 %v807_v3, %v777_v42  ;;  %v855_v10 = vadd.f32 %v14126_v35, %v814_v46  ;;  %v848_v17 = vsel %vm844_vm11, %v14128_v50, %v14129_v20  ;;  %v886_v41 = vsel %vm13428_vm5, %v14131_v34, %v14130_v45  ;;  %v14141_v46 = vld [vmem:[#allocation88_spill] sm:$0xff]  ;;  %v14145_v43 = vld [vmem:[#allocation89_spill] sm:$0xff]  ;;  %v14146_v50 = vld [vmem:[#allocation91_spill] sm:$0xff] }
 0x9b5   :  { %v856_v62 = vadd.f32 %v845_v58, %v815_v60  ;;  %v857_v53 = vadd.f32 %v846_v19, %v816_v18  ;;  %v887_v12 = vsel %vm13428_vm5, %v14130_v45, %v14132_v28  ;;  %v888_v2 = vsel %vm13428_vm5, %v14132_v28, %v14133_v54  ;;  %v14143_v60 = vld [vmem:[#allocation100_spill] sm:$0xff]  ;;  %v14144_v18 = vld [vmem:[#allocation90_spill] sm:$0xff] }
 0x9b6   :  { %v858_v32 = vadd.f32 %v847_v27, %v817_v0  ;;  %v860_v47 = vadd.f32 %v14129_v20, %v819_v59  ;;  %v889_v8 = vsel %vm13428_vm5, %v14133_v54, %v7593_v29  ;;  %v927_v24 = vsel %vm13762_vm4, %v14135_v55, %v14134_v63 }
 0x9b7   :  { %v859_v30 = vadd.f32 %v848_v17, %v818_v52  ;;  %v896_v48 = vadd.f32 %v14131_v34, %v855_v10  ;;  %v897_v57 = vadd.f32 %v886_v41, %v856_v62  ;;  %v928_v6 = vsel %vm13762_vm4, %v14134_v63, %v14136_v4  ;;  %v14147_v52 = vld [vmem:[#allocation104_spill] sm:$0xff]  ;;  %v14148_v10 = vld [vmem:[#allocation103_spill] sm:$0xff]  ;;  %v14149_v62 = vld [vmem:[#allocation101_spill] sm:$0xff] }
 0x9b8   :  { %v898_v5 = vadd.f32 %v887_v12, %v857_v53  ;;  %v899_v13 = vadd.f32 %v888_v2, %v858_v32  ;;  %v929_v22 = vsel %vm13762_vm4, %v14136_v4, %v14137_v25  ;;  %vm13434_vm5 = vcmask 982016   ;;  %v14150_v2 = vld [vmem:[#allocation92_spill] sm:$0xff]  ;;  %v14151_v63 = vld [vmem:[#allocation94_spill] sm:$0xff] }
 0x9b9   :  { %v900_v56 = vadd.f32 %v889_v8, %v859_v30  ;;  %v901_v9 = vadd.f32 %v7593_v29, %v860_v47  ;;  %v937_v51 = vadd.f32 %v14135_v55, %v896_v48  ;;  %v938_v14 = vadd.f32 %v927_v24, %v897_v57  ;;  %v14152_v30 = vld [vmem:[#allocation105_spill] sm:$0xff]  ;;  %v14153_v4 = vld [vmem:[#allocation102_spill] sm:$0xff] }
 0x9ba   :  { %v939_v37 = vadd.f32 %v928_v6, %v898_v5  ;;  %v930_v15 = vsel %vm13762_vm4, %v14137_v25, %v14138_v7  ;;  %v967_v16 = vsel %vm65_vm9, %v14140_v44, %v14139_v38  ;;  %v940_v42 = vadd.f32 %v929_v22, %v899_v13 }
 0x9bb   :  { %v968_v29 = vsel %vm65_vm9, %v14139_v38, %v14141_v46  ;;  %v969_v3 = vsel %vm65_vm9, %v14141_v46, %v14142_v61  ;;  %v1018_v49 = vsel %vm13434_vm5, %v14144_v18, %v14143_v60  ;;  %v942_v35 = vadd.f32 %v14138_v7, %v901_v9  ;;  %v14160_v46 = vld [vmem:[#allocation110_spill] sm:$0xff] }
 0x9bc   :  { %v977_v58 = vadd.f32 %v14140_v44, %v937_v51  ;;  %v970_v19 = vsel %vm65_vm9, %v14142_v61, %v14145_v43  ;;  %v941_v0 = vadd.f32 %v930_v15, %v900_v56  ;;  %v978_v59 = vadd.f32 %v967_v16, %v938_v14  ;;  %v14155_v56 = vld [vmem:[#allocation107_spill] sm:$0xff]  ;;  %v14158_v44 = vld [vmem:[#allocation106_spill] sm:$0xff] }
 0x9bd   :  { %v1019_v27 = vsel %vm13434_vm5, %v14143_v60, %v14146_v50  ;;  %v1064_v20 = vsel %vm13756_vm2, %v14148_v10, %v14147_v52  ;;  %v979_v45 = vadd.f32 %v968_v29, %v939_v37  ;;  %v980_v34 = vadd.f32 %v969_v3, %v940_v42  ;;  %v14156_v14 = vld [vmem:[#allocation95_spill] sm:$0xff]  ;;  %v14161_v18 = vld [vmem:[#allocation98_spill] sm:$0xff] }
 0x9be   :  { %v1029_v41 = vadd.f32 %v1018_v49, %v977_v58  ;;  %v1020_v53 = vsel %vm13434_vm5, %v14146_v50, %v14149_v62  ;;  %v981_v12 = vadd.f32 %v970_v19, %v941_v0  ;;  %v982_v54 = vadd.f32 %v14145_v43, %v942_v35  ;;  %v14162_v58 = vld [vmem:[#allocation108_spill] sm:$0xff] }
 0x9bf   :  { %v1021_v32 = vsel %vm13434_vm5, %v14149_v62, %v14150_v2  ;;  %v1110_v47 = vsel %vm1109_vm7, %v7703_v21, %v7705_v40  ;;  %v1030_v8 = vadd.f32 %v1019_v27, %v978_v59  ;;  %v1065_v55 = vsel %vm13756_vm2, %v14147_v52, %v14151_v63  ;;  %v14154_v21 = vld [vmem:[#allocation97_spill] sm:$0xff] }
 0x9c0   :  { %v1075_v24 = vadd.f32 %v1064_v20, %v1029_v41  ;;  %v1066_v48 = vsel %vm13756_vm2, %v14151_v63, %v14152_v30  ;;  %v1031_v57 = vadd.f32 %v1020_v53, %v979_v45  ;;  %v1034_v6 = vadd.f32 %v14153_v4, %v982_v54 }
 0x9c1   :  { %v1022_v5 = vsel %vm13434_vm5, %v14150_v2, %v14153_v4  ;;  %v1032_v13 = vadd.f32 %v1021_v32, %v980_v34  ;;  %v1111_v25 = vsel %vm1109_vm7, %v7705_v40, %v14154_v21  ;;  %v1112_v9 = vsel %vm1109_vm7, %v14154_v21, %v14155_v56  ;;  %v14159_v40 = vld [vmem:[#allocation109_spill] sm:$0xff]  ;;  %v14164_v34 = vld [vmem:[#allocation111_spill] sm:$0xff] }
 0x9c2   :  { %v1121_v22 = vadd.f32 %v1110_v47, %v1075_v24  ;;  %v1076_v51 = vadd.f32 %v1065_v55, %v1030_v8  ;;  %v1067_v37 = vsel %vm13756_vm2, %v14152_v30, %v14156_v14  ;;  %v1077_v7 = vadd.f32 %v1066_v48, %v1031_v57 }
 0x9c3   :  { %v1068_v16 = vsel %vm13756_vm2, %v14156_v14, %v14158_v44  ;;  %v1152_v29 = vsel %vm13433_vm1, %v14159_v40, %v14160_v46  ;;  %v1153_v61 = vsel %vm13433_vm1, %v14160_v46, %v7968_v33  ;;  %v1033_v3 = vadd.f32 %v1022_v5, %v981_v12 }
 0x9c4   :  { %v1162_v42 = vadd.f32 %v14159_v40, %v1121_v22  ;;  %v1122_v60 = vadd.f32 %v1111_v25, %v1076_v51  ;;  %v1113_v49 = vsel %vm1109_vm7, %v14155_v56, %v14161_v18  ;;  %v1123_v35 = vadd.f32 %v1112_v9, %v1077_v7 }
 0x9c5   :  { %v1114_v43 = vsel %vm1109_vm7, %v14161_v18, %v14162_v58  ;;  %v1078_v50 = vadd.f32 %v1067_v37, %v1032_v13  ;;  %v1079_v27 = vadd.f32 %v1068_v16, %v1033_v3  ;;  %v1080_v45 = vadd.f32 %v14158_v44, %v1034_v6  ;;  %v8172_v44 = vld [vmem:[%s13215_s4] sm:$0xff] }
 0x9c6   :  { %v1163_v52 = vadd.f32 %v1152_v29, %v1122_v60  ;;  %v1164_v10 = vadd.f32 %v1153_v61, %v1123_v35  ;;  %v1154_v41 = vsel %vm13433_vm1, %v7968_v33, %v14164_v34  ;;  %v1155_v62 = vsel %vm13433_vm1, %v14164_v34, %v8001_v36 }
 0x9c7   :  { %v1124_v53 = vadd.f32 %v1113_v49, %v1078_v50  ;;  %v1126_v32 = vadd.f32 %v14162_v58, %v1080_v45  ;;  %v14170_v16 = vmov 2   ;;  %v14171_v40 = vmov 8  }
 0x9c8   :  { %vm13738_vm5 = vcmask 1048024   ;;  %v14176_v34 = vmov 4  }
 0x9c9   :  { %v1165_v63 = vadd.f32 %v1154_v41, %v1124_v53  ;;  %v1167_v57 = vadd.f32 %v8001_v36, %v1126_v32  ;;  %v14178_v53 = vmov 5  }
 0x9ed   :  { %v8027_v39 = vpop.permute.xlu0 %1182  ;;  %v1185_v17 = vpop.permute.xlu1 %1184 }
 0x9ee   :  { %v1193_v19 = vsel %vm13747_vm0, %v8027_v39, %v1185_v17  ;;  %v1203_v0 = vadd.f32 %v8027_v39, %v1162_v42 }
 0x9ef   :  { %v1204_v12 = vadd.f32 %v1193_v19, %v1163_v52 }
 0x9f1   :  { %v8044_v1 = vpop.permute.xlu0 %1186  ;;  %v1189_v15 = vpop.permute.xlu1 %1188 }
 0x9f2   :  { %v1194_v59 = vsel %vm13747_vm0, %v1185_v17, %v8044_v1  ;;  %v1125_v17 = vadd.f32 %v1114_v43, %v1079_v27  ;;  %v1195_v47 = vsel %vm13747_vm0, %v8044_v1, %v1189_v15 }
 0x9f3   :  { %v1205_v54 = vadd.f32 %v1194_v59, %v1164_v10  ;;  %v1206_v6 = vadd.f32 %v1195_v47, %v1165_v63  ;;  %v14173_v59 = vmov 3  }
 0x9f4   :  { %v1166_v55 = vadd.f32 %v1155_v62, %v1125_v17 }
 0x9f5   :  { %v8069_v28 = vpop.permute.xlu0 %1190 }
 0x9f6   :  { %v1196_v8 = vsel %vm13747_vm0, %v1189_v15, %v8069_v28  ;;  %v1208_v25 = vadd.f32 %v8069_v28, %v1167_v57 }
 0x9f7   :  { %v1207_v5 = vadd.f32 %v1196_v8, %v1166_v55 }
 0x9f9   :  { %v8097_v38 = vpop.permute.xlu0 %1241 }
 0x9fa   :  { %14157 = vst [vmem:[#allocation53_spill] sm:$0xff] %v8097_v38 }
 0x9fd   :  { %v1246_v2 = vpop.permute.xlu0 %1245 }
 0x9fe   :  { %v8120_v20 = vpop.permute.xlu1 %1211 }
 0x9ff   :  { %14163 = vst [vmem:[#allocation21_spill] sm:$0xff] %v8120_v20  ;;  %v1214_v39 = vadd.f32 %v8120_v20, %v1203_v0  ;;  %v1215_v30 = vadd.f32 %v8120_v20, %v1204_v12  ;;  %v1216_v48 = vadd.f32 %v8120_v20, %v1205_v54  ;;  %v1217_v56 = vadd.f32 %v8120_v20, %v1206_v6 }
 0xa00   :  { %v1218_v9 = vadd.f32 %v8120_v20, %v1207_v5  ;;  %v1219_v28 = vadd.f32 %v8120_v20, %v1208_v25 }
 0xa01   :  { %v1261_v33 = vmul.f32 %v8097_v38, %v1214_v39  ;;  %v8150_v22 = vpop.permute.xlu0 %1249 }
 0xa02   :  { %v1244_v24 = vpop.permute.xlu1 %1243  ;;  %14167 = vst [vmem:[#allocation55_spill] sm:$0xff] %v8150_v22  ;;  %v1266_v15 = vmul.f32 %v8150_v22, %v1219_v28 }
 0xa03   :  { %v8141_v4 = vsel %vm13433_vm1, %v8097_v38, %v1244_v24  ;;  %v8144_v1 = vsel %vm13433_vm1, %v1244_v24, %v1246_v2  ;;  %1273 = vrot.lane.b32.xlu1 %v1261_v33, %s13456_s3 }
 0xa04   :  { %14165 = vst [vmem:[#allocation54_spill] sm:$0xff] %v8141_v4  ;;  %14166 = vst [vmem:[#allocation23_spill] sm:$0xff] %v8144_v1  ;;  %v1262_v13 = vmul.f32 %v8141_v4, %v1215_v30  ;;  %v1263_v21 = vmul.f32 %v8144_v1, %v1216_v48 }
 0xa06   :  { %v1248_v36 = vpop.permute.xlu1 %1247  ;;  %1275 = vrot.lane.b32.xlu0 %v1262_v13, %s13456_s3 }
 0xa07   :  { %v8156_v51 = vsel %vm13433_vm1, %v1246_v2, %v1248_v36  ;;  %v8160_v14 = vsel %vm13433_vm1, %v1248_v36, %v8150_v22  ;;  %1277 = vrot.lane.b32.xlu1 %v1263_v21, %s13456_s3  ;;  %vm13742_vm1 = vcmask 572416   ;;  %v14180_v2 = vmov 6  }
 0xa08   :  { %14168 = vst [vmem:[#allocation56_spill] sm:$0xff] %v8156_v51  ;;  %14169 = vst [vmem:[#allocation24_spill] sm:$0xff] %v8160_v14  ;;  %v1264_v37 = vmul.f32 %v8156_v51, %v1217_v56  ;;  %v1265_v7 = vmul.f32 %v8160_v14, %v1218_v9  ;;  %v14182_v56 = vmov 7  }
 0xa0a   :  { %1279 = vrot.lane.b32.xlu0 %v1264_v37, %s13456_s3 }
 0xa0b   :  { %1281 = vrot.lane.b32.xlu1 %v1265_v7, %s13456_s3 }
 0xa0e   :  { %1283 = vrot.lane.b32.xlu0 %v1266_v15, %s13456_s3  ;;  %s13469_s3 = smov 17  }
 0xa0f   :  { %1309 = vperm.xlu1 %6615, %v8172_v44  }
 0xa12   :  { %1323 = vperm.xlu0 %6616, %v8172_v44  }
 0xa13   :  { %6617 = vset.pattern.permute.xlu1 %v14170_v16 }
 0xa16   :  { %6623 = vset.pattern.permute.xlu0 %v14171_v40 }
 0xa75   :  { %v1274_v42 = vpop.permute.xlu1 %1273 }
 0xa78   :  { %v1276_v46 = vpop.permute.xlu0 %1275 }
 0xa79   :  { %v1286_v29 = vsel %vm13742_vm1, %v1274_v42, %v1276_v46  ;;  %v1278_v61 = vpop.permute.xlu1 %1277 }
 0xa7a   :  { %1297 = vst.msk [vmem:[#allocation2 + $0x10] sm:$0xff] %vm13738_vm5, %v1286_v29  ;;  %v8182_v3 = vsel %vm13742_vm1, %v1276_v46, %v1278_v61  ;;  %vm13744_vm5 = vcmask 998400  }
 0xa7b   :  { %1298 = vst [vmem:[#allocation2 + $0x18] sm:$0xff] %v8182_v3 }
 0xa7c   :  { %v1280_v60 = vpop.permute.xlu0 %1279 }
 0xa7d   :  { %v8186_v18 = vsel %vm13742_vm1, %v1278_v61, %v1280_v60  ;;  %v1282_v49 = vpop.permute.xlu1 %1281 }
 0xa7e   :  { %1299 = vst [vmem:[#allocation2 + $0x20] sm:$0xff] %v8186_v18  ;;  %v8190_v35 = vsel %vm13742_vm1, %v1280_v60, %v1282_v49 }
 0xa7f   :  { %1300 = vst [vmem:[#allocation2 + $0x28] sm:$0xff] %v8190_v35 }
 0xa80   :  { %v1284_v58 = vpop.permute.xlu0 %1283 }
 0xa81   :  { %v1290_v43 = vsel %vm13742_vm1, %v1282_v49, %v1284_v58  ;;  %v8245_v33 = vld [vmem:[#allocation2 + $0x10] sm:$0xff]  ;;  %vm13746_vm1 = vcmask 924672  }
 0xa82   :  { %1301 = vst.msk [vmem:[#allocation2 + $0x30] sm:$0xff] %vm13776_vm14, %v1290_v43  ;;  %vm13794_vm14 = vcmask 105472  }
 0xa8a   :  { %v8203_v50 = vpop.permute.xlu1 %1309 }
 0xa8b   :  { %14174 = vst [vmem:[#allocation26_spill] sm:$0xff] %v8203_v50 }
 0xa8d   :  { %v8195_v19 = vpop.permute.xlu0 %1323 }
 0xa8e   :  { %14172 = vst [vmem:[#allocation57_spill] sm:$0xff] %v8195_v19  ;;  %v1326_v0 = vmul.f32 %v7631_v23, %v8195_v19  ;;  %v1329_v63 = vmul.f32 %v8195_v19, %v8182_v3  ;;  %v1328_v55 = vmul.f32 %v8245_v33, %v8195_v19  ;;  %v1330_v30 = vmul.f32 %v8195_v19, %v8186_v18 }
 0xa90   :  { %1336 = vrot.lane.b32.xlu1 %v1326_v0, %s6796_s16 }
 0xa94   :  { %1338 = vrot.lane.b32.xlu1 %v1326_v0, %s6796_s16  ;;  %v14184_v0 = vmov 15  }
 0xa98   :  { %1361 = vperm.xlu1 %6617, %v8172_v44  }
 0xa9c   :  { %6618 = vset.pattern.permute.xlu1 %v14173_v59 }
 0xb02   :  { %v8205_v27 = vpop.permute.xlu1 %1336 }
 0xb06   :  { %v8207_v52 = vpop.permute.xlu1 %1338 }
 0xb13   :  { %v8209_v10 = vpop.permute.xlu1 %1361 }
 0xb14   :  { %14175 = vst [vmem:[#allocation58_spill] sm:$0xff] %v8209_v10  ;;  %v1365_v45 = vmul.f32 %v7631_v23, %v8209_v10  ;;  %v1367_v24 = vmul.f32 %v8209_v10, %v8182_v3  ;;  %v1366_v57 = vmul.f32 %v8245_v33, %v8209_v10  ;;  %v1368_v5 = vmul.f32 %v8209_v10, %v8186_v18 }
 0xb16   :  { %1376 = vrot.lane.b32.xlu1 %v1365_v45, %s13450_s21  ;;  %1374 = vrot.lane.b32.xlu0 %v1365_v45, %s13450_s21 }
 0xb1a   :  { %1400 = vperm.xlu1 %6618, %v8172_v44  }
 0xb1e   :  { %6619 = vset.pattern.permute.xlu1 %v14176_v34 }
 0xb88   :  { %v8217_v41 = vpop.permute.xlu1 %1376 }
 0xb95   :  { %v8219_v62 = vpop.permute.xlu1 %1400 }
 0xb96   :  { %14177 = vst [vmem:[#allocation59_spill] sm:$0xff] %v8219_v62  ;;  %v1404_v39 = vmul.f32 %v7631_v23, %v8219_v62  ;;  %v1406_v48 = vmul.f32 %v8219_v62, %v8182_v3  ;;  %v1405_v21 = vmul.f32 %v8245_v33, %v8219_v62  ;;  %v1407_v25 = vmul.f32 %v8219_v62, %v8186_v18 }
 0xb98   :  { %1415 = vrot.lane.b32.xlu1 %v1404_v39, %s13578_s20  ;;  %1413 = vrot.lane.b32.xlu0 %v1404_v39, %s13578_s20 }
 0xb9c   :  { %1438 = vperm.xlu1 %6619, %v8172_v44  }
 0xba0   :  { %6620 = vset.pattern.permute.xlu1 %v14178_v53 }
 0xc0a   :  { %v8227_v17 = vpop.permute.xlu1 %1415 }
 0xc17   :  { %v8229_v12 = vpop.permute.xlu1 %1438 }
 0xc18   :  { %14179 = vst [vmem:[#allocation27_spill] sm:$0xff] %v8229_v12  ;;  %v1442_v54 = vmul.f32 %v7631_v23, %v8229_v12  ;;  %v1444_v6 = vmul.f32 %v8229_v12, %v8182_v3  ;;  %v1443_v36 = vmul.f32 %v8245_v33, %v8229_v12  ;;  %v1445_v9 = vmul.f32 %v8229_v12, %v8186_v18 }
 0xc1a   :  { %1453 = vrot.lane.b32.xlu1 %v1442_v54, %s13462_s2  ;;  %1451 = vrot.lane.b32.xlu0 %v1442_v54, %s13462_s2 }
 0xc1e   :  { %1476 = vperm.xlu1 %6620, %v8172_v44  }
 0xc22   :  { %6621 = vset.pattern.permute.xlu1 %v14180_v2 }
 0xc8c   :  { %v8237_v32 = vpop.permute.xlu1 %1453 }
 0xc99   :  { %v8239_v47 = vpop.permute.xlu1 %1476 }
 0xc9a   :  { %14181 = vst [vmem:[#allocation60_spill] sm:$0xff] %v8239_v47  ;;  %v1480_v8 = vmul.f32 %v7631_v23, %v8239_v47  ;;  %v1482_v13 = vmul.f32 %v8239_v47, %v8182_v3  ;;  %v1481_v28 = vmul.f32 %v8245_v33, %v8239_v47  ;;  %v1483_v37 = vmul.f32 %v8239_v47, %v8186_v18 }
 0xc9c   :  { %1491 = vrot.lane.b32.xlu1 %v1480_v8, %s6772_s18  ;;  %1489 = vrot.lane.b32.xlu0 %v1480_v8, %s6772_s18 }
 0xca0   :  { %1342 = vrot.lane.b32.xlu1 %v1329_v63, %s6796_s16  ;;  %1340 = vrot.lane.b32.xlu0 %v1328_v55, %s6796_s16 }
 0xca4   :  { %1380 = vrot.lane.b32.xlu1 %v1367_v24, %s13450_s21  ;;  %1344 = vrot.lane.b32.xlu0 %v1330_v30, %s6796_s16  ;;  %v14186_v30 = vmov 9  }
 0xca8   :  { %1419 = vrot.lane.b32.xlu1 %v1406_v48, %s13578_s20  ;;  %1378 = vrot.lane.b32.xlu0 %v1366_v57, %s13450_s21  ;;  %v8347_v48 = vpop.permute.xlu0 %1374 }
 0xcac   :  { %1457 = vrot.lane.b32.xlu1 %v1444_v6, %s13462_s2  ;;  %1382 = vrot.lane.b32.xlu0 %v1368_v5, %s13450_s21  ;;  %v8349_v57 = vpop.permute.xlu0 %1413  ;;  %s6833_s21 = smov 20  }
 0xcb0   :  { %1495 = vrot.lane.b32.xlu1 %v1482_v13, %s6772_s18  ;;  %1417 = vrot.lane.b32.xlu0 %v1405_v21, %s13578_s20  ;;  %v8351_v6 = vpop.permute.xlu0 %1451 }
 0xcb4   :  { %1515 = vperm.xlu1 %6621, %v8172_v44   ;;  %1421 = vrot.lane.b32.xlu0 %v1407_v25, %s13578_s20  ;;  %s13614_s20 = smov 89  }
 0xcb8   :  { %1455 = vrot.lane.b32.xlu0 %v1443_v36, %s13462_s2  ;;  %6622 = vset.pattern.permute.xlu1 %v14182_v56 }
 0xcbc   :  { %1459 = vrot.lane.b32.xlu0 %v1445_v9, %s13462_s2  ;;  %s13477_s2 = smov 14  }
 0xcc0   :  { %1493 = vrot.lane.b32.xlu0 %v1481_v28, %s6772_s18 }
 0xcc4   :  { %1497 = vrot.lane.b32.xlu0 %v1483_v37, %s6772_s18 }
 0xd0e   :  { %v8294_v7 = vpop.permute.xlu1 %1491  ;;  %v8353_v5 = vpop.permute.xlu0 %1489 }
 0xd12   :  { %v8296_v15 = vpop.permute.xlu1 %1342  ;;  %v8355_v13 = vpop.permute.xlu0 %1340 }
 0xd16   :  { %v8298_v40 = vpop.permute.xlu1 %1380  ;;  %v8357_v21 = vpop.permute.xlu0 %1344 }
 0xd1a   :  { %v8300_v42 = vpop.permute.xlu1 %1419  ;;  %v8359_v25 = vpop.permute.xlu0 %1378 }
 0xd1e   :  { %v8302_v46 = vpop.permute.xlu1 %1457  ;;  %v8361_v36 = vpop.permute.xlu0 %1382 }
 0xd22   :  { %v8304_v29 = vpop.permute.xlu1 %1495  ;;  %v8363_v9 = vpop.permute.xlu0 %1417 }
 0xd26   :  { %v8365_v28 = vpop.permute.xlu0 %1421 }
 0xd2a   :  { %v8367_v37 = vpop.permute.xlu0 %1455 }
 0xd2f   :  { %v8306_v61 = vpop.permute.xlu1 %1515 }
 0xd30   :  { %14183 = vst [vmem:[#allocation29_spill] sm:$0xff] %v8306_v61  ;;  %v1519_v60 = vmul.f32 %v7631_v23, %v8306_v61  ;;  %v1521_v49 = vmul.f32 %v8306_v61, %v8182_v3  ;;  %v1520_v58 = vmul.f32 %v8245_v33, %v8306_v61  ;;  %v1522_v43 = vmul.f32 %v8306_v61, %v8186_v18 }
 0xd32   :  { %1530 = vrot.lane.b32.xlu1 %v1519_v60, %s6832_s23  ;;  %1528 = vrot.lane.b32.xlu0 %v1519_v60, %s6832_s23  ;;  %v8369_v60 = vpop.permute.xlu0 %1459 }
 0xd36   :  { %1534 = vrot.lane.b32.xlu1 %v1521_v49, %s6832_s23  ;;  %1532 = vrot.lane.b32.xlu0 %v1520_v58, %s6832_s23  ;;  %v8371_v49 = vpop.permute.xlu0 %1493 }
 0xd3a   :  { %1560 = vperm.xlu1 %6622, %v8172_v44   ;;  %1536 = vrot.lane.b32.xlu0 %v1522_v43, %s6832_s23  ;;  %v8373_v58 = vpop.permute.xlu0 %1497 }
 0xd3e   :  { %6630 = vset.pattern.permute.xlu1 %v14184_v0 }
 0xda4   :  { %v8323_v45 = vpop.permute.xlu1 %1530  ;;  %v8375_v43 = vpop.permute.xlu0 %1528 }
 0xda8   :  { %v8325_v39 = vpop.permute.xlu1 %1534  ;;  %v8377_v0 = vpop.permute.xlu0 %1532 }
 0xdb5   :  { %v8327_v54 = vpop.permute.xlu1 %1560 }
 0xdb6   :  { %14185 = vst [vmem:[#allocation61_spill] sm:$0xff] %v8327_v54  ;;  %v1564_v8 = vmul.f32 %v7631_v23, %v8327_v54  ;;  %v1566_v63 = vmul.f32 %v8327_v54, %v8182_v3  ;;  %v1565_v55 = vmul.f32 %v8327_v54, %v8245_v33  ;;  %v1568_v24 = vmul.f32 %v8327_v54, %v8190_v35 }
 0xdb7   :  { %v1567_v23 = vmul.f32 %v8327_v54, %v8186_v18  ;;  %v8391_v54 = vld [vmem:[#allocation2] sm:$0xff] }
 0xdb8   :  { %1577 = vrot.lane.b32.xlu1 %v1564_v8, %s6812_s26  ;;  %1575 = vrot.lane.b32.xlu0 %v1564_v8, %s6812_s26  ;;  %v8379_v8 = vpop.permute.xlu0 %1536 }
 0xdbc   :  { %1581 = vrot.lane.b32.xlu1 %v1566_v63, %s6812_s26  ;;  %1579 = vrot.lane.b32.xlu0 %v1565_v55, %s6812_s26 }
 0xdc0   :  { %1585 = vrot.lane.b32.xlu1 %v1568_v24, %s6812_s26  ;;  %1583 = vrot.lane.b32.xlu0 %v1567_v23, %s6812_s26 }
 0xdc4   :  { %1603 = vperm.xlu0 %6623, %v8172_v44  }
 0xdc8   :  { %6624 = vset.pattern.permute.xlu0 %v14186_v30 }
 0xe2a   :  { %v8381_v63 = vpop.permute.xlu0 %1575 }
 0xe2e   :  { %v8383_v55 = vpop.permute.xlu0 %1579 }
 0xe32   :  { %v8385_v24 = vpop.permute.xlu0 %1583 }
 0xe3f   :  { %v8387_v23 = vpop.permute.xlu0 %1603 }
 0xe40   :  { %14187 = vst [vmem:[#allocation62_spill] sm:$0xff] %v8387_v23  ;;  %v1608_v30 = vmul.f32 %v8387_v23, %v8245_v33  ;;  %v1606_v61 = vmul.f32 %v8391_v54, %v8387_v23  ;;  %v1610_v47 = vmul.f32 %v8387_v23, %v8186_v18  ;;  %v1609_v12 = vmul.f32 %v8387_v23, %v8182_v3 }
 0xe41   :  { %v1611_v62 = vmul.f32 %v8387_v23, %v8190_v35 }
 0xe42   :  { %1622 = vrot.lane.b32.xlu0 %v1608_v30, %s6818_s11  ;;  %1618 = vrot.lane.b32.xlu1 %v1606_v61, %s6818_s11  ;;  %v14188_v30 = vmov 10  }
 0xe46   :  { %1626 = vrot.lane.b32.xlu0 %v1610_v47, %s6818_s11  ;;  %1620 = vrot.lane.b32.xlu1 %v1606_v61, %s6818_s11 }
 0xe4a   :  { %1646 = vperm.xlu0 %6624, %v8172_v44   ;;  %1624 = vrot.lane.b32.xlu1 %v1609_v12, %s6818_s11 }
 0xe4e   :  { %1628 = vrot.lane.b32.xlu1 %v1611_v62, %s6818_s11  ;;  %6625 = vset.pattern.permute.xlu0 %v14188_v30 }
 0xeb4   :  { %v8409_v10 = vpop.permute.xlu0 %1622 }
 0xeb8   :  { %v8411_v19 = vpop.permute.xlu0 %1626 }
 0xec5   :  { %v8413_v47 = vpop.permute.xlu0 %1646 }
 0xec6   :  { %14189 = vst [vmem:[#allocation30_spill] sm:$0xff] %v8413_v47  ;;  %v1651_v61 = vmul.f32 %v8413_v47, %v8245_v33  ;;  %v1649_v22 = vmul.f32 %v8391_v54, %v8413_v47  ;;  %v1653_v62 = vmul.f32 %v8413_v47, %v8186_v18  ;;  %v1652_v12 = vmul.f32 %v8413_v47, %v8182_v3 }
 0xec7   :  { %v1654_v30 = vmul.f32 %v8413_v47, %v8190_v35 }
 0xec8   :  { %1665 = vrot.lane.b32.xlu0 %v1651_v61, %s6833_s21  ;;  %1661 = vrot.lane.b32.xlu1 %v1649_v22, %s6833_s21  ;;  %v14190_v61 = vmov 11  }
 0xecc   :  { %1669 = vrot.lane.b32.xlu0 %v1653_v62, %s6833_s21  ;;  %1663 = vrot.lane.b32.xlu1 %v1649_v22, %s6833_s21 }
 0xed0   :  { %1690 = vperm.xlu0 %6625, %v8172_v44   ;;  %1667 = vrot.lane.b32.xlu1 %v1652_v12, %s6833_s21 }
 0xed4   :  { %1671 = vrot.lane.b32.xlu1 %v1654_v30, %s6833_s21  ;;  %6626 = vset.pattern.permute.xlu0 %v14190_v61 }
 0xf3a   :  { %v8433_v23 = vpop.permute.xlu0 %1665 }
 0xf3e   :  { %v8435_v14 = vpop.permute.xlu0 %1669 }
 0xf3f   :  { %14191 = vst [vmem:[#allocation63_spill] sm:$0xff] %v8435_v14 }
 0xf4b   :  { %v8437_v62 = vpop.permute.xlu0 %1690 }
 0xf4c   :  { %14192 = vst [vmem:[#allocation32_spill] sm:$0xff] %v8437_v62  ;;  %v1695_v22 = vmul.f32 %v8437_v62, %v8245_v33  ;;  %v1693_v51 = vmul.f32 %v8391_v54, %v8437_v62  ;;  %v1697_v12 = vmul.f32 %v8437_v62, %v8186_v18  ;;  %v1696_v30 = vmul.f32 %v8437_v62, %v8182_v3 }
 0xf4d   :  { %v1698_v61 = vmul.f32 %v8437_v62, %v8190_v35 }
 0xf4e   :  { %1709 = vrot.lane.b32.xlu0 %v1695_v22, %s13469_s3  ;;  %1705 = vrot.lane.b32.xlu1 %v1693_v51, %s13469_s3  ;;  %v14193_v22 = vmov 12  }
 0xf52   :  { %1713 = vrot.lane.b32.xlu0 %v1697_v12, %s13469_s3  ;;  %1707 = vrot.lane.b32.xlu1 %v1693_v51, %s13469_s3 }
 0xf56   :  { %1734 = vperm.xlu0 %6626, %v8172_v44   ;;  %1711 = vrot.lane.b32.xlu1 %v1696_v30, %s13469_s3 }
 0xf5a   :  { %1715 = vrot.lane.b32.xlu1 %v1698_v61, %s13469_s3  ;;  %6627 = vset.pattern.permute.xlu0 %v14193_v22  ;;  %s13508_s3 = smov 11  }
 0xfc0   :  { %v8457_v47 = vpop.permute.xlu0 %1709 }
 0xfc1   :  { %14194 = vst [vmem:[#allocation65_spill] sm:$0xff] %v8457_v47 }
 0xfc4   :  { %v8459_v1 = vpop.permute.xlu0 %1713 }
 0xfc5   :  { %14195 = vst [vmem:[#allocation67_spill] sm:$0xff] %v8459_v1 }
 0xfd1   :  { %v8461_v12 = vpop.permute.xlu0 %1734 }
 0xfd2   :  { %14196 = vst [vmem:[#allocation33_spill] sm:$0xff] %v8461_v12  ;;  %v1739_v51 = vmul.f32 %v8461_v12, %v8245_v33  ;;  %v1737_v4 = vmul.f32 %v8391_v54, %v8461_v12  ;;  %v1741_v30 = vmul.f32 %v8461_v12, %v8186_v18  ;;  %v1740_v61 = vmul.f32 %v8461_v12, %v8182_v3 }
 0xfd3   :  { %v1742_v22 = vmul.f32 %v8461_v12, %v8190_v35 }
 0xfd4   :  { %1753 = vrot.lane.b32.xlu0 %v1739_v51, %s13477_s2  ;;  %1749 = vrot.lane.b32.xlu1 %v1737_v4, %s13477_s2  ;;  %v14197_v51 = vmov 13  }
 0xfd8   :  { %1757 = vrot.lane.b32.xlu0 %v1741_v30, %s13477_s2  ;;  %1751 = vrot.lane.b32.xlu1 %v1737_v4, %s13477_s2 }
 0xfdc   :  { %1778 = vperm.xlu0 %6627, %v8172_v44   ;;  %1755 = vrot.lane.b32.xlu1 %v1740_v61, %s13477_s2 }
 0xfe0   :  { %1759 = vrot.lane.b32.xlu1 %v1742_v22, %s13477_s2  ;;  %6628 = vset.pattern.permute.xlu0 %v14197_v51  ;;  %s13485_s2 = smov 8  }
0x1046   :  { %v8481_v62 = vpop.permute.xlu0 %1753 }
0x1047   :  { %14198 = vst [vmem:[#allocation69_spill] sm:$0xff] %v8481_v62 }
0x104a   :  { %v8483_v38 = vpop.permute.xlu0 %1757 }
0x104b   :  { %14199 = vst [vmem:[#allocation35_spill] sm:$0xff] %v8483_v38 }
0x1057   :  { %v8485_v30 = vpop.permute.xlu0 %1778 }
0x1058   :  { %14200 = vst [vmem:[#allocation70_spill] sm:$0xff] %v8485_v30  ;;  %v1783_v4 = vmul.f32 %v8485_v30, %v8245_v33  ;;  %v1781_v20 = vmul.f32 %v8391_v54, %v8485_v30  ;;  %v1785_v61 = vmul.f32 %v8485_v30, %v8186_v18  ;;  %v1784_v22 = vmul.f32 %v8485_v30, %v8182_v3 }
0x1059   :  { %v1786_v51 = vmul.f32 %v8485_v30, %v8190_v35 }
0x105a   :  { %1797 = vrot.lane.b32.xlu0 %v1783_v4, %s13508_s3  ;;  %1793 = vrot.lane.b32.xlu1 %v1781_v20, %s13508_s3  ;;  %v14201_v4 = vmov 14  }
0x105e   :  { %1801 = vrot.lane.b32.xlu0 %v1785_v61, %s13508_s3  ;;  %1795 = vrot.lane.b32.xlu1 %v1781_v20, %s13508_s3 }
0x1062   :  { %1822 = vperm.xlu0 %6628, %v8172_v44   ;;  %1799 = vrot.lane.b32.xlu1 %v1784_v22, %s13508_s3 }
0x1066   :  { %1803 = vrot.lane.b32.xlu1 %v1786_v51, %s13508_s3  ;;  %6629 = vset.pattern.permute.xlu0 %v14201_v4  ;;  %s13520_s3 = smov 46  }
0x10cc   :  { %v8505_v12 = vpop.permute.xlu0 %1797 }
0x10cd   :  { %14202 = vst [vmem:[#allocation71_spill] sm:$0xff] %v8505_v12 }
0x10d0   :  { %v8507_v31 = vpop.permute.xlu0 %1801 }
0x10d1   :  { %14203 = vst [vmem:[#allocation36_spill] sm:$0xff] %v8507_v31 }
0x10dd   :  { %v8509_v61 = vpop.permute.xlu0 %1822 }
0x10de   :  { %14204 = vst [vmem:[#allocation72_spill] sm:$0xff] %v8509_v61  ;;  %v1827_v20 = vmul.f32 %v8509_v61, %v8245_v33  ;;  %v1825_v11 = vmul.f32 %v8391_v54, %v8509_v61  ;;  %v1829_v22 = vmul.f32 %v8509_v61, %v8186_v18  ;;  %v1828_v51 = vmul.f32 %v8509_v61, %v8182_v3 }
0x10df   :  { %v1830_v4 = vmul.f32 %v8509_v61, %v8190_v35 }
0x10e0   :  { %1841 = vrot.lane.b32.xlu0 %v1827_v20, %s13485_s2  ;;  %1837 = vrot.lane.b32.xlu1 %v1825_v11, %s13485_s2  ;;  %v8528_v20 = vpop.permute.xlu1 %1577 }
0x10e4   :  { %1845 = vrot.lane.b32.xlu0 %v1829_v22, %s13485_s2  ;;  %1839 = vrot.lane.b32.xlu1 %v1825_v11, %s13485_s2  ;;  %v8530_v30 = vpop.permute.xlu1 %1581 }
0x10e8   :  { %1866 = vperm.xlu0 %6629, %v8172_v44   ;;  %1843 = vrot.lane.b32.xlu1 %v1828_v51, %s13485_s2  ;;  %v8532_v26 = vpop.permute.xlu1 %1585 }
0x10ec   :  { %1847 = vrot.lane.b32.xlu1 %v1830_v4, %s13485_s2  ;;  %v8534_v22 = vpop.permute.xlu1 %1618  ;;  %s13503_s2 = smov 52  }
0x10f0   :  { %v8538_v56 = vpop.permute.xlu1 %1620 }
0x10f4   :  { %v8548_v34 = vpop.permute.xlu1 %1624 }
0x10f8   :  { %v8558_v59 = vpop.permute.xlu1 %1628 }
0x1152   :  { %v8536_v11 = vpop.permute.xlu0 %1841 }
0x1153   :  { %14205 = vst [vmem:[#allocation38_spill] sm:$0xff] %v8536_v11  ;;  %v14208_v11 = vmov 16  }
0x1156   :  { %v8540_v53 = vpop.permute.xlu0 %1845 }
0x1157   :  { %14206 = vst [vmem:[#allocation73_spill] sm:$0xff] %v8540_v53 }
0x1163   :  { %v8542_v51 = vpop.permute.xlu0 %1866 }
0x1164   :  { %14207 = vst [vmem:[#allocation74_spill] sm:$0xff] %v8542_v51  ;;  %v1871_v61 = vmul.f32 %v8542_v51, %v8182_v3  ;;  %v1869_v4 = vmul.f32 %v8391_v54, %v8542_v51  ;;  %v1873_v2 = vmul.f32 %v8542_v51, %v8190_v35  ;;  %v1870_v16 = vmul.f32 %v8542_v51, %v8245_v33 }
0x1165   :  { %v1872_v53 = vmul.f32 %v8542_v51, %v8186_v18 }
0x1166   :  { %1883 = vrot.lane.b32.xlu0 %v1871_v61, %s13503_s2  ;;  %1879 = vrot.lane.b32.xlu1 %v1869_v4, %s13503_s2  ;;  %v8563_v61 = vpop.permute.xlu1 %1661 }
0x116a   :  { %1887 = vrot.lane.b32.xlu0 %v1873_v2, %s13503_s2  ;;  %1881 = vrot.lane.b32.xlu1 %v1870_v16, %s13503_s2  ;;  %v8566_v4 = vpop.permute.xlu1 %1663 }
0x116e   :  { %1885 = vrot.lane.b32.xlu1 %v1872_v53, %s13503_s2  ;;  %v8569_v31 = vpop.permute.xlu1 %1667  ;;  %s13514_s2 = smov 49  }
0x116f   :  { %14209 = vst [vmem:[#allocation39_spill] sm:$0xff] %v8569_v31 }
0x1172   :  { %1905 = vperm.xlu1 %6630, %v8172_v44   ;;  %v8571_v2 = vpop.permute.xlu1 %1671 }
0x1173   :  { %14210 = vst [vmem:[#allocation75_spill] sm:$0xff] %v8571_v2 }
0x1176   :  { %6631 = vset.pattern.permute.xlu1 %v14208_v11  ;;  %v8573_v16 = vpop.permute.xlu1 %1705 }
0x1177   :  { %14211 = vst [vmem:[#allocation41_spill] sm:$0xff] %v8573_v16 }
0x117a   :  { %v8575_v12 = vpop.permute.xlu1 %1707 }
0x117b   :  { %14212 = vst [vmem:[#allocation76_spill] sm:$0xff] %v8575_v12 }
0x117e   :  { %v8577_v38 = vpop.permute.xlu1 %1711 }
0x117f   :  { %14213 = vst [vmem:[#allocation77_spill] sm:$0xff] %v8577_v38 }
0x1182   :  { %v8579_v51 = vpop.permute.xlu1 %1715 }
0x1183   :  { %14214 = vst [vmem:[#allocation42_spill] sm:$0xff] %v8579_v51 }
0x1186   :  { %v8581_v53 = vpop.permute.xlu1 %1749 }
0x1187   :  { %14215 = vst [vmem:[#allocation78_spill] sm:$0xff] %v8581_v53 }
0x118a   :  { %v8583_v62 = vpop.permute.xlu1 %1751 }
0x118b   :  { %14216 = vst [vmem:[#allocation44_spill] sm:$0xff] %v8583_v62 }
0x118e   :  { %v8585_v1 = vpop.permute.xlu1 %1755 }
0x118f   :  { %14217 = vst [vmem:[#allocation79_spill] sm:$0xff] %v8585_v1 }
0x1192   :  { %v8587_v47 = vpop.permute.xlu1 %1759 }
0x1193   :  { %14218 = vst [vmem:[#allocation80_spill] sm:$0xff] %v8587_v47 }
0x1196   :  { %v8589_v11 = vpop.permute.xlu1 %1793 }
0x1197   :  { %14219 = vst [vmem:[#allocation45_spill] sm:$0xff] %v8589_v11 }
0x119a   :  { %v8591_v14 = vpop.permute.xlu1 %1795 }
0x119b   :  { %14220 = vst [vmem:[#allocation81_spill] sm:$0xff] %v8591_v14 }
0x119e   :  { %v8593_v2 = vpop.permute.xlu1 %1799 }
0x119f   :  { %14221 = vst [vmem:[#allocation47_spill] sm:$0xff] %v8593_v2 }
0x11a2   :  { %v8595_v16 = vpop.permute.xlu1 %1803 }
0x11a3   :  { %14222 = vst [vmem:[#allocation82_spill] sm:$0xff] %v8595_v16 }
0x11a6   :  { %v8597_v12 = vpop.permute.xlu1 %1837 }
0x11a7   :  { %14223 = vst [vmem:[#allocation83_spill] sm:$0xff] %v8597_v12 }
0x11aa   :  { %v8599_v38 = vpop.permute.xlu1 %1839 }
0x11ab   :  { %14224 = vst [vmem:[#allocation48_spill] sm:$0xff] %v8599_v38 }
0x11ae   :  { %v8601_v51 = vpop.permute.xlu1 %1843 }
0x11af   :  { %14225 = vst [vmem:[#allocation50_spill] sm:$0xff] %v8601_v51 }
0x11b2   :  { %v8603_v53 = vpop.permute.xlu1 %1847 }
0x11b3   :  { %14226 = vst [vmem:[#allocation84_spill] sm:$0xff] %v8603_v53 }
0x11d8   :  { %v8605_v62 = vpop.permute.xlu1 %1879 }
0x11d9   :  { %14227 = vst [vmem:[#allocation85_spill] sm:$0xff] %v8605_v62 }
0x11dc   :  { %v8607_v1 = vpop.permute.xlu1 %1881 }
0x11dd   :  { %14228 = vst [vmem:[#allocation51_spill] sm:$0xff] %v8607_v1 }
0x11e0   :  { %v8609_v47 = vpop.permute.xlu1 %1885 }
0x11e1   :  { %14229 = vst [vmem:[#allocation86_spill] sm:$0xff] %v8609_v47 }
0x11ed   :  { %v8611_v11 = vpop.permute.xlu1 %1905 }
0x11ee   :  { %14230 = vst [vmem:[#allocation64_spill] sm:$0xff] %v8611_v11  ;;  %v1909_v2 = vmul.f32 %v8611_v11, %v8245_v33  ;;  %v1908_v12 = vmul.f32 %v8391_v54, %v8611_v11  ;;  %v1911_v62 = vmul.f32 %v8611_v11, %v8186_v18  ;;  %v1910_v1 = vmul.f32 %v8611_v11, %v8182_v3 }
0x11ef   :  { %v1912_v47 = vmul.f32 %v8611_v11, %v8190_v35 }
0x11f0   :  { %1920 = vrot.lane.b32.xlu1 %v1909_v2, %s13514_s2  ;;  %1918 = vrot.lane.b32.xlu0 %v1908_v12, %s13514_s2  ;;  %v14231_v2 = vmov 17  }
0x11f4   :  { %1924 = vrot.lane.b32.xlu1 %v1911_v62, %s13514_s2  ;;  %1922 = vrot.lane.b32.xlu0 %v1910_v1, %s13514_s2 }
0x11f8   :  { %1944 = vperm.xlu1 %6631, %v8172_v44   ;;  %1926 = vrot.lane.b32.xlu0 %v1912_v47, %s13514_s2  ;;  %s13530_s2 = smov 43  }
0x11fc   :  { %6632 = vset.pattern.permute.xlu1 %v14231_v2 }
0x1262   :  { %v8630_v12 = vpop.permute.xlu1 %1920 }
0x1263   :  { %14232 = vst [vmem:[#allocation87_spill] sm:$0xff] %v8630_v12 }
0x1266   :  { %v8632_v51 = vpop.permute.xlu1 %1924 }
0x1267   :  { %14233 = vst [vmem:[#allocation88_spill] sm:$0xff] %v8632_v51 }
0x1273   :  { %v8634_v53 = vpop.permute.xlu1 %1944 }
0x1274   :  { %14234 = vst [vmem:[#allocation66_spill] sm:$0xff] %v8634_v53  ;;  %v1948_v62 = vmul.f32 %v8634_v53, %v8245_v33  ;;  %v1947_v1 = vmul.f32 %v8391_v54, %v8634_v53  ;;  %v1950_v47 = vmul.f32 %v8634_v53, %v8186_v18  ;;  %v1949_v2 = vmul.f32 %v8634_v53, %v8182_v3 }
0x1275   :  { %v1951_v11 = vmul.f32 %v8634_v53, %v8190_v35 }
0x1276   :  { %1959 = vrot.lane.b32.xlu1 %v1948_v62, %s13520_s3  ;;  %1957 = vrot.lane.b32.xlu0 %v1947_v1, %s13520_s3  ;;  %v14235_v62 = vmov 18  }
0x127a   :  { %1963 = vrot.lane.b32.xlu1 %v1950_v47, %s13520_s3  ;;  %1961 = vrot.lane.b32.xlu0 %v1949_v2, %s13520_s3 }
0x127e   :  { %1983 = vperm.xlu1 %6632, %v8172_v44   ;;  %1965 = vrot.lane.b32.xlu0 %v1951_v11, %s13520_s3  ;;  %s13791_s3 = smov 40  }
0x1282   :  { %6633 = vset.pattern.permute.xlu1 %v14235_v62 }
0x12e8   :  { %v8653_v1 = vpop.permute.xlu1 %1959 }
0x12e9   :  { %14236 = vst [vmem:[#allocation100_spill] sm:$0xff] %v8653_v1 }
0x12ec   :  { %v8655_v51 = vpop.permute.xlu1 %1963 }
0x12ed   :  { %14237 = vst [vmem:[#allocation90_spill] sm:$0xff] %v8655_v51 }
0x12f9   :  { %v8657_v12 = vpop.permute.xlu1 %1983 }
0x12fa   :  { %14238 = vst [vmem:[#allocation89_spill] sm:$0xff] %v8657_v12  ;;  %v1987_v47 = vmul.f32 %v8657_v12, %v8245_v33  ;;  %v1986_v2 = vmul.f32 %v8391_v54, %v8657_v12  ;;  %v1989_v11 = vmul.f32 %v8657_v12, %v8186_v18  ;;  %v1988_v62 = vmul.f32 %v8657_v12, %v8182_v3 }
0x12fb   :  { %v1990_v53 = vmul.f32 %v8657_v12, %v8190_v35 }
0x12fc   :  { %1998 = vrot.lane.b32.xlu1 %v1987_v47, %s13530_s2  ;;  %1996 = vrot.lane.b32.xlu0 %v1986_v2, %s13530_s2  ;;  %v14239_v47 = vmov 19  }
0x1300   :  { %2002 = vrot.lane.b32.xlu1 %v1989_v11, %s13530_s2  ;;  %2000 = vrot.lane.b32.xlu0 %v1988_v62, %s13530_s2 }
0x1304   :  { %2022 = vperm.xlu1 %6633, %v8172_v44   ;;  %2004 = vrot.lane.b32.xlu0 %v1990_v53, %s13530_s2  ;;  %s13553_s2 = smov 34  }
0x1308   :  { %6634 = vset.pattern.permute.xlu1 %v14239_v47 }
0x136e   :  { %v8676_v2 = vpop.permute.xlu1 %1998 }
0x136f   :  { %14240 = vst [vmem:[#allocation91_spill] sm:$0xff] %v8676_v2 }
0x1372   :  { %v8678_v51 = vpop.permute.xlu1 %2002 }
0x1373   :  { %14241 = vst [vmem:[#allocation104_spill] sm:$0xff] %v8678_v51 }
0x137f   :  { %v8680_v1 = vpop.permute.xlu1 %2022 }
0x1380   :  { %14242 = vst [vmem:[#allocation103_spill] sm:$0xff] %v8680_v1  ;;  %v2026_v11 = vmul.f32 %v8680_v1, %v8245_v33  ;;  %v2025_v62 = vmul.f32 %v8391_v54, %v8680_v1  ;;  %v2028_v53 = vmul.f32 %v8680_v1, %v8186_v18  ;;  %v2027_v47 = vmul.f32 %v8680_v1, %v8182_v3 }
0x1381   :  { %v2029_v12 = vmul.f32 %v8680_v1, %v8190_v35 }
0x1382   :  { %2037 = vrot.lane.b32.xlu1 %v2026_v11, %s13791_s3  ;;  %2035 = vrot.lane.b32.xlu0 %v2025_v62, %s13791_s3  ;;  %v14243_v11 = vmov 20  }
0x1386   :  { %2041 = vrot.lane.b32.xlu1 %v2028_v53, %s13791_s3  ;;  %2039 = vrot.lane.b32.xlu0 %v2027_v47, %s13791_s3 }
0x138a   :  { %2061 = vperm.xlu1 %6634, %v8172_v44   ;;  %2043 = vrot.lane.b32.xlu0 %v2029_v12, %s13791_s3 }
0x138e   :  { %6635 = vset.pattern.permute.xlu1 %v14243_v11 }
0x13f4   :  { %v8699_v62 = vpop.permute.xlu1 %2037 }
0x13f5   :  { %14244 = vst [vmem:[#allocation101_spill] sm:$0xff] %v8699_v62 }
0x13f8   :  { %v8701_v51 = vpop.permute.xlu1 %2041 }
0x13f9   :  { %14245 = vst [vmem:[#allocation92_spill] sm:$0xff] %v8701_v51 }
0x1405   :  { %v8703_v2 = vpop.permute.xlu1 %2061 }
0x1406   :  { %14246 = vst [vmem:[#allocation94_spill] sm:$0xff] %v8703_v2  ;;  %v2065_v53 = vmul.f32 %v8703_v2, %v8245_v33  ;;  %v2064_v47 = vmul.f32 %v8391_v54, %v8703_v2  ;;  %v2067_v12 = vmul.f32 %v8703_v2, %v8186_v18  ;;  %v2066_v11 = vmul.f32 %v8703_v2, %v8182_v3 }
0x1407   :  { %v2068_v1 = vmul.f32 %v8703_v2, %v8190_v35 }
0x1408   :  { %2076 = vrot.lane.b32.xlu1 %v2065_v53, %s6782_s28  ;;  %2074 = vrot.lane.b32.xlu0 %v2064_v47, %s6782_s28  ;;  %v14247_v53 = vmov 21  }
0x140c   :  { %2080 = vrot.lane.b32.xlu1 %v2067_v12, %s6782_s28  ;;  %2078 = vrot.lane.b32.xlu0 %v2066_v11, %s6782_s28 }
0x1410   :  { %2100 = vperm.xlu1 %6635, %v8172_v44   ;;  %2082 = vrot.lane.b32.xlu0 %v2068_v1, %s6782_s28 }
0x1414   :  { %6636 = vset.pattern.permute.xlu1 %v14247_v53 }
0x147a   :  { %v8722_v47 = vpop.permute.xlu1 %2076 }
0x147b   :  { %14248 = vst [vmem:[#allocation105_spill] sm:$0xff] %v8722_v47 }
0x147e   :  { %v8724_v51 = vpop.permute.xlu1 %2080 }
0x147f   :  { %14249 = vst [vmem:[#allocation102_spill] sm:$0xff] %v8724_v51 }
0x148b   :  { %v8726_v62 = vpop.permute.xlu1 %2100 }
0x148c   :  { %14250 = vst [vmem:[#allocation97_spill] sm:$0xff] %v8726_v62  ;;  %v2104_v12 = vmul.f32 %v8726_v62, %v8245_v33  ;;  %v2103_v11 = vmul.f32 %v8391_v54, %v8726_v62  ;;  %v2106_v1 = vmul.f32 %v8726_v62, %v8186_v18  ;;  %v2105_v53 = vmul.f32 %v8726_v62, %v8182_v3  ;;  %v8751_v3 = vld [vmem:[#allocation2 + $0x18] sm:$0xff] }
0x148d   :  { %v2107_v33 = vmul.f32 %v8726_v62, %v8190_v35 }
0x148e   :  { %2115 = vrot.lane.b32.xlu1 %v2104_v12, %s13553_s2  ;;  %2113 = vrot.lane.b32.xlu0 %v2103_v11, %s13553_s2  ;;  %v14251_v12 = vmov 22  }
0x1492   :  { %2119 = vrot.lane.b32.xlu1 %v2106_v1, %s13553_s2  ;;  %2117 = vrot.lane.b32.xlu0 %v2105_v53, %s13553_s2  ;;  %v8753_v1 = vld [vmem:[#allocation2 + $0x10] sm:$0xff] }
0x1496   :  { %2144 = vperm.xlu1 %6636, %v8172_v44   ;;  %2121 = vrot.lane.b32.xlu0 %v2107_v33, %s13553_s2  ;;  %v8761_v33 = vld [vmem:[#allocation2 + $0x28] sm:$0xff]  ;;  %s13565_s2 = smov 69  }
0x149a   :  { %6637 = vset.pattern.permute.xlu1 %v14251_v12  ;;  %v8763_v12 = vld [vmem:[#allocation2 + $0x20] sm:$0xff] }
0x1500   :  { %v8745_v11 = vpop.permute.xlu1 %2115 }
0x1501   :  { %14252 = vst [vmem:[#allocation107_spill] sm:$0xff] %v8745_v11  ;;  %v8771_v11 = vld [vmem:[#allocation2 + $0x30] sm:$0xff] }
0x1504   :  { %v8747_v2 = vpop.permute.xlu1 %2119 }
0x1505   :  { %14253 = vst [vmem:[#allocation95_spill] sm:$0xff] %v8747_v2 }
0x1511   :  { %v8749_v18 = vpop.permute.xlu1 %2144 }
0x1512   :  { %14254 = vst [vmem:[#allocation106_spill] sm:$0xff] %v8749_v18  ;;  %v2148_v53 = vmul.f32 %v8749_v18, %v8751_v3  ;;  %v2147_v35 = vmul.f32 %v8749_v18, %v8753_v1  ;;  %v2150_v62 = vmul.f32 %v8749_v18, %v8761_v33  ;;  %v2149_v2 = vmul.f32 %v8749_v18, %v8763_v12 }
0x1514   :  { %2159 = vrot.lane.b32.xlu1 %v2148_v53, %s13547_s19  ;;  %2157 = vrot.lane.b32.xlu0 %v2147_v35, %s13547_s19  ;;  %v2151_v53 = vmul.f32 %v8749_v18, %v8771_v11  ;;  %v14255_v35 = vmov 23  }
0x1518   :  { %2163 = vrot.lane.b32.xlu1 %v2150_v62, %s13547_s19  ;;  %2161 = vrot.lane.b32.xlu0 %v2149_v2, %s13547_s19 }
0x151c   :  { %2183 = vperm.xlu1 %6637, %v8172_v44   ;;  %2165 = vrot.lane.b32.xlu0 %v2151_v53, %s13547_s19  ;;  %s13559_s19 = smov 72  }
0x1520   :  { %6638 = vset.pattern.permute.xlu1 %v14255_v35 }
0x1586   :  { %v8778_v51 = vpop.permute.xlu1 %2159 }
0x1587   :  { %14256 = vst [vmem:[#allocation109_spill] sm:$0xff] %v8778_v51 }
0x158a   :  { %v8780_v47 = vpop.permute.xlu1 %2163 }
0x158b   :  { %14257 = vst [vmem:[#allocation110_spill] sm:$0xff] %v8780_v47 }
0x1597   :  { %v8782_v38 = vpop.permute.xlu1 %2183 }
0x1598   :  { %14258 = vst [vmem:[#allocation98_spill] sm:$0xff] %v8782_v38  ;;  %v2187_v2 = vmul.f32 %v8782_v38, %v8751_v3  ;;  %v2186_v62 = vmul.f32 %v8782_v38, %v8753_v1  ;;  %v2189_v53 = vmul.f32 %v8782_v38, %v8761_v33  ;;  %v2188_v35 = vmul.f32 %v8782_v38, %v8763_v12 }
0x1599   :  { %v2190_v18 = vmul.f32 %v8782_v38, %v8771_v11 }
0x159a   :  { %2198 = vrot.lane.b32.xlu1 %v2187_v2, %s6779_s25  ;;  %2196 = vrot.lane.b32.xlu0 %v2186_v62, %s6779_s25  ;;  %v14259_v2 = vmov 24  }
0x159e   :  { %2202 = vrot.lane.b32.xlu1 %v2189_v53, %s6779_s25  ;;  %2200 = vrot.lane.b32.xlu0 %v2188_v35, %s6779_s25 }
0x15a2   :  { %2222 = vperm.xlu1 %6638, %v8172_v44   ;;  %2204 = vrot.lane.b32.xlu0 %v2190_v18, %s6779_s25 }
0x15a6   :  { %6639 = vset.pattern.permute.xlu1 %v14259_v2 }
0x160c   :  { %v8801_v62 = vpop.permute.xlu1 %2198 }
0x160d   :  { %14260 = vst [vmem:[#allocation108_spill] sm:$0xff] %v8801_v62 }
0x1610   :  { %v8803_v47 = vpop.permute.xlu1 %2202 }
0x1611   :  { %14261 = vst [vmem:[#allocation111_spill] sm:$0xff] %v8803_v47 }
0x161d   :  { %v8805_v51 = vpop.permute.xlu1 %2222 }
0x161e   :  { %14262 = vst [vmem:[#allocation119_spill] sm:$0xff] %v8805_v51  ;;  %v2226_v53 = vmul.f32 %v8805_v51, %v8751_v3  ;;  %v2225_v35 = vmul.f32 %v8805_v51, %v8753_v1  ;;  %v2228_v18 = vmul.f32 %v8805_v51, %v8761_v33  ;;  %v2227_v2 = vmul.f32 %v8805_v51, %v8763_v12 }
0x161f   :  { %v2229_v38 = vmul.f32 %v8805_v51, %v8771_v11 }
0x1620   :  { %2237 = vrot.lane.b32.xlu1 %v2226_v53, %s13559_s19  ;;  %2235 = vrot.lane.b32.xlu0 %v2225_v35, %s13559_s19  ;;  %v6846_v53 = vmov 25  }
0x1624   :  { %2241 = vrot.lane.b32.xlu1 %v2228_v18, %s13559_s19  ;;  %2239 = vrot.lane.b32.xlu0 %v2227_v2, %s13559_s19 }
0x1628   :  { %2261 = vperm.xlu1 %6639, %v8172_v44   ;;  %2243 = vrot.lane.b32.xlu0 %v2229_v38, %s13559_s19  ;;  %s13576_s19 = smov 66  }
0x162c   :  { %6640 = vset.pattern.permute.xlu1 %v6846_v53 }
0x1692   :  { %v8823_v35 = vpop.permute.xlu1 %2237 }
0x1693   :  { %14263 = vst [vmem:[#allocation120_spill] sm:$0xff] %v8823_v35 }
0x1696   :  { %v8825_v47 = vpop.permute.xlu1 %2241 }
0x1697   :  { %14264 = vst [vmem:[#allocation121_spill] sm:$0xff] %v8825_v47 }
0x16a3   :  { %v8827_v62 = vpop.permute.xlu1 %2261 }
0x16a4   :  { %14265 = vst [vmem:[#allocation122_spill] sm:$0xff] %v8827_v62  ;;  %v2265_v18 = vmul.f32 %v8827_v62, %v8751_v3  ;;  %v2264_v2 = vmul.f32 %v8827_v62, %v8753_v1  ;;  %v2267_v38 = vmul.f32 %v8827_v62, %v8761_v33  ;;  %v2266_v53 = vmul.f32 %v8827_v62, %v8763_v12 }
0x16a5   :  { %v2268_v51 = vmul.f32 %v8827_v62, %v8771_v11 }
0x16a6   :  { %2276 = vrot.lane.b32.xlu1 %v2265_v18, %s13565_s2  ;;  %2274 = vrot.lane.b32.xlu0 %v2264_v2, %s13565_s2  ;;  %v6848_v18 = vmov 26  }
0x16aa   :  { %2280 = vrot.lane.b32.xlu1 %v2267_v38, %s13565_s2  ;;  %2278 = vrot.lane.b32.xlu0 %v2266_v53, %s13565_s2 }
0x16ae   :  { %2300 = vperm.xlu1 %6640, %v8172_v44   ;;  %2282 = vrot.lane.b32.xlu0 %v2268_v51, %s13565_s2  ;;  %s13574_s2 = smov 63  }
0x16b2   :  { %6641 = vset.pattern.permute.xlu1 %v6848_v18 }
0x1718   :  { %v8845_v2 = vpop.permute.xlu1 %2276 }
0x1719   :  { %14266 = vst [vmem:[#allocation123_spill] sm:$0xff] %v8845_v2 }
0x171c   :  { %v8847_v47 = vpop.permute.xlu1 %2280 }
0x171d   :  { %14267 = vst [vmem:[#allocation124_spill] sm:$0xff] %v8847_v47 }
0x1729   :  { %v8849_v35 = vpop.permute.xlu1 %2300 }
0x172a   :  { %14268 = vst [vmem:[#allocation125_spill] sm:$0xff] %v8849_v35  ;;  %v2304_v38 = vmul.f32 %v8849_v35, %v8751_v3  ;;  %v2303_v53 = vmul.f32 %v8849_v35, %v8753_v1  ;;  %v2306_v51 = vmul.f32 %v8849_v35, %v8761_v33  ;;  %v2305_v18 = vmul.f32 %v8849_v35, %v8763_v12 }
0x172b   :  { %v2307_v62 = vmul.f32 %v8849_v35, %v8771_v11 }
0x172c   :  { %2315 = vrot.lane.b32.xlu1 %v2304_v38, %s13576_s19  ;;  %2313 = vrot.lane.b32.xlu0 %v2303_v53, %s13576_s19  ;;  %v6850_v38 = vmov 27  }
0x1730   :  { %2319 = vrot.lane.b32.xlu1 %v2306_v51, %s13576_s19  ;;  %2317 = vrot.lane.b32.xlu0 %v2305_v18, %s13576_s19 }
0x1734   :  { %2339 = vperm.xlu1 %6641, %v8172_v44   ;;  %2321 = vrot.lane.b32.xlu0 %v2307_v62, %s13576_s19  ;;  %s13669_s19 = smov 98  }
0x1738   :  { %6642 = vset.pattern.permute.xlu1 %v6850_v38 }
0x179e   :  { %v8867_v53 = vpop.permute.xlu1 %2315 }
0x179f   :  { %14269 = vst [vmem:[#allocation126_spill] sm:$0xff] %v8867_v53 }
0x17a2   :  { %v8869_v47 = vpop.permute.xlu1 %2319 }
0x17a3   :  { %14270 = vst [vmem:[#allocation127_spill] sm:$0xff] %v8869_v47 }
0x17af   :  { %v8871_v2 = vpop.permute.xlu1 %2339 }
0x17b0   :  { %14271 = vst [vmem:[#allocation128_spill] sm:$0xff] %v8871_v2  ;;  %v2343_v51 = vmul.f32 %v8871_v2, %v8751_v3  ;;  %v2342_v18 = vmul.f32 %v8871_v2, %v8753_v1  ;;  %v2345_v62 = vmul.f32 %v8871_v2, %v8761_v33  ;;  %v2344_v38 = vmul.f32 %v8871_v2, %v8763_v12 }
0x17b1   :  { %v2346_v35 = vmul.f32 %v8871_v2, %v8771_v11 }
0x17b2   :  { %2354 = vrot.lane.b32.xlu1 %v2343_v51, %s13574_s2  ;;  %2352 = vrot.lane.b32.xlu0 %v2342_v18, %s13574_s2  ;;  %v6852_v51 = vmov 28  }
0x17b6   :  { %2358 = vrot.lane.b32.xlu1 %v2345_v62, %s13574_s2  ;;  %2356 = vrot.lane.b32.xlu0 %v2344_v38, %s13574_s2 }
0x17ba   :  { %2378 = vperm.xlu1 %6642, %v8172_v44   ;;  %2360 = vrot.lane.b32.xlu0 %v2346_v35, %s13574_s2  ;;  %s13789_s2 = smov 104  }
0x17be   :  { %6643 = vset.pattern.permute.xlu1 %v6852_v51 }
0x1824   :  { %v8889_v18 = vpop.permute.xlu1 %2354 }
0x1825   :  { %14272 = vst [vmem:[#allocation129_spill] sm:$0xff] %v8889_v18 }
0x1828   :  { %v8891_v47 = vpop.permute.xlu1 %2358 }
0x1829   :  { %14273 = vst [vmem:[#allocation130_spill] sm:$0xff] %v8891_v47 }
0x1835   :  { %v8893_v53 = vpop.permute.xlu1 %2378 }
0x1836   :  { %14274 = vst [vmem:[#allocation131_spill] sm:$0xff] %v8893_v53  ;;  %v2382_v62 = vmul.f32 %v8893_v53, %v8751_v3  ;;  %v2381_v38 = vmul.f32 %v8893_v53, %v8753_v1  ;;  %v2384_v35 = vmul.f32 %v8893_v53, %v8761_v33  ;;  %v2383_v51 = vmul.f32 %v8893_v53, %v8763_v12 }
0x1837   :  { %v2385_v2 = vmul.f32 %v8893_v53, %v8771_v11  ;;  %v6853_v1 = vmov 29   ;;  %v8934_v53 = vld [vmem:[%s13215_s4] sm:$0xff]  ;;  %s13685_s4 = smov 101  }
0x1838   :  { %2393 = vrot.lane.b32.xlu1 %v2382_v62, %s6804_s15  ;;  %2391 = vrot.lane.b32.xlu0 %v2381_v38, %s6804_s15 }
0x183c   :  { %2397 = vrot.lane.b32.xlu1 %v2384_v35, %s6804_s15  ;;  %2395 = vrot.lane.b32.xlu0 %v2383_v51, %s6804_s15 }
0x1840   :  { %2421 = vperm.xlu1 %6643, %v8172_v44   ;;  %2399 = vrot.lane.b32.xlu0 %v2385_v2, %s6804_s15 }
0x1844   :  { %6644 = vset.pattern.permute.xlu1 %v6853_v1 }
0x18aa   :  { %v8911_v62 = vpop.permute.xlu1 %2393 }
0x18ab   :  { %14275 = vst [vmem:[#allocation132_spill] sm:$0xff] %v8911_v62 }
0x18ae   :  { %v8913_v38 = vpop.permute.xlu1 %2397 }
0x18af   :  { %14276 = vst [vmem:[#allocation133_spill] sm:$0xff] %v8913_v38 }
0x18bb   :  { %v8915_v47 = vpop.permute.xlu1 %2421 }
0x18bc   :  { %14277 = vst [vmem:[#allocation134_spill] sm:$0xff] %v8915_v47  ;;  %v2425_v35 = vmul.f32 %v8915_v47, %v8763_v12  ;;  %v2424_v51 = vmul.f32 %v8915_v47, %v8751_v3  ;;  %v2427_v44 = vmul.f32 %v8915_v47, %v8771_v11  ;;  %v2426_v2 = vmul.f32 %v8915_v47, %v8761_v33 }
0x18bd   :  { %v2428_v1 = vmul.f32 %v8391_v54, %v8915_v47 }
0x18be   :  { %2436 = vrot.lane.b32.xlu1 %v2425_v35, %s13789_s2  ;;  %2434 = vrot.lane.b32.xlu0 %v2424_v51, %s13789_s2  ;;  %v6855_v35 = vmov 30  }
0x18c2   :  { %2440 = vrot.lane.b32.xlu1 %v2427_v44, %s13789_s2  ;;  %2438 = vrot.lane.b32.xlu0 %v2426_v2, %s13789_s2 }
0x18c6   :  { %2460 = vperm.xlu1 %6644, %v8934_v53   ;;  %2442 = vrot.lane.b32.xlu0 %v2428_v1, %s13789_s2  ;;  %s14619_s2 = smov 93  }
0x18ca   :  { %6645 = vset.pattern.permute.xlu1 %v6855_v35 }
0x1930   :  { %v8938_v51 = vpop.permute.xlu1 %2436 }
0x1931   :  { %14278 = vst [vmem:[#allocation135_spill] sm:$0xff] %v8938_v51 }
0x1934   :  { %v8940_v38 = vpop.permute.xlu1 %2440 }
0x1935   :  { %14279 = vst [vmem:[#allocation136_spill] sm:$0xff] %v8940_v38 }
0x1941   :  { %v8942_v44 = vpop.permute.xlu1 %2460 }
0x1942   :  { %14280 = vst [vmem:[#allocation137_spill] sm:$0xff] %v8942_v44  ;;  %v2464_v2 = vmul.f32 %v8942_v44, %v8763_v12  ;;  %v2463_v47 = vmul.f32 %v8942_v44, %v8751_v3  ;;  %v2466_v1 = vmul.f32 %v8942_v44, %v8771_v11  ;;  %v2465_v35 = vmul.f32 %v8942_v44, %v8761_v33 }
0x1943   :  { %v2467_v38 = vmul.f32 %v8391_v54, %v8942_v44 }
0x1944   :  { %2475 = vrot.lane.b32.xlu1 %v2464_v2, %s13685_s4  ;;  %2473 = vrot.lane.b32.xlu0 %v2463_v47, %s13685_s4  ;;  %v6857_v2 = vmov 31  }
0x1948   :  { %2479 = vrot.lane.b32.xlu1 %v2466_v1, %s13685_s4  ;;  %2477 = vrot.lane.b32.xlu0 %v2465_v35, %s13685_s4 }
0x194c   :  { %2499 = vperm.xlu1 %6645, %v8934_v53   ;;  %2481 = vrot.lane.b32.xlu0 %v2467_v38, %s13685_s4  ;;  %s13785_s4 = smov 112  }
0x1950   :  { %6646 = vset.pattern.permute.xlu1 %v6857_v2 }
0x19b6   :  { %v8960_v47 = vpop.permute.xlu1 %2475 }
0x19b7   :  { %14281 = vst [vmem:[#allocation138_spill] sm:$0xff] %v8960_v47 }
0x19ba   :  { %v8962_v51 = vpop.permute.xlu1 %2479 }
0x19bb   :  { %14282 = vst [vmem:[#allocation139_spill] sm:$0xff] %v8962_v51  ;;  %v8980_v51 = vpop.permute.xlu0 %1883 }
0x19bc   :  { %14284 = vst [vmem:[#allocation141_spill] sm:$0xff] %v8980_v51 }
0x19c7   :  { %v8964_v62 = vpop.permute.xlu1 %2499 }
0x19c8   :  { %14283 = vst [vmem:[#allocation140_spill] sm:$0xff] %v8964_v62  ;;  %v2503_v1 = vmul.f32 %v8964_v62, %v8763_v12  ;;  %v2502_v35 = vmul.f32 %v8964_v62, %v8751_v3  ;;  %v2505_v38 = vmul.f32 %v8964_v62, %v8771_v11  ;;  %v2504_v2 = vmul.f32 %v8964_v62, %v8761_v33 }
0x19c9   :  { %v2506_v44 = vmul.f32 %v8391_v54, %v8964_v62 }
0x19ca   :  { %2514 = vrot.lane.b32.xlu1 %v2503_v1, %s13669_s19  ;;  %2512 = vrot.lane.b32.xlu0 %v2502_v35, %s13669_s19  ;;  %v6859_v1 = vmov 32  }
0x19ce   :  { %2518 = vrot.lane.b32.xlu1 %v2505_v38, %s13669_s19  ;;  %2516 = vrot.lane.b32.xlu0 %v2504_v2, %s13669_s19  ;;  %v8990_v38 = vpop.permute.xlu0 %1887 }
0x19cf   :  { %14288 = vst [vmem:[#allocation145_spill] sm:$0xff] %v8990_v38 }
0x19d2   :  { %2538 = vperm.xlu1 %6646, %v8934_v53   ;;  %2520 = vrot.lane.b32.xlu0 %v2506_v44, %s13669_s19  ;;  %v8998_v44 = vpop.permute.xlu0 %1918  ;;  %s13679_s19 = smov 121  }
0x19d3   :  { %14289 = vst [vmem:[#allocation146_spill] sm:$0xff] %v8998_v44 }
0x19d6   :  { %6647 = vset.pattern.permute.xlu1 %v6859_v1  ;;  %v9008_v38 = vpop.permute.xlu0 %1922 }
0x19d7   :  { %14290 = vst [vmem:[#allocation147_spill] sm:$0xff] %v9008_v38 }
0x1a3c   :  { %v8984_v35 = vpop.permute.xlu1 %2514 }
0x1a3d   :  { %14285 = vst [vmem:[#allocation142_spill] sm:$0xff] %v8984_v35 }
0x1a40   :  { %v8986_v47 = vpop.permute.xlu1 %2518 }
0x1a41   :  { %14286 = vst [vmem:[#allocation143_spill] sm:$0xff] %v8986_v47 }
0x1a4d   :  { %v8988_v18 = vpop.permute.xlu1 %2538 }
0x1a4e   :  { %14287 = vst [vmem:[#allocation144_spill] sm:$0xff] %v8988_v18  ;;  %v2542_v2 = vmul.f32 %v8988_v18, %v8763_v12  ;;  %v2541_v62 = vmul.f32 %v8988_v18, %v8751_v3  ;;  %v2544_v1 = vmul.f32 %v8988_v18, %v8771_v11  ;;  %v2543_v47 = vmul.f32 %v8988_v18, %v8761_v33 }
0x1a4f   :  { %v2545_v35 = vmul.f32 %v8391_v54, %v8988_v18 }
0x1a50   :  { %2553 = vrot.lane.b32.xlu1 %v2542_v2, %s6770_s0  ;;  %2551 = vrot.lane.b32.xlu0 %v2541_v62, %s6770_s0  ;;  %v6860_v62 = vmov 33  }
0x1a54   :  { %2557 = vrot.lane.b32.xlu1 %v2544_v1, %s6770_s0  ;;  %2555 = vrot.lane.b32.xlu0 %v2543_v47, %s6770_s0  ;;  %v9018_v1 = vpop.permute.xlu0 %1926 }
0x1a55   :  { %14294 = vst [vmem:[#allocation151_spill] sm:$0xff] %v9018_v1 }
0x1a58   :  { %2577 = vperm.xlu1 %6647, %v8934_v53   ;;  %2559 = vrot.lane.b32.xlu0 %v2545_v35, %s6770_s0  ;;  %v9026_v35 = vpop.permute.xlu0 %1957 }
0x1a59   :  { %14295 = vst [vmem:[#allocation152_spill] sm:$0xff] %v9026_v35 }
0x1a5c   :  { %6648 = vset.pattern.permute.xlu1 %v6860_v62  ;;  %v9036_v1 = vpop.permute.xlu0 %1961 }
0x1a5d   :  { %14296 = vst [vmem:[#allocation153_spill] sm:$0xff] %v9036_v1 }
0x1ac2   :  { %v9012_v2 = vpop.permute.xlu1 %2553 }
0x1ac3   :  { %14291 = vst [vmem:[#allocation148_spill] sm:$0xff] %v9012_v2 }
0x1ac6   :  { %v9014_v44 = vpop.permute.xlu1 %2557 }
0x1ac7   :  { %14292 = vst [vmem:[#allocation149_spill] sm:$0xff] %v9014_v44 }
0x1ad3   :  { %v9016_v51 = vpop.permute.xlu1 %2577 }
0x1ad4   :  { %14293 = vst [vmem:[#allocation150_spill] sm:$0xff] %v9016_v51  ;;  %v2581_v47 = vmul.f32 %v9016_v51, %v8763_v12  ;;  %v2580_v18 = vmul.f32 %v9016_v51, %v8751_v3  ;;  %v2583_v62 = vmul.f32 %v9016_v51, %v8771_v11  ;;  %v2582_v44 = vmul.f32 %v9016_v51, %v8761_v33 }
0x1ad5   :  { %v2584_v2 = vmul.f32 %v8391_v54, %v9016_v51 }
0x1ad6   :  { %2592 = vrot.lane.b32.xlu1 %v2581_v47, %s6799_s13  ;;  %2590 = vrot.lane.b32.xlu0 %v2580_v18, %s6799_s13  ;;  %v6861_v18 = vmov 34  }
0x1ada   :  { %2596 = vrot.lane.b32.xlu1 %v2583_v62, %s6799_s13  ;;  %2594 = vrot.lane.b32.xlu0 %v2582_v44, %s6799_s13  ;;  %v9046_v62 = vpop.permute.xlu0 %1965 }
0x1adb   :  { %14300 = vst [vmem:[#allocation157_spill] sm:$0xff] %v9046_v62 }
0x1ade   :  { %2615 = vperm.xlu1 %6648, %v8934_v53   ;;  %2598 = vrot.lane.b32.xlu0 %v2584_v2, %s6799_s13  ;;  %v9054_v2 = vpop.permute.xlu0 %1996 }
0x1adf   :  { %14301 = vst [vmem:[#allocation158_spill] sm:$0xff] %v9054_v2 }
0x1ae2   :  { %6649 = vset.pattern.permute.xlu1 %v6861_v18  ;;  %v9064_v62 = vpop.permute.xlu0 %2000 }
0x1ae3   :  { %14302 = vst [vmem:[#allocation159_spill] sm:$0xff] %v9064_v62 }
0x1b48   :  { %v9040_v47 = vpop.permute.xlu1 %2592 }
0x1b49   :  { %14297 = vst [vmem:[#allocation154_spill] sm:$0xff] %v9040_v47 }
0x1b4c   :  { %v9042_v35 = vpop.permute.xlu1 %2596 }
0x1b4d   :  { %14298 = vst [vmem:[#allocation155_spill] sm:$0xff] %v9042_v35 }
0x1b59   :  { %v9044_v38 = vpop.permute.xlu1 %2615 }
0x1b5a   :  { %14299 = vst [vmem:[#allocation156_spill] sm:$0xff] %v9044_v38  ;;  %v2619_v44 = vmul.f32 %v9044_v38, %v8763_v12  ;;  %v2618_v51 = vmul.f32 %v9044_v38, %v8751_v3  ;;  %v2621_v18 = vmul.f32 %v9044_v38, %v8771_v11  ;;  %v2620_v35 = vmul.f32 %v9044_v38, %v8761_v33 }
0x1b5b   :  { %v2622_v47 = vmul.f32 %v8391_v54, %v9044_v38 }
0x1b5c   :  { %2630 = vrot.lane.b32.xlu1 %v2619_v44, %s13614_s20  ;;  %2628 = vrot.lane.b32.xlu0 %v2618_v51, %s13614_s20  ;;  %v6863_v51 = vmov 35   ;;  %v9068_v44 = vpop.permute.xlu0 %2004 }
0x1b5d   :  { %14303 = vst [vmem:[#allocation160_spill] sm:$0xff] %v9068_v44 }
0x1b60   :  { %2634 = vrot.lane.b32.xlu1 %v2621_v18, %s13614_s20  ;;  %2632 = vrot.lane.b32.xlu0 %v2620_v35, %s13614_s20  ;;  %v9070_v2 = vpop.permute.xlu0 %2035 }
0x1b61   :  { %14304 = vst [vmem:[#allocation161_spill] sm:$0xff] %v9070_v2 }
0x1b64   :  { %2654 = vperm.xlu1 %6649, %v8934_v53   ;;  %2636 = vrot.lane.b32.xlu0 %v2622_v47, %s13614_s20  ;;  %v9072_v1 = vpop.permute.xlu0 %2039  ;;  %s13637_s20 = smov 86  }
0x1b65   :  { %14305 = vst [vmem:[#allocation162_spill] sm:$0xff] %v9072_v1  ;;  %v6865_v1 = vmov 36  }
0x1b66   :  { %6651 = vset.pattern.permute.xlu0 %v6865_v1 }
0x1b68   :  { %6650 = vset.pattern.permute.xlu1 %v6863_v51  ;;  %v9076_v35 = vpop.permute.xlu0 %2043 }
0x1b69   :  { %14307 = vst [vmem:[#allocation164_spill] sm:$0xff] %v9076_v35 }
0x1b6c   :  { %v9080_v38 = vpop.permute.xlu0 %2074 }
0x1b6d   :  { %14309 = vst [vmem:[#allocation166_spill] sm:$0xff] %v9080_v38 }
0x1b70   :  { %v9094_v38 = vpop.permute.xlu0 %2078 }
0x1b71   :  { %14311 = vst [vmem:[#allocation168_spill] sm:$0xff] %v9094_v38 }
0x1bce   :  { %v9074_v18 = vpop.permute.xlu1 %2630 }
0x1bcf   :  { %14306 = vst [vmem:[#allocation163_spill] sm:$0xff] %v9074_v18 }
0x1bd2   :  { %v9078_v16 = vpop.permute.xlu1 %2634 }
0x1bd3   :  { %14308 = vst [vmem:[#allocation165_spill] sm:$0xff] %v9078_v16 }
0x1bdf   :  { %v9082_v62 = vpop.permute.xlu1 %2654 }
0x1be0   :  { %14310 = vst [vmem:[#allocation167_spill] sm:$0xff] %v9082_v62  ;;  %v2658_v47 = vmul.f32 %v9082_v62, %v8763_v12  ;;  %v2657_v51 = vmul.f32 %v9082_v62, %v8751_v3  ;;  %v2660_v18 = vmul.f32 %v9082_v62, %v8771_v11  ;;  %v2659_v16 = vmul.f32 %v9082_v62, %v8761_v33 }
0x1be1   :  { %v2661_v35 = vmul.f32 %v8391_v54, %v9082_v62 }
0x1be2   :  { %2669 = vrot.lane.b32.xlu1 %v2658_v47, %s13637_s20  ;;  %2667 = vrot.lane.b32.xlu0 %v2657_v51, %s13637_s20  ;;  %v9102_v47 = vpop.permute.xlu0 %2082 }
0x1be3   :  { %14312 = vst [vmem:[#allocation169_spill] sm:$0xff] %v9102_v47 }
0x1be6   :  { %2673 = vrot.lane.b32.xlu1 %v2660_v18, %s13637_s20  ;;  %2671 = vrot.lane.b32.xlu0 %v2659_v16, %s13637_s20  ;;  %v9104_v51 = vpop.permute.xlu0 %2113 }
0x1be7   :  { %14313 = vst [vmem:[#allocation170_spill] sm:$0xff] %v9104_v51 }
0x1bea   :  { %2699 = vperm.xlu1 %6650, %v8934_v53   ;;  %2675 = vrot.lane.b32.xlu0 %v2661_v35, %s13637_s20  ;;  %v9106_v2 = vpop.permute.xlu0 %2117  ;;  %s13787_s20 = smov 2  }
0x1beb   :  { %14314 = vst [vmem:[#allocation171_spill] sm:$0xff] %v9106_v2 }
0x1bee   :  { %v9108_v38 = vpop.permute.xlu0 %2121 }
0x1bef   :  { %14315 = vst [vmem:[#allocation172_spill] sm:$0xff] %v9108_v38 }
0x1bf2   :  { %v9110_v18 = vpop.permute.xlu0 %2157 }
0x1bf3   :  { %14316 = vst [vmem:[#allocation173_spill] sm:$0xff] %v9110_v18 }
0x1bf6   :  { %v9112_v16 = vpop.permute.xlu0 %2161 }
0x1bf7   :  { %14317 = vst [vmem:[#allocation174_spill] sm:$0xff] %v9112_v16 }
0x1bfa   :  { %v9114_v44 = vpop.permute.xlu0 %2165 }
0x1bfb   :  { %14318 = vst [vmem:[#allocation175_spill] sm:$0xff] %v9114_v44 }
0x1bfe   :  { %v9116_v54 = vpop.permute.xlu0 %2196 }
0x1bff   :  { %14319 = vst [vmem:[#allocation176_spill] sm:$0xff] %v9116_v54 }
0x1c02   :  { %v9118_v62 = vpop.permute.xlu0 %2200 }
0x1c03   :  { %14320 = vst [vmem:[#allocation177_spill] sm:$0xff] %v9118_v62 }
0x1c06   :  { %v9120_v35 = vpop.permute.xlu0 %2204 }
0x1c07   :  { %14321 = vst [vmem:[#allocation178_spill] sm:$0xff] %v9120_v35 }
0x1c0a   :  { %v9122_v47 = vpop.permute.xlu0 %2235 }
0x1c0b   :  { %14322 = vst [vmem:[#allocation179_spill] sm:$0xff] %v9122_v47 }
0x1c0e   :  { %v9124_v51 = vpop.permute.xlu0 %2239 }
0x1c0f   :  { %14323 = vst [vmem:[#allocation180_spill] sm:$0xff] %v9124_v51 }
0x1c12   :  { %v9126_v1 = vpop.permute.xlu0 %2243 }
0x1c13   :  { %14324 = vst [vmem:[#allocation181_spill] sm:$0xff] %v9126_v1 }
0x1c16   :  { %v9128_v2 = vpop.permute.xlu0 %2274 }
0x1c17   :  { %14325 = vst [vmem:[#allocation182_spill] sm:$0xff] %v9128_v2 }
0x1c1a   :  { %v9130_v38 = vpop.permute.xlu0 %2278 }
0x1c1b   :  { %14326 = vst [vmem:[#allocation183_spill] sm:$0xff] %v9130_v38 }
0x1c1e   :  { %v9132_v18 = vpop.permute.xlu0 %2282 }
0x1c1f   :  { %14327 = vst [vmem:[#allocation184_spill] sm:$0xff] %v9132_v18 }
0x1c22   :  { %v9134_v16 = vpop.permute.xlu0 %2313 }
0x1c23   :  { %14328 = vst [vmem:[#allocation185_spill] sm:$0xff] %v9134_v16 }
0x1c26   :  { %v9136_v44 = vpop.permute.xlu0 %2317 }
0x1c27   :  { %14329 = vst [vmem:[#allocation186_spill] sm:$0xff] %v9136_v44 }
0x1c2a   :  { %v9138_v54 = vpop.permute.xlu0 %2321 }
0x1c2b   :  { %14330 = vst [vmem:[#allocation187_spill] sm:$0xff] %v9138_v54 }
0x1c2e   :  { %v9140_v62 = vpop.permute.xlu0 %2352 }
0x1c2f   :  { %14331 = vst [vmem:[#allocation188_spill] sm:$0xff] %v9140_v62 }
0x1c32   :  { %v9142_v35 = vpop.permute.xlu0 %2356 }
0x1c33   :  { %14332 = vst [vmem:[#allocation189_spill] sm:$0xff] %v9142_v35 }
0x1c36   :  { %v9144_v47 = vpop.permute.xlu0 %2360 }
0x1c37   :  { %14333 = vst [vmem:[#allocation190_spill] sm:$0xff] %v9144_v47 }
0x1c3a   :  { %v9148_v1 = vpop.permute.xlu0 %2391 }
0x1c3b   :  { %14335 = vst [vmem:[#allocation192_spill] sm:$0xff] %v9148_v1 }
0x1c3e   :  { %v9152_v38 = vpop.permute.xlu0 %2395 }
0x1c3f   :  { %14337 = vst [vmem:[#allocation194_spill] sm:$0xff] %v9152_v38  ;;  %v9170_v38 = vld [vmem:[#allocation2] sm:$0xff] }
0x1c42   :  { %v9166_v47 = vpop.permute.xlu0 %2399 }
0x1c43   :  { %14339 = vst [vmem:[#allocation196_spill] sm:$0xff] %v9166_v47 }
0x1c54   :  { %v9146_v51 = vpop.permute.xlu1 %2669 }
0x1c55   :  { %14334 = vst [vmem:[#allocation191_spill] sm:$0xff] %v9146_v51 }
0x1c58   :  { %v9150_v2 = vpop.permute.xlu1 %2673 }
0x1c59   :  { %14336 = vst [vmem:[#allocation193_spill] sm:$0xff] %v9150_v2 }
0x1c65   :  { %v9154_v18 = vpop.permute.xlu1 %2699 }
0x1c66   :  { %14338 = vst [vmem:[#allocation195_spill] sm:$0xff] %v9154_v18  ;;  %v2703_v44 = vmul.f32 %v9154_v18, %v8763_v12  ;;  %v2702_v54 = vmul.f32 %v9154_v18, %v8751_v3  ;;  %v2705_v51 = vmul.f32 %v9154_v18, %v8771_v11  ;;  %v2704_v2 = vmul.f32 %v9154_v18, %v8761_v33 }
0x1c67   :  { %v2707_v3 = vmul.f32 %v9170_v38, %v9154_v18 }
0x1c68   :  { %2716 = vrot.lane.b32.xlu1 %v2703_v44, %s13787_s20  ;;  %2714 = vrot.lane.b32.xlu0 %v2702_v54, %s13787_s20  ;;  %v9174_v44 = vpop.permute.xlu0 %2434 }
0x1c69   :  { %14340 = vst [vmem:[#allocation197_spill] sm:$0xff] %v9174_v44 }
0x1c6c   :  { %2720 = vrot.lane.b32.xlu1 %v2705_v51, %s13787_s20  ;;  %2718 = vrot.lane.b32.xlu0 %v2704_v2, %s13787_s20  ;;  %v9179_v54 = vpop.permute.xlu0 %2438  ;;  %v6867_v51 = vmov 37  }
0x1c6d   :  { %14341 = vst [vmem:[#allocation198_spill] sm:$0xff] %v9179_v54  ;;  %6652 = vset.pattern.permute.xlu1 %v6867_v51 }
0x1c70   :  { %2724 = vrot.lane.b32.xlu1 %v2707_v3, %s13787_s20  ;;  %2722 = vrot.lane.b32.xlu0 %v2707_v3, %s13787_s20  ;;  %v9181_v47 = vpop.permute.xlu0 %2442 }
0x1c71   :  { %14342 = vst [vmem:[#allocation199_spill] sm:$0xff] %v9181_v47 }
0x1c74   :  { %2743 = vperm.xlu0 %6651, %v8934_v53   ;;  %v9183_v2 = vpop.permute.xlu0 %2473 }
0x1c75   :  { %14343 = vst [vmem:[#allocation200_spill] sm:$0xff] %v9183_v2 }
0x1c78   :  { %v9185_v35 = vpop.permute.xlu0 %2477 }
0x1c79   :  { %14344 = vst [vmem:[#allocation201_spill] sm:$0xff] %v9185_v35 }
0x1c7c   :  { %v9187_v1 = vpop.permute.xlu0 %2481 }
0x1c7d   :  { %14345 = vst [vmem:[#allocation202_spill] sm:$0xff] %v9187_v1 }
0x1c80   :  { %v9189_v18 = vpop.permute.xlu0 %2512 }
0x1c81   :  { %14346 = vst [vmem:[#allocation203_spill] sm:$0xff] %v9189_v18 }
0x1c84   :  { %v9191_v44 = vpop.permute.xlu0 %2516 }
0x1c85   :  { %14347 = vst [vmem:[#allocation204_spill] sm:$0xff] %v9191_v44 }
0x1c88   :  { %v9193_v62 = vpop.permute.xlu0 %2520 }
0x1c89   :  { %14348 = vst [vmem:[#allocation205_spill] sm:$0xff] %v9193_v62 }
0x1c8c   :  { %v9195_v3 = vpop.permute.xlu0 %2551 }
0x1c8d   :  { %14349 = vst [vmem:[#allocation206_spill] sm:$0xff] %v9195_v3 }
0x1c90   :  { %v9197_v16 = vpop.permute.xlu0 %2555 }
0x1c91   :  { %14350 = vst [vmem:[#allocation207_spill] sm:$0xff] %v9197_v16 }
0x1c94   :  { %v9199_v54 = vpop.permute.xlu0 %2559 }
0x1c95   :  { %14351 = vst [vmem:[#allocation208_spill] sm:$0xff] %v9199_v54 }
0x1c98   :  { %v9201_v47 = vpop.permute.xlu0 %2590 }
0x1c99   :  { %14352 = vst [vmem:[#allocation209_spill] sm:$0xff] %v9201_v47 }
0x1c9c   :  { %v9203_v51 = vpop.permute.xlu0 %2594 }
0x1c9d   :  { %14353 = vst [vmem:[#allocation210_spill] sm:$0xff] %v9203_v51 }
0x1ca0   :  { %v9205_v2 = vpop.permute.xlu0 %2598 }
0x1ca1   :  { %14354 = vst [vmem:[#allocation211_spill] sm:$0xff] %v9205_v2 }
0x1ca4   :  { %v9207_v35 = vpop.permute.xlu0 %2628 }
0x1ca5   :  { %14355 = vst [vmem:[#allocation212_spill] sm:$0xff] %v9207_v35 }
0x1ca8   :  { %v9209_v1 = vpop.permute.xlu0 %2632 }
0x1ca9   :  { %14356 = vst [vmem:[#allocation213_spill] sm:$0xff] %v9209_v1 }
0x1cac   :  { %v9211_v18 = vpop.permute.xlu0 %2636 }
0x1cad   :  { %14357 = vst [vmem:[#allocation214_spill] sm:$0xff] %v9211_v18 }
0x1cb0   :  { %v9213_v44 = vpop.permute.xlu0 %2667 }
0x1cb1   :  { %14358 = vst [vmem:[#allocation215_spill] sm:$0xff] %v9213_v44 }
0x1cb4   :  { %v9215_v62 = vpop.permute.xlu0 %2671 }
0x1cb5   :  { %14359 = vst [vmem:[#allocation216_spill] sm:$0xff] %v9215_v62 }
0x1cb8   :  { %v9217_v3 = vpop.permute.xlu0 %2675 }
0x1cb9   :  { %14360 = vst [vmem:[#allocation217_spill] sm:$0xff] %v9217_v3 }
0x1cda   :  { %v9219_v16 = vpop.permute.xlu0 %2714  ;;  %v9241_v62 = vpop.permute.xlu1 %2716 }
0x1cdb   :  { %14361 = vst [vmem:[#allocation218_spill] sm:$0xff] %v9219_v16  ;;  %14365 = vst [vmem:[#allocation222_spill] sm:$0xff] %v9241_v62 }
0x1cde   :  { %v9221_v54 = vpop.permute.xlu0 %2718 }
0x1cdf   :  { %14362 = vst [vmem:[#allocation219_spill] sm:$0xff] %v9221_v54 }
0x1ce2   :  { %v9223_v47 = vpop.permute.xlu0 %2722 }
0x1ce3   :  { %14363 = vst [vmem:[#allocation220_spill] sm:$0xff] %v9223_v47  ;;  %v6868_v47 = vmov 38  }
0x1cef   :  { %v9225_v51 = vpop.permute.xlu0 %2743 }
0x1cf0   :  { %14364 = vst [vmem:[#allocation221_spill] sm:$0xff] %v9225_v51  ;;  %v2748_v2 = vmul.f32 %v9225_v51, %v8771_v11  ;;  %v2746_v18 = vmul.f32 %v9225_v51, %v8763_v12  ;;  %v2750_v3 = vmul.f32 %v9170_v38, %v9225_v51  ;;  %v2747_v54 = vmul.f32 %v9225_v51, %v8761_v33 }
0x1cf2   :  { %2760 = vrot.lane.b32.xlu0 %v2748_v2, %s6794_s14  ;;  %2756 = vrot.lane.b32.xlu1 %v2746_v18, %s6794_s14  ;;  %v9243_v2 = vpop.permute.xlu1 %2720 }
0x1cf3   :  { %14366 = vst [vmem:[#allocation223_spill] sm:$0xff] %v9243_v2 }
0x1cf6   :  { %2764 = vrot.lane.b32.xlu0 %v2750_v3, %s6794_s14  ;;  %2758 = vrot.lane.b32.xlu1 %v2747_v54, %s6794_s14  ;;  %v9245_v18 = vpop.permute.xlu1 %2724 }
0x1cf7   :  { %14367 = vst [vmem:[#allocation224_spill] sm:$0xff] %v9245_v18 }
0x1cfa   :  { %2762 = vrot.lane.b32.xlu1 %v2750_v3, %s6794_s14 }
0x1cfe   :  { %2781 = vperm.xlu1 %6652, %v8934_v53  }
0x1d02   :  { %6653 = vset.pattern.permute.xlu1 %v6868_v47 }
0x1d64   :  { %v9247_v16 = vpop.permute.xlu1 %2756 }
0x1d65   :  { %14368 = vst [vmem:[#allocation225_spill] sm:$0xff] %v9247_v16 }
0x1d68   :  { %v9249_v1 = vpop.permute.xlu1 %2758 }
0x1d69   :  { %14369 = vst [vmem:[#allocation226_spill] sm:$0xff] %v9249_v1 }
0x1d6c   :  { %v9251_v51 = vpop.permute.xlu1 %2762 }
0x1d6d   :  { %14370 = vst [vmem:[#allocation227_spill] sm:$0xff] %v9251_v51  ;;  %v6869_v51 = vmov 39  }
0x1d79   :  { %v9253_v44 = vpop.permute.xlu1 %2781 }
0x1d7a   :  { %14371 = vst [vmem:[#allocation228_spill] sm:$0xff] %v9253_v44  ;;  %v2785_v54 = vmul.f32 %v9253_v44, %v8761_v33  ;;  %v2784_v47 = vmul.f32 %v9253_v44, %v8763_v12  ;;  %v2787_v3 = vmul.f32 %v9170_v38, %v9253_v44  ;;  %v2786_v18 = vmul.f32 %v9253_v44, %v8771_v11 }
0x1d7c   :  { %2796 = vrot.lane.b32.xlu1 %v2785_v54, %s6797_s17  ;;  %2794 = vrot.lane.b32.xlu0 %v2784_v47, %s6797_s17 }
0x1d80   :  { %2800 = vrot.lane.b32.xlu1 %v2787_v3, %s6797_s17  ;;  %2798 = vrot.lane.b32.xlu0 %v2786_v18, %s6797_s17 }
0x1d84   :  { %2819 = vperm.xlu1 %6653, %v8934_v53   ;;  %2802 = vrot.lane.b32.xlu0 %v2787_v3, %s6797_s17  ;;  %v6871_v3 = vmov 40  }
0x1d88   :  { %6654 = vset.pattern.permute.xlu1 %v6869_v51 }
0x1dee   :  { %v9269_v2 = vpop.permute.xlu1 %2796 }
0x1def   :  { %14372 = vst [vmem:[#allocation229_spill] sm:$0xff] %v9269_v2 }
0x1df2   :  { %v9271_v54 = vpop.permute.xlu1 %2800 }
0x1df3   :  { %14373 = vst [vmem:[#allocation230_spill] sm:$0xff] %v9271_v54 }
0x1dff   :  { %v9273_v47 = vpop.permute.xlu1 %2819 }
0x1e00   :  { %14374 = vst [vmem:[#allocation231_spill] sm:$0xff] %v9273_v47  ;;  %v2823_v16 = vmul.f32 %v9273_v47, %v8761_v33  ;;  %v2822_v44 = vmul.f32 %v9273_v47, %v8763_v12  ;;  %v2825_v51 = vmul.f32 %v9170_v38, %v9273_v47  ;;  %v2824_v18 = vmul.f32 %v9273_v47, %v8771_v11 }
0x1e02   :  { %2834 = vrot.lane.b32.xlu1 %v2823_v16, %s13679_s19  ;;  %2832 = vrot.lane.b32.xlu0 %v2822_v44, %s13679_s19 }
0x1e06   :  { %2838 = vrot.lane.b32.xlu1 %v2825_v51, %s13679_s19  ;;  %2836 = vrot.lane.b32.xlu0 %v2824_v18, %s13679_s19 }
0x1e0a   :  { %2858 = vperm.xlu1 %6654, %v8934_v53   ;;  %2840 = vrot.lane.b32.xlu0 %v2825_v51, %s13679_s19  ;;  %s13688_s19 = smov 115  }
0x1e0e   :  { %6655 = vset.pattern.permute.xlu1 %v6871_v3  ;;  %v6872_v3 = vmov 41  }
0x1e74   :  { %v9289_v54 = vpop.permute.xlu1 %2834 }
0x1e75   :  { %14375 = vst [vmem:[#allocation232_spill] sm:$0xff] %v9289_v54 }
0x1e78   :  { %v9291_v16 = vpop.permute.xlu1 %2838 }
0x1e79   :  { %14376 = vst [vmem:[#allocation233_spill] sm:$0xff] %v9291_v16 }
0x1e85   :  { %v9293_v44 = vpop.permute.xlu1 %2858 }
0x1e86   :  { %14377 = vst [vmem:[#allocation234_spill] sm:$0xff] %v9293_v44  ;;  %v2862_v2 = vmul.f32 %v9293_v44, %v8761_v33  ;;  %v2861_v47 = vmul.f32 %v9293_v44, %v8763_v12  ;;  %v2864_v51 = vmul.f32 %v9170_v38, %v9293_v44  ;;  %v2863_v18 = vmul.f32 %v9293_v44, %v8771_v11 }
0x1e88   :  { %2873 = vrot.lane.b32.xlu1 %v2862_v2, %s6826_s27  ;;  %2871 = vrot.lane.b32.xlu0 %v2861_v47, %s6826_s27 }
0x1e8c   :  { %2877 = vrot.lane.b32.xlu1 %v2864_v51, %s6826_s27  ;;  %2875 = vrot.lane.b32.xlu0 %v2863_v18, %s6826_s27 }
0x1e90   :  { %2896 = vperm.xlu1 %6655, %v8934_v53   ;;  %2879 = vrot.lane.b32.xlu0 %v2864_v51, %s6826_s27 }
0x1e94   :  { %6656 = vset.pattern.permute.xlu1 %v6872_v3  ;;  %v6874_v3 = vmov 42  }
0x1efa   :  { %v9309_v16 = vpop.permute.xlu1 %2873 }
0x1efb   :  { %14378 = vst [vmem:[#allocation235_spill] sm:$0xff] %v9309_v16 }
0x1efe   :  { %v9311_v2 = vpop.permute.xlu1 %2877 }
0x1eff   :  { %14379 = vst [vmem:[#allocation236_spill] sm:$0xff] %v9311_v2 }
0x1f0b   :  { %v9313_v47 = vpop.permute.xlu1 %2896 }
0x1f0c   :  { %14380 = vst [vmem:[#allocation237_spill] sm:$0xff] %v9313_v47  ;;  %v2900_v54 = vmul.f32 %v9313_v47, %v8761_v33  ;;  %v2899_v44 = vmul.f32 %v9313_v47, %v8763_v12  ;;  %v2902_v51 = vmul.f32 %v9170_v38, %v9313_v47  ;;  %v2901_v18 = vmul.f32 %v9313_v47, %v8771_v11 }
0x1f0e   :  { %2911 = vrot.lane.b32.xlu1 %v2900_v54, %s13688_s19  ;;  %2909 = vrot.lane.b32.xlu0 %v2899_v44, %s13688_s19 }
0x1f12   :  { %2915 = vrot.lane.b32.xlu1 %v2902_v51, %s13688_s19  ;;  %2913 = vrot.lane.b32.xlu0 %v2901_v18, %s13688_s19 }
0x1f16   :  { %2935 = vperm.xlu1 %6656, %v8934_v53   ;;  %2917 = vrot.lane.b32.xlu0 %v2902_v51, %s13688_s19  ;;  %s13727_s19 = smov 28  }
0x1f1a   :  { %6657 = vset.pattern.permute.xlu1 %v6874_v3 }
0x1f80   :  { %v9329_v2 = vpop.permute.xlu1 %2911 }
0x1f81   :  { %14381 = vst [vmem:[#allocation238_spill] sm:$0xff] %v9329_v2 }
0x1f84   :  { %v9331_v54 = vpop.permute.xlu1 %2915 }
0x1f85   :  { %14382 = vst [vmem:[#allocation239_spill] sm:$0xff] %v9331_v54  ;;  %v9356_v54 = vld [vmem:[#allocation2 + $0x28] sm:$0xff] }
0x1f91   :  { %v9333_v44 = vpop.permute.xlu1 %2935 }
0x1f92   :  { %14383 = vst [vmem:[#allocation240_spill] sm:$0xff] %v9333_v44  ;;  %v2939_v16 = vmul.f32 %v9333_v44, %v8761_v33  ;;  %v2938_v47 = vmul.f32 %v9333_v44, %v8763_v12  ;;  %v2941_v51 = vmul.f32 %v9170_v38, %v9333_v44  ;;  %v2940_v18 = vmul.f32 %v9333_v44, %v8771_v11  ;;  %v9358_v11 = vld [vmem:[#allocation2 + $0x20] sm:$0xff] }
0x1f93   :  { %v14384_v33 = vmov 0   ;;  %v6876_v12 = vmov 43  }
0x1f94   :  { %2950 = vrot.lane.b32.xlu1 %v2939_v16, %s13785_s4  ;;  %2948 = vrot.lane.b32.xlu0 %v2938_v47, %s13785_s4 }
0x1f95   :  { %6658 = vset.pattern.permute.xlu0 %v6876_v12  ;;  %v9366_v12 = vld [vmem:[#allocation2 + $0x30] sm:$0xff] }
0x1f98   :  { %2954 = vrot.lane.b32.xlu1 %v2941_v51, %s13785_s4  ;;  %2952 = vrot.lane.b32.xlu0 %v2940_v18, %s13785_s4 }
0x1f9c   :  { %2980 = vperm.xlu1 %6657, %v8934_v53   ;;  %2956 = vrot.lane.b32.xlu0 %v2941_v51, %s13785_s4 }
0x1fa0   :  { %6664 = vset.pattern.permute.xlu1 %v14384_v33 }
0x2006   :  { %v9350_v16 = vpop.permute.xlu1 %2950 }
0x2007   :  { %14385 = vst [vmem:[#allocation241_spill] sm:$0xff] %v9350_v16  ;;  %v9372_v16 = vld [vmem:[#allocation2 + $0x48] sm:$0xff] }
0x200a   :  { %v9352_v47 = vpop.permute.xlu1 %2954 }
0x200b   :  { %14386 = vst [vmem:[#allocation242_spill] sm:$0xff] %v9352_v47 }
0x2017   :  { %v9354_v3 = vpop.permute.xlu1 %2980 }
0x2018   :  { %14387 = vst [vmem:[#allocation243_spill] sm:$0xff] %v9354_v3  ;;  %v2984_v18 = vmul.f32 %v9354_v3, %v9356_v54  ;;  %v2983_v51 = vmul.f32 %v9354_v3, %v9358_v11  ;;  %v2986_v44 = vmul.f32 %v9170_v38, %v9354_v3  ;;  %v2985_v47 = vmul.f32 %v9354_v3, %v9366_v12 }
0x2019   :  { %v2988_v2 = vmul.f32 %v9354_v3, %v9372_v16 }
0x201a   :  { %2997 = vrot.lane.b32.xlu1 %v2984_v18, %s13727_s19  ;;  %2995 = vrot.lane.b32.xlu0 %v2983_v51, %s13727_s19  ;;  %v6878_v18 = vmov 44   ;;  %v9381_v51 = vpop.permute.xlu0 %2760 }
0x201b   :  { %14388 = vst [vmem:[#allocation244_spill] sm:$0xff] %v9381_v51 }
0x201e   :  { %3001 = vrot.lane.b32.xlu1 %v2986_v44, %s13727_s19  ;;  %2999 = vrot.lane.b32.xlu0 %v2985_v47, %s13727_s19  ;;  %v9383_v1 = vpop.permute.xlu0 %2764 }
0x201f   :  { %14389 = vst [vmem:[#allocation245_spill] sm:$0xff] %v9383_v1 }
0x2022   :  { %3005 = vrot.lane.b32.xlu1 %v2988_v2, %s13727_s19  ;;  %3003 = vrot.lane.b32.xlu0 %v2986_v44, %s13727_s19  ;;  %v9385_v62 = vpop.permute.xlu0 %2794  ;;  %s13734_s19 = smov 13  }
0x2023   :  { %14390 = vst [vmem:[#allocation246_spill] sm:$0xff] %v9385_v62 }
0x2026   :  { %3024 = vperm.xlu0 %6658, %v8934_v53   ;;  %v9387_v35 = vpop.permute.xlu0 %2798 }
0x2027   :  { %14391 = vst [vmem:[#allocation247_spill] sm:$0xff] %v9387_v35 }
0x202a   :  { %6659 = vset.pattern.permute.xlu0 %v6878_v18  ;;  %v9389_v47 = vpop.permute.xlu0 %2802 }
0x202b   :  { %14392 = vst [vmem:[#allocation248_spill] sm:$0xff] %v9389_v47 }
0x202e   :  { %v9391_v14 = vpop.permute.xlu0 %2832 }
0x202f   :  { %14393 = vst [vmem:[#allocation249_spill] sm:$0xff] %v9391_v14 }
0x2032   :  { %v9393_v3 = vpop.permute.xlu0 %2836 }
0x2033   :  { %14394 = vst [vmem:[#allocation250_spill] sm:$0xff] %v9393_v3 }
0x2036   :  { %v9395_v2 = vpop.permute.xlu0 %2840 }
0x2037   :  { %14395 = vst [vmem:[#allocation251_spill] sm:$0xff] %v9395_v2 }
0x203a   :  { %v9397_v44 = vpop.permute.xlu0 %2871 }
0x203b   :  { %14396 = vst [vmem:[#allocation252_spill] sm:$0xff] %v9397_v44 }
0x203e   :  { %v9399_v31 = vpop.permute.xlu0 %2875 }
0x203f   :  { %14397 = vst [vmem:[#allocation253_spill] sm:$0xff] %v9399_v31 }
0x2042   :  { %v9401_v18 = vpop.permute.xlu0 %2879 }
0x2043   :  { %14398 = vst [vmem:[#allocation254_spill] sm:$0xff] %v9401_v18 }
0x2046   :  { %v9403_v51 = vpop.permute.xlu0 %2909 }
0x204a   :  { %v9405_v1 = vpop.permute.xlu0 %2913 }
0x204b   :  { %14399 = vst [vmem:[#allocation255_spill] sm:$0xff] %v9405_v1 }
0x204e   :  { %v9407_v62 = vpop.permute.xlu0 %2917 }
0x204f   :  { %14400 = vst [vmem:[#allocation256_spill] sm:$0xff] %v9407_v62 }
0x2052   :  { %v9409_v35 = vpop.permute.xlu0 %2948 }
0x2056   :  { %v9411_v47 = vpop.permute.xlu0 %2952 }
0x2057   :  { %14401 = vst [vmem:[#allocation257_spill] sm:$0xff] %v9411_v47 }
0x205a   :  { %v9413_v14 = vpop.permute.xlu0 %2956 }
0x205b   :  { %14402 = vst [vmem:[#allocation258_spill] sm:$0xff] %v9413_v14 }
0x208c   :  { %v9415_v3 = vpop.permute.xlu0 %2995 }
0x208d   :  { %14403 = vst [vmem:[#allocation259_spill] sm:$0xff] %v9415_v3 }
0x2090   :  { %v9417_v2 = vpop.permute.xlu0 %2999 }
0x2091   :  { %14404 = vst [vmem:[#allocation260_spill] sm:$0xff] %v9417_v2 }
0x2094   :  { %v9419_v44 = vpop.permute.xlu0 %3003 }
0x2095   :  { %14405 = vst [vmem:[#allocation261_spill] sm:$0xff] %v9419_v44 }
0x20a1   :  { %v9421_v31 = vpop.permute.xlu0 %3024 }
0x20a2   :  { %14406 = vst [vmem:[#allocation262_spill] sm:$0xff] %v9421_v31  ;;  %v3029_v18 = vmul.f32 %v9421_v31, %v9366_v12  ;;  %v3027_v62 = vmul.f32 %v9421_v31, %v9358_v11  ;;  %v3031_v14 = vmul.f32 %v9170_v38, %v9421_v31  ;;  %v3028_v2 = vmul.f32 %v9421_v31, %v9356_v54 }
0x20a3   :  { %v3032_v44 = vmul.f32 %v9421_v31, %v9372_v16 }
0x20a4   :  { %3043 = vrot.lane.b32.xlu0 %v3029_v18, %s6814_s24  ;;  %3039 = vrot.lane.b32.xlu1 %v3027_v62, %s6814_s24  ;;  %v6879_v62 = vmov 45  }
0x20a8   :  { %3047 = vrot.lane.b32.xlu0 %v3031_v14, %s6814_s24  ;;  %3041 = vrot.lane.b32.xlu1 %v3028_v2, %s6814_s24 }
0x20ac   :  { %3067 = vperm.xlu0 %6659, %v8934_v53   ;;  %3045 = vrot.lane.b32.xlu1 %v3031_v14, %s6814_s24 }
0x20b0   :  { %3049 = vrot.lane.b32.xlu1 %v3032_v44, %s6814_s24  ;;  %6660 = vset.pattern.permute.xlu0 %v6879_v62 }
0x2116   :  { %v9440_v18 = vpop.permute.xlu0 %3043 }
0x2117   :  { %14407 = vst [vmem:[#allocation263_spill] sm:$0xff] %v9440_v18 }
0x211a   :  { %v9442_v47 = vpop.permute.xlu0 %3047 }
0x211b   :  { %14408 = vst [vmem:[#allocation264_spill] sm:$0xff] %v9442_v47 }
0x2127   :  { %v9444_v3 = vpop.permute.xlu0 %3067 }
0x2128   :  { %14409 = vst [vmem:[#allocation265_spill] sm:$0xff] %v9444_v3  ;;  %v3072_v2 = vmul.f32 %v9444_v3, %v9366_v12  ;;  %v3070_v1 = vmul.f32 %v9444_v3, %v9358_v11  ;;  %v3074_v14 = vmul.f32 %v9170_v38, %v9444_v3  ;;  %v3071_v44 = vmul.f32 %v9444_v3, %v9356_v54 }
0x2129   :  { %v3075_v62 = vmul.f32 %v9444_v3, %v9372_v16 }
0x212a   :  { %3086 = vrot.lane.b32.xlu0 %v3072_v2, %s6820_s22  ;;  %3082 = vrot.lane.b32.xlu1 %v3070_v1, %s6820_s22  ;;  %v6880_v1 = vmov 46  }
0x212e   :  { %3090 = vrot.lane.b32.xlu0 %v3074_v14, %s6820_s22  ;;  %3084 = vrot.lane.b32.xlu1 %v3071_v44, %s6820_s22 }
0x2132   :  { %3110 = vperm.xlu0 %6660, %v8934_v53   ;;  %3088 = vrot.lane.b32.xlu1 %v3074_v14, %s6820_s22 }
0x2136   :  { %3092 = vrot.lane.b32.xlu1 %v3075_v62, %s6820_s22  ;;  %6661 = vset.pattern.permute.xlu0 %v6880_v1 }
0x219c   :  { %v9463_v2 = vpop.permute.xlu0 %3086 }
0x219d   :  { %14410 = vst [vmem:[#allocation266_spill] sm:$0xff] %v9463_v2 }
0x21a0   :  { %v9465_v31 = vpop.permute.xlu0 %3090 }
0x21a1   :  { %14411 = vst [vmem:[#allocation267_spill] sm:$0xff] %v9465_v31 }
0x21ad   :  { %v9467_v47 = vpop.permute.xlu0 %3110 }
0x21ae   :  { %14412 = vst [vmem:[#allocation268_spill] sm:$0xff] %v9467_v47  ;;  %v3115_v44 = vmul.f32 %v9467_v47, %v9366_v12  ;;  %v3113_v18 = vmul.f32 %v9467_v47, %v9358_v11  ;;  %v3117_v14 = vmul.f32 %v9170_v38, %v9467_v47  ;;  %v3114_v62 = vmul.f32 %v9467_v47, %v9356_v54 }
0x21af   :  { %v3118_v1 = vmul.f32 %v9467_v47, %v9372_v16 }
0x21b0   :  { %3129 = vrot.lane.b32.xlu0 %v3115_v44, %s6783_s29  ;;  %3125 = vrot.lane.b32.xlu1 %v3113_v18, %s6783_s29  ;;  %v6881_v18 = vmov 47  }
0x21b4   :  { %3133 = vrot.lane.b32.xlu0 %v3117_v14, %s6783_s29  ;;  %3127 = vrot.lane.b32.xlu1 %v3114_v62, %s6783_s29 }
0x21b8   :  { %3154 = vperm.xlu0 %6661, %v8934_v53   ;;  %3131 = vrot.lane.b32.xlu1 %v3117_v14, %s6783_s29 }
0x21bc   :  { %3135 = vrot.lane.b32.xlu1 %v3118_v1, %s6783_s29  ;;  %6662 = vset.pattern.permute.xlu0 %v6881_v18 }
0x2222   :  { %v9486_v44 = vpop.permute.xlu0 %3129 }
0x2223   :  { %14413 = vst [vmem:[#allocation269_spill] sm:$0xff] %v9486_v44 }
0x2226   :  { %v9488_v3 = vpop.permute.xlu0 %3133 }
0x2227   :  { %14414 = vst [vmem:[#allocation270_spill] sm:$0xff] %v9488_v3 }
0x2233   :  { %v9490_v31 = vpop.permute.xlu0 %3154 }
0x2234   :  { %14415 = vst [vmem:[#allocation271_spill] sm:$0xff] %v9490_v31  ;;  %v3159_v62 = vmul.f32 %v9490_v31, %v9366_v12  ;;  %v3157_v2 = vmul.f32 %v9490_v31, %v9358_v11  ;;  %v3161_v14 = vmul.f32 %v9170_v38, %v9490_v31  ;;  %v3158_v1 = vmul.f32 %v9490_v31, %v9356_v54 }
0x2235   :  { %v3162_v18 = vmul.f32 %v9490_v31, %v9372_v16 }
0x2236   :  { %3173 = vrot.lane.b32.xlu0 %v3159_v62, %s13783_s9  ;;  %3169 = vrot.lane.b32.xlu1 %v3157_v2, %s13783_s9  ;;  %v6882_v2 = vmov 48  }
0x223a   :  { %3177 = vrot.lane.b32.xlu0 %v3161_v14, %s13783_s9  ;;  %3171 = vrot.lane.b32.xlu1 %v3158_v1, %s13783_s9 }
0x223e   :  { %3198 = vperm.xlu0 %6662, %v8934_v53   ;;  %3175 = vrot.lane.b32.xlu1 %v3161_v14, %s13783_s9 }
0x2242   :  { %3179 = vrot.lane.b32.xlu1 %v3162_v18, %s13783_s9  ;;  %6663 = vset.pattern.permute.xlu0 %v6882_v2  ;;  %s6889_s9 = smov 4  }
0x22a8   :  { %v9509_v62 = vpop.permute.xlu0 %3173 }
0x22ac   :  { %v9511_v47 = vpop.permute.xlu0 %3177 }
0x22ad   :  { %14416 = vst [vmem:[#allocation272_spill] sm:$0xff] %v9511_v47 }
0x22b9   :  { %v9513_v3 = vpop.permute.xlu0 %3198 }
0x22ba   :  { %14417 = vst [vmem:[#allocation273_spill] sm:$0xff] %v9513_v3  ;;  %v3203_v1 = vmul.f32 %v9513_v3, %v9366_v12  ;;  %v3201_v44 = vmul.f32 %v9513_v3, %v9358_v11  ;;  %v3205_v14 = vmul.f32 %v9170_v38, %v9513_v3  ;;  %v3202_v18 = vmul.f32 %v9513_v3, %v9356_v54 }
0x22bb   :  { %v3206_v2 = vmul.f32 %v9513_v3, %v9372_v16 }
0x22bc   :  { %3217 = vrot.lane.b32.xlu0 %v3203_v1, %s13734_s19  ;;  %3213 = vrot.lane.b32.xlu1 %v3201_v44, %s13734_s19  ;;  %v9535_v1 = vpop.permute.xlu1 %2997 }
0x22c0   :  { %3221 = vrot.lane.b32.xlu0 %v3205_v14, %s13734_s19  ;;  %3215 = vrot.lane.b32.xlu1 %v3202_v18, %s13734_s19  ;;  %v9539_v47 = vpop.permute.xlu1 %3001 }
0x22c4   :  { %3242 = vperm.xlu0 %6663, %v8934_v53   ;;  %3219 = vrot.lane.b32.xlu1 %v3205_v14, %s13734_s19  ;;  %v9547_v3 = vpop.permute.xlu1 %3005 }
0x22c5   :  { %14421 = vst [vmem:[#allocation277_spill] sm:$0xff] %v9547_v3  ;;  %v1423_v3 = vsel %vm13756_vm2, %v8349_v57, %v8227_v17  ;;  %v6681_v57 = vld [vmem:[#allocation2 + $0x20] sm:$0xff] }
0x22c8   :  { %3223 = vrot.lane.b32.xlu1 %v3206_v2, %s13734_s19  ;;  %6665 = vset.pattern.permute.xlu0 %v14384_v33  ;;  %s13778_s19 = smov 10  }
0x232e   :  { %v9533_v44 = vpop.permute.xlu0 %3217 }
0x232f   :  { %14418 = vst [vmem:[#allocation274_spill] sm:$0xff] %v9533_v44 }
0x2332   :  { %v9537_v31 = vpop.permute.xlu0 %3221 }
0x2333   :  { %14419 = vst [vmem:[#allocation275_spill] sm:$0xff] %v9537_v31  ;;  %v9555_v31 = vpop.permute.xlu1 %3039 }
0x233f   :  { %v9541_v18 = vpop.permute.xlu0 %3242 }
0x2340   :  { %14420 = vst [vmem:[#allocation276_spill] sm:$0xff] %v9541_v18  ;;  %v3247_v53 = vmul.f32 %v9541_v18, %v9366_v12  ;;  %v3245_v14 = vmul.f32 %v9541_v18, %v9358_v11  ;;  %v3249_v2 = vmul.f32 %v9170_v38, %v9541_v18  ;;  %v3246_v33 = vmul.f32 %v9541_v18, %v9356_v54 }
0x2341   :  { %v1346_v11 = vsel %vm305_vm15, %v8205_v27, %v8207_v52  ;;  %v1313_v12 = vmul.f32 %v9170_v38, %v8203_v50  ;;  %v1385_v54 = vsel %vm13744_vm5, %v8347_v48, %v8217_v41  ;;  %v1461_v38 = vsel %vm13747_vm0, %v8351_v6, %v8237_v32 }
0x2342   :  { %3261 = vrot.lane.b32.xlu0 %v3247_v53, %s13778_s19  ;;  %3257 = vrot.lane.b32.xlu1 %v3245_v14, %s13778_s19  ;;  %v9568_v53 = vpop.permute.xlu1 %3041  ;;  %v3250_v14 = vmul.f32 %v9541_v18, %v9372_v16  ;;  %v1347_v48 = vsel %vm305_vm15, %v8207_v52, %v8355_v13  ;;  %v1348_v16 = vsel %vm305_vm15, %v8355_v13, %v8296_v15 }
0x2343   :  { %v1386_v6 = vsel %vm13744_vm5, %v8217_v41, %v8359_v25  ;;  %v1424_v41 = vsel %vm13756_vm2, %v8227_v17, %v8363_v9 }
0x2346   :  { %3265 = vrot.lane.b32.xlu0 %v3249_v2, %s13778_s19  ;;  %3259 = vrot.lane.b32.xlu1 %v3246_v33, %s13778_s19  ;;  %v1355_v33 = vadd.f32 %v1346_v11, %v1313_v12  ;;  %v6680_v11 = vld [vmem:[#allocation2 + $0x10] sm:$0xff]  ;;  %v9593_v52 = vpop.permute.xlu1 %3045 }
0x2347   :  { %v1314_v18 = vmul.f32 %v6680_v11, %v8203_v50  ;;  %14422 = vst [vmem:[#allocation278_spill] sm:$0xff] %v9593_v52  ;;  %v1387_v11 = vsel %vm13744_vm5, %v8359_v25, %v8298_v40 }
0x2348   :  { %v1394_v27 = vadd.f32 %v1385_v54, %v1355_v33  ;;  %v1349_v54 = vsel %vm305_vm15, %v8296_v15, %v8357_v21  ;;  %v1388_v15 = vsel %vm13744_vm5, %v8298_v40, %v8361_v36  ;;  %v1462_v40 = vsel %vm13747_vm0, %v8237_v32, %v8367_v37 }
0x2349   :  { %vm13745_vm5 = vcmask 900096  }
0x234a   :  { %3263 = vrot.lane.b32.xlu1 %v3249_v2, %s13778_s19  ;;  %v1432_v2 = vadd.f32 %v1423_v3, %v1394_v27  ;;  %v6682_v3 = vld [vmem:[#allocation2 + $0x18] sm:$0xff]  ;;  %v1356_v27 = vadd.f32 %v1347_v48, %v1313_v12  ;;  %v1425_v12 = vsel %vm13756_vm2, %v8363_v9, %v8300_v42  ;;  %v1463_v48 = vsel %vm13747_vm0, %v8367_v37, %v8302_v46 }
0x234b   :  { %v1315_v33 = vmul.f32 %v6682_v3, %v8203_v50  ;;  %v1500_v9 = vsel %vm13746_vm1, %v8353_v5, %v8294_v7  ;;  %v1501_v37 = vsel %vm13746_vm1, %v8294_v7, %v8371_v49  ;;  %v1540_v7 = vsel %vm13745_vm5, %v8323_v45, %v8377_v0 }
0x234c   :  { %v1470_v13 = vadd.f32 %v1461_v38, %v1432_v2  ;;  %v1395_v3 = vadd.f32 %v1386_v6, %v1356_v27  ;;  %v9626_v2 = vpop.permute.xlu1 %3049 }
0x234d   :  { %v1358_v52 = vadd.f32 %v1349_v54, %v1315_v33 }
0x234e   :  { %3267 = vrot.lane.b32.xlu1 %v3250_v14, %s13778_s19  ;;  %v1316_v14 = vmul.f32 %v6681_v57, %v8203_v50  ;;  %v1357_v57 = vadd.f32 %v1348_v16, %v1314_v18  ;;  %v1433_v17 = vadd.f32 %v1424_v41, %v1395_v3  ;;  %v1509_v6 = vadd.f32 %v1500_v9, %v1470_v13  ;;  %s13780_s19 = smov 74  }
0x234f   :  { %v1397_v18 = vadd.f32 %v1388_v15, %v1358_v52 }
0x2350   :  { %v1359_v44 = vadd.f32 %v8357_v21, %v1316_v14  ;;  %v1396_v38 = vadd.f32 %v1387_v11, %v1357_v57  ;;  %v1426_v21 = vsel %vm13756_vm2, %v8300_v42, %v8365_v28  ;;  %v1464_v42 = vsel %vm13747_vm0, %v8302_v46, %v8369_v60  ;;  %v9651_v11 = vpop.permute.xlu1 %3082 }
0x2351   :  { %v1435_v32 = vadd.f32 %v1426_v21, %v1397_v18  ;;  %v1471_v16 = vadd.f32 %v1462_v40, %v1433_v17  ;;  %v1502_v14 = vsel %vm13746_vm1, %v8371_v49, %v8304_v29  ;;  %v1539_v46 = vsel %vm13745_vm5, %v8375_v43, %v8323_v45  ;;  %v14423_v17 = vld [vmem:[#allocation39_spill] sm:$0xff] }
0x2352   :  { %v1398_v25 = vadd.f32 %v8361_v36, %v1359_v44  ;;  %v1434_v36 = vadd.f32 %v1425_v12, %v1396_v38  ;;  %v1541_v49 = vsel %vm13745_vm5, %v8377_v0, %v8325_v39  ;;  %v1548_v13 = vadd.f32 %v1539_v46, %v1509_v6 }
0x2353   :  { %v1473_v52 = vadd.f32 %v1464_v42, %v1435_v32  ;;  %v1510_v33 = vadd.f32 %v1501_v37, %v1471_v16  ;;  %v1587_v45 = vsel %vm13766_vm3, %v8381_v63, %v8528_v20  ;;  %v1588_v0 = vsel %vm13766_vm3, %v8528_v20, %v8383_v55  ;;  %v14426_v32 = vld [vmem:[#allocation76_spill] sm:$0xff]  ;;  %v14427_v16 = vld [vmem:[#allocation41_spill] sm:$0xff] }
0x2354   :  { %v1436_v44 = vadd.f32 %v8365_v28, %v1398_v25  ;;  %v1472_v5 = vadd.f32 %v1463_v48, %v1434_v36  ;;  %v1503_v28 = vsel %vm13746_vm1, %v8304_v29, %v8373_v58  ;;  %v1542_v29 = vsel %vm13745_vm5, %v8325_v39, %v8379_v8 }
0x2355   :  { %v1512_v43 = vadd.f32 %v1503_v28, %v1473_v52  ;;  %v1549_v57 = vadd.f32 %v1540_v7, %v1510_v33  ;;  %v1590_v39 = vsel %vm13766_vm3, %v8530_v30, %v8385_v24  ;;  %v1591_v63 = vsel %vm13766_vm3, %v8385_v24, %v8532_v26  ;;  %v14430_v52 = vld [vmem:[#allocation67_spill] sm:$0xff] }
0x2356   :  { %v1474_v54 = vadd.f32 %v8369_v60, %v1436_v44  ;;  %v1511_v60 = vadd.f32 %v1502_v14, %v1472_v5  ;;  %vm13748_vm5 = vcmask 162816   ;;  %v1597_v12 = vadd.f32 %v1587_v45, %v1548_v13  ;;  %v14434_v13 = vld [vmem:[#allocation69_spill] sm:$0xff] }
0x2357   :  { %v1551_v41 = vadd.f32 %v1542_v29, %v1512_v43  ;;  %v1598_v20 = vadd.f32 %v1588_v0, %v1549_v57  ;;  %v1630_v38 = vsel %vm13762_vm4, %v8534_v22, %v8538_v56  ;;  %v1633_v26 = vsel %vm13762_vm4, %v8548_v34, %v8411_v19  ;;  %v14433_v29 = vld [vmem:[#allocation78_spill] sm:$0xff] }
0x2358   :  { %v1513_v27 = vadd.f32 %v8373_v58, %v1474_v54  ;;  %v1550_v15 = vadd.f32 %v1541_v49, %v1511_v60  ;;  %v1589_v58 = vsel %vm13766_vm3, %v8383_v55, %v8530_v30  ;;  %v1631_v55 = vsel %vm13762_vm4, %v8538_v56, %v8409_v10  ;;  %v9687_v56 = vpop.permute.xlu1 %3084  ;;  %v14429_v54 = vld [vmem:[#allocation77_spill] sm:$0xff]  ;;  %v14431_v49 = vld [vmem:[#allocation42_spill] sm:$0xff] }
0x2359   :  { %v1600_v30 = vadd.f32 %v1590_v39, %v1551_v41  ;;  %v1634_v21 = vsel %vm13762_vm4, %v8411_v19, %v8558_v59  ;;  %v1674_v22 = vsel %vm13748_vm5, %v8563_v61, %v8566_v4  ;;  %vm13749_vm1 = vcmask 138240   ;;  %v14424_v19 = vld [vmem:[#allocation63_spill] sm:$0xff] }
0x235a   :  { %v1552_v3 = vadd.f32 %v8379_v8, %v1513_v27  ;;  %v1599_v25 = vadd.f32 %v1589_v58, %v1550_v15  ;;  %v1632_v8 = vsel %vm13762_vm4, %v8409_v10, %v8548_v34  ;;  %v1640_v40 = vadd.f32 %v1630_v38, %v1597_v12  ;;  %v14425_v61 = vld [vmem:[#allocation75_spill] sm:$0xff]  ;;  %v14432_v27 = vld [vmem:[#allocation44_spill] sm:$0xff] }
0x235b   :  { %v1641_v18 = vadd.f32 %v1631_v55, %v1598_v20  ;;  %v1675_v10 = vsel %vm13748_vm5, %v8566_v4, %v8433_v23  ;;  %v1676_v34 = vsel %vm13748_vm5, %v8433_v23, %v14423_v17  ;;  %v1643_v9 = vadd.f32 %v1633_v26, %v1600_v30  ;;  %v14428_v23 = vld [vmem:[#allocation65_spill] sm:$0xff]  ;;  %v14435_v58 = vld [vmem:[#allocation79_spill] sm:$0xff]  ;;  %v14437_v20 = vld [vmem:[#allocation80_spill] sm:$0xff] }
0x235c   :  { %v1601_v24 = vadd.f32 %v1591_v63, %v1552_v3  ;;  %v1642_v48 = vadd.f32 %v1632_v8, %v1599_v25  ;;  %v1677_v59 = vsel %vm13748_vm5, %v14423_v17, %v14424_v19  ;;  %v1678_v36 = vsel %vm13748_vm5, %v14424_v19, %v14425_v61  ;;  %v9722_v0 = vpop.permute.xlu1 %3088  ;;  %v14436_v41 = vld [vmem:[#allocation35_spill] sm:$0xff]  ;;  %v14438_v30 = vld [vmem:[#allocation81_spill] sm:$0xff]  ;;  %v14442_v17 = vld [vmem:[#allocation82_spill] sm:$0xff] }
0x235d   :  { %v1684_v42 = vadd.f32 %v1674_v22, %v1640_v40  ;;  %v1718_v4 = vsel %vm13749_vm1, %v14427_v16, %v14426_v32  ;;  %vm13750_vm0 = vcmask 113664   ;;  %v1685_v37 = vadd.f32 %v1675_v10, %v1641_v18  ;;  %v14439_v8 = vld [vmem:[#allocation45_spill] sm:$0xff]  ;;  %v14441_v18 = vld [vmem:[#allocation47_spill] sm:$0xff] }
0x235e   :  { %v1644_v44 = vadd.f32 %v1634_v21, %v1601_v24  ;;  %v1686_v14 = vadd.f32 %v1676_v34, %v1642_v48  ;;  %v1719_v5 = vsel %vm13749_vm1, %v14426_v32, %v14428_v23  ;;  %v1720_v28 = vsel %vm13749_vm1, %v14428_v23, %v14429_v54  ;;  %v14440_v24 = vld [vmem:[#allocation71_spill] sm:$0xff]  ;;  %v14443_v34 = vld [vmem:[#allocation36_spill] sm:$0xff] }
0x235f   :  { %v1687_v46 = vadd.f32 %v1677_v59, %v1643_v9  ;;  %v1721_v7 = vsel %vm13749_vm1, %v14429_v54, %v14430_v52  ;;  %v1722_v33 = vsel %vm13749_vm1, %v14430_v52, %v14431_v49  ;;  %v1728_v60 = vadd.f32 %v1718_v4, %v1684_v42  ;;  %v14444_v59 = vld [vmem:[#allocation48_spill] sm:$0xff]  ;;  %v14445_v61 = vld [vmem:[#allocation83_spill] sm:$0xff] }
0x2360   :  { %v1688_v6 = vadd.f32 %v1678_v36, %v1644_v44  ;;  %v1762_v43 = vsel %vm13750_vm0, %v14433_v29, %v14432_v27  ;;  %v1763_v45 = vsel %vm13750_vm0, %v14432_v27, %v14434_v13  ;;  %vm13751_vm5 = vcmask 89088   ;;  %v14446_v44 = vld [vmem:[#allocation38_spill] sm:$0xff]  ;;  %v14447_v4 = vld [vmem:[#allocation84_spill] sm:$0xff]  ;;  %v9757_v23 = vpop.permute.xlu1 %3092  ;;  %v14451_v27 = vld [vmem:[#allocation85_spill] sm:$0xff] }
0x2361   :  { %v1729_v57 = vadd.f32 %v1719_v5, %v1685_v37  ;;  %v1730_v15 = vadd.f32 %v1720_v28, %v1686_v14  ;;  %v1764_v39 = vsel %vm13750_vm0, %v14434_v13, %v14435_v58  ;;  %v1765_v3 = vsel %vm13750_vm0, %v14435_v58, %v14436_v41  ;;  %v14448_v37 = vld [vmem:[#allocation73_spill] sm:$0xff]  ;;  %v14449_v28 = vld [vmem:[#allocation50_spill] sm:$0xff] }
0x2362   :  { %v1731_v63 = vadd.f32 %v1721_v7, %v1687_v46  ;;  %v1732_v12 = vadd.f32 %v1722_v33, %v1688_v6  ;;  %v1766_v38 = vsel %vm13750_vm0, %v14436_v41, %v14437_v20  ;;  %vm13752_vm1 = vcmask 64512   ;;  %v14456_v20 = vld [vmem:[#allocation146_spill] sm:$0xff] }
0x2363   :  { %v1772_v55 = vadd.f32 %v1762_v43, %v1728_v60  ;;  %v1773_v25 = vadd.f32 %v1763_v45, %v1729_v57  ;;  %v1806_v26 = vsel %vm13751_vm5, %v14439_v8, %v14438_v30  ;;  %v1807_v21 = vsel %vm13751_vm5, %v14438_v30, %v14440_v24  ;;  %v14450_v60 = vld [vmem:[#allocation51_spill] sm:$0xff]  ;;  %v14452_v43 = vld [vmem:[#allocation141_spill] sm:$0xff]  ;;  %v14453_v45 = vld [vmem:[#allocation86_spill] sm:$0xff] }
0x2364   :  { %v1774_v22 = vadd.f32 %v1764_v39, %v1730_v15  ;;  %v1775_v40 = vadd.f32 %v1765_v3, %v1731_v63  ;;  %v1808_v10 = vsel %vm13751_vm5, %v14440_v24, %v14441_v18  ;;  %v1810_v48 = vsel %vm13751_vm5, %v14443_v34, %v14442_v17  ;;  %v14454_v39 = vld [vmem:[#allocation145_spill] sm:$0xff]  ;;  %v9777_v3 = vpop.permute.xlu1 %3125  ;;  %v14458_v30 = vld [vmem:[#allocation88_spill] sm:$0xff] }
0x2365   :  { %v1776_v9 = vadd.f32 %v1766_v38, %v1732_v12  ;;  %v1809_v19 = vsel %vm13751_vm5, %v14441_v18, %v14443_v34  ;;  %v1850_v36 = vsel %vm13752_vm1, %v14445_v61, %v14444_v59  ;;  %v1851_v42 = vsel %vm13752_vm1, %v14444_v59, %v14446_v44  ;;  %v14455_v12 = vld [vmem:[#allocation87_spill] sm:$0xff]  ;;  %v14461_v17 = vld [vmem:[#allocation152_spill] sm:$0xff] }
0x2366   :  { %v1816_v32 = vadd.f32 %v1806_v26, %v1772_v55  ;;  %v1817_v16 = vadd.f32 %v1807_v21, %v1773_v25  ;;  %v1854_v14 = vsel %vm13752_vm1, %v14448_v37, %v14447_v4  ;;  %vm13753_vm0 = vcmask 424960   ;;  %v14457_v55 = vld [vmem:[#allocation147_spill] sm:$0xff] }
0x2367   :  { %v1818_v5 = vadd.f32 %v1808_v10, %v1774_v22  ;;  %v1820_v54 = vadd.f32 %v1810_v48, %v1776_v9  ;;  %v1852_v46 = vsel %vm13752_vm1, %v14446_v44, %v14449_v28  ;;  %v1853_v6 = vsel %vm13752_vm1, %v14449_v28, %v14448_v37  ;;  %v14459_v22 = vld [vmem:[#allocation151_spill] sm:$0xff]  ;;  %v14460_v10 = vld [vmem:[#allocation100_spill] sm:$0xff]  ;;  %v14462_v48 = vld [vmem:[#allocation153_spill] sm:$0xff] }
0x2368   :  { %v1819_v52 = vadd.f32 %v1809_v19, %v1775_v40  ;;  %v1860_v7 = vadd.f32 %v1850_v36, %v1816_v32  ;;  %v1861_v49 = vadd.f32 %v1851_v42, %v1817_v16  ;;  %vm13754_vm5 = vcmask 400384   ;;  %v14463_v36 = vld [vmem:[#allocation90_spill] sm:$0xff]  ;;  %v14464_v16 = vld [vmem:[#allocation157_spill] sm:$0xff] }
0x2369   :  { %v1864_v33 = vadd.f32 %v1854_v14, %v1820_v54  ;;  %v1890_v29 = vsel %vm13753_vm0, %v14451_v27, %v14450_v60  ;;  %v1891_v13 = vsel %vm13753_vm0, %v14450_v60, %v14452_v43  ;;  %v1892_v57 = vsel %vm13753_vm0, %v14452_v43, %v14453_v45  ;;  %v14466_v54 = vld [vmem:[#allocation158_spill] sm:$0xff] }
0x236a   :  { %v1862_v15 = vadd.f32 %v1852_v46, %v1818_v5  ;;  %v1863_v58 = vadd.f32 %v1853_v6, %v1819_v52  ;;  %v1893_v41 = vsel %vm13753_vm0, %v14453_v45, %v14454_v39  ;;  %vm13755_vm1 = vcmask 375808   ;;  %v14465_v5 = vld [vmem:[#allocation91_spill] sm:$0xff]  ;;  %v9811_v52 = vpop.permute.xlu1 %3127  ;;  %v14471_v45 = vld [vmem:[#allocation161_spill] sm:$0xff] }
0x236b   :  { %v1903_v63 = vadd.f32 %v14454_v39, %v1864_v33  ;;  %v1929_v38 = vsel %vm13754_vm5, %v14456_v20, %v14455_v12  ;;  %v1930_v25 = vsel %vm13754_vm5, %v14455_v12, %v14457_v55  ;;  %v1931_v8 = vsel %vm13754_vm5, %v14457_v55, %v14458_v30  ;;  %v14467_v46 = vld [vmem:[#allocation159_spill] sm:$0xff]  ;;  %v14468_v33 = vld [vmem:[#allocation104_spill] sm:$0xff] }
0x236c   :  { %v1899_v26 = vadd.f32 %v1890_v29, %v1860_v7  ;;  %v1900_v24 = vadd.f32 %v1891_v13, %v1861_v49  ;;  %v1901_v21 = vadd.f32 %v1892_v57, %v1862_v15  ;;  %v1932_v40 = vsel %vm13754_vm5, %v14458_v30, %v14459_v22  ;;  %v14469_v29 = vld [vmem:[#allocation160_spill] sm:$0xff]  ;;  %v14470_v13 = vld [vmem:[#allocation101_spill] sm:$0xff]  ;;  %v14472_v15 = vld [vmem:[#allocation162_spill] sm:$0xff] }
0x236d   :  { %v1902_v18 = vadd.f32 %v1893_v41, %v1863_v58  ;;  %v1968_v34 = vsel %vm13755_vm1, %v14461_v17, %v14460_v10  ;;  %v1969_v9 = vsel %vm13755_vm1, %v14460_v10, %v14462_v48  ;;  %vm13758_vm0 = vcmask 351232   ;;  %v14476_v30 = vld [vmem:[#allocation166_spill] sm:$0xff] }
0x236e   :  { %v1938_v19 = vadd.f32 %v1929_v38, %v1899_v26  ;;  %v1939_v59 = vadd.f32 %v1930_v25, %v1900_v24  ;;  %v1940_v61 = vadd.f32 %v1931_v8, %v1901_v21  ;;  %v1970_v44 = vsel %vm13755_vm1, %v14462_v48, %v14463_v36  ;;  %v14474_v38 = vld [vmem:[#allocation164_spill] sm:$0xff]  ;;  %v14475_v25 = vld [vmem:[#allocation105_spill] sm:$0xff]  ;;  %v14478_v17 = vld [vmem:[#allocation102_spill] sm:$0xff] }
0x236f   :  { %v1941_v42 = vadd.f32 %v1932_v40, %v1902_v18  ;;  %v1942_v32 = vadd.f32 %v14459_v22, %v1903_v63  ;;  %v1971_v4 = vsel %vm13755_vm1, %v14463_v36, %v14464_v16  ;;  %vm13757_vm5 = vcmask 326656   ;;  %v14473_v63 = vld [vmem:[#allocation92_spill] sm:$0xff]  ;;  %v14479_v48 = vld [vmem:[#allocation107_spill] sm:$0xff] }
0x2370   :  { %v1977_v37 = vadd.f32 %v1968_v34, %v1938_v19  ;;  %v1978_v14 = vadd.f32 %v1969_v9, %v1939_v59  ;;  %v2007_v28 = vsel %vm13758_vm0, %v14466_v54, %v14465_v5  ;;  %v2008_v6 = vsel %vm13758_vm0, %v14465_v5, %v14467_v46  ;;  %v14477_v26 = vld [vmem:[#allocation168_spill] sm:$0xff]  ;;  %v14480_v9 = vld [vmem:[#allocation170_spill] sm:$0xff]  ;;  %v9845_v59 = vpop.permute.xlu1 %3131 }
0x2371   :  { %v1979_v7 = vadd.f32 %v1970_v44, %v1940_v61  ;;  %v1981_v49 = vadd.f32 %v14464_v16, %v1942_v32  ;;  %v2009_v60 = vsel %vm13758_vm0, %v14467_v46, %v14468_v33  ;;  %vm13759_vm1 = vcmask 302080   ;;  %v14481_v32 = vld [vmem:[#allocation169_spill] sm:$0xff] }
0x2372   :  { %v1980_v27 = vadd.f32 %v1971_v4, %v1941_v42  ;;  %v2010_v43 = vsel %vm13758_vm0, %v14468_v33, %v14469_v29  ;;  %v2046_v57 = vsel %vm13757_vm5, %v14471_v45, %v14470_v13  ;;  %v2047_v58 = vsel %vm13757_vm5, %v14470_v13, %v14472_v15  ;;  %v14482_v4 = vld [vmem:[#allocation171_spill] sm:$0xff]  ;;  %v14486_v33 = vld [vmem:[#allocation172_spill] sm:$0xff] }
0x2373   :  { %v2016_v39 = vadd.f32 %v2007_v28, %v1977_v37  ;;  %v2017_v41 = vadd.f32 %v2008_v6, %v1978_v14  ;;  %v2048_v12 = vsel %vm13757_vm5, %v14472_v15, %v14473_v63  ;;  %vm13760_vm2 = vcmask 277504   ;;  %v14483_v14 = vld [vmem:[#allocation95_spill] sm:$0xff]  ;;  %v14484_v6 = vld [vmem:[#allocation109_spill] sm:$0xff] }
0x2374   :  { %v2018_v20 = vadd.f32 %v2009_v60, %v1979_v7  ;;  %v2049_v55 = vsel %vm13757_vm5, %v14473_v63, %v14474_v38  ;;  %v2085_v8 = vsel %vm13759_vm1, %v14476_v30, %v14475_v25  ;;  %v2086_v24 = vsel %vm13759_vm1, %v14475_v25, %v14477_v26  ;;  %v14485_v7 = vld [vmem:[#allocation173_spill] sm:$0xff] }
0x2375   :  { %v2019_v21 = vadd.f32 %v2010_v43, %v1980_v27  ;;  %v2020_v22 = vadd.f32 %v14469_v29, %v1981_v49  ;;  %v2055_v40 = vadd.f32 %v2046_v57, %v2016_v39  ;;  %v2056_v18 = vadd.f32 %v2047_v58, %v2017_v41  ;;  %v14487_v27 = vld [vmem:[#allocation174_spill] sm:$0xff]  ;;  %v14489_v58 = vld [vmem:[#allocation108_spill] sm:$0xff] }
0x2376   :  { %v2057_v10 = vadd.f32 %v2048_v12, %v2018_v20  ;;  %v2087_v34 = vsel %vm13759_vm1, %v14477_v26, %v14478_v17  ;;  %v2124_v19 = vsel %vm13760_vm2, %v14480_v9, %v14479_v48  ;;  %vm13761_vm5 = vcmask 637952   ;;  %v14488_v43 = vld [vmem:[#allocation110_spill] sm:$0xff]  ;;  %v14490_v39 = vld [vmem:[#allocation176_spill] sm:$0xff]  ;;  %v14491_v20 = vld [vmem:[#allocation175_spill] sm:$0xff] }
0x2377   :  { %v2058_v61 = vadd.f32 %v2049_v55, %v2019_v21  ;;  %v2059_v36 = vadd.f32 %v14474_v38, %v2020_v22  ;;  %v2094_v44 = vadd.f32 %v2085_v8, %v2055_v40  ;;  %v2095_v42 = vadd.f32 %v2086_v24, %v2056_v18  ;;  %v9877_v55 = vpop.permute.xlu1 %3135  ;;  %v14492_v26 = vld [vmem:[#allocation120_spill] sm:$0xff]  ;;  %v14493_v24 = vld [vmem:[#allocation179_spill] sm:$0xff]  ;;  %v14494_v40 = vld [vmem:[#allocation177_spill] sm:$0xff] }
0x2378   :  { %v2088_v16 = vsel %vm13759_vm1, %v14478_v17, %v14481_v32  ;;  %v2125_v37 = vsel %vm13760_vm2, %v14479_v48, %v14482_v4  ;;  %v2126_v5 = vsel %vm13760_vm2, %v14482_v4, %v14483_v14  ;;  %vm13763_vm0 = vcmask 613376   ;;  %v14496_v9 = vld [vmem:[#allocation178_spill] sm:$0xff]  ;;  %v14500_v4 = vld [vmem:[#allocation121_spill] sm:$0xff] }
0x2379   :  { %v2096_v54 = vadd.f32 %v2087_v34, %v2057_v10  ;;  %v2098_v28 = vadd.f32 %v14481_v32, %v2059_v36  ;;  %v2133_v46 = vadd.f32 %v2124_v19, %v2094_v44  ;;  %v2168_v49 = vsel %vm13761_vm5, %v14485_v7, %v14484_v6  ;;  %v14495_v10 = vld [vmem:[#allocation111_spill] sm:$0xff]  ;;  %v14498_v36 = vld [vmem:[#allocation182_spill] sm:$0xff]  ;;  %v14499_v32 = vld [vmem:[#allocation180_spill] sm:$0xff] }
0x237a   :  { %v2127_v60 = vsel %vm13760_vm2, %v14483_v14, %v14486_v33  ;;  %v2169_v29 = vsel %vm13761_vm5, %v14484_v6, %v14487_v27  ;;  %v2170_v13 = vsel %vm13761_vm5, %v14487_v27, %v14488_v43  ;;  %vm13764_vm1 = vcmask 588800  }
0x237b   :  { %v2097_v45 = vadd.f32 %v2088_v16, %v2058_v61  ;;  %v2134_v57 = vadd.f32 %v2125_v37, %v2095_v42  ;;  %v2135_v15 = vadd.f32 %v2126_v5, %v2096_v54  ;;  %v2207_v41 = vsel %vm13763_vm0, %v14490_v39, %v14489_v58  ;;  %v14497_v61 = vld [vmem:[#allocation123_spill] sm:$0xff]  ;;  %v9901_v14 = vpop.permute.xlu1 %3169 }
0x237c   :  { %v2137_v63 = vadd.f32 %v14486_v33, %v2098_v28  ;;  %v2177_v12 = vadd.f32 %v2168_v49, %v2133_v46  ;;  %v2171_v38 = vsel %vm13761_vm5, %v14488_v43, %v14491_v20  ;;  %vm13765_vm2 = vcmask 564224   ;;  %v14501_v28 = vld [vmem:[#allocation126_spill] sm:$0xff]  ;;  %v14502_v46 = vld [vmem:[#allocation185_spill] sm:$0xff] }
0x237d   :  { %v2136_v25 = vadd.f32 %v2127_v60, %v2097_v45  ;;  %v2178_v30 = vadd.f32 %v2169_v29, %v2134_v57  ;;  %v2179_v8 = vadd.f32 %v2170_v13, %v2135_v15  ;;  %v2246_v21 = vsel %vm13764_vm1, %v14493_v24, %v14492_v26  ;;  %v14503_v33 = vld [vmem:[#allocation181_spill] sm:$0xff]  ;;  %v14504_v13 = vld [vmem:[#allocation183_spill] sm:$0xff]  ;;  %v14506_v15 = vld [vmem:[#allocation188_spill] sm:$0xff] }
0x237e   :  { %v2216_v22 = vadd.f32 %v2207_v41, %v2177_v12  ;;  %v2208_v18 = vsel %vm13763_vm0, %v14489_v58, %v14494_v40  ;;  %v2209_v17 = vsel %vm13763_vm0, %v14494_v40, %v14495_v10  ;;  %vm13768_vm5 = vcmask 539648   ;;  %v14505_v57 = vld [vmem:[#allocation129_spill] sm:$0xff]  ;;  %v14507_v41 = vld [vmem:[#allocation124_spill] sm:$0xff]  ;;  %v14512_v40 = vld [vmem:[#allocation127_spill] sm:$0xff] }
0x237f   :  { %v2180_v34 = vadd.f32 %v2171_v38, %v2136_v25  ;;  %v2181_v48 = vadd.f32 %v14491_v20, %v2137_v63  ;;  %v2210_v19 = vsel %vm13763_vm0, %v14495_v10, %v14496_v9  ;;  %v2285_v44 = vsel %vm13765_vm2, %v14498_v36, %v14497_v61  ;;  %v14508_v38 = vld [vmem:[#allocation184_spill] sm:$0xff]  ;;  %v14515_v36 = vld [vmem:[#allocation197_spill] sm:$0xff] }
0x2380   :  { %v2255_v42 = vadd.f32 %v2246_v21, %v2216_v22  ;;  %v2247_v16 = vsel %vm13764_vm1, %v14492_v26, %v14499_v32  ;;  %v2248_v37 = vsel %vm13764_vm1, %v14499_v32, %v14500_v4  ;;  %vm13767_vm4 = vcmask 515072   ;;  %v14510_v26 = vld [vmem:[#allocation132_spill] sm:$0xff] }
0x2381   :  { %v2217_v5 = vadd.f32 %v2208_v18, %v2178_v30  ;;  %v2218_v54 = vadd.f32 %v2209_v17, %v2179_v8  ;;  %v2324_v6 = vsel %vm13768_vm5, %v14502_v46, %v14501_v28  ;;  %v2219_v7 = vadd.f32 %v2210_v19, %v2180_v34  ;;  %v14509_v30 = vld [vmem:[#allocation186_spill] sm:$0xff]  ;;  %v14511_v24 = vld [vmem:[#allocation192_spill] sm:$0xff]  ;;  %v9932_v17 = vpop.permute.xlu1 %3171 }
0x2382   :  { %v2220_v49 = vadd.f32 %v14496_v9, %v2181_v48  ;;  %v2249_v60 = vsel %vm13764_vm1, %v14500_v4, %v14503_v33  ;;  %v2294_v27 = vadd.f32 %v2285_v44, %v2255_v42  ;;  %v2286_v45 = vsel %vm13765_vm2, %v14497_v61, %v14504_v13  ;;  %v14513_v9 = vld [vmem:[#allocation189_spill] sm:$0xff]  ;;  %v14514_v61 = vld [vmem:[#allocation135_spill] sm:$0xff]  ;;  %v14518_v46 = vld [vmem:[#allocation138_spill] sm:$0xff] }
0x2383   :  { %v2256_v29 = vadd.f32 %v2247_v16, %v2217_v5  ;;  %v2257_v43 = vadd.f32 %v2248_v37, %v2218_v54  ;;  %v2363_v58 = vsel %vm13767_vm4, %v14506_v15, %v14505_v57  ;;  %v2287_v63 = vsel %vm13765_vm2, %v14504_v13, %v14507_v41  ;;  %v14516_v37 = vld [vmem:[#allocation187_spill] sm:$0xff]  ;;  %v14517_v54 = vld [vmem:[#allocation194_spill] sm:$0xff] }
0x2384   :  { %v2259_v39 = vadd.f32 %v14503_v33, %v2220_v49  ;;  %v2333_v12 = vadd.f32 %v2324_v6, %v2294_v27  ;;  %vm13773_vm0 = vcmask 850944   ;;  %v2258_v20 = vadd.f32 %v2249_v60, %v2219_v7  ;;  %v14519_v6 = vld [vmem:[#allocation200_spill] sm:$0xff]  ;;  %v14520_v49 = vld [vmem:[#allocation130_spill] sm:$0xff] }
0x2385   :  { %v2288_v25 = vsel %vm13765_vm2, %v14507_v41, %v14508_v38  ;;  %v2325_v8 = vsel %vm13768_vm5, %v14501_v28, %v14509_v30  ;;  %v2401_v21 = vsel %vm13769_vm12, %v14511_v24, %v14510_v26  ;;  %v2295_v22 = vadd.f32 %v2286_v45, %v2256_v29  ;;  %v14522_v45 = vld [vmem:[#allocation198_spill] sm:$0xff] }
0x2386   :  { %v2326_v18 = vsel %vm13768_vm5, %v14509_v30, %v14512_v40  ;;  %v2372_v10 = vadd.f32 %v2363_v58, %v2333_v12  ;;  %vm13770_vm1 = vcmask 826368   ;;  %v2296_v34 = vadd.f32 %v2287_v63, %v2257_v43  ;;  %v14521_v43 = vld [vmem:[#allocation190_spill] sm:$0xff]  ;;  %v14524_v58 = vld [vmem:[#allocation203_spill] sm:$0xff]  ;;  %v14525_v63 = vld [vmem:[#allocation133_spill] sm:$0xff] }
0x2387   :  { %v2298_v48 = vadd.f32 %v14508_v38, %v2259_v39  ;;  %v2364_v19 = vsel %vm13767_vm4, %v14505_v57, %v14513_v9  ;;  %v2445_v44 = vsel %vm13773_vm0, %v14515_v36, %v14514_v61  ;;  %v2297_v42 = vadd.f32 %v2288_v25, %v2258_v20  ;;  %v14523_v15 = vld [vmem:[#allocation142_spill] sm:$0xff]  ;;  %v9966_v25 = vpop.permute.xlu1 %3175 }
0x2388   :  { %v2334_v32 = vadd.f32 %v2325_v8, %v2295_v22  ;;  %v2410_v16 = vadd.f32 %v2401_v21, %v2372_v10  ;;  %vm13772_vm2 = vcmask 801792   ;;  %v2335_v4 = vadd.f32 %v2326_v18, %v2296_v34  ;;  %v14527_v21 = vld [vmem:[#allocation148_spill] sm:$0xff]  ;;  %v14528_v22 = vld [vmem:[#allocation206_spill] sm:$0xff] }
0x2389   :  { %v2327_v5 = vsel %vm13768_vm5, %v14512_v40, %v14516_v37  ;;  %v2402_v28 = vsel %vm13769_vm12, %v14510_v26, %v14517_v54  ;;  %v2484_v7 = vsel %vm13770_vm1, %v14519_v6, %v14518_v46  ;;  %v2365_v33 = vsel %vm13767_vm4, %v14513_v9, %v14520_v49  ;;  %v14526_v26 = vld [vmem:[#allocation201_spill] sm:$0xff]  ;;  %v14529_v9 = vld [vmem:[#allocation196_spill] sm:$0xff]  ;;  %v14535_v6 = vld [vmem:[#allocation207_spill] sm:$0xff] }
0x238a   :  { %v2373_v60 = vadd.f32 %v2364_v19, %v2334_v32  ;;  %v2454_v27 = vadd.f32 %v2445_v44, %v2410_v16  ;;  %vm13771_vm3 = vcmask 777216   ;;  %v2337_v29 = vadd.f32 %v14516_v37, %v2298_v48  ;;  %v14531_v44 = vld [vmem:[#allocation154_spill] sm:$0xff]  ;;  %v14533_v16 = vld [vmem:[#allocation136_spill] sm:$0xff] }
0x238b   :  { %v2366_v13 = vsel %vm13767_vm4, %v14520_v49, %v14521_v43  ;;  %v2446_v57 = vsel %vm13773_vm0, %v14514_v61, %v14522_v45  ;;  %v2523_v39 = vsel %vm13772_vm2, %v14524_v58, %v14523_v15  ;;  %v2336_v41 = vadd.f32 %v2327_v5, %v2297_v42  ;;  %v14530_v61 = vld [vmem:[#allocation204_spill] sm:$0xff]  ;;  %v14532_v42 = vld [vmem:[#allocation209_spill] sm:$0xff]  ;;  %v14536_v49 = vld [vmem:[#allocation163_spill] sm:$0xff] }
0x238c   :  { %v2403_v12 = vsel %vm13769_vm12, %v14517_v54, %v14525_v63  ;;  %v2411_v20 = vadd.f32 %v2402_v28, %v2373_v60  ;;  %v2493_v38 = vadd.f32 %v2484_v7, %v2454_v27  ;;  %v2374_v30 = vadd.f32 %v2365_v33, %v2335_v4  ;;  %v14534_v28 = vld [vmem:[#allocation199_spill] sm:$0xff]  ;;  %v14537_v33 = vld [vmem:[#allocation212_spill] sm:$0xff]  ;;  %v14539_v58 = vld [vmem:[#allocation210_spill] sm:$0xff] }
0x238d   :  { %v2376_v8 = vadd.f32 %v14521_v43, %v2337_v29  ;;  %v2485_v24 = vsel %vm13770_vm1, %v14518_v46, %v14526_v26  ;;  %v2562_v40 = vsel %vm13771_vm3, %v14528_v22, %v14527_v21  ;;  %v2375_v18 = vadd.f32 %v2366_v13, %v2336_v41  ;;  %v14538_v27 = vld [vmem:[#allocation139_spill] sm:$0xff]  ;;  %v14543_v22 = vld [vmem:[#allocation213_spill] sm:$0xff] }
0x238e   :  { %v2455_v10 = vadd.f32 %v2446_v57, %v2411_v20  ;;  %v2532_v34 = vadd.f32 %v2523_v39, %v2493_v38  ;;  %vm13775_vm4 = vcmask 728064   ;;  %v2412_v48 = vadd.f32 %v2403_v12, %v2374_v30  ;;  %v14540_v41 = vld [vmem:[#allocation191_spill] sm:$0xff]  ;;  %v14542_v38 = vld [vmem:[#allocation202_spill] sm:$0xff] }
0x238f   :  { %v2404_v19 = vsel %vm13769_vm12, %v14525_v63, %v14529_v9  ;;  %v2524_v36 = vsel %vm13772_vm2, %v14523_v15, %v14530_v61  ;;  %v2600_v32 = vsel %vm13777_vm6, %v14532_v42, %v14531_v44  ;;  %v2447_v4 = vsel %vm13773_vm0, %v14522_v45, %v14533_v16  ;;  %v10000_v45 = vpop.permute.xlu1 %3179  ;;  %v14541_v63 = vld [vmem:[#allocation215_spill] sm:$0xff] }
0x2390   :  { %v2494_v37 = vadd.f32 %v2485_v24, %v2455_v10  ;;  %v2571_v5 = vadd.f32 %v2562_v40, %v2532_v34  ;;  %vm13774_vm5 = vcmask 703488   ;;  %v2414_v54 = vadd.f32 %v14529_v9, %v2376_v8  ;;  %v14545_v10 = vld [vmem:[#allocation218_spill] sm:$0xff]  ;;  %v14546_v9 = vld [vmem:[#allocation143_spill] sm:$0xff] }
0x2391   :  { %v2448_v46 = vsel %vm13773_vm0, %v14533_v16, %v14534_v28  ;;  %v2563_v7 = vsel %vm13771_vm3, %v14527_v21, %v14535_v6  ;;  %v2639_v60 = vsel %vm13775_vm4, %v14537_v33, %v14536_v49  ;;  %v2486_v29 = vsel %vm13770_vm1, %v14526_v26, %v14538_v27  ;;  %v14547_v16 = vld [vmem:[#allocation205_spill] sm:$0xff] }
0x2392   :  { %v2533_v43 = vadd.f32 %v2524_v36, %v2494_v37  ;;  %v2609_v13 = vadd.f32 %v2600_v32, %v2571_v5  ;;  %vm2726_vm12 = vcmask 15360   ;;  %v2413_v57 = vadd.f32 %v2404_v19, %v2375_v18  ;;  %v14544_v18 = vld [vmem:[#allocation222_spill] sm:$0xff]  ;;  %v14548_v37 = vld [vmem:[#allocation216_spill] sm:$0xff] }
0x2393   :  { %v2456_v15 = vadd.f32 %v2447_v4, %v2412_v48  ;;  %v2601_v39 = vsel %vm13777_vm6, %v14531_v44, %v14539_v58  ;;  %v2678_v12 = vsel %vm13774_vm5, %v14541_v63, %v14540_v41  ;;  %v2458_v20 = vadd.f32 %v14534_v28, %v2414_v54  ;;  %v10022_v42 = vpop.permute.xlu1 %3213  ;;  %v14549_v54 = vld [vmem:[#allocation226_spill] sm:$0xff]  ;;  %v14550_v28 = vld [vmem:[#allocation225_spill] sm:$0xff] }
0x2394   :  { %v2487_v30 = vsel %vm13770_vm1, %v14538_v27, %v14542_v38  ;;  %v2572_v8 = vadd.f32 %v2563_v7, %v2533_v43  ;;  %v2648_v26 = vadd.f32 %v2639_v60, %v2609_v13  ;;  %v2457_v24 = vadd.f32 %v2448_v46, %v2413_v57  ;;  %v14551_v7 = vld [vmem:[#allocation149_spill] sm:$0xff]  ;;  %v14554_v57 = vld [vmem:[#allocation246_spill] sm:$0xff] }
0x2395   :  { %v2495_v21 = vadd.f32 %v2486_v29, %v2456_v15  ;;  %v2640_v40 = vsel %vm13775_vm4, %v14536_v49, %v14543_v22  ;;  %v2727_v34 = vsel %vm2726_vm12, %v14545_v10, %v14544_v18  ;;  %v2497_v48 = vadd.f32 %v14542_v38, %v2458_v20  ;;  %v14552_v29 = vld [vmem:[#allocation219_spill] sm:$0xff]  ;;  %v14553_v13 = vld [vmem:[#allocation229_spill] sm:$0xff] }
0x2396   :  { %v2525_v19 = vsel %vm13772_vm2, %v14530_v61, %v14546_v9  ;;  %v2610_v36 = vadd.f32 %v2601_v39, %v2572_v8  ;;  %v2687_v44 = vadd.f32 %v2678_v12, %v2648_v26  ;;  %v2496_v32 = vadd.f32 %v2487_v30, %v2457_v24  ;;  %v14555_v39 = vld [vmem:[#allocation208_spill] sm:$0xff] }
0x2397   :  { %v2526_v4 = vsel %vm13772_vm2, %v14546_v9, %v14547_v16  ;;  %v2679_v5 = vsel %vm13774_vm5, %v14540_v41, %v14548_v37  ;;  %v2766_v46 = vsel %vm213_vm10, %v14550_v28, %v14549_v54  ;;  %v2564_v61 = vsel %vm13771_vm3, %v14535_v6, %v14551_v7  ;;  %v14556_v6 = vld [vmem:[#allocation155_spill] sm:$0xff]  ;;  %v14557_v8 = vld [vmem:[#allocation244_spill] sm:$0xff] }
0x2398   :  { %v2649_v49 = vadd.f32 %v2640_v40, %v2610_v36  ;;  %v2737_v33 = vadd.f32 %v2727_v34, %v2687_v44  ;;  %vm2842_vm1 = vcmask 990208   ;;  %v2534_v60 = vadd.f32 %v2525_v19, %v2495_v21  ;;  %v14558_v24 = vld [vmem:[#allocation232_spill] sm:$0xff]  ;;  %v14559_v21 = vld [vmem:[#allocation249_spill] sm:$0xff]  ;;  %v14561_v36 = vld [vmem:[#allocation247_spill] sm:$0xff] }
0x2399   :  { %v10037_v27 = vadd.f32 %v14547_v16, %v2497_v48  ;;  %v2728_v43 = vsel %vm2726_vm12, %v14544_v18, %v14552_v29  ;;  %v2804_v15 = vsel %vm351_vm13, %v14554_v57, %v14553_v13  ;;  %v2565_v41 = vsel %vm13771_vm3, %v14551_v7, %v14555_v39  ;;  %v14560_v18 = vld [vmem:[#allocation165_spill] sm:$0xff]  ;;  %v14563_v16 = vld [vmem:[#allocation252_spill] sm:$0xff] }
0x239a   :  { %v2602_v63 = vsel %vm13777_vm6, %v14539_v58, %v14556_v6  ;;  %v2688_v12 = vadd.f32 %v2679_v5, %v2649_v49  ;;  %v2775_v20 = vadd.f32 %v2766_v46, %v2737_v33  ;;  %v2535_v38 = vadd.f32 %v2526_v4, %v2496_v32  ;;  %v10060_v58 = vpop.permute.xlu1 %3215  ;;  %v14562_v32 = vld [vmem:[#allocation235_spill] sm:$0xff]  ;;  %v14565_v7 = vld [vmem:[#allocation193_spill] sm:$0xff]  ;;  %v14566_v49 = vld [vmem:[#allocation250_spill] sm:$0xff] }
0x239b   :  { %v2573_v30 = vadd.f32 %v2564_v61, %v2534_v60  ;;  %v2767_v26 = vsel %vm213_vm10, %v14549_v54, %v14557_v8  ;;  %v2843_v40 = vsel %vm2842_vm1, %v14559_v21, %v14558_v24  ;;  %v2641_v10 = vsel %vm13775_vm4, %v14543_v22, %v14560_v18  ;;  %v14564_v5 = vld [vmem:[#allocation211_spill] sm:$0xff]  ;;  %v14567_v60 = vld [vmem:[#allocation238_spill] sm:$0xff] }
0x239c   :  { %v2738_v34 = vadd.f32 %v2728_v43, %v2688_v12  ;;  %v2813_v48 = vadd.f32 %v2804_v15, %v2775_v20  ;;  %vm13797_vm3 = vcmask 941056   ;;  %v2574_v9 = vadd.f32 %v2565_v41, %v2535_v38  ;;  %v14570_v12 = vld [vmem:[#allocation253_spill] sm:$0xff] }
0x239d   :  { %v2611_v19 = vadd.f32 %v2602_v63, %v2573_v30  ;;  %v2805_v44 = vsel %vm351_vm13, %v14553_v13, %v14561_v36  ;;  %v2881_v4 = vsel %vm1109_vm7, %v14563_v16, %v14562_v32  ;;  %v2603_v54 = vsel %vm13777_vm6, %v14556_v6, %v14564_v5  ;;  %v14568_v13 = vld [vmem:[#allocation214_spill] sm:$0xff]  ;;  %v14569_v63 = vld [vmem:[#allocation223_spill] sm:$0xff]  ;;  %v14571_v38 = vld [vmem:[#allocation241_spill] sm:$0xff] }
0x239e   :  { %v2776_v22 = vadd.f32 %v2767_v26, %v2738_v34  ;;  %v2852_v28 = vadd.f32 %v2843_v40, %v2813_v48  ;;  %vm2958_vm2 = vcmask 916480   ;;  %v2680_v61 = vsel %vm13774_vm5, %v14548_v37, %v14565_v7  ;;  %v14572_v26 = vld [vmem:[#allocation217_spill] sm:$0xff]  ;;  %v14573_v34 = vld [vmem:[#allocation227_spill] sm:$0xff] }
0x239f   :  { %v2650_v46 = vadd.f32 %v2641_v10, %v2611_v19  ;;  %v2844_v33 = vsel %vm2842_vm1, %v14558_v24, %v14566_v49  ;;  %v2920_v43 = vsel %vm13797_vm3, %v9403_v51, %v14567_v60  ;;  %v2642_v57 = vsel %vm13775_vm4, %v14560_v18, %v14568_v13  ;;  %v10095_v18 = vpop.permute.xlu1 %3219  ;;  %v14574_v48 = vld [vmem:[#allocation255_spill] sm:$0xff] }
0x23a0   :  { %v2814_v15 = vadd.f32 %v2805_v44, %v2776_v22  ;;  %v2890_v41 = vadd.f32 %v2881_v4, %v2852_v28  ;;  %vm13796_vm0 = vcmask 228352   ;;  %v2612_v6 = vadd.f32 %v2603_v54, %v2574_v9  ;;  %v14577_v28 = vld [vmem:[#allocation230_spill] sm:$0xff] }
0x23a1   :  { %v2729_v37 = vsel %vm2726_vm12, %v14552_v29, %v14569_v63  ;;  %v2882_v20 = vsel %vm1109_vm7, %v14562_v32, %v14570_v12  ;;  %v2959_v51 = vsel %vm2958_vm2, %v9409_v35, %v14571_v38  ;;  %v2689_v30 = vadd.f32 %v2680_v61, %v2650_v46  ;;  %v14575_v35 = vld [vmem:[#allocation259_spill] sm:$0xff]  ;;  %v14576_v32 = vld [vmem:[#allocation220_spill] sm:$0xff]  ;;  %v14578_v46 = vld [vmem:[#allocation257_spill] sm:$0xff] }
0x23a2   :  { %v2681_v24 = vsel %vm13774_vm5, %v14565_v7, %v14572_v26  ;;  %v2853_v21 = vadd.f32 %v2844_v33, %v2814_v15  ;;  %v2929_v40 = vadd.f32 %v2920_v43, %v2890_v41  ;;  %v2651_v10 = vadd.f32 %v2642_v57, %v2612_v6  ;;  %v14579_v15 = vld [vmem:[#allocation233_spill] sm:$0xff]  ;;  %v14580_v6 = vld [vmem:[#allocation260_spill] sm:$0xff] }
0x23a3   :  { %v2768_v29 = vsel %vm213_vm10, %v14557_v8, %v14573_v34  ;;  %v2921_v9 = vsel %vm13797_vm3, %v14567_v60, %v14574_v48  ;;  %v3008_v19 = vsel %vm13796_vm0, %v14575_v35, %v9535_v1  ;;  %v2739_v44 = vadd.f32 %v2729_v37, %v2689_v30 }
0x23a4   :  { %v2730_v16 = vsel %vm2726_vm12, %v14569_v63, %v14576_v32  ;;  %v2891_v4 = vadd.f32 %v2882_v20, %v2853_v21  ;;  %v2968_v54 = vadd.f32 %v2959_v51, %v2929_v40  ;;  %v2690_v22 = vadd.f32 %v2681_v24, %v2651_v10  ;;  %v14581_v51 = vld [vmem:[#allocation245_spill] sm:$0xff]  ;;  %v14582_v24 = vld [vmem:[#allocation236_spill] sm:$0xff]  ;;  %v14583_v21 = vld [vmem:[#allocation263_spill] sm:$0xff] }
0x23a5   :  { %v2806_v8 = vsel %vm351_vm13, %v14561_v36, %v14577_v28  ;;  %v2960_v7 = vsel %vm2958_vm2, %v14571_v38, %v14578_v46  ;;  %v3051_v61 = vsel %vm844_vm11, %v9555_v31, %v9568_v53  ;;  %v2777_v33 = vadd.f32 %v2768_v29, %v2739_v44  ;;  %v10127_v38 = vpop.permute.xlu1 %3223 }
0x23a6   :  { %v2930_v60 = vadd.f32 %v2921_v9, %v2891_v4  ;;  %v3018_v43 = vadd.f32 %v3008_v19, %v2968_v54  ;;  %vm13795_vm5 = vcmask 154624   ;;  %v2740_v57 = vadd.f32 %v2730_v16, %v2690_v22  ;;  %v14586_v22 = vld [vmem:[#allocation248_spill] sm:$0xff] }
0x23a7   :  { %v2845_v41 = vsel %vm2842_vm1, %v14566_v49, %v14579_v15  ;;  %v3009_v36 = vsel %vm13796_vm0, %v9535_v1, %v14580_v6  ;;  %v3094_v63 = vsel %vm65_vm9, %v9651_v11, %v9687_v56  ;;  %v2815_v37 = vadd.f32 %v2806_v8, %v2777_v33  ;;  %v14588_v8 = vld [vmem:[#allocation269_spill] sm:$0xff] }
0x23a8   :  { %v2969_v20 = vadd.f32 %v2960_v7, %v2930_v60  ;;  %v3061_v31 = vadd.f32 %v3051_v61, %v3018_v43  ;;  %vm13798_vm4 = vcmask 130048   ;;  %v2769_v30 = vsel %vm213_vm10, %v14573_v34, %v14581_v51  ;;  %v14584_v34 = vld [vmem:[#allocation239_spill] sm:$0xff] }
0x23a9   :  { %v2883_v49 = vsel %vm1109_vm7, %v14570_v12, %v14582_v24  ;;  %v3052_v1 = vsel %vm844_vm11, %v9568_v53, %v14583_v21  ;;  %v3138_v11 = vsel %vm13795_vm5, %v9777_v3, %v9811_v52  ;;  %v2854_v40 = vadd.f32 %v2845_v41, %v2815_v37  ;;  %v14585_v12 = vld [vmem:[#allocation266_spill] sm:$0xff]  ;;  %v14589_v43 = vld [vmem:[#allocation251_spill] sm:$0xff] }
0x23aa   :  { %v3019_v10 = vadd.f32 %v3009_v36, %v2969_v20  ;;  %v3104_v29 = vadd.f32 %v3094_v63, %v3061_v31  ;;  %v2575_v9 = vadd.f32 %v14555_v39, %v10037_v27  ;;  %v2922_v35 = vsel %vm13797_vm3, %v14574_v48, %v14584_v34  ;;  %v14587_v39 = vld [vmem:[#allocation242_spill] sm:$0xff] }
0x23ab   :  { %v3095_v19 = vsel %vm65_vm9, %v9687_v56, %v14585_v12  ;;  %v3182_v53 = vsel %vm13798_vm4, %v9901_v14, %v9932_v17  ;;  %v2778_v3 = vadd.f32 %v2769_v30, %v2740_v57  ;;  %v2892_v44 = vadd.f32 %v2883_v49, %v2854_v40  ;;  %v14590_v37 = vld [vmem:[#allocation254_spill] sm:$0xff] }
0x23ac   :  { %v3062_v16 = vadd.f32 %v3052_v1, %v3019_v10  ;;  %v3148_v4 = vadd.f32 %v3138_v11, %v3104_v29  ;;  %v2807_v27 = vsel %vm351_vm13, %v14577_v28, %v14586_v22  ;;  %v2961_v48 = vsel %vm2958_vm2, %v14578_v46, %v14587_v39  ;;  %v14591_v20 = vld [vmem:[#allocation278_spill] sm:$0xff]  ;;  %v14593_v29 = vld [vmem:[#allocation256_spill] sm:$0xff] }
0x23ad   :  { %v3139_v56 = vsel %vm13795_vm5, %v9811_v52, %v14588_v8  ;;  %v3226_v14 = vsel %vm13794_vm14, %v10022_v42, %v10060_v58  ;;  %v2931_v7 = vadd.f32 %v2922_v35, %v2892_v44  ;;  %vm13793_vm6 = vcmask 80896   ;;  %v14592_v31 = vld [vmem:[#allocation274_spill] sm:$0xff] }
0x23ae   :  { %v3105_v61 = vadd.f32 %v3095_v19, %v3062_v16  ;;  %v3192_v33 = vadd.f32 %v3182_v53, %v3148_v4  ;;  %v2613_v60 = vadd.f32 %v14564_v5, %v2575_v9  ;;  %v2846_v28 = vsel %vm2842_vm1, %v14579_v15, %v14589_v43 }
0x23af   :  { %v3010_v46 = vsel %vm13796_vm0, %v14580_v6, %v9539_v47  ;;  %v3183_v52 = vsel %vm13798_vm4, %v9932_v17, %v9509_v62  ;;  %v2816_v57 = vadd.f32 %v2807_v27, %v2778_v3  ;;  %v2970_v42 = vadd.f32 %v2961_v48, %v2931_v7  ;;  %v14596_v27 = vld [vmem:[#allocation261_spill] sm:$0xff] }
0x23b0   :  { %v3149_v41 = vadd.f32 %v3139_v56, %v3105_v61  ;;  %v3236_v36 = vadd.f32 %v3226_v14, %v3192_v33  ;;  %v2884_v5 = vsel %vm1109_vm7, %v14582_v24, %v14590_v37  ;;  %v3053_v15 = vsel %vm844_vm11, %v14583_v21, %v14591_v20 }
0x23b1   :  { %v3227_v6 = vsel %vm13794_vm14, %v10060_v58, %v14592_v31  ;;  %v2855_v17 = vadd.f32 %v2846_v28, %v2816_v57  ;;  %v3020_v49 = vadd.f32 %v3010_v46, %v2970_v42  ;;  %v2652_v10 = vadd.f32 %v14568_v13, %v2613_v60  ;;  %v14594_v13 = vld [vmem:[#allocation224_spill] sm:$0xff]  ;;  %v14598_v60 = vld [vmem:[#allocation267_spill] sm:$0xff] }
0x23b2   :  { %v3193_v1 = vadd.f32 %v3183_v52, %v3149_v41  ;;  %v2923_v24 = vsel %vm13797_vm3, %v14584_v34, %v14593_v29  ;;  %v3096_v21 = vsel %vm65_vm9, %v14585_v12, %v9722_v0  ;;  %v2731_v53 = vsel %vm2726_vm12, %v14576_v32, %v14594_v13  ;;  %v14595_v34 = vld [vmem:[#allocation258_spill] sm:$0xff] }
0x23b3   :  { %v2893_v9 = vadd.f32 %v2884_v5, %v2855_v17  ;;  %v3063_v35 = vadd.f32 %v3053_v15, %v3020_v49  ;;  %v2962_v3 = vsel %vm2958_vm2, %v14587_v39, %v14595_v34  ;;  %v3140_v12 = vsel %vm13795_vm5, %v14588_v8, %v9845_v59  ;;  %v14599_v41 = vld [vmem:[#allocation270_spill] sm:$0xff]  ;;  %v14602_v17 = vld [vmem:[#allocation277_spill] sm:$0xff] }
0x23b4   :  { %v3258_v54 = vpop.permute.xlu1 %3257  ;;  %v3262_v11 = vpop.permute.xlu0 %3261  ;;  %v3237_v19 = vadd.f32 %v3227_v6, %v3193_v1  ;;  %v2691_v44 = vadd.f32 %v14572_v26, %v2652_v10  ;;  %v3011_v48 = vsel %vm13796_vm0, %v9539_v47, %v14596_v27  ;;  %v3184_v32 = vsel %vm13798_vm4, %v9509_v62, %v9966_v25  ;;  %v14597_v26 = vld [vmem:[#allocation264_spill] sm:$0xff] }
0x23b5   :  { %v2932_v16 = vadd.f32 %v2923_v24, %v2893_v9  ;;  %v3106_v4 = vadd.f32 %v3096_v21, %v3063_v35  ;;  %v3054_v8 = vsel %vm844_vm11, %v14591_v20, %v14597_v26  ;;  %v3228_v47 = vsel %vm13794_vm14, %v14592_v31, %v10095_v18  ;;  %v14601_v31 = vld [vmem:[#allocation275_spill] sm:$0xff] }
0x23b6   :  { %v2741_v56 = vadd.f32 %v2731_v53, %v2691_v44  ;;  %v3097_v28 = vsel %vm65_vm9, %v9722_v0, %v14598_v60  ;;  %v14600_v0 = vld [vmem:[#allocation272_spill] sm:$0xff]  ;;  %v3229_v6 = vsel %vm13794_vm14, %v10095_v18, %v14601_v31  ;;  %v3012_v49 = vsel %vm13796_vm0, %v14596_v27, %v14602_v17 }
0x23b7   :  { %v2971_v14 = vadd.f32 %v2962_v3, %v2932_v16  ;;  %v3150_v39 = vadd.f32 %v3140_v12, %v3106_v4  ;;  %v3185_v20 = vsel %vm13798_vm4, %v9966_v25, %v14600_v0  ;;  %v3055_v18 = vsel %vm844_vm11, %v14597_v26, %v9626_v2  ;;  %v3509_v4 = vld [vmem:[#allocation3 + $0x10] sm:$0xff] }
0x23b8   :  { %v3260_v63 = vpop.permute.xlu1 %3259  ;;  %v2779_v62 = vadd.f32 %v14581_v51, %v2741_v56  ;;  %v3141_v51 = vsel %vm13795_vm5, %v9845_v59, %v14599_v41  ;;  %v3142_v21 = vsel %vm13795_vm5, %v14599_v41, %v9877_v55  ;;  %v3186_v2 = vsel %vm13798_vm4, %v14600_v0, %v10000_v45  ;;  %v71_v55 = vld [vmem:[%s13216_s5] sm:$0xff]  ;;  %s14611_s5 = smov 3   ;;  %v3510_v56 = vld [vmem:[#allocation3 + $0x18] sm:$0xff] }
0x23b9   :  { %v3270_v30 = vsel %vm13793_vm6, %v3258_v54, %v3260_v63  ;;  %v3271_v58 = vsel %vm13793_vm6, %v3260_v63, %v3262_v11  ;;  %v3021_v61 = vadd.f32 %v3011_v48, %v2971_v14  ;;  %v3194_v33 = vadd.f32 %v3184_v32, %v3150_v39  ;;  %v72_v32 = vld [vmem:[%s13218_s7] sm:$0xff]  ;;  %s14617_s7 = smov 57   ;;  %v14618_v39 = vld [vmem:[#allocation12_spill] sm:$0xff] }
0x23ba   :  { %v10184_v40 = vadd.f32 %v3270_v30, %v3236_v36  ;;  %v3281_v54 = vadd.f32 %v3271_v58, %v3237_v19  ;;  %v2817_v52 = vadd.f32 %v14586_v22, %v2779_v62  ;;  %v3266_v30 = vpop.permute.xlu0 %3265  ;;  %v14604_v3 = vmov 3   ;;  %v10305_v14 = vld [vmem:[#allocation2] sm:$0xff] }
0x23bb   :  { %v3064_v57 = vadd.f32 %v3054_v8, %v3021_v61  ;;  %v3238_v42 = vadd.f32 %v3228_v47, %v3194_v33  ;;  %v14605_v12 = vmov 2   ;;  %v14606_v44 = vmov 6  }
0x23bc   :  { %3289 = vrot.lane.b32.xlu1 %v10184_v40, %s6799_s13  ;;  %3286 = vrot.lane.b32.xlu0 %v10184_v40, %s6832_s23  ;;  %v3264_v7 = vpop.permute.xlu1 %3263  ;;  %v2856_v36 = vadd.f32 %v14589_v43, %v2817_v52  ;;  %v14607_v16 = vmov 4   ;;  %v14609_v27 = vmov 0   ;;  %v14610_v48 = vmov 7  }
0x23bd   :  { %v3272_v46 = vsel %vm13793_vm6, %v3262_v11, %v3264_v7  ;;  %v3107_v63 = vadd.f32 %v3097_v28, %v3064_v57  ;;  %v3273_v25 = vsel %vm13793_vm6, %v3264_v7, %v3266_v30  ;;  %v3597_v7 = vmul.f32 %v10305_v14, %v14618_v39 }
0x23be   :  { %v3282_v5 = vadd.f32 %v3272_v46, %v3238_v42  ;;  %v2894_v22 = vadd.f32 %v14590_v37, %v2856_v36  ;;  %vm13802_vm5 = vcmask 523264   ;;  %vm13801_vm0 = vcmask 654336  }
0x23bf   :  { %v3151_v15 = vadd.f32 %v3141_v51, %v3107_v63  ;;  %vm13799_vm3 = vcmask 932864  }
0x23c0   :  { %3296 = vrot.lane.b32.xlu1 %v3281_v54, %s6810_s10  ;;  %3292 = vrot.lane.b32.xlu0 %v10184_v40, %s13780_s19  ;;  %s13781_s19 = smov 38   ;;  %v2933_v59 = vadd.f32 %v14593_v29, %v2894_v22  ;;  %v3098_v29 = vsel %vm65_vm9, %v14598_v60, %v9757_v23  ;;  %v3268_v35 = vpop.permute.xlu1 %3267  ;;  %v3230_v23 = vsel %vm13794_vm14, %v14601_v31, %v10127_v38  ;;  %v73_v38 = vld [vmem:[%s13217_s6] sm:$0xff]  ;;  %s14616_s6 = smov 55   ;;  %vm13803_vm14 = vcmask 392192  }
0x23c1   :  { %v3195_v43 = vadd.f32 %v3185_v20, %v3151_v15  ;;  %v3274_v13 = vsel %vm13793_vm6, %v3266_v30, %v3268_v35  ;;  %vm13804_vm6 = vcmask 261120  }
0x23c2   :  { %v2972_v37 = vadd.f32 %v14595_v34, %v2933_v59  ;;  %v14603_v34 = vmov 1  }
0x23c3   :  { %v3239_v1 = vadd.f32 %v3229_v6, %v3195_v43 }
0x23c4   :  { %3302 = vrot.lane.b32.xlu1 %v3281_v54, %s6833_s21  ;;  %3299 = vrot.lane.b32.xlu0 %v3281_v54, %s13781_s19  ;;  %s13782_s19 = smov 76   ;;  %v3022_v11 = vadd.f32 %v3012_v49, %v2972_v37 }
0x23c5   :  { %v3283_v10 = vadd.f32 %v3273_v25, %v3239_v1 }
0x23c6   :  { %v3065_v24 = vadd.f32 %v3055_v18, %v3022_v11 }
0x23c8   :  { %3309 = vrot.lane.b32.xlu1 %v3282_v5, %s13785_s4  ;;  %3305 = vrot.lane.b32.xlu0 %v3281_v54, %s13787_s20  ;;  %v3108_v58 = vadd.f32 %v3098_v29, %v3065_v24  ;;  %v14608_v54 = vmov 5   ;;  %s14613_s4 = smov 77   ;;  %s14614_s20 = smov 111   ;;  %v14623_v24 = vld [vmem:[#allocation114_spill] sm:$0xff] }
0x23ca   :  { %v3152_v9 = vadd.f32 %v3142_v21, %v3108_v58 }
0x23cc   :  { %3315 = vrot.lane.b32.xlu1 %v3282_v5, %s13782_s19  ;;  %3312 = vrot.lane.b32.xlu0 %v3282_v5, %s6798_s12  ;;  %v3196_v19 = vadd.f32 %v3186_v2, %v3152_v9  ;;  %s6888_s19 = smov 114   ;;  %v14624_v2 = vld [vmem:[#allocation115_spill] sm:$0xff] }
0x23ce   :  { %v3240_v53 = vadd.f32 %v3230_v23, %v3196_v19 }
0x23d0   :  { %3321 = vrot.lane.b32.xlu1 %v3283_v10, %s6807_s30  ;;  %3319 = vrot.lane.b32.xlu0 %v3282_v5, %s6807_s30  ;;  %v3284_v45 = vadd.f32 %v3274_v13, %v3240_v53 }
0x23d4   :  { %3328 = vrot.lane.b32.xlu1 %v3283_v10, %s6820_s22  ;;  %3325 = vrot.lane.b32.xlu0 %v3283_v10, %s13791_s3  ;;  %s14612_s3 = smov 39  }
0x23d8   :  { %3335 = vrot.lane.b32.xlu1 %v3283_v10, %s6888_s19  ;;  %3331 = vrot.lane.b32.xlu0 %v3283_v10, %s6889_s9 }
0x23dc   :  { %3363 = vperm.xlu1 %6664, %v71_v55   ;;  %3337 = vrot.lane.b32.xlu0 %v3284_v45, %s6888_s19 }
0x23e0   :  { %6666 = vset.pattern.permute.xlu1 %v14603_v34  ;;  %3378 = vperm.xlu0 %6665, %v73_v38   ;;  %v14628_v34 = vld [vmem:[#allocation116_spill] sm:$0xff] }
0x23e1   :  { %3394 = vperm.xlu1 %6666, %v73_v38  }
0x23e4   :  { %6668 = vset.pattern.permute.xlu0 %v14604_v3 }
0x23e5   :  { %6667 = vset.pattern.permute.xlu1 %v14605_v12  ;;  %3426 = vperm.xlu0 %6668, %v73_v38  }
0x23e6   :  { %3410 = vperm.xlu1 %6667, %v73_v38  }
0x23e9   :  { %6671 = vset.pattern.permute.xlu0 %v14606_v44 }
0x23ea   :  { %6669 = vset.pattern.permute.xlu1 %v14607_v16  ;;  %3474 = vperm.xlu0 %6671, %v73_v38  }
0x23eb   :  { %3442 = vperm.xlu1 %6669, %v73_v38  }
0x23ee   :  { %3512 = vrot.lane.b32.xlu0 %v3509_v4, %s6771_s1 }
0x23ef   :  { %6670 = vset.pattern.permute.xlu1 %v14608_v54  ;;  %6674 = vset.pattern.permute.xlu0 %v14609_v27 }
0x23f0   :  { %3458 = vperm.xlu1 %6670, %v73_v38  }
0x23f2   :  { %3520 = vrot.lane.b32.xlu0 %v3509_v4, %s6770_s0 }
0x23f4   :  { %6672 = vset.pattern.permute.xlu1 %v14610_v48  ;;  %v14630_v48 = vld [vmem:[#allocation117_spill] sm:$0xff] }
0x23f5   :  { %3490 = vperm.xlu1 %6672, %v73_v38  }
0x23f6   :  { %3529 = vrot.lane.b32.xlu0 %v3509_v4, %s14611_s5  ;;  %s14615_s5 = smov 21  }
0x23f9   :  { %6673 = vset.pattern.permute.xlu1 %v14609_v27 }
0x23fa   :  { %3499 = vperm.xlu1 %6673, %v72_v32   ;;  %3537 = vrot.lane.b32.xlu0 %v3509_v4, %s14612_s3  ;;  %s14620_s3 = smov 1  }
0x23fe   :  { %3546 = vrot.lane.b32.xlu0 %v3510_v56, %s6779_s25  ;;  %3516 = vrot.lane.b32.xlu1 %v3509_v4, %s14613_s4  ;;  %s14621_s4 = smov 73  }
0x2402   :  { %3554 = vrot.lane.b32.xlu0 %v3510_v56, %s14614_s20  ;;  %3525 = vrot.lane.b32.xlu1 %v3509_v4, %s6772_s18  ;;  %s14660_s20 = smov 126  }
0x2406   :  { %3562 = vrot.lane.b32.xlu0 %v3510_v56, %s6783_s29  ;;  %3533 = vrot.lane.b32.xlu1 %v3509_v4, %s14615_s5  ;;  %s14667_s5 = smov 91  }
0x240a   :  { %3571 = vrot.lane.b32.xlu0 %v3510_v56, %s14616_s6  ;;  %3541 = vrot.lane.b32.xlu1 %v3509_v4, %s14617_s7  ;;  %s14669_s6 = smov 90  }
0x240e   :  { %3609 = vrot.lane.b32.xlu0 %v3597_v7, %s6794_s14  ;;  %3550 = vrot.lane.b32.xlu1 %v3510_v56, %s14619_s2 }
0x2412   :  { %3558 = vrot.lane.b32.xlu1 %v3510_v56, %s14620_s3  ;;  %s14701_s3 = smov 117  }
0x2416   :  { %3566 = vrot.lane.b32.xlu1 %v3510_v56, %s6782_s28 }
0x241a   :  { %3575 = vrot.lane.b32.xlu1 %v3510_v56, %s14621_s4  ;;  %s14707_s4 = smov 116  }
0x242e   :  { %v3290_v26 = vpop.permute.xlu1 %3289  ;;  %v3287_v8 = vpop.permute.xlu0 %3286 }
0x242f   :  { %v3342_v51 = vsel %vm13798_vm4, %v10184_v40, %v3287_v8 }
0x2430   :  { %v3344_v0 = vsel %vm13804_vm6, %v3342_v51, %v3290_v26 }
0x2432   :  { %v3297_v47 = vpop.permute.xlu1 %3296  ;;  %v3293_v62 = vpop.permute.xlu0 %3292 }
0x2433   :  { %v3346_v22 = vsel %vm13803_vm14, %v3344_v0, %v3293_v62 }
0x2434   :  { %v3348_v6 = vsel %vm13802_vm5, %v3346_v22, %v3297_v47  ;;  %v14632_v47 = vld [vmem:[#allocation113_spill] sm:$0xff] }
0x2435   :  { %v10360_v62 = vsub.s32 5, %v14632_v47 }
0x2436   :  { %v3303_v61 = vpop.permute.xlu1 %3302  ;;  %v3300_v33 = vpop.permute.xlu0 %3299 }
0x2437   :  { %v3350_v43 = vsel %vm13801_vm0, %v3348_v6, %v3300_v33  ;;  %14633 = vst [vmem:[#allocation77_spill] sm:$0xff] %v10360_v62 }
0x243a   :  { %v3306_v60 = vpop.permute.xlu0 %3305  ;;  %v3310_v28 = vpop.permute.xlu1 %3309 }
0x243e   :  { %v3313_v46 = vpop.permute.xlu0 %3312  ;;  %v3316_v52 = vpop.permute.xlu1 %3315 }
0x243f   :  { %v3354_v63 = vsel %vm13798_vm4, %v3310_v28, %v3313_v46  ;;  %vm13800_vm4 = vcmask 785408   ;;  %v14635_v28 = vld [vmem:[#allocation118_spill] sm:$0xff] }
0x2440   :  { %v3355_v15 = vsel %vm13804_vm6, %v3354_v63, %v3316_v52  ;;  %v3352_v25 = vsel %vm13800_vm4, %v3350_v43, %v3303_v61  ;;  %vm14648_vm6 = vcmask 679448  }
0x2441   :  { %v3353_v1 = vsel %vm2958_vm2, %v3352_v25, %v3306_v60 }
0x2442   :  { %v3320_v57 = vpop.permute.xlu0 %3319  ;;  %v3322_v41 = vpop.permute.xlu1 %3321 }
0x2443   :  { %v3323_v20 = vsel %vm680_vm8, %v3320_v57, %v3322_v41  ;;  %v10369_v57 = vsub.s32 6, %v14632_v47 }
0x2444   :  { %v3356_v31 = vsel %vm13803_vm14, %v3355_v15, %v3323_v20  ;;  %vm14647_vm14 = vcmask 253048  }
0x2445   :  { %14636 = vst [vmem:[#allocation42_spill] sm:$0xff] %v10369_v57 }
0x2446   :  { %v3326_v42 = vpop.permute.xlu0 %3325  ;;  %v3329_v5 = vpop.permute.xlu1 %3328 }
0x2447   :  { %v3357_v59 = vsel %vm13802_vm5, %v3356_v31, %v3326_v42  ;;  %v10381_v31 = vsub.s32 7, %v14632_v47  ;;  %vm14646_vm5 = vcmask 400648  }
0x2448   :  { %v3358_v49 = vsel %vm13801_vm0, %v3357_v59, %v3329_v5  ;;  %vm14645_vm0 = vcmask 1048568  }
0x2449   :  { %14639 = vst [vmem:[#allocation78_spill] sm:$0xff] %v10381_v31 }
0x244a   :  { %v3332_v36 = vpop.permute.xlu0 %3331  ;;  %v3336_v30 = vpop.permute.xlu1 %3335 }
0x244b   :  { %v3359_v37 = vsel %vm13800_vm4, %v3358_v49, %v3332_v36  ;;  %vm14644_vm4 = vcmask 892648  }
0x244e   :  { %v3338_v40 = vpop.permute.xlu0 %3337 }
0x244f   :  { %v3340_v17 = vsel %vm13799_vm3, %v3336_v30, %v3338_v40  ;;  %vm14637_vm3 = vcmask 613848  }
0x2450   :  { %v3360_v18 = vsel %vm2958_vm2, %v3359_v37, %v3340_v17 }
0x2457   :  { %v10331_v11 = vpop.permute.xlu1 %3363 }
0x2458   :  { %14622 = vst [vmem:[#allocation39_spill] sm:$0xff] %v10331_v11  ;;  %v3366_v10 = vadd.f32 %v10331_v11, %v3353_v1  ;;  %v3367_v29 = vadd.f32 %v10331_v11, %v3360_v18 }
0x245a   :  { %v3371_v21 = vrot.slane %v3366_v10, %v14623_v24  ;;  %v3375_v58 = vrot.slane %v3367_v29, %v14623_v24  ;;  %v3388_v9 = vrot.slane %v3366_v10, %v14624_v2  ;;  %v3392_v35 = vrot.slane %v3367_v29, %v14624_v2 }
0x245b   :  { %v10339_v23 = vpop.permute.xlu0 %3378  ;;  %v3404_v3 = vrot.slane %v3366_v10, %v14628_v34  ;;  %v3408_v12 = vrot.slane %v3367_v29, %v14628_v34  ;;  %v3420_v32 = vrot.slane %v3366_v10, %v14630_v48  ;;  %v3424_v56 = vrot.slane %v3367_v29, %v14630_v48 }
0x245c   :  { %14625 = vst [vmem:[#allocation63_spill] sm:$0xff] %v10339_v23  ;;  %v10341_v19 = vpop.permute.xlu1 %3394  ;;  %v3381_v13 = vmul.f32 %v10339_v23, %v3371_v21  ;;  %v3382_v53 = vmul.f32 %v10339_v23, %v3375_v58  ;;  %v3436_v46 = vrot.slane %v3366_v10, %v14635_v28  ;;  %v3440_v52 = vrot.slane %v3367_v29, %v14635_v28 }
0x245d   :  { %14626 = vst [vmem:[#allocation75_spill] sm:$0xff] %v10341_v19  ;;  %v3397_v55 = vmul.f32 %v10341_v19, %v3388_v9  ;;  %v3398_v45 = vmul.f32 %v10341_v19, %v3392_v35  ;;  %v3452_v5 = vrot.slane %v3366_v10, %v10360_v62  ;;  %v3456_v0 = vrot.slane %v3367_v29, %v10360_v62 }
0x245e   :  { %v3468_v20 = vrot.slane %v3366_v10, %v10369_v57  ;;  %v3472_v22 = vrot.slane %v3367_v29, %v10369_v57  ;;  %v3484_v1 = vrot.slane %v3366_v10, %v10381_v31  ;;  %v3488_v18 = vrot.slane %v3367_v29, %v10381_v31  ;;  %v6684_v29 = vld [vmem:[#allocation3] sm:$0xff] }
0x245f   :  { %v3399_v16 = vadd.f32 %v3397_v55, %v3381_v13  ;;  %v3400_v4 = vadd.f32 %v3398_v45, %v3382_v53 }
0x2460   :  { %v10347_v38 = vpop.permute.xlu0 %3426 }
0x2461   :  { %14627 = vst [vmem:[#allocation76_spill] sm:$0xff] %v10347_v38  ;;  %v10351_v44 = vpop.permute.xlu1 %3410  ;;  %v3429_v61 = vmul.f32 %v10347_v38, %v3420_v32  ;;  %v3430_v33 = vmul.f32 %v10347_v38, %v3424_v56 }
0x2462   :  { %14629 = vst [vmem:[#allocation41_spill] sm:$0xff] %v10351_v44  ;;  %v3413_v54 = vmul.f32 %v10351_v44, %v3404_v3  ;;  %v3414_v27 = vmul.f32 %v10351_v44, %v3408_v12 }
0x2464   :  { %v3415_v7 = vadd.f32 %v3413_v54, %v3399_v16  ;;  %v3416_v26 = vadd.f32 %v3414_v27, %v3400_v4  ;;  %v6685_v54 = vld [vmem:[#allocation3 + $0x8] sm:$0xff] }
0x2465   :  { %v10357_v8 = vpop.permute.xlu0 %3474 }
0x2466   :  { %14631 = vst [vmem:[#allocation65_spill] sm:$0xff] %v10357_v8  ;;  %v10364_v60 = vpop.permute.xlu1 %3442  ;;  %v3431_v42 = vadd.f32 %v3429_v61, %v3415_v7  ;;  %v3432_v41 = vadd.f32 %v3430_v33, %v3416_v26  ;;  %v3477_v17 = vmul.f32 %v10357_v8, %v3468_v20  ;;  %v3478_v49 = vmul.f32 %v10357_v8, %v3472_v22 }
0x2467   :  { %14634 = vst [vmem:[#allocation67_spill] sm:$0xff] %v10364_v60  ;;  %v3445_v51 = vmul.f32 %v10364_v60, %v3436_v46  ;;  %v3446_v36 = vmul.f32 %v10364_v60, %v3440_v52 }
0x2469   :  { %v3513_v63 = vpop.permute.xlu0 %3512  ;;  %v3447_v40 = vadd.f32 %v3445_v51, %v3431_v42  ;;  %v3448_v6 = vadd.f32 %v3446_v36, %v3432_v41 }
0x246a   :  { %3515 = vst.msk [vmem:[#allocation2 + $0x10] sm:$0xff] %vm14637_vm3, %v3513_v63  ;;  %vm14640_vm3 = vcmask 121856  }
0x246b   :  { %v10378_v15 = vpop.permute.xlu1 %3458 }
0x246c   :  { %14638 = vst [vmem:[#allocation44_spill] sm:$0xff] %v10378_v15  ;;  %v3461_v59 = vmul.f32 %v10378_v15, %v3452_v5  ;;  %v3462_v43 = vmul.f32 %v10378_v15, %v3456_v0 }
0x246d   :  { %v3521_v30 = vpop.permute.xlu0 %3520 }
0x246e   :  { %v3463_v25 = vadd.f32 %v3461_v59, %v3447_v40  ;;  %v3464_v37 = vadd.f32 %v3462_v43, %v3448_v6  ;;  %3524 = vst.msk [vmem:[#allocation2 + $0x18] sm:$0xff] %vm14640_vm3, %v3521_v30  ;;  %vm14643_vm3 = vcmask 187448   ;;  %v14659_v43 = vld [vmem:[#allocation14_spill] sm:$0xff] }
0x2470   :  { %v10390_v21 = vpop.permute.xlu1 %3490  ;;  %v3479_v58 = vadd.f32 %v3477_v17, %v3463_v25  ;;  %v3480_v9 = vadd.f32 %v3478_v49, %v3464_v37 }
0x2471   :  { %14641 = vst [vmem:[#allocation69_spill] sm:$0xff] %v10390_v21  ;;  %v3493_v35 = vmul.f32 %v10390_v21, %v3484_v1  ;;  %v3494_v13 = vmul.f32 %v10390_v21, %v3488_v18  ;;  %v3530_v53 = vpop.permute.xlu0 %3529  ;;  %v14661_v1 = vld [vmem:[#allocation15_spill] sm:$0xff] }
0x2472   :  { %v3679_v18 = vmul.f32 %v10305_v14, %v14661_v1 }
0x2473   :  { %v3495_v55 = vadd.f32 %v3493_v35, %v3479_v58  ;;  %v3496_v45 = vadd.f32 %v3494_v13, %v3480_v9 }
0x2475   :  { %v10394_v3 = vpop.permute.xlu1 %3499  ;;  %v3538_v12 = vpop.permute.xlu0 %3537 }
0x2476   :  { %14642 = vst [vmem:[#allocation79_spill] sm:$0xff] %v10394_v3  ;;  %v3502_v16 = vadd.f32 %v10394_v3, %v3495_v55  ;;  %v3503_v10 = vadd.f32 %v10394_v3, %v3496_v45  ;;  %3540 = vst.msk [vmem:[#allocation2 + $0x20] sm:$0xff] %vm14643_vm3, %v3538_v12  ;;  %vm14649_vm3 = vcmask 958248   ;;  %v14662_v55 = vld [vmem:[#allocation16_spill] sm:$0xff] }
0x2477   :  { %v3720_v45 = vmul.f32 %v10305_v14, %v14662_v55 }
0x2478   :  { %v3504_v4 = vmul.f32 %v6684_v29, %v3502_v16  ;;  %v3505_v27 = vmul.f32 %v6685_v54, %v3503_v10  ;;  %v14663_v54 = vld [vmem:[#allocation17_spill] sm:$0xff] }
0x2479   :  { %v3517_v32 = vpop.permute.xlu1 %3516  ;;  %v3547_v56 = vpop.permute.xlu0 %3546 }
0x247a   :  { %3519 = vst.msk [vmem:[#allocation2 + $0x10] sm:$0xff] %vm14644_vm4, %v3517_v32  ;;  %3506 = vst [vmem:[#allocation8] sm:$0xff] %v3504_v4  ;;  %vm14651_vm4 = vcmask 745048  }
0x247b   :  { %3507 = vst [vmem:[#allocation8 + $0x8] sm:$0xff] %v3505_v27  ;;  %3523 = vst.msk [vmem:[#allocation2 + $0x10] sm:$0xff] %vm14645_vm0, %v3521_v30  ;;  %vm14650_vm0 = vcmask 466248   ;;  %v3638_v30 = vmul.f32 %v10305_v14, %v14659_v43 }
0x247d   :  { %v3526_v7 = vpop.permute.xlu1 %3525  ;;  %v3555_v26 = vpop.permute.xlu0 %3554 }
0x247e   :  { %3528 = vst.msk [vmem:[#allocation2 + $0x18] sm:$0xff] %vm14646_vm5, %v3526_v7  ;;  %vm14652_vm5 = vcmask 1023848  }
0x247f   :  { %3557 = vst.msk [vmem:[#allocation2 + $0x28] sm:$0xff] %vm14647_vm14, %v3555_v26  ;;  %vm14654_vm14 = vcmask 810648  }
0x2480   :  { %3532 = vst.msk [vmem:[#allocation2 + $0x18] sm:$0xff] %vm14648_vm6, %v3530_v53  ;;  %vm14653_vm6 = vcmask 531848  }
0x2481   :  { %v3534_v47 = vpop.permute.xlu1 %3533  ;;  %v3563_v51 = vpop.permute.xlu0 %3562 }
0x2482   :  { %v10404_v61 = vld [vmem:[#allocation2 + $0x10] sm:$0xff]  ;;  %3536 = vst.msk [vmem:[#allocation2 + $0x18] sm:$0xff] %vm14649_vm3, %v3534_v47  ;;  %vm14655_vm3 = vcmask 1048488  }
0x2483   :  { %v3598_v33 = vmul.f32 %v10404_v61, %v14618_v39  ;;  %v3639_v25 = vmul.f32 %v10404_v61, %v14659_v43  ;;  %v3680_v35 = vmul.f32 %v10404_v61, %v14661_v1  ;;  %v3721_v10 = vmul.f32 %v10404_v61, %v14662_v55 }
0x2484   :  { %v3761_v27 = vmul.f32 %v10404_v61, %v14663_v54 }
0x2485   :  { %v3542_v46 = vpop.permute.xlu1 %3541  ;;  %3611 = vrot.lane.b32.xlu1 %v3598_v33, %s6794_s14  ;;  %v3572_v0 = vpop.permute.xlu0 %3571  ;;  %v14664_v33 = vld [vmem:[#allocation18_spill] sm:$0xff] }
0x2486   :  { %3544 = vst.msk [vmem:[#allocation2 + $0x20] sm:$0xff] %vm14650_vm0, %v3542_v46  ;;  %vm14656_vm0 = vcmask 39936  }
0x2487   :  { %3549 = vst.msk [vmem:[#allocation2 + $0x20] sm:$0xff] %vm14651_vm4, %v3547_v56  ;;  %vm14657_vm4 = vcmask 318648  }
0x2489   :  { %v10412_v52 = vld [vmem:[#allocation2 + $0x18] sm:$0xff]  ;;  %v3551_v42 = vpop.permute.xlu1 %3550 }
0x248a   :  { %3553 = vst.msk [vmem:[#allocation2 + $0x20] sm:$0xff] %vm14652_vm5, %v3551_v42  ;;  %v3599_v41 = vmul.f32 %v10412_v52, %v14618_v39  ;;  %vm14658_vm5 = vcmask 597448   ;;  %v3640_v49 = vmul.f32 %v10412_v52, %v14659_v43  ;;  %v3681_v9 = vmul.f32 %v10412_v52, %v14661_v1 }
0x248b   :  { %v3722_v16 = vmul.f32 %v10412_v52, %v14662_v55  ;;  %v3762_v7 = vmul.f32 %v10412_v52, %v14663_v54  ;;  %v3798_v46 = vmul.f32 %v10412_v52, %v14664_v33  ;;  %v3797_v42 = vmul.f32 %v10404_v61, %v14664_v33 }
0x248c   :  { %3613 = vrot.lane.b32.xlu0 %v3599_v41, %s6794_s14 }
0x248d   :  { %v3559_v36 = vpop.permute.xlu1 %3558 }
0x248e   :  { %3561 = vst.msk [vmem:[#allocation2 + $0x28] sm:$0xff] %vm14653_vm6, %v3559_v36  ;;  %v14665_v36 = vld [vmem:[#allocation19_spill] sm:$0xff]  ;;  %vm14739_vm6 = vcmask 1031168  }
0x248f   :  { %3565 = vst.msk [vmem:[#allocation2 + $0x28] sm:$0xff] %vm14654_vm14, %v3563_v51  ;;  %vm14740_vm14 = vmmov %vm14739_vm6 }
0x2491   :  { %v10420_v63 = vld [vmem:[#allocation2 + $0x20] sm:$0xff]  ;;  %v3567_v5 = vpop.permute.xlu1 %3566 }
0x2492   :  { %3569 = vst.msk [vmem:[#allocation2 + $0x28] sm:$0xff] %vm14655_vm3, %v3567_v5  ;;  %v3600_v20 = vmul.f32 %v10420_v63, %v14618_v39  ;;  %v3682_v53 = vmul.f32 %v10420_v63, %v14661_v1  ;;  %v3723_v4 = vmul.f32 %v10420_v63, %v14662_v55  ;;  %v3763_v56 = vmul.f32 %v10420_v63, %v14663_v54  ;;  %vm14741_vm3 = vmmov %vm14739_vm6 }
0x2493   :  { %3570 = vst.msk [vmem:[#allocation2 + $0x30] sm:$0xff] %vm14656_vm0, %v3567_v5  ;;  %v3799_v51 = vmul.f32 %v10420_v63, %v14664_v33  ;;  %v3833_v5 = vmul.f32 %v10404_v61, %v14665_v36  ;;  %vm14742_vm0 = vmmov %vm14741_vm3 }
0x2494   :  { %3574 = vst.msk [vmem:[#allocation2 + $0x30] sm:$0xff] %vm14657_vm4, %v3572_v0  ;;  %3615 = vrot.lane.b32.xlu1 %v3600_v20, %s6794_s14  ;;  %v3835_v20 = vmul.f32 %v10420_v63, %v14665_v36  ;;  %vm14743_vm4 = vmmov %vm14742_vm0 }
0x2495   :  { %v3576_v22 = vpop.permute.xlu1 %3575 }
0x2496   :  { %3578 = vst.msk [vmem:[#allocation2 + $0x30] sm:$0xff] %vm14658_vm5, %v3576_v22  ;;  %v3834_v22 = vmul.f32 %v10412_v52, %v14665_v36  ;;  %vm14744_vm5 = vcmask 769024  }
0x2499   :  { %v10429_v40 = vld [vmem:[#allocation2 + $0x28] sm:$0xff] }
0x249a   :  { %v3601_v6 = vmul.f32 %v10429_v40, %v14618_v39  ;;  %v3642_v37 = vmul.f32 %v10429_v40, %v14659_v43  ;;  %v3683_v13 = vmul.f32 %v10429_v40, %v14661_v1  ;;  %v3724_v29 = vmul.f32 %v10429_v40, %v14662_v55 }
0x249b   :  { %v3764_v47 = vmul.f32 %v10429_v40, %v14663_v54  ;;  %v3800_v41 = vmul.f32 %v10429_v40, %v14664_v33 }
0x249c   :  { %3617 = vrot.lane.b32.xlu0 %v3601_v6, %s6794_s14 }
0x249d   :  { %v10434_v59 = vld [vmem:[#allocation2 + $0x30] sm:$0xff] }
0x249e   :  { %v3602_v17 = vmul.f32 %v10434_v59, %v14618_v39  ;;  %v3641_v39 = vmul.f32 %v10420_v63, %v14659_v43  ;;  %v3643_v58 = vmul.f32 %v10434_v59, %v14659_v43  ;;  %v3684_v12 = vmul.f32 %v10434_v59, %v14661_v1 }
0x249f   :  { %v3725_v32 = vmul.f32 %v10434_v59, %v14662_v55  ;;  %v3765_v26 = vmul.f32 %v10434_v59, %v14663_v54  ;;  %v3801_v0 = vmul.f32 %v10434_v59, %v14664_v33  ;;  %v3837_v6 = vmul.f32 %v10434_v59, %v14665_v36  ;;  %v14672_v33 = vld [vmem:[#allocation31_spill] sm:$0xff] }
0x24a0   :  { %3650 = vrot.lane.b32.xlu0 %v3638_v30, %s14660_s20  ;;  %3619 = vrot.lane.b32.xlu1 %v3602_v17, %s6794_s14  ;;  %v3836_v43 = vmul.f32 %v10429_v40, %v14665_v36  ;;  %v14666_v30 = vld [vmem:[#allocation20_spill] sm:$0xff]  ;;  %v4016_v36 = vmul.f32 %v10429_v40, %v14672_v33 }
0x24a1   :  { %v3870_v17 = vmul.f32 %v10412_v52, %v14666_v30 }
0x24a4   :  { %3654 = vrot.lane.b32.xlu0 %v3640_v49, %s14660_s20  ;;  %3652 = vrot.lane.b32.xlu1 %v3639_v25, %s14660_s20  ;;  %v3869_v49 = vmul.f32 %v10404_v61, %v14666_v30  ;;  %v3872_v25 = vmul.f32 %v10429_v40, %v14666_v30 }
0x24a8   :  { %3658 = vrot.lane.b32.xlu0 %v3642_v37, %s14660_s20  ;;  %3656 = vrot.lane.b32.xlu1 %v3641_v39, %s14660_s20  ;;  %v3871_v37 = vmul.f32 %v10420_v63, %v14666_v30  ;;  %v14668_v39 = vld [vmem:[#allocation22_spill] sm:$0xff] }
0x24a9   :  { %v3905_v1 = vmul.f32 %v10404_v61, %v14668_v39 }
0x24ac   :  { %3691 = vrot.lane.b32.xlu0 %v3679_v18, %s6796_s16  ;;  %3660 = vrot.lane.b32.xlu1 %v3643_v58, %s14660_s20  ;;  %v3873_v18 = vmul.f32 %v10434_v59, %v14666_v30  ;;  %v3907_v58 = vmul.f32 %v10420_v63, %v14668_v39  ;;  %s14857_s20 = smov 70  }
0x24b0   :  { %3695 = vrot.lane.b32.xlu0 %v3681_v9, %s6796_s16  ;;  %3693 = vrot.lane.b32.xlu1 %v3680_v35, %s6796_s16  ;;  %v3906_v9 = vmul.f32 %v10412_v52, %v14668_v39  ;;  %v3909_v35 = vmul.f32 %v10434_v59, %v14668_v39 }
0x24b4   :  { %3699 = vrot.lane.b32.xlu0 %v3683_v13, %s6796_s16  ;;  %3697 = vrot.lane.b32.xlu1 %v3682_v53, %s6796_s16  ;;  %v3908_v13 = vmul.f32 %v10429_v40, %v14668_v39  ;;  %v14670_v53 = vld [vmem:[#allocation25_spill] sm:$0xff] }
0x24b5   :  { %v3942_v55 = vmul.f32 %v10412_v52, %v14670_v53 }
0x24b8   :  { %3732 = vrot.lane.b32.xlu0 %v3720_v45, %s6797_s17  ;;  %3701 = vrot.lane.b32.xlu1 %v3684_v12, %s6796_s16  ;;  %v3941_v45 = vmul.f32 %v10404_v61, %v14670_v53  ;;  %v3944_v12 = vmul.f32 %v10429_v40, %v14670_v53 }
0x24bc   :  { %3736 = vrot.lane.b32.xlu0 %v3722_v16, %s6797_s17  ;;  %3734 = vrot.lane.b32.xlu1 %v3721_v10, %s6797_s17  ;;  %v3943_v16 = vmul.f32 %v10420_v63, %v14670_v53  ;;  %v14671_v10 = vld [vmem:[#allocation28_spill] sm:$0xff] }
0x24bd   :  { %v3979_v54 = vmul.f32 %v10420_v63, %v14671_v10 }
0x24c0   :  { %3740 = vrot.lane.b32.xlu0 %v3724_v29, %s6797_s17  ;;  %3738 = vrot.lane.b32.xlu1 %v3723_v4, %s6797_s17  ;;  %v3977_v29 = vmul.f32 %v10404_v61, %v14671_v10  ;;  %v3945_v4 = vmul.f32 %v10434_v59, %v14670_v53 }
0x24c4   :  { %3771 = vrot.lane.b32.xlu0 %v3761_v27, %s6798_s12  ;;  %3742 = vrot.lane.b32.xlu1 %v3725_v32, %s6797_s17  ;;  %v3978_v27 = vmul.f32 %v10412_v52, %v14671_v10  ;;  %v10592_v32 = vpop.permute.xlu0 %3609 }
0x24c8   :  { %3775 = vrot.lane.b32.xlu0 %v3763_v56, %s6798_s12  ;;  %3773 = vrot.lane.b32.xlu1 %v3762_v7, %s6798_s12  ;;  %v3981_v56 = vmul.f32 %v10434_v59, %v14671_v10  ;;  %v3980_v7 = vmul.f32 %v10429_v40, %v14671_v10 }
0x24cc   :  { %3779 = vrot.lane.b32.xlu0 %v3765_v26, %s6798_s12  ;;  %3777 = vrot.lane.b32.xlu1 %v3764_v47, %s6798_s12 }
0x24d0   :  { %3809 = vrot.lane.b32.xlu0 %v3798_v46, %s14619_s2  ;;  %3807 = vrot.lane.b32.xlu1 %v3797_v42, %s14619_s2  ;;  %v4014_v46 = vmul.f32 %v10412_v52, %v14672_v33  ;;  %v4013_v42 = vmul.f32 %v10404_v61, %v14672_v33 }
0x24d4   :  { %3813 = vrot.lane.b32.xlu0 %v3800_v41, %s14619_s2  ;;  %3811 = vrot.lane.b32.xlu1 %v3799_v51, %s14619_s2 }
0x24d8   :  { %3843 = vrot.lane.b32.xlu0 %v3833_v5, %s6799_s13  ;;  %3815 = vrot.lane.b32.xlu1 %v3801_v0, %s14619_s2  ;;  %v4015_v5 = vmul.f32 %v10420_v63, %v14672_v33  ;;  %s14686_s2 = smov 119  }
0x24dc   :  { %3847 = vrot.lane.b32.xlu0 %v3835_v20, %s6799_s13  ;;  %3845 = vrot.lane.b32.xlu1 %v3834_v22, %s6799_s13  ;;  %v14673_v22 = vld [vmem:[#allocation34_spill] sm:$0xff] }
0x24e0   :  { %3851 = vrot.lane.b32.xlu0 %v3837_v6, %s6799_s13  ;;  %3849 = vrot.lane.b32.xlu1 %v3836_v43, %s6799_s13  ;;  %v4049_v6 = vmul.f32 %v10404_v61, %v14673_v22  ;;  %v4017_v43 = vmul.f32 %v10434_v59, %v14672_v33 }
0x24e4   :  { %3881 = vrot.lane.b32.xlu0 %v3870_v17, %s14667_s5  ;;  %3879 = vrot.lane.b32.xlu1 %v3869_v49, %s14667_s5  ;;  %v4051_v49 = vmul.f32 %v10420_v63, %v14673_v22 }
0x24e8   :  { %3885 = vrot.lane.b32.xlu0 %v3872_v25, %s14667_s5  ;;  %3883 = vrot.lane.b32.xlu1 %v3871_v37, %s14667_s5  ;;  %v4050_v25 = vmul.f32 %v10412_v52, %v14673_v22 }
0x24ec   :  { %3915 = vrot.lane.b32.xlu0 %v3905_v1, %s14669_s6  ;;  %3887 = vrot.lane.b32.xlu1 %v3873_v18, %s14667_s5  ;;  %v4053_v1 = vmul.f32 %v10434_v59, %v14673_v22  ;;  %v4052_v18 = vmul.f32 %v10429_v40, %v14673_v22  ;;  %s14872_s5 = smov 122  }
0x24f0   :  { %3919 = vrot.lane.b32.xlu0 %v3907_v58, %s14669_s6  ;;  %3917 = vrot.lane.b32.xlu1 %v3906_v9, %s14669_s6 }
0x24f4   :  { %3923 = vrot.lane.b32.xlu0 %v3909_v35, %s14669_s6  ;;  %3921 = vrot.lane.b32.xlu1 %v3908_v13, %s14669_s6  ;;  %v14674_v35 = vld [vmem:[#allocation37_spill] sm:$0xff]  ;;  %s14891_s6 = smov 52  }
0x24f5   :  { %v4086_v13 = vmul.f32 %v10412_v52, %v14674_v35  ;;  %v4085_v53 = vmul.f32 %v10404_v61, %v14674_v35 }
0x24f7   :  { %v10600_v26 = vpop.permute.xlu1 %3611 }
0x24f8   :  { %3953 = vrot.lane.b32.xlu0 %v3942_v55, %s6804_s15  ;;  %3951 = vrot.lane.b32.xlu1 %v3941_v45, %s6804_s15 }
0x24fc   :  { %3957 = vrot.lane.b32.xlu0 %v3944_v12, %s6804_s15  ;;  %3955 = vrot.lane.b32.xlu1 %v3943_v16, %s6804_s15  ;;  %v4088_v12 = vmul.f32 %v10429_v40, %v14674_v35  ;;  %v4087_v16 = vmul.f32 %v10420_v63, %v14674_v35 }
0x24fe   :  { %v10602_v47 = vpop.permute.xlu0 %3613 }
0x2500   :  { %3987 = vrot.lane.b32.xlu0 %v3977_v29, %s6771_s1  ;;  %3959 = vrot.lane.b32.xlu1 %v3945_v4, %s6804_s15  ;;  %v14675_v4 = vld [vmem:[#allocation40_spill] sm:$0xff] }
0x2501   :  { %v4123_v33 = vmul.f32 %v10420_v63, %v14675_v4  ;;  %v4124_v22 = vmul.f32 %v10429_v40, %v14675_v4 }
0x2504   :  { %3991 = vrot.lane.b32.xlu0 %v3979_v54, %s6771_s1  ;;  %3989 = vrot.lane.b32.xlu1 %v3978_v27, %s6771_s1  ;;  %v4121_v54 = vmul.f32 %v10404_v61, %v14675_v4  ;;  %v4089_v27 = vmul.f32 %v10434_v59, %v14674_v35 }
0x2506   :  { %v10610_v41 = vpop.permute.xlu1 %3615 }
0x2508   :  { %3995 = vrot.lane.b32.xlu0 %v3981_v56, %s6771_s1  ;;  %3993 = vrot.lane.b32.xlu1 %v3980_v7, %s6771_s1  ;;  %s14678_s1 = smov 24  }
0x250c   :  { %4025 = vrot.lane.b32.xlu0 %v4014_v46, %s6807_s30  ;;  %4023 = vrot.lane.b32.xlu1 %v4013_v42, %s6807_s30  ;;  %v4122_v46 = vmul.f32 %v10412_v52, %v14675_v4 }
0x250e   :  { %v10612_v51 = vpop.permute.xlu0 %3617 }
0x2510   :  { %4029 = vrot.lane.b32.xlu0 %v4016_v36, %s6807_s30  ;;  %4027 = vrot.lane.b32.xlu1 %v4015_v5, %s6807_s30  ;;  %v4125_v5 = vmul.f32 %v10434_v59, %v14675_v4  ;;  %v14677_v4 = vld [vmem:[#allocation46_spill] sm:$0xff] }
0x2512   :  { %v10620_v0 = vpop.permute.xlu1 %3619  ;;  %v10622_v20 = vpop.permute.xlu0 %3650 }
0x2514   :  { %4059 = vrot.lane.b32.xlu0 %v4049_v6, %s14617_s7  ;;  %4031 = vrot.lane.b32.xlu1 %v4017_v43, %s6807_s30 }
0x2516   :  { %v10630_v30 = vpop.permute.xlu1 %3652  ;;  %v10632_v17 = vpop.permute.xlu0 %3654 }
0x2518   :  { %4063 = vrot.lane.b32.xlu0 %v4051_v49, %s14617_s7  ;;  %4061 = vrot.lane.b32.xlu1 %v4050_v25, %s14617_s7  ;;  %v14676_v49 = vld [vmem:[#allocation43_spill] sm:$0xff] }
0x2519   :  { %v4158_v25 = vmul.f32 %v10412_v52, %v14676_v49 }
0x251a   :  { %v10640_v37 = vpop.permute.xlu1 %3656  ;;  %v10642_v39 = vpop.permute.xlu0 %3658 }
0x251c   :  { %4067 = vrot.lane.b32.xlu0 %v4053_v1, %s14617_s7  ;;  %4065 = vrot.lane.b32.xlu1 %v4052_v18, %s14617_s7  ;;  %v4157_v1 = vmul.f32 %v10404_v61, %v14676_v49  ;;  %s14682_s7 = smov 120  }
0x251e   :  { %v10650_v58 = vpop.permute.xlu1 %3660  ;;  %v10652_v9 = vpop.permute.xlu0 %3691 }
0x2520   :  { %4097 = vrot.lane.b32.xlu0 %v4086_v13, %s6810_s10  ;;  %4095 = vrot.lane.b32.xlu1 %v4085_v53, %s6810_s10  ;;  %v4160_v13 = vmul.f32 %v10429_v40, %v14676_v49  ;;  %v4159_v53 = vmul.f32 %v10420_v63, %v14676_v49 }
0x2522   :  { %v10660_v55 = vpop.permute.xlu1 %3693  ;;  %v10662_v45 = vpop.permute.xlu0 %3695 }
0x2524   :  { %4101 = vrot.lane.b32.xlu0 %v4088_v12, %s6810_s10  ;;  %4099 = vrot.lane.b32.xlu1 %v4087_v16, %s6810_s10 }
0x2526   :  { %v10670_v10 = vpop.permute.xlu1 %3697  ;;  %v10672_v29 = vpop.permute.xlu0 %3699 }
0x2528   :  { %4131 = vrot.lane.b32.xlu0 %v4121_v54, %s6812_s26  ;;  %4103 = vrot.lane.b32.xlu1 %v4089_v27, %s6810_s10  ;;  %v4193_v54 = vmul.f32 %v10404_v61, %v14677_v4  ;;  %v4161_v27 = vmul.f32 %v10434_v59, %v14676_v49 }
0x252a   :  { %v10680_v56 = vpop.permute.xlu1 %3701  ;;  %v10682_v7 = vpop.permute.xlu0 %3732 }
0x252c   :  { %4135 = vrot.lane.b32.xlu0 %v4123_v33, %s6812_s26  ;;  %4133 = vrot.lane.b32.xlu1 %v4122_v46, %s6812_s26 }
0x252e   :  { %v10690_v42 = vpop.permute.xlu1 %3734  ;;  %v10692_v36 = vpop.permute.xlu0 %3736 }
0x2530   :  { %4139 = vrot.lane.b32.xlu0 %v4125_v5, %s6812_s26  ;;  %4137 = vrot.lane.b32.xlu1 %v4124_v22, %s6812_s26  ;;  %v4195_v5 = vmul.f32 %v10420_v63, %v14677_v4  ;;  %v4194_v22 = vmul.f32 %v10412_v52, %v14677_v4 }
0x2532   :  { %v10700_v6 = vpop.permute.xlu1 %3738  ;;  %v10702_v43 = vpop.permute.xlu0 %3740 }
0x2534   :  { %4169 = vrot.lane.b32.xlu0 %v4158_v25, %s6814_s24  ;;  %4167 = vrot.lane.b32.xlu1 %v4157_v1, %s6814_s24  ;;  %v4197_v1 = vmul.f32 %v10434_v59, %v14677_v4 }
0x2536   :  { %v10710_v18 = vpop.permute.xlu1 %3742  ;;  %v10712_v35 = vpop.permute.xlu0 %3771 }
0x2538   :  { %4173 = vrot.lane.b32.xlu0 %v4160_v13, %s6814_s24  ;;  %4171 = vrot.lane.b32.xlu1 %v4159_v53, %s6814_s24  ;;  %v4196_v13 = vmul.f32 %v10429_v40, %v14677_v4 }
0x253a   :  { %v10720_v12 = vpop.permute.xlu1 %3773  ;;  %v10722_v16 = vpop.permute.xlu0 %3775 }
0x253c   :  { %4203 = vrot.lane.b32.xlu0 %v4193_v54, %s14678_s1  ;;  %4175 = vrot.lane.b32.xlu1 %v4161_v27, %s6814_s24  ;;  %v14679_v27 = vld [vmem:[#allocation49_spill] sm:$0xff] }
0x253d   :  { %v4233_v31 = vmul.f32 %v10434_v59, %v14679_v27 }
0x253e   :  { %v10730_v33 = vpop.permute.xlu1 %3777  ;;  %v10732_v46 = vpop.permute.xlu0 %3779 }
0x2540   :  { %4207 = vrot.lane.b32.xlu0 %v4195_v5, %s14678_s1  ;;  %4205 = vrot.lane.b32.xlu1 %v4194_v22, %s14678_s1  ;;  %v4230_v5 = vmul.f32 %v10412_v52, %v14679_v27  ;;  %v4229_v22 = vmul.f32 %v10404_v61, %v14679_v27 }
0x2542   :  { %v10740_v25 = vpop.permute.xlu1 %3807  ;;  %v10742_v49 = vpop.permute.xlu0 %3809 }
0x2544   :  { %4211 = vrot.lane.b32.xlu0 %v4197_v1, %s14678_s1  ;;  %4209 = vrot.lane.b32.xlu1 %v4196_v13, %s14678_s1  ;;  %v4232_v1 = vmul.f32 %v10429_v40, %v14679_v27  ;;  %v4231_v13 = vmul.f32 %v10420_v63, %v14679_v27  ;;  %s14893_s1 = smov 49  }
0x2546   :  { %v10750_v53 = vpop.permute.xlu1 %3811  ;;  %v10752_v54 = vpop.permute.xlu0 %3813 }
0x2548   :  { %4241 = vrot.lane.b32.xlu0 %v4230_v5, %s6818_s11  ;;  %4239 = vrot.lane.b32.xlu1 %v4229_v22, %s6818_s11  ;;  %v14680_v5 = vld [vmem:[#allocation52_spill] sm:$0xff] }
0x2549   :  { %v4265_v22 = vmul.f32 %v10404_v61, %v14680_v5 }
0x254a   :  { %v10760_v3 = vpop.permute.xlu1 %3815  ;;  %v10762_v4 = vpop.permute.xlu0 %3843 }
0x254c   :  { %4245 = vrot.lane.b32.xlu0 %v4232_v1, %s6818_s11  ;;  %4243 = vrot.lane.b32.xlu1 %v4231_v13, %s6818_s11  ;;  %v4267_v1 = vmul.f32 %v10420_v63, %v14680_v5  ;;  %v4266_v13 = vmul.f32 %v10412_v52, %v14680_v5 }
0x254e   :  { %v10770_v21 = vpop.permute.xlu1 %3845  ;;  %v10772_v8 = vpop.permute.xlu0 %3847 }
0x2550   :  { %4275 = vrot.lane.b32.xlu0 %v4265_v22, %s6820_s22  ;;  %4247 = vrot.lane.b32.xlu1 %v4233_v31, %s6818_s11  ;;  %v4268_v31 = vmul.f32 %v10429_v40, %v14680_v5  ;;  %v4269_v22 = vmul.f32 %v10434_v59, %v14680_v5 }
0x2552   :  { %v10780_v15 = vpop.permute.xlu1 %3849  ;;  %v10782_v57 = vpop.permute.xlu0 %3851 }
0x2554   :  { %4279 = vrot.lane.b32.xlu0 %v4267_v1, %s6820_s22  ;;  %4277 = vrot.lane.b32.xlu1 %v4266_v13, %s6820_s22  ;;  %v14681_v1 = vld [vmem:[#allocation68_spill] sm:$0xff] }
0x2555   :  { %v4302_v13 = vmul.f32 %v10404_v61, %v14681_v1  ;;  %v4303_v28 = vmul.f32 %v10412_v52, %v14681_v1 }
0x2556   :  { %v10790_v60 = vpop.permute.xlu1 %3879  ;;  %v10792_v27 = vpop.permute.xlu0 %3881 }
0x2558   :  { %4281 = vrot.lane.b32.xlu1 %v4268_v31, %s6820_s22  ;;  %4283 = vrot.lane.b32.xlu0 %v4269_v22, %s6820_s22  ;;  %v4304_v31 = vmul.f32 %v10420_v63, %v14681_v1  ;;  %v4305_v22 = vmul.f32 %v10429_v40, %v14681_v1 }
0x255a   :  { %v10800_v62 = vpop.permute.xlu1 %3883  ;;  %v10802_v38 = vpop.permute.xlu0 %3885 }
0x255c   :  { %4314 = vrot.lane.b32.xlu1 %v4302_v13, %s14682_s7  ;;  %4316 = vrot.lane.b32.xlu0 %v4303_v28, %s14682_s7  ;;  %v4306_v28 = vmul.f32 %v10434_v59, %v14681_v1  ;;  %v4307_v13 = vmul.f32 %v10305_v14, %v14681_v1 }
0x255e   :  { %v10810_v44 = vpop.permute.xlu1 %3887  ;;  %v10812_v5 = vpop.permute.xlu0 %3915 }
0x2560   :  { %4318 = vrot.lane.b32.xlu1 %v4304_v31, %s14682_s7  ;;  %4320 = vrot.lane.b32.xlu0 %v4305_v22, %s14682_s7  ;;  %v14685_v31 = vld [vmem:[#allocation93_spill] sm:$0xff] }
0x2561   :  { %v4343_v22 = vmul.f32 %v10404_v61, %v14685_v31  ;;  %v4344_v2 = vmul.f32 %v10412_v52, %v14685_v31 }
0x2562   :  { %v10820_v48 = vpop.permute.xlu1 %3917  ;;  %v10822_v19 = vpop.permute.xlu0 %3919 }
0x2564   :  { %4322 = vrot.lane.b32.xlu1 %v4306_v28, %s14682_s7  ;;  %4324 = vrot.lane.b32.xlu0 %v4307_v13, %s14682_s7  ;;  %v4345_v28 = vmul.f32 %v10420_v63, %v14685_v31  ;;  %v4346_v13 = vmul.f32 %v10429_v40, %v14685_v31  ;;  %s14895_s7 = smov 46  }
0x2566   :  { %v10830_v23 = vpop.permute.xlu1 %3921  ;;  %v10832_v34 = vpop.permute.xlu0 %3923 }
0x2567   :  { %14683 = vst [vmem:[#allocation35_spill] sm:$0xff] %v10830_v23  ;;  %14684 = vst [vmem:[#allocation80_spill] sm:$0xff] %v10832_v34 }
0x2568   :  { %4355 = vrot.lane.b32.xlu1 %v4343_v22, %s14686_s2  ;;  %4357 = vrot.lane.b32.xlu0 %v4344_v2, %s14686_s2  ;;  %v4347_v2 = vmul.f32 %v10434_v59, %v14685_v31  ;;  %v4348_v22 = vmul.f32 %v10305_v14, %v14685_v31 }
0x256a   :  { %v10840_v24 = vpop.permute.xlu1 %3951  ;;  %v10842_v1 = vpop.permute.xlu0 %3953 }
0x256b   :  { %14687 = vst [vmem:[#allocation81_spill] sm:$0xff] %v10840_v24  ;;  %14688 = vst [vmem:[#allocation45_spill] sm:$0xff] %v10842_v1 }
0x256c   :  { %4359 = vrot.lane.b32.xlu1 %v4345_v28, %s14686_s2  ;;  %4361 = vrot.lane.b32.xlu0 %v4346_v13, %s14686_s2  ;;  %v14693_v28 = vld [vmem:[#allocation96_spill] sm:$0xff] }
0x256d   :  { %v4384_v13 = vmul.f32 %v10404_v61, %v14693_v28 }
0x256e   :  { %v10850_v11 = vpop.permute.xlu1 %3955  ;;  %v10852_v50 = vpop.permute.xlu0 %3957 }
0x256f   :  { %14689 = vst [vmem:[#allocation71_spill] sm:$0xff] %v10850_v11  ;;  %14690 = vst [vmem:[#allocation47_spill] sm:$0xff] %v10852_v50  ;;  %v4385_v50 = vmul.f32 %v10412_v52, %v14693_v28 }
0x2570   :  { %4363 = vrot.lane.b32.xlu1 %v4347_v2, %s14686_s2  ;;  %4365 = vrot.lane.b32.xlu0 %v4348_v22, %s14686_s2  ;;  %v4386_v2 = vmul.f32 %v10420_v63, %v14693_v28  ;;  %v4387_v22 = vmul.f32 %v10429_v40, %v14693_v28 }
0x2572   :  { %v10860_v24 = vpop.permute.xlu1 %3959  ;;  %v10862_v1 = vpop.permute.xlu0 %3987 }
0x2573   :  { %14691 = vst [vmem:[#allocation82_spill] sm:$0xff] %v10860_v24  ;;  %14692 = vst [vmem:[#allocation36_spill] sm:$0xff] %v10862_v1 }
0x2574   :  { %4396 = vrot.lane.b32.xlu1 %v4384_v13, %s6826_s27  ;;  %4398 = vrot.lane.b32.xlu0 %v4385_v50, %s6826_s27  ;;  %v4388_v50 = vmul.f32 %v10434_v59, %v14693_v28  ;;  %v4389_v13 = vmul.f32 %v10305_v14, %v14693_v28 }
0x2576   :  { %v10870_v11 = vpop.permute.xlu1 %3989  ;;  %v10872_v31 = vpop.permute.xlu0 %3991 }
0x2577   :  { %14694 = vst [vmem:[#allocation48_spill] sm:$0xff] %v10870_v11  ;;  %14695 = vst [vmem:[#allocation83_spill] sm:$0xff] %v10872_v31 }
0x2578   :  { %4400 = vrot.lane.b32.xlu1 %v4386_v2, %s6826_s27  ;;  %4402 = vrot.lane.b32.xlu0 %v4387_v22, %s6826_s27  ;;  %v14700_v2 = vld [vmem:[#allocation99_spill] sm:$0xff] }
0x2579   :  { %v4425_v22 = vmul.f32 %v10412_v52, %v14700_v2 }
0x257a   :  { %v10880_v1 = vpop.permute.xlu1 %3993  ;;  %v10882_v24 = vpop.permute.xlu0 %3995 }
0x257b   :  { %14696 = vst [vmem:[#allocation38_spill] sm:$0xff] %v10880_v1  ;;  %14697 = vst [vmem:[#allocation84_spill] sm:$0xff] %v10882_v24  ;;  %v4426_v24 = vmul.f32 %v10420_v63, %v14700_v2 }
0x257c   :  { %4404 = vrot.lane.b32.xlu1 %v4388_v50, %s6826_s27  ;;  %4406 = vrot.lane.b32.xlu0 %v4389_v13, %s6826_s27  ;;  %v4427_v50 = vmul.f32 %v10429_v40, %v14700_v2  ;;  %v4428_v13 = vmul.f32 %v10434_v59, %v14700_v2 }
0x257e   :  { %v10890_v31 = vpop.permute.xlu1 %4023  ;;  %v10892_v11 = vpop.permute.xlu0 %4025 }
0x257f   :  { %14698 = vst [vmem:[#allocation73_spill] sm:$0xff] %v10890_v31  ;;  %14699 = vst [vmem:[#allocation50_spill] sm:$0xff] %v10892_v11 }
0x2580   :  { %4435 = vrot.lane.b32.xlu1 %v4425_v22, %s14701_s3  ;;  %4437 = vrot.lane.b32.xlu0 %v4426_v24, %s14701_s3  ;;  %v4429_v24 = vmul.f32 %v10305_v14, %v14700_v2  ;;  %v14706_v22 = vld [vmem:[#allocation112_spill] sm:$0xff] }
0x2582   :  { %v10900_v1 = vpop.permute.xlu1 %4027  ;;  %v10902_v28 = vpop.permute.xlu0 %4029 }
0x2583   :  { %14702 = vst [vmem:[#allocation51_spill] sm:$0xff] %v10900_v1  ;;  %14703 = vst [vmem:[#allocation85_spill] sm:$0xff] %v10902_v28  ;;  %v4461_v28 = vmul.f32 %v10412_v52, %v14706_v22 }
0x2584   :  { %4439 = vrot.lane.b32.xlu1 %v4427_v50, %s14701_s3  ;;  %4441 = vrot.lane.b32.xlu0 %v4428_v13, %s14701_s3  ;;  %v4462_v50 = vmul.f32 %v10420_v63, %v14706_v22  ;;  %v4463_v13 = vmul.f32 %v10429_v40, %v14706_v22 }
0x2586   :  { %v10910_v31 = vpop.permute.xlu1 %4031  ;;  %v10912_v11 = vpop.permute.xlu0 %4059 }
0x2587   :  { %14704 = vst [vmem:[#allocation141_spill] sm:$0xff] %v10910_v31  ;;  %14705 = vst [vmem:[#allocation86_spill] sm:$0xff] %v10912_v11 }
0x2588   :  { %4443 = vrot.lane.b32.xlu1 %v4429_v24, %s14701_s3  ;;  %4471 = vrot.lane.b32.xlu0 %v4461_v28, %s14707_s4  ;;  %v4464_v28 = vmul.f32 %v10434_v59, %v14706_v22  ;;  %v4465_v24 = vmul.f32 %v10305_v14, %v14706_v22  ;;  %s14904_s3 = smov 40  }
0x258a   :  { %v10920_v1 = vpop.permute.xlu1 %4061  ;;  %v10922_v34 = vpop.permute.xlu0 %4063 }
0x258b   :  { %14708 = vst [vmem:[#allocation145_spill] sm:$0xff] %v10920_v1  ;;  %14709 = vst [vmem:[#allocation87_spill] sm:$0xff] %v10922_v34 }
0x258c   :  { %4473 = vrot.lane.b32.xlu1 %v4462_v50, %s14707_s4  ;;  %4475 = vrot.lane.b32.xlu0 %v4463_v13, %s14707_s4 }
0x258e   :  { %v10930_v2 = vpop.permute.xlu1 %4065  ;;  %v10932_v11 = vpop.permute.xlu0 %4067 }
0x258f   :  { %14710 = vst [vmem:[#allocation146_spill] sm:$0xff] %v10930_v2  ;;  %14711 = vst [vmem:[#allocation147_spill] sm:$0xff] %v10932_v11 }
0x2590   :  { %4477 = vrot.lane.b32.xlu1 %v4464_v28, %s14707_s4  ;;  %4479 = vrot.lane.b32.xlu0 %v4465_v24, %s14707_s4 }
0x2592   :  { %v10940_v34 = vpop.permute.xlu1 %4095  ;;  %v10942_v1 = vpop.permute.xlu0 %4097 }
0x2593   :  { %14712 = vst [vmem:[#allocation88_spill] sm:$0xff] %v10940_v34  ;;  %14713 = vst [vmem:[#allocation151_spill] sm:$0xff] %v10942_v1 }
0x2596   :  { %v10944_v50 = vpop.permute.xlu1 %4099  ;;  %v10946_v13 = vpop.permute.xlu0 %4101 }
0x2597   :  { %14714 = vst [vmem:[#allocation100_spill] sm:$0xff] %v10944_v50  ;;  %14715 = vst [vmem:[#allocation152_spill] sm:$0xff] %v10946_v13 }
0x259a   :  { %v10948_v2 = vpop.permute.xlu1 %4103  ;;  %v10950_v11 = vpop.permute.xlu0 %4131 }
0x259b   :  { %14716 = vst [vmem:[#allocation153_spill] sm:$0xff] %v10948_v2  ;;  %14717 = vst [vmem:[#allocation90_spill] sm:$0xff] %v10950_v11 }
0x259e   :  { %v10952_v31 = vpop.permute.xlu1 %4133  ;;  %v10954_v23 = vpop.permute.xlu0 %4135 }
0x259f   :  { %14718 = vst [vmem:[#allocation157_spill] sm:$0xff] %v10952_v31  ;;  %14719 = vst [vmem:[#allocation91_spill] sm:$0xff] %v10954_v23 }
0x25a2   :  { %v10956_v22 = vpop.permute.xlu1 %4137  ;;  %v10958_v28 = vpop.permute.xlu0 %4139 }
0x25a3   :  { %14720 = vst [vmem:[#allocation158_spill] sm:$0xff] %v10956_v22  ;;  %14721 = vst [vmem:[#allocation159_spill] sm:$0xff] %v10958_v28 }
0x25a6   :  { %v10960_v24 = vpop.permute.xlu1 %4167  ;;  %v10962_v34 = vpop.permute.xlu0 %4169 }
0x25a7   :  { %14722 = vst [vmem:[#allocation104_spill] sm:$0xff] %v10960_v24  ;;  %14723 = vst [vmem:[#allocation160_spill] sm:$0xff] %v10962_v34 }
0x25aa   :  { %v10964_v1 = vpop.permute.xlu1 %4171  ;;  %v10966_v50 = vpop.permute.xlu0 %4173 }
0x25ab   :  { %14724 = vst [vmem:[#allocation101_spill] sm:$0xff] %v10964_v1  ;;  %14725 = vst [vmem:[#allocation161_spill] sm:$0xff] %v10966_v50 }
0x25ae   :  { %v10968_v13 = vpop.permute.xlu1 %4175  ;;  %v10970_v2 = vpop.permute.xlu0 %4203 }
0x25af   :  { %14726 = vst [vmem:[#allocation162_spill] sm:$0xff] %v10968_v13  ;;  %14727 = vst [vmem:[#allocation92_spill] sm:$0xff] %v10970_v2  ;;  %v14738_v2 = vld [vmem:[#allocation13_spill] sm:$0xff] }
0x25b2   :  { %v10972_v11 = vpop.permute.xlu1 %4205  ;;  %v10974_v31 = vpop.permute.xlu0 %4207 }
0x25b3   :  { %14728 = vst [vmem:[#allocation164_spill] sm:$0xff] %v10972_v11  ;;  %14729 = vst [vmem:[#allocation105_spill] sm:$0xff] %v10974_v31  ;;  %v3585_v11 = vmul.f32 %v10305_v14, %v14738_v2  ;;  %v3624_v14 = vsel %vm213_vm10, %v10610_v41, %v10612_v51 }
0x25b6   :  { %v10976_v23 = vpop.permute.xlu1 %4209  ;;  %v10978_v22 = vpop.permute.xlu0 %4211 }
0x25b7   :  { %14730 = vst [vmem:[#allocation166_spill] sm:$0xff] %v10976_v23  ;;  %14731 = vst [vmem:[#allocation168_spill] sm:$0xff] %v10978_v22  ;;  %v3621_v23 = vsel %vm213_vm10, %v10592_v32, %v10600_v26  ;;  %v3588_v32 = vmul.f32 %v10420_v63, %v14738_v2  ;;  %v3663_v63 = vsel %vm14740_vm14, %v10630_v30, %v10632_v17 }
0x25b8   :  { %vm14746_vm14 = vmmov %vm14744_vm5 }
0x25b9   :  { %v3635_v31 = vadd.f32 %v3624_v14, %v3588_v32 }
0x25ba   :  { %v10980_v28 = vpop.permute.xlu1 %4239  ;;  %v10982_v24 = vpop.permute.xlu0 %4241 }
0x25bb   :  { %14732 = vst [vmem:[#allocation102_spill] sm:$0xff] %v10980_v28  ;;  %14733 = vst [vmem:[#allocation107_spill] sm:$0xff] %v10982_v24  ;;  %v3622_v28 = vsel %vm213_vm10, %v10600_v26, %v10602_v47  ;;  %v3589_v26 = vmul.f32 %v10429_v40, %v14738_v2  ;;  %v3590_v24 = vmul.f32 %v10434_v59, %v14738_v2 }
0x25be   :  { %v10984_v34 = vpop.permute.xlu1 %4243  ;;  %v10986_v1 = vpop.permute.xlu0 %4245 }
0x25bf   :  { %14734 = vst [vmem:[#allocation170_spill] sm:$0xff] %v10984_v34  ;;  %14735 = vst [vmem:[#allocation169_spill] sm:$0xff] %v10986_v1  ;;  %v3586_v34 = vmul.f32 %v10404_v61, %v14738_v2  ;;  %v3587_v1 = vmul.f32 %v10412_v52, %v14738_v2  ;;  %v3625_v61 = vsel %vm213_vm10, %v10612_v51, %v10620_v0 }
0x25c0   :  { %v3662_v52 = vsel %vm14739_vm6, %v10622_v20, %v10630_v30  ;;  %v3664_v51 = vsel %vm14741_vm3, %v10632_v17, %v10640_v37  ;;  %v3666_v20 = vsel %vm14743_vm4, %v10642_v39, %v10650_v58  ;;  %v3704_v17 = vsel %vm305_vm15, %v10660_v55, %v10662_v45  ;;  %vm14745_vm6 = vmmov %vm14744_vm5 }
0x25c1   :  { %vm14747_vm3 = vmmov %vm14744_vm5 }
0x25c2   :  { %v10988_v50 = vpop.permute.xlu1 %4247  ;;  %v10990_v13 = vpop.permute.xlu0 %4275 }
0x25c3   :  { %14736 = vst [vmem:[#allocation171_spill] sm:$0xff] %v10988_v50  ;;  %14737 = vst [vmem:[#allocation95_spill] sm:$0xff] %v10990_v13  ;;  %v3623_v13 = vsel %vm213_vm10, %v10602_v47, %v10610_v41  ;;  %v3632_v50 = vadd.f32 %v3621_v23, %v3585_v11  ;;  %v3633_v47 = vadd.f32 %v3622_v28, %v3586_v34 }
0x25c4   :  { %v3634_v22 = vadd.f32 %v3623_v13, %v3587_v1  ;;  %v3665_v11 = vsel %vm14742_vm0, %v10640_v37, %v10642_v39  ;;  %v3636_v23 = vadd.f32 %v3625_v61, %v3589_v26  ;;  %v3637_v34 = vadd.f32 %v10620_v0, %v3590_v24 }
0x25c5   :  { %v3673_v59 = vadd.f32 %v3662_v52, %v3632_v50  ;;  %v3674_v30 = vadd.f32 %v3663_v63, %v3633_v47  ;;  %v3703_v1 = vsel %vm305_vm15, %v10652_v9, %v10660_v55  ;;  %v3705_v37 = vsel %vm305_vm15, %v10662_v45, %v10670_v10 }
0x25c6   :  { %v11025_v41 = vpop.permute.xlu1 %4277  ;;  %v11027_v40 = vpop.permute.xlu0 %4279  ;;  %v3675_v2 = vadd.f32 %v3664_v51, %v3634_v22  ;;  %v3676_v0 = vadd.f32 %v3665_v11, %v3635_v31  ;;  %v3678_v50 = vadd.f32 %v10650_v58, %v3637_v34  ;;  %v3706_v39 = vsel %vm305_vm15, %v10670_v10, %v10672_v29 }
0x25c7   :  { %v3677_v9 = vadd.f32 %v3666_v20, %v3636_v23  ;;  %v3707_v55 = vsel %vm305_vm15, %v10672_v29, %v10680_v56  ;;  %v3744_v45 = vsel %vm351_vm13, %v10682_v7, %v10690_v42  ;;  %v3745_v58 = vsel %vm351_vm13, %v10690_v42, %v10692_v36 }
0x25c8   :  { %v3714_v31 = vadd.f32 %v3703_v1, %v3673_v59  ;;  %v3715_v22 = vadd.f32 %v3704_v17, %v3674_v30  ;;  %v3716_v10 = vadd.f32 %v3705_v37, %v3675_v2  ;;  %v3746_v24 = vsel %vm351_vm13, %v10692_v36, %v10700_v6 }
0x25c9   :  { %v3717_v14 = vadd.f32 %v3706_v39, %v3676_v0  ;;  %v3719_v32 = vadd.f32 %v10680_v56, %v3678_v50  ;;  %v3747_v29 = vsel %vm351_vm13, %v10700_v6, %v10702_v43  ;;  %v3748_v7 = vsel %vm351_vm13, %v10702_v43, %v10710_v18 }
0x25ca   :  { %v11052_v13 = vpop.permute.xlu1 %4281  ;;  %v11054_v28 = vpop.permute.xlu0 %4283  ;;  %v3718_v26 = vadd.f32 %v3707_v55, %v3677_v9  ;;  %v3755_v42 = vadd.f32 %v3744_v45, %v3714_v31  ;;  %v3756_v61 = vadd.f32 %v3745_v58, %v3715_v22  ;;  %v3781_v52 = vsel %vm14744_vm5, %v10712_v35, %v10720_v12 }
0x25cb   :  { %v3757_v56 = vadd.f32 %v3746_v24, %v3716_v10  ;;  %v3782_v6 = vsel %vm14745_vm6, %v10720_v12, %v10722_v16  ;;  %v3783_v43 = vsel %vm14746_vm14, %v10722_v16, %v10730_v33  ;;  %v3784_v63 = vsel %vm14747_vm3, %v10730_v33, %v10732_v46 }
0x25cc   :  { %v3758_v51 = vadd.f32 %v3747_v29, %v3717_v14  ;;  %v3759_v11 = vadd.f32 %v3748_v7, %v3718_v26  ;;  %v3760_v23 = vadd.f32 %v10710_v18, %v3719_v32  ;;  %v3791_v34 = vadd.f32 %v10712_v35, %v3755_v42  ;;  %v14762_v7 = vld [vmem:[#allocation35_spill] sm:$0xff]  ;;  %v14764_v26 = vld [vmem:[#allocation80_spill] sm:$0xff] }
0x25cd   :  { %v3792_v59 = vadd.f32 %v3781_v52, %v3756_v61  ;;  %vm14748_vm0 = vcmask 760832   ;;  %v3793_v33 = vadd.f32 %v3782_v6, %v3757_v56  ;;  %vm14752_vm14 = vcmask 752640  }
0x25ce   :  { %v11078_v47 = vpop.permute.xlu1 %4314  ;;  %v11080_v36 = vpop.permute.xlu0 %4316  ;;  %v3817_v20 = vsel %vm14748_vm0, %v10740_v25, %v10742_v49  ;;  %vm14749_vm4 = vmmov %vm14748_vm0  ;;  %v3794_v30 = vadd.f32 %v3783_v43, %v3758_v51  ;;  %v3795_v1 = vadd.f32 %v3784_v63, %v3759_v11  ;;  %v3796_v18 = vadd.f32 %v10732_v46, %v3760_v23  ;;  %v14767_v63 = vld [vmem:[#allocation81_spill] sm:$0xff]  ;;  %v14771_v23 = vld [vmem:[#allocation47_spill] sm:$0xff] }
0x25cf   :  { %v3818_v12 = vsel %vm14749_vm4, %v10742_v49, %v10750_v53  ;;  %vm14750_vm5 = vmmov %vm14748_vm0  ;;  %v3827_v37 = vadd.f32 %v10740_v25, %v3791_v34  ;;  %v3853_v49 = vsel %vm14752_vm14, %v10762_v4, %v10770_v21  ;;  %v3828_v0 = vadd.f32 %v3817_v20, %v3792_v59 }
0x25d0   :  { %v3819_v16 = vsel %vm14750_vm5, %v10750_v53, %v10752_v54  ;;  %vm14751_vm6 = vmmov %vm14748_vm0  ;;  %v3829_v46 = vadd.f32 %v3818_v12, %v3793_v33  ;;  %v3832_v25 = vadd.f32 %v10760_v3, %v3796_v18  ;;  %vm14756_vm5 = vcmask 744448  }
0x25d1   :  { %v3820_v2 = vsel %vm14751_vm6, %v10752_v54, %v10760_v3  ;;  %vm14753_vm3 = vmmov %vm14752_vm14  ;;  %v3830_v50 = vadd.f32 %v3819_v16, %v3794_v30  ;;  %v3863_v9 = vadd.f32 %v10762_v4, %v3827_v37  ;;  %v3889_v55 = vsel %vm14756_vm5, %v10790_v60, %v10792_v27  ;;  %v14773_v16 = vld [vmem:[#allocation82_spill] sm:$0xff]  ;;  %v14775_v30 = vld [vmem:[#allocation48_spill] sm:$0xff] }
0x25d2   :  { %v11103_v17 = vpop.permute.xlu1 %4318  ;;  %v11105_v35 = vpop.permute.xlu0 %4320  ;;  %v3854_v53 = vsel %vm14753_vm3, %v10770_v21, %v10772_v8  ;;  %vm14754_vm0 = vmmov %vm14753_vm3  ;;  %v3831_v21 = vadd.f32 %v3820_v2, %v3795_v1  ;;  %v3864_v45 = vadd.f32 %v3853_v49, %v3828_v0  ;;  %v3868_v22 = vadd.f32 %v10782_v57, %v3832_v25  ;;  %v14776_v1 = vld [vmem:[#allocation36_spill] sm:$0xff]  ;;  %v14778_v37 = vld [vmem:[#allocation83_spill] sm:$0xff] }
0x25d3   :  { %v3855_v39 = vsel %vm14754_vm0, %v10772_v8, %v10780_v15  ;;  %vm14755_vm4 = vmmov %vm14754_vm0  ;;  %v3865_v58 = vadd.f32 %v3854_v53, %v3829_v46  ;;  %v3899_v14 = vadd.f32 %v10790_v60, %v3863_v9  ;;  %vm14760_vm0 = vcmask 736256   ;;  %v14780_v46 = vld [vmem:[#allocation38_spill] sm:$0xff] }
0x25d4   :  { %v3856_v54 = vsel %vm14755_vm4, %v10780_v15, %v10782_v57  ;;  %vm14757_vm6 = vmmov %vm14756_vm5  ;;  %v3866_v4 = vadd.f32 %v3855_v39, %v3830_v50  ;;  %v3900_v32 = vadd.f32 %v3889_v55, %v3864_v45  ;;  %v3904_v61 = vadd.f32 %v10810_v44, %v3868_v22  ;;  %v14782_v55 = vld [vmem:[#allocation84_spill] sm:$0xff]  ;;  %v14784_v45 = vld [vmem:[#allocation50_spill] sm:$0xff] }
0x25d5   :  { %v3890_v31 = vsel %vm14757_vm6, %v10792_v27, %v10800_v62  ;;  %vm14758_vm14 = vmmov %vm14756_vm5  ;;  %v3867_v24 = vadd.f32 %v3856_v54, %v3831_v21  ;;  %v3925_v27 = vsel %vm14760_vm0, %v10812_v5, %v10820_v48  ;;  %v3935_v52 = vadd.f32 %v10812_v5, %v3899_v14 }
0x25d6   :  { %v11131_v8 = vpop.permute.xlu1 %4322  ;;  %v11133_v3 = vpop.permute.xlu0 %4324  ;;  %v3891_v15 = vsel %vm14758_vm14, %v10800_v62, %v10802_v38  ;;  %vm14759_vm3 = vmmov %vm14756_vm5  ;;  %v3901_v29 = vadd.f32 %v3890_v31, %v3865_v58  ;;  %v3936_v43 = vadd.f32 %v3925_v27, %v3900_v32  ;;  %vm14768_vm14 = vcmask 490496   ;;  %v14785_v58 = vld [vmem:[#allocation73_spill] sm:$0xff] }
0x25d7   :  { %v3892_v10 = vsel %vm14759_vm3, %v10802_v38, %v10810_v44  ;;  %vm14761_vm4 = vmmov %vm14760_vm0  ;;  %v3902_v42 = vadd.f32 %v3891_v15, %v3866_v4  ;;  %v3940_v20 = vadd.f32 %v14764_v26, %v3904_v61  ;;  %v3971_v12 = vadd.f32 %v14767_v63, %v3935_v52  ;;  %v14787_v27 = vld [vmem:[#allocation85_spill] sm:$0xff] }
0x25d8   :  { %v3926_v57 = vsel %vm14761_vm4, %v10820_v48, %v10822_v19  ;;  %vm14763_vm5 = vmmov %vm14760_vm0  ;;  %v3903_v60 = vadd.f32 %v3892_v10, %v3867_v24  ;;  %v14766_v48 = vld [vmem:[#allocation45_spill] sm:$0xff]  ;;  %v4033_v31 = vsel %vm680_vm8, %v14785_v58, %v14784_v45  ;;  %v14786_v10 = vld [vmem:[#allocation51_spill] sm:$0xff] }
0x25d9   :  { %v3927_v62 = vsel %vm14763_vm5, %v10822_v19, %v14762_v7  ;;  %vm14765_vm6 = vmmov %vm14760_vm0  ;;  %v3961_v51 = vsel %vm14768_vm14, %v14767_v63, %v14766_v48  ;;  %v14769_v19 = vld [vmem:[#allocation71_spill] sm:$0xff]  ;;  %v3937_v44 = vadd.f32 %v3926_v57, %v3901_v29  ;;  %vm14777_vm5 = vcmask 482304   ;;  %v14788_v57 = vld [vmem:[#allocation141_spill] sm:$0xff] }
0x25da   :  { %v3928_v38 = vsel %vm14765_vm6, %v14762_v7, %v14764_v26  ;;  %v11157_v56 = vpop.permute.xlu1 %4355  ;;  %v11159_v6 = vpop.permute.xlu0 %4357  ;;  %vm14770_vm3 = vmmov %vm14768_vm14  ;;  %v3938_v59 = vadd.f32 %v3927_v62, %v3902_v42  ;;  %v3997_v18 = vsel %vm14777_vm5, %v14776_v1, %v14775_v30  ;;  %v3972_v49 = vadd.f32 %v3961_v51, %v3936_v43  ;;  %v14789_v42 = vld [vmem:[#allocation145_spill] sm:$0xff]  ;;  %v14792_v63 = vld [vmem:[#allocation87_spill] sm:$0xff] }
0x25db   :  { %v3962_v11 = vsel %vm14770_vm3, %v14766_v48, %v14769_v19  ;;  %vm14772_vm0 = vmmov %vm14770_vm3  ;;  %v3939_v5 = vadd.f32 %v3928_v38, %v3903_v60  ;;  %v3976_v9 = vadd.f32 %v14773_v16, %v3940_v20  ;;  %v4007_v54 = vadd.f32 %v14776_v1, %v3971_v12  ;;  %v14790_v60 = vld [vmem:[#allocation86_spill] sm:$0xff]  ;;  %v14801_v1 = vld [vmem:[#allocation100_spill] sm:$0xff] }
0x25dc   :  { %v3963_v34 = vsel %vm14772_vm0, %v14769_v19, %v14771_v23  ;;  %vm14774_vm4 = vmmov %vm14772_vm0  ;;  %v3973_v53 = vadd.f32 %v3962_v11, %v3937_v44  ;;  %v4008_v22 = vadd.f32 %v3997_v18, %v3972_v49  ;;  %v4034_v24 = vsel %vm680_vm8, %v14784_v45, %v14786_v10  ;;  %v14794_v19 = vld [vmem:[#allocation146_spill] sm:$0xff]  ;;  %v14807_v45 = vld [vmem:[#allocation157_spill] sm:$0xff] }
0x25dd   :  { %v3964_v33 = vsel %vm14774_vm4, %v14771_v23, %v14773_v16  ;;  %vm14779_vm6 = vmmov %vm14777_vm5  ;;  %v3974_v0 = vadd.f32 %v3963_v34, %v3938_v59  ;;  %v4012_v32 = vadd.f32 %v14782_v55, %v3976_v9  ;;  %v4035_v29 = vsel %vm680_vm8, %v14786_v10, %v14787_v27  ;;  %v14796_v23 = vld [vmem:[#allocation147_spill] sm:$0xff] }
0x25de   :  { %v3998_v2 = vsel %vm14779_vm6, %v14775_v30, %v14778_v37  ;;  %vm14781_vm14 = vmmov %vm14777_vm5  ;;  %v11184_v39 = vpop.permute.xlu1 %4359  ;;  %v11186_v25 = vpop.permute.xlu0 %4361  ;;  %v3975_v4 = vadd.f32 %v3964_v33, %v3939_v5  ;;  %v4036_v7 = vsel %vm680_vm8, %v14787_v27, %v14788_v57  ;;  %v4043_v26 = vadd.f32 %v14785_v58, %v4007_v54  ;;  %v14798_v16 = vld [vmem:[#allocation151_spill] sm:$0xff]  ;;  %v14799_v33 = vld [vmem:[#allocation88_spill] sm:$0xff] }
0x25df   :  { %v3999_v50 = vsel %vm14781_vm14, %v14778_v37, %v14780_v46  ;;  %vm14783_vm3 = vmmov %vm14777_vm5  ;;  %v4009_v15 = vadd.f32 %v3998_v2, %v3973_v53  ;;  %v4044_v38 = vadd.f32 %v4033_v31, %v4008_v22  ;;  %vm14791_vm0 = vcmask 465920   ;;  %v14803_v37 = vld [vmem:[#allocation152_spill] sm:$0xff]  ;;  %v14808_v58 = vld [vmem:[#allocation90_spill] sm:$0xff] }
0x25e0   :  { %v4000_v21 = vsel %vm14783_vm3, %v14780_v46, %v14782_v55  ;;  %v4010_v14 = vadd.f32 %v3999_v50, %v3974_v0  ;;  %v4069_v61 = vsel %vm14791_vm0, %v14790_v60, %v14789_v42  ;;  %vm14793_vm4 = vmmov %vm14791_vm0  ;;  %v4048_v5 = vadd.f32 %v14788_v57, %v4012_v32  ;;  %v14805_v55 = vld [vmem:[#allocation153_spill] sm:$0xff]  ;;  %v14812_v27 = vld [vmem:[#allocation158_spill] sm:$0xff] }
0x25e1   :  { %v4011_v62 = vadd.f32 %v4000_v21, %v3975_v4  ;;  %v4045_v48 = vadd.f32 %v4034_v24, %v4009_v15  ;;  %v4070_v51 = vsel %vm14793_vm4, %v14789_v42, %v14792_v63  ;;  %vm14795_vm5 = vmmov %vm14791_vm0  ;;  %v4079_v20 = vadd.f32 %v14790_v60, %v4043_v26  ;;  %v14810_v4 = vld [vmem:[#allocation91_spill] sm:$0xff]  ;;  %v14817_v26 = vld [vmem:[#allocation104_spill] sm:$0xff] }
0x25e2   :  { %v11210_v52 = vpop.permute.xlu1 %4363  ;;  %v11212_v43 = vpop.permute.xlu0 %4365  ;;  %v4071_v11 = vsel %vm14795_vm5, %v14792_v63, %v14794_v19  ;;  %vm14797_vm6 = vmmov %vm14791_vm0  ;;  %v4046_v44 = vadd.f32 %v4035_v29, %v4010_v14  ;;  %v4080_v12 = vadd.f32 %v4069_v61, %v4044_v38  ;;  %vm14800_vm14 = vcmask 457728   ;;  %v14814_v57 = vld [vmem:[#allocation159_spill] sm:$0xff] }
0x25e3   :  { %v4072_v34 = vsel %vm14797_vm6, %v14794_v19, %v14796_v23  ;;  %v4047_v59 = vadd.f32 %v4036_v7, %v4011_v62  ;;  %v4105_v30 = vsel %vm14800_vm14, %v14799_v33, %v14798_v16  ;;  %vm14802_vm3 = vmmov %vm14800_vm14  ;;  %v4081_v49 = vadd.f32 %v4070_v51, %v4045_v48  ;;  %v14816_v62 = vld [vmem:[#allocation160_spill] sm:$0xff]  ;;  %v14818_v48 = vld [vmem:[#allocation101_spill] sm:$0xff] }
0x25e4   :  { %v4106_v18 = vsel %vm14802_vm3, %v14798_v16, %v14801_v1  ;;  %vm14804_vm0 = vmmov %vm14802_vm3  ;;  %v4082_v53 = vadd.f32 %v4071_v11, %v4046_v44  ;;  %v4084_v46 = vadd.f32 %v14796_v23, %v4048_v5  ;;  %v4115_v54 = vadd.f32 %v14799_v33, %v4079_v20  ;;  %v14821_v33 = vld [vmem:[#allocation164_spill] sm:$0xff] }
0x25e5   :  { %v4107_v2 = vsel %vm14804_vm0, %v14801_v1, %v14803_v37  ;;  %v4083_v0 = vadd.f32 %v4072_v34, %v4047_v59  ;;  %vm14806_vm4 = vmmov %vm14804_vm0  ;;  %vm14809_vm5 = vcmask 211968   ;;  %v4116_v15 = vadd.f32 %v4105_v30, %v4080_v12  ;;  %v14819_v34 = vld [vmem:[#allocation161_spill] sm:$0xff]  ;;  %v14820_v59 = vld [vmem:[#allocation162_spill] sm:$0xff] }
0x25e6   :  { %v11235_v50 = vpop.permute.xlu1 %4396  ;;  %v11237_v9 = vpop.permute.xlu0 %4398  ;;  %v4108_v21 = vsel %vm14806_vm4, %v14803_v37, %v14805_v55  ;;  %v4141_v31 = vsel %vm14809_vm5, %v14808_v58, %v14807_v45  ;;  %vm14811_vm6 = vmmov %vm14809_vm5  ;;  %v4117_v10 = vadd.f32 %v4106_v18, %v4081_v49  ;;  %v4118_v24 = vadd.f32 %v4107_v2, %v4082_v53  ;;  %v14822_v30 = vld [vmem:[#allocation92_spill] sm:$0xff]  ;;  %v14824_v2 = vld [vmem:[#allocation105_spill] sm:$0xff] }
0x25e7   :  { %v4142_v22 = vsel %vm14811_vm6, %v14807_v45, %v14810_v4  ;;  %v4120_v14 = vadd.f32 %v14805_v55, %v4084_v46  ;;  %v4151_v32 = vadd.f32 %v14808_v58, %v4115_v54  ;;  %vm14813_vm14 = vmmov %vm14809_vm5  ;;  %v4177_v38 = vsel %vm844_vm11, %v14817_v26, %v14816_v62  ;;  %v14826_v53 = vld [vmem:[#allocation166_spill] sm:$0xff] }
0x25e8   :  { %v4143_v29 = vsel %vm14813_vm14, %v14810_v4, %v14812_v27  ;;  %vm14815_vm3 = vmmov %vm14809_vm5  ;;  %v4119_v42 = vadd.f32 %v4108_v21, %v4083_v0  ;;  %v4152_v60 = vadd.f32 %v4141_v31, %v4116_v15  ;;  %v4153_v61 = vadd.f32 %v4142_v22, %v4117_v10  ;;  %v14828_v21 = vld [vmem:[#allocation168_spill] sm:$0xff]  ;;  %v14830_v22 = vld [vmem:[#allocation102_spill] sm:$0xff] }
0x25e9   :  { %v4144_v7 = vsel %vm14815_vm3, %v14812_v27, %v14814_v57  ;;  %v4178_v63 = vsel %vm844_vm11, %v14816_v62, %v14818_v48  ;;  %v4156_v11 = vadd.f32 %v14814_v57, %v4120_v14  ;;  %v4187_v23 = vadd.f32 %v14817_v26, %v4151_v32  ;;  %v14831_v10 = vld [vmem:[#allocation107_spill] sm:$0xff]  ;;  %v14833_v14 = vld [vmem:[#allocation170_spill] sm:$0xff]  ;;  %v14836_v26 = vld [vmem:[#allocation169_spill] sm:$0xff] }
0x25ea   :  { %v11263_v51 = vpop.permute.xlu1 %4400  ;;  %v11265_v19 = vpop.permute.xlu0 %4402  ;;  %v4179_v44 = vsel %vm844_vm11, %v14818_v48, %v14819_v34  ;;  %v4180_v5 = vsel %vm844_vm11, %v14819_v34, %v14820_v59  ;;  %v4154_v20 = vadd.f32 %v4143_v29, %v4118_v24  ;;  %v4155_v12 = vadd.f32 %v4144_v7, %v4119_v42  ;;  %v14838_v42 = vld [vmem:[#allocation171_spill] sm:$0xff] }
0x25eb   :  { %v4188_v16 = vadd.f32 %v4177_v38, %v4152_v60  ;;  %vm14823_vm0 = vcmask 195584   ;;  %v4189_v18 = vadd.f32 %v4178_v63, %v4153_v61  ;;  %v4223_v37 = vadd.f32 %v14822_v30, %v4187_v23  ;;  %v14840_v61 = vld [vmem:[#allocation95_spill] sm:$0xff] }
0x25ec   :  { %v4213_v1 = vsel %vm14823_vm0, %v14822_v30, %v14821_v33  ;;  %vm14825_vm4 = vmmov %vm14823_vm0  ;;  %v4190_v46 = vadd.f32 %v4179_v44, %v4154_v20  ;;  %v4191_v54 = vadd.f32 %v4180_v5, %v4155_v12  ;;  %v4192_v55 = vadd.f32 %v14820_v59, %v4156_v11 }
0x25ed   :  { %v4214_v49 = vsel %vm14825_vm4, %v14821_v33, %v14824_v2  ;;  %vm14827_vm5 = vmmov %vm14823_vm0  ;;  %v4224_v4 = vadd.f32 %v4213_v1, %v4188_v16  ;;  %v4259_v15 = vadd.f32 %v14830_v22, %v4223_v37  ;;  %vm14832_vm14 = vcmask 187392  }
0x25ee   :  { %v4215_v0 = vsel %vm14827_vm5, %v14824_v2, %v14826_v53  ;;  %vm14829_vm6 = vmmov %vm14823_vm0  ;;  %v11289_v58 = vpop.permute.xlu1 %4404  ;;  %v11291_v31 = vpop.permute.xlu0 %4406  ;;  %v4249_v24 = vsel %vm14832_vm14, %v14830_v22, %v14831_v10  ;;  %v4225_v27 = vadd.f32 %v4214_v49, %v4189_v18  ;;  %v4228_v57 = vadd.f32 %v14828_v21, %v4192_v55 }
0x25ef   :  { %v4216_v45 = vsel %vm14829_vm6, %v14826_v53, %v14828_v21  ;;  %vm14834_vm3 = vmmov %vm14832_vm14  ;;  %v4226_v29 = vadd.f32 %v4215_v0, %v4190_v46  ;;  %vm14835_vm0 = vcmask 982016   ;;  %v4295_v48 = vadd.f32 %v14840_v61, %v4259_v15 }
0x25f0   :  { %v4250_v32 = vsel %vm14834_vm3, %v14831_v10, %v14833_v14  ;;  %v4326_v7 = vsel %vm14835_vm0, %v11078_v47, %v11080_v36  ;;  %v4227_v62 = vadd.f32 %v4216_v45, %v4191_v54  ;;  %vm14837_vm4 = vmmov %vm14834_vm3  ;;  %v4260_v63 = vadd.f32 %v4249_v24, %v4224_v4 }
0x25f1   :  { %v4251_v38 = vsel %vm14837_vm4, %v14833_v14, %v14836_v26  ;;  %vm14839_vm5 = vmmov %vm14834_vm3  ;;  %v4261_v11 = vadd.f32 %v4250_v32, %v4225_v27  ;;  %v4285_v23 = vsel %vm65_vm9, %v14840_v61, %v11025_v41  ;;  %vm14841_vm6 = vcmask 973824  }
0x25f2   :  { %v4252_v60 = vsel %vm14839_vm5, %v14836_v26, %v14838_v42  ;;  %v4367_v47 = vsel %vm14841_vm6, %v11157_v56, %v11159_v6  ;;  %v4436_v34 = vpop.permute.xlu1 %4435  ;;  %v4438_v44 = vpop.permute.xlu0 %4437  ;;  %v4286_v59 = vsel %vm65_vm9, %v11025_v41, %v11027_v40  ;;  %v4287_v5 = vsel %vm65_vm9, %v11027_v40, %v11052_v13  ;;  %vm14842_vm14 = vmmov %vm14835_vm0 }
0x25f3   :  { %v4288_v20 = vsel %vm65_vm9, %v11052_v13, %v11054_v28  ;;  %v4337_v12 = vadd.f32 %v4326_v7, %v4295_v48  ;;  %v4262_v16 = vadd.f32 %v4251_v38, %v4226_v29  ;;  %v4263_v33 = vadd.f32 %v4252_v60, %v4227_v62  ;;  %vm14843_vm3 = vmmov %vm14835_vm0  ;;  %v14851_v62 = vld [vmem:[#allocation21_spill] sm:$0xff] }
0x25f4   :  { %v4264_v30 = vadd.f32 %v14838_v42, %v4228_v57  ;;  %v4408_v56 = vsel %vm1109_vm7, %v11235_v50, %v11237_v9  ;;  %v4296_v1 = vadd.f32 %v4285_v23, %v4260_v63  ;;  %v4327_v41 = vsel %vm14842_vm14, %v11080_v36, %v11103_v17  ;;  %vm14844_vm4 = vmmov %vm14841_vm6  ;;  %v14856_v23 = vld [vmem:[#allocation53_spill] sm:$0xff] }
0x25f5   :  { %v4328_v40 = vsel %vm14843_vm3, %v11103_v17, %v11105_v35  ;;  %v4378_v18 = vadd.f32 %v4367_v47, %v4337_v12  ;;  %v4297_v13 = vadd.f32 %v4286_v59, %v4261_v11  ;;  %v4298_v37 = vadd.f32 %v4287_v5, %v4262_v16  ;;  %vm14845_vm5 = vmmov %vm14844_vm4 }
0x25f6   :  { %v4299_v2 = vadd.f32 %v4288_v20, %v4263_v33  ;;  %v4300_v49 = vadd.f32 %v11054_v28, %v4264_v30  ;;  %v4440_v53 = vpop.permute.xlu1 %4439  ;;  %v4442_v0 = vpop.permute.xlu0 %4441  ;;  %v4329_v50 = vsel %vm14835_vm0, %v11105_v35, %v11131_v8  ;;  %v4368_v36 = vsel %vm14844_vm4, %v11159_v6, %v11184_v39  ;;  %vm14846_vm6 = vmmov %vm14835_vm0 }
0x25f7   :  { %v4369_v17 = vsel %vm14845_vm5, %v11184_v39, %v11186_v25  ;;  %v4419_v46 = vadd.f32 %v4408_v56, %v4378_v18  ;;  %v4338_v54 = vadd.f32 %v4327_v41, %v4296_v1  ;;  %v4339_v55 = vadd.f32 %v4328_v40, %v4297_v13  ;;  %vm14847_vm14 = vmmov %vm14844_vm4  ;;  %v14860_v13 = vld [vmem:[#allocation54_spill] sm:$0xff] }
0x25f8   :  { %v4330_v28 = vsel %vm14846_vm6, %v11131_v8, %v11133_v3  ;;  %v4342_v21 = vadd.f32 %v11133_v3, %v4300_v49  ;;  %v4370_v35 = vsel %vm14847_vm14, %v11186_v25, %v11210_v52  ;;  %v4409_v6 = vsel %vm1109_vm7, %v11237_v9, %v11263_v51  ;;  %vm14848_vm3 = vmmov %vm14844_vm4 }
0x25f9   :  { %v4410_v39 = vsel %vm1109_vm7, %v11263_v51, %v11265_v19  ;;  %v4455_v45 = vadd.f32 %v4436_v34, %v4419_v46  ;;  %v4340_v4 = vadd.f32 %v4329_v50, %v4298_v37  ;;  %v4379_v22 = vadd.f32 %v4368_v36, %v4338_v54  ;;  %v14862_v36 = vld [vmem:[#allocation56_spill] sm:$0xff] }
0x25fa   :  { %v4380_v15 = vadd.f32 %v4369_v17, %v4339_v55  ;;  %v4371_v8 = vsel %vm14848_vm3, %v11210_v52, %v11212_v43  ;;  %v4444_v3 = vpop.permute.xlu1 %4443  ;;  %v4472_v10 = vpop.permute.xlu0 %4471  ;;  %v4341_v24 = vadd.f32 %v4330_v28, %v4299_v2  ;;  %vm14849_vm0 = vcmask 957440   ;;  %v14861_v2 = vld [vmem:[#allocation23_spill] sm:$0xff]  ;;  %v14863_v46 = vld [vmem:[#allocation24_spill] sm:$0xff] }
0x25fb   :  { %v4445_v25 = vsel %vm14849_vm0, %v4436_v34, %v4438_v44  ;;  %vm14850_vm4 = vmmov %vm14849_vm0  ;;  %v4491_v9 = vadd.f32 %v4472_v10, %v4455_v45  ;;  %v4381_v32 = vadd.f32 %v4370_v35, %v4340_v4  ;;  %v4383_v27 = vadd.f32 %v11212_v43, %v4342_v21  ;;  %v14864_v55 = vld [vmem:[#allocation55_spill] sm:$0xff]  ;;  %v11395_v21 = vld [vmem:[#allocation2] sm:$0xff] }
0x25fc   :  { %v4446_v14 = vsel %vm14850_vm4, %v4438_v44, %v4440_v53  ;;  %v4420_v51 = vadd.f32 %v4409_v6, %v4379_v22  ;;  %v4421_v29 = vadd.f32 %v4410_v39, %v4380_v15  ;;  %v4382_v57 = vadd.f32 %v4371_v8, %v4341_v24  ;;  %vm14852_vm5 = vmmov %vm14849_vm0  ;;  %v14865_v35 = vld [vmem:[#allocation57_spill] sm:$0xff] }
0x25fd   :  { %v4411_v7 = vsel %vm1109_vm7, %v11265_v19, %v11289_v58  ;;  %v4412_v52 = vsel %vm1109_vm7, %v11289_v58, %v11291_v31  ;;  %v4497_v26 = vadd.f32 %v4491_v9, %v14851_v62  ;;  %v4424_v38 = vadd.f32 %v11291_v31, %v4383_v27  ;;  %vm14853_vm6 = vmmov %vm14849_vm0 }
0x25fe   :  { %v4456_v42 = vadd.f32 %v4445_v25, %v4420_v51  ;;  %v4457_v60 = vadd.f32 %v4446_v14, %v4421_v29  ;;  %v4447_v61 = vsel %vm14852_vm5, %v4440_v53, %v4442_v0  ;;  %v4474_v43 = vpop.permute.xlu1 %4473  ;;  %v4476_v48 = vpop.permute.xlu0 %4475  ;;  %v4448_v63 = vsel %vm14853_vm6, %v4442_v0, %v4444_v3  ;;  %v14871_v14 = vld [vmem:[#allocation58_spill] sm:$0xff] }
0x25ff   :  { %vm14854_vm14 = vcmask 949248   ;;  %v4503_v47 = vmul.f32 %v4497_v26, %v14856_v23  ;;  %v4422_v34 = vadd.f32 %v4411_v7, %v4381_v32  ;;  %v4423_v58 = vadd.f32 %v4412_v52, %v4382_v57 }
0x2600   :  { %v4481_v11 = vsel %vm14854_vm14, %v4472_v10, %v4474_v43  ;;  %vm14855_vm3 = vmmov %vm14854_vm14  ;;  %v4460_v5 = vadd.f32 %v4444_v3, %v4424_v38  ;;  %v4557_v6 = vmul.f32 %v11395_v21, %v14865_v35  ;;  %vm14866_vm5 = vcmask 572416  }
0x2601   :  { %v4482_v19 = vsel %vm14855_vm3, %v4474_v43, %v4476_v48  ;;  %v4492_v44 = vadd.f32 %v4481_v11, %v4456_v42  ;;  %4515 = vrot.lane.b32.xlu1 %v4503_v47, %s14857_s20  ;;  %v4458_v31 = vadd.f32 %v4447_v61, %v4422_v34  ;;  %v4459_v20 = vadd.f32 %v4448_v63, %v4423_v58  ;;  %vm14858_vm0 = vmmov %vm14855_vm3  ;;  %v14878_v58 = vld [vmem:[#allocation29_spill] sm:$0xff] }
0x2602   :  { %v4493_v59 = vadd.f32 %v4482_v19, %v4457_v60  ;;  %v4478_v33 = vpop.permute.xlu1 %4477  ;;  %v4480_v30 = vpop.permute.xlu0 %4479  ;;  %vm14859_vm4 = vmmov %vm14858_vm0  ;;  %vm14868_vm14 = vcmask 1048024   ;;  %v4591_v9 = vmul.f32 %v11395_v21, %v14871_v14  ;;  %v14876_v60 = vld [vmem:[#allocation27_spill] sm:$0xff]  ;;  %v14877_v19 = vld [vmem:[#allocation60_spill] sm:$0xff] }
0x2603   :  { %v4498_v12 = vadd.f32 %v4492_v44, %v14851_v62  ;;  %v4483_v56 = vsel %vm14858_vm0, %v4476_v48, %v4478_v33  ;;  %v4484_v1 = vsel %vm14859_vm4, %v4478_v33, %v4480_v30  ;;  %v4496_v41 = vadd.f32 %v4480_v30, %v4460_v5  ;;  %vm14867_vm6 = vmmov %vm14866_vm5 }
0x2604   :  { %v4499_v16 = vadd.f32 %v4493_v59, %v14851_v62  ;;  %v4494_v40 = vadd.f32 %v4483_v56, %v4458_v31  ;;  %v4495_v18 = vadd.f32 %v4484_v1, %v4459_v20  ;;  %vm14869_vm3 = vmmov %vm14866_vm5  ;;  %v4659_v61 = vmul.f32 %v11395_v21, %v14876_v60 }
0x2605   :  { %v4504_v37 = vmul.f32 %v4498_v12, %v14860_v13  ;;  %v4502_v50 = vadd.f32 %v4496_v41, %v14851_v62  ;;  %vm14870_vm0 = vmmov %vm14869_vm3  ;;  %v4694_v23 = vmul.f32 %v11395_v21, %v14877_v19  ;;  %v4727_v44 = vmul.f32 %v11395_v21, %v14878_v58  ;;  %v14879_v12 = vld [vmem:[#allocation61_spill] sm:$0xff]  ;;  %v14880_v41 = vld [vmem:[#allocation62_spill] sm:$0xff] }
0x2606   :  { %v4505_v49 = vmul.f32 %v4499_v16, %v14861_v2  ;;  %v4500_v53 = vadd.f32 %v4494_v40, %v14851_v62  ;;  %v4501_v0 = vadd.f32 %v4495_v18, %v14851_v62  ;;  %vm14873_vm4 = vmmov %vm14870_vm0  ;;  %v14875_v62 = vld [vmem:[#allocation59_spill] sm:$0xff]  ;;  %v4763_v16 = vmul.f32 %v11395_v21, %v14879_v12 }
0x2607   :  { %4517 = vrot.lane.b32.xlu0 %v4504_v37, %s14857_s20  ;;  %v4508_v28 = vmul.f32 %v4502_v50, %v14864_v55  ;;  %v4626_v26 = vmul.f32 %v11395_v21, %v14875_v62  ;;  %v4802_v40 = vmul.f32 %v11395_v21, %v14880_v41 }
0x2608   :  { %4519 = vrot.lane.b32.xlu1 %v4505_v49, %s14857_s20  ;;  %v4506_v17 = vmul.f32 %v4500_v53, %v14862_v36  ;;  %v4507_v54 = vmul.f32 %v4501_v0, %v14863_v46  ;;  %v14881_v49 = vld [vmem:[#allocation30_spill] sm:$0xff]  ;;  %v14882_v46 = vld [vmem:[#allocation32_spill] sm:$0xff] }
0x2609   :  { %v4841_v53 = vmul.f32 %v11395_v21, %v14881_v49 }
0x260b   :  { %4521 = vrot.lane.b32.xlu0 %v4506_v17, %s14857_s20 }
0x260c   :  { %4523 = vrot.lane.b32.xlu1 %v4507_v54, %s14857_s20  ;;  %v4880_v54 = vmul.f32 %v11395_v21, %v14882_v46 }
0x260f   :  { %4525 = vrot.lane.b32.xlu0 %v4508_v28, %s14857_s20  ;;  %s14919_s20 = smov 78  }
0x2610   :  { %4567 = vrot.lane.b32.xlu1 %v4557_v6, %s6796_s16 }
0x2613   :  { %4569 = vrot.lane.b32.xlu0 %v4557_v6, %s6796_s16 }
0x2673   :  { %v4516_v39 = vpop.permute.xlu1 %4515 }
0x2679   :  { %v4518_v4 = vpop.permute.xlu0 %4517 }
0x267a   :  { %v4520_v45 = vpop.permute.xlu1 %4519  ;;  %v4527_v22 = vsel %vm14866_vm5, %v4516_v39, %v4518_v4  ;;  %vm14874_vm5 = vcmask 744448   ;;  %v14884_v39 = vld [vmem:[#allocation33_spill] sm:$0xff] }
0x267b   :  { %v11404_v15 = vsel %vm14867_vm6, %v4518_v4, %v4520_v45  ;;  %4537 = vst.msk [vmem:[#allocation2 + $0x10] sm:$0xff] %vm14868_vm14, %v4527_v22  ;;  %vm15052_vm6 = vcmask 998400  }
0x267c   :  { %4538 = vst [vmem:[#allocation2 + $0x18] sm:$0xff] %v11404_v15  ;;  %v4560_v8 = vmul.f32 %v11404_v15, %v14865_v35  ;;  %v4594_v38 = vmul.f32 %v11404_v15, %v14871_v14  ;;  %v4628_v42 = vmul.f32 %v11404_v15, %v14875_v62  ;;  %v4662_v47 = vmul.f32 %v11404_v15, %v14876_v60  ;;  %vm15056_vm14 = vmmov %vm15052_vm6 }
0x267d   :  { %v4522_v10 = vpop.permute.xlu0 %4521  ;;  %v4696_v34 = vmul.f32 %v11404_v15, %v14877_v19  ;;  %v4730_v33 = vmul.f32 %v11404_v15, %v14878_v58  ;;  %v4765_v30 = vmul.f32 %v11404_v15, %v14879_v12  ;;  %v4804_v13 = vmul.f32 %v11404_v15, %v14880_v41 }
0x267e   :  { %v4524_v3 = vpop.permute.xlu1 %4523  ;;  %4573 = vrot.lane.b32.xlu0 %v4560_v8, %s6796_s16  ;;  %v11412_v24 = vsel %vm14869_vm3, %v4520_v45, %v4522_v10  ;;  %v4843_v50 = vmul.f32 %v11404_v15, %v14881_v49  ;;  %v4882_v28 = vmul.f32 %v11404_v15, %v14882_v46  ;;  %v4919_v45 = vmul.f32 %v11395_v21, %v14884_v39  ;;  %vm15058_vm3 = vmmov %vm15052_vm6 }
0x267f   :  { %v11415_v25 = vsel %vm14870_vm0, %v4522_v10, %v4524_v3  ;;  %4539 = vst [vmem:[#allocation2 + $0x20] sm:$0xff] %v11412_v24  ;;  %v4561_v7 = vmul.f32 %v11412_v24, %v14865_v35  ;;  %v4595_v52 = vmul.f32 %v11412_v24, %v14871_v14  ;;  %v4629_v63 = vmul.f32 %v11412_v24, %v14875_v62 }
0x2680   :  { %4540 = vst [vmem:[#allocation2 + $0x28] sm:$0xff] %v11415_v25  ;;  %v4663_v11 = vmul.f32 %v11412_v24, %v14876_v60  ;;  %v4697_v31 = vmul.f32 %v11412_v24, %v14877_v19  ;;  %v4731_v20 = vmul.f32 %v11412_v24, %v14878_v58  ;;  %v4767_v56 = vmul.f32 %v11415_v25, %v14879_v12 }
0x2681   :  { %v4526_v32 = vpop.permute.xlu0 %4525  ;;  %v4766_v18 = vmul.f32 %v11412_v24, %v14879_v12  ;;  %v4806_v37 = vmul.f32 %v11415_v25, %v14880_v41  ;;  %v4805_v0 = vmul.f32 %v11412_v24, %v14880_v41  ;;  %v4845_v36 = vmul.f32 %v11415_v25, %v14881_v49 }
0x2682   :  { %4601 = vrot.lane.b32.xlu0 %v4591_v9, %s14872_s5  ;;  %v11422_v27 = vld [vmem:[#allocation2 + $0x10] sm:$0xff]  ;;  %v4531_v51 = vsel %vm14873_vm4, %v4524_v3, %v4526_v32  ;;  %v4844_v55 = vmul.f32 %v11412_v24, %v14881_v49  ;;  %v4883_v4 = vmul.f32 %v11412_v24, %v14882_v46  ;;  %v4921_v22 = vmul.f32 %v11404_v15, %v14884_v39 }
0x2683   :  { %4541 = vst.msk [vmem:[#allocation2 + $0x30] sm:$0xff] %vm14874_vm5, %v4531_v51  ;;  %v4559_v29 = vmul.f32 %v11422_v27, %v14865_v35  ;;  %v4593_v57 = vmul.f32 %v11422_v27, %v14871_v14  ;;  %v4627_v43 = vmul.f32 %v11422_v27, %v14875_v62  ;;  %v4661_v48 = vmul.f32 %v11422_v27, %v14876_v60  ;;  %v11578_v51 = vpop.permute.xlu1 %4567 }
0x2684   :  { %v4695_v59 = vmul.f32 %v11422_v27, %v14877_v19  ;;  %v4729_v5 = vmul.f32 %v11422_v27, %v14878_v58  ;;  %v4764_v1 = vmul.f32 %v11422_v27, %v14879_v12  ;;  %v4803_v2 = vmul.f32 %v11422_v27, %v14880_v41  ;;  %v14892_v41 = vld [vmem:[#allocation64_spill] sm:$0xff] }
0x2685   :  { %4571 = vrot.lane.b32.xlu1 %v4559_v29, %s6796_s16  ;;  %v4842_v17 = vmul.f32 %v11422_v27, %v14881_v49  ;;  %v4884_v35 = vmul.f32 %v11415_v25, %v14882_v46  ;;  %v4881_v6 = vmul.f32 %v11422_v27, %v14882_v46  ;;  %v11564_v8 = vpop.permute.xlu0 %4569  ;;  %v4923_v3 = vmul.f32 %v11415_v25, %v14884_v39 }
0x2686   :  { %4605 = vrot.lane.b32.xlu0 %v4593_v57, %s14872_s5  ;;  %v4920_v10 = vmul.f32 %v11422_v27, %v14884_v39  ;;  %v4922_v29 = vmul.f32 %v11412_v24, %v14884_v39  ;;  %vm15059_vm0 = vcmask 973824  }
0x2687   :  { %vm15060_vm4 = vmmov %vm15059_vm0 }
0x2688   :  { %vm15061_vm5 = vmmov %vm15059_vm0 }
0x2689   :  { %4575 = vrot.lane.b32.xlu1 %v4561_v7, %s6796_s16  ;;  %s14889_s16 = smov 8  }
0x268a   :  { %4609 = vrot.lane.b32.xlu0 %v4595_v52, %s14872_s5 }
0x268d   :  { %4603 = vrot.lane.b32.xlu1 %v4591_v9, %s14872_s5  ;;  %v14886_v9 = vld [vmem:[#allocation70_spill] sm:$0xff] }
0x268e   :  { %4637 = vrot.lane.b32.xlu0 %v4626_v26, %s14686_s2  ;;  %v4958_v32 = vmul.f32 %v11395_v21, %v14886_v9  ;;  %v4960_v7 = vmul.f32 %v11404_v15, %v14886_v9 }
0x2691   :  { %4607 = vrot.lane.b32.xlu1 %v4594_v38, %s14872_s5  ;;  %s14936_s5 = smov 69  }
0x2692   :  { %4641 = vrot.lane.b32.xlu0 %v4628_v42, %s14686_s2  ;;  %v4959_v42 = vmul.f32 %v11422_v27, %v14886_v9 }
0x2695   :  { %4635 = vrot.lane.b32.xlu1 %v4626_v26, %s14686_s2  ;;  %v4962_v26 = vmul.f32 %v11415_v25, %v14886_v9 }
0x2696   :  { %4669 = vrot.lane.b32.xlu0 %v4659_v61, %s14707_s4 }
0x2699   :  { %4639 = vrot.lane.b32.xlu1 %v4627_v43, %s14686_s2 }
0x269a   :  { %4673 = vrot.lane.b32.xlu0 %v4661_v48, %s14707_s4 }
0x269d   :  { %4643 = vrot.lane.b32.xlu1 %v4629_v63, %s14686_s2  ;;  %v4961_v63 = vmul.f32 %v11412_v24, %v14886_v9  ;;  %s14898_s2 = smov 43  }
0x269e   :  { %4677 = vrot.lane.b32.xlu0 %v4663_v11, %s14707_s4 }
0x26a1   :  { %4671 = vrot.lane.b32.xlu1 %v4659_v61, %s14707_s4  ;;  %v14888_v61 = vld [vmem:[#allocation72_spill] sm:$0xff] }
0x26a2   :  { %4705 = vrot.lane.b32.xlu0 %v4694_v23, %s6772_s18  ;;  %v4997_v43 = vmul.f32 %v11395_v21, %v14888_v61  ;;  %v4999_v19 = vmul.f32 %v11404_v15, %v14888_v61  ;;  %v5000_v12 = vmul.f32 %v11412_v24, %v14888_v61 }
0x26a5   :  { %4675 = vrot.lane.b32.xlu1 %v4662_v47, %s14707_s4  ;;  %s14914_s4 = smov 34  }
0x26a6   :  { %4709 = vrot.lane.b32.xlu0 %v4696_v34, %s6772_s18  ;;  %v5001_v34 = vmul.f32 %v11415_v25, %v14888_v61 }
0x26a9   :  { %4703 = vrot.lane.b32.xlu1 %v4694_v23, %s6772_s18 }
0x26aa   :  { %4737 = vrot.lane.b32.xlu0 %v4727_v44, %s6832_s23 }
0x26ad   :  { %4707 = vrot.lane.b32.xlu1 %v4695_v59, %s6772_s18 }
0x26ae   :  { %4741 = vrot.lane.b32.xlu0 %v4729_v5, %s6832_s23  ;;  %v14890_v5 = vld [vmem:[#allocation74_spill] sm:$0xff] }
0x26b1   :  { %4711 = vrot.lane.b32.xlu1 %v4697_v31, %s6772_s18  ;;  %s14883_s18 = smov 17   ;;  %v5036_v31 = vmul.f32 %v11422_v27, %v14890_v5 }
0x26b2   :  { %4745 = vrot.lane.b32.xlu0 %v4731_v20, %s6832_s23 }
0x26b5   :  { %4739 = vrot.lane.b32.xlu1 %v4727_v44, %s6832_s23  ;;  %v4998_v44 = vmul.f32 %v11422_v27, %v14888_v61 }
0x26b6   :  { %4776 = vrot.lane.b32.xlu0 %v4763_v16, %s6812_s26 }
0x26b9   :  { %4743 = vrot.lane.b32.xlu1 %v4730_v33, %s6832_s23  ;;  %v5038_v33 = vmul.f32 %v11412_v24, %v14890_v5 }
0x26ba   :  { %4780 = vrot.lane.b32.xlu0 %v4765_v30, %s6812_s26 }
0x26bd   :  { %4774 = vrot.lane.b32.xlu1 %v4763_v16, %s6812_s26 }
0x26be   :  { %4784 = vrot.lane.b32.xlu0 %v4767_v56, %s6812_s26  ;;  %v5035_v56 = vmul.f32 %v11395_v21, %v14890_v5 }
0x26c1   :  { %4778 = vrot.lane.b32.xlu1 %v4764_v1, %s6812_s26 }
0x26c2   :  { %4815 = vrot.lane.b32.xlu0 %v4802_v40, %s6818_s11 }
0x26c5   :  { %4782 = vrot.lane.b32.xlu1 %v4766_v18, %s6812_s26  ;;  %s14885_s26 = smov 14  }
0x26c6   :  { %4819 = vrot.lane.b32.xlu0 %v4804_v13, %s6818_s11  ;;  %v5037_v13 = vmul.f32 %v11404_v15, %v14890_v5 }
0x26c9   :  { %4813 = vrot.lane.b32.xlu1 %v4802_v40, %s6818_s11  ;;  %v5069_v40 = vmul.f32 %v11395_v21, %v14892_v41 }
0x26ca   :  { %4823 = vrot.lane.b32.xlu0 %v4806_v37, %s6818_s11 }
0x26cd   :  { %4817 = vrot.lane.b32.xlu1 %v4803_v2, %s6818_s11  ;;  %v5071_v2 = vmul.f32 %v11404_v15, %v14892_v41 }
0x26ce   :  { %4854 = vrot.lane.b32.xlu0 %v4841_v53, %s6833_s21 }
0x26d1   :  { %4821 = vrot.lane.b32.xlu1 %v4805_v0, %s6818_s11  ;;  %s14887_s11 = smov 11  }
0x26d2   :  { %4858 = vrot.lane.b32.xlu0 %v4843_v50, %s6833_s21  ;;  %v5073_v50 = vmul.f32 %v11415_v25, %v14892_v41 }
0x26d5   :  { %4852 = vrot.lane.b32.xlu1 %v4841_v53, %s6833_s21  ;;  %v5039_v53 = vmul.f32 %v11415_v25, %v14890_v5 }
0x26d6   :  { %4862 = vrot.lane.b32.xlu0 %v4845_v36, %s6833_s21 }
0x26d9   :  { %4856 = vrot.lane.b32.xlu1 %v4842_v17, %s6833_s21  ;;  %v5070_v17 = vmul.f32 %v11422_v27, %v14892_v41 }
0x26da   :  { %4893 = vrot.lane.b32.xlu0 %v4880_v54, %s14883_s18 }
0x26dd   :  { %4860 = vrot.lane.b32.xlu1 %v4844_v55, %s6833_s21 }
0x26de   :  { %4897 = vrot.lane.b32.xlu0 %v4882_v28, %s14883_s18 }
0x26e1   :  { %4891 = vrot.lane.b32.xlu1 %v4880_v54, %s14883_s18  ;;  %v14894_v54 = vld [vmem:[#allocation66_spill] sm:$0xff] }
0x26e2   :  { %4901 = vrot.lane.b32.xlu0 %v4884_v35, %s14883_s18  ;;  %v5104_v55 = vmul.f32 %v11422_v27, %v14894_v54  ;;  %v5072_v35 = vmul.f32 %v11412_v24, %v14892_v41  ;;  %v5106_v39 = vmul.f32 %v11412_v24, %v14894_v54 }
0x26e5   :  { %4895 = vrot.lane.b32.xlu1 %v4881_v6, %s14883_s18 }
0x26e6   :  { %4932 = vrot.lane.b32.xlu0 %v4919_v45, %s14885_s26 }
0x26e9   :  { %4899 = vrot.lane.b32.xlu1 %v4883_v4, %s14883_s18  ;;  %v5103_v4 = vmul.f32 %v11395_v21, %v14894_v54  ;;  %s14950_s18 = smov 63  }
0x26ea   :  { %4936 = vrot.lane.b32.xlu0 %v4921_v22, %s14885_s26 }
0x26ed   :  { %4930 = vrot.lane.b32.xlu1 %v4919_v45, %s14885_s26 }
0x26ee   :  { %4940 = vrot.lane.b32.xlu0 %v4923_v3, %s14885_s26  ;;  %v14897_v3 = vld [vmem:[#allocation89_spill] sm:$0xff] }
0x26f0   :  { %v11572_v14 = vpop.permute.xlu0 %4573 }
0x26f1   :  { %4934 = vrot.lane.b32.xlu1 %v4920_v10, %s14885_s26  ;;  %v5137_v10 = vmul.f32 %v11395_v21, %v14897_v3 }
0x26f2   :  { %4971 = vrot.lane.b32.xlu0 %v4958_v32, %s14887_s11 }
0x26f4   :  { %v11582_v57 = vpop.permute.xlu0 %4601 }
0x26f5   :  { %4938 = vrot.lane.b32.xlu1 %v4922_v29, %s14885_s26  ;;  %s14963_s26 = smov 104  }
0x26f6   :  { %4975 = vrot.lane.b32.xlu0 %v4960_v7, %s14887_s11  ;;  %v5139_v7 = vmul.f32 %v11404_v15, %v14897_v3 }
0x26f7   :  { %v11588_v52 = vpop.permute.xlu1 %4571 }
0x26f8   :  { %v11590_v62 = vpop.permute.xlu0 %4605 }
0x26f9   :  { %4969 = vrot.lane.b32.xlu1 %v4958_v32, %s14887_s11  ;;  %v5105_v32 = vmul.f32 %v11404_v15, %v14894_v54 }
0x26fa   :  { %4979 = vrot.lane.b32.xlu0 %v4962_v26, %s14887_s11 }
0x26fb   :  { %v11596_v38 = vpop.permute.xlu1 %4575 }
0x26fc   :  { %v11600_v60 = vpop.permute.xlu0 %4609 }
0x26fd   :  { %4973 = vrot.lane.b32.xlu1 %v4959_v42, %s14887_s11  ;;  %v5107_v42 = vmul.f32 %v11415_v25, %v14894_v54 }
0x26fe   :  { %5010 = vrot.lane.b32.xlu0 %v4997_v43, %s14889_s16 }
0x26ff   :  { %v11606_v48 = vpop.permute.xlu1 %4603 }
0x2700   :  { %v11610_v11 = vpop.permute.xlu0 %4637 }
0x2701   :  { %4977 = vrot.lane.b32.xlu1 %v4961_v63, %s14887_s11  ;;  %s14969_s11 = smov 101  }
0x2702   :  { %5014 = vrot.lane.b32.xlu0 %v4999_v19, %s14889_s16  ;;  %v5138_v19 = vmul.f32 %v11422_v27, %v14897_v3 }
0x2703   :  { %v11616_v23 = vpop.permute.xlu1 %4607 }
0x2704   :  { %v11618_v47 = vpop.permute.xlu0 %4641 }
0x2705   :  { %5008 = vrot.lane.b32.xlu1 %v4997_v43, %s14889_s16  ;;  %v5141_v43 = vmul.f32 %v11415_v25, %v14897_v3 }
0x2706   :  { %5018 = vrot.lane.b32.xlu0 %v5001_v34, %s14889_s16 }
0x2707   :  { %v11624_v58 = vpop.permute.xlu1 %4635 }
0x2708   :  { %v11628_v59 = vpop.permute.xlu0 %4669 }
0x2709   :  { %5012 = vrot.lane.b32.xlu1 %v4998_v44, %s14889_s16  ;;  %v14903_v44 = vld [vmem:[#allocation103_spill] sm:$0xff] }
0x270a   :  { %5047 = vrot.lane.b32.xlu0 %v5036_v31, %s14891_s6  ;;  %v5172_v5 = vmul.f32 %v11422_v27, %v14903_v44 }
0x270b   :  { %v11634_v20 = vpop.permute.xlu1 %4639 }
0x270c   :  { %v11638_v16 = vpop.permute.xlu0 %4673 }
0x270d   :  { %5016 = vrot.lane.b32.xlu1 %v5000_v12, %s14889_s16  ;;  %v5140_v12 = vmul.f32 %v11412_v24, %v14897_v3  ;;  %s14995_s16 = smov 89  }
0x270e   :  { %5051 = vrot.lane.b32.xlu0 %v5038_v33, %s14891_s6 }
0x270f   :  { %v11644_v30 = vpop.permute.xlu1 %4643 }
0x2710   :  { %v11648_v1 = vpop.permute.xlu0 %4677 }
0x2711   :  { %5045 = vrot.lane.b32.xlu1 %v5035_v56, %s14891_s6  ;;  %v5174_v56 = vmul.f32 %v11412_v24, %v14903_v44 }
0x2712   :  { %5079 = vrot.lane.b32.xlu0 %v5069_v40, %s14893_s1  ;;  %v5171_v40 = vmul.f32 %v11395_v21, %v14903_v44 }
0x2713   :  { %v11654_v18 = vpop.permute.xlu1 %4671 }
0x2714   :  { %v11658_v37 = vpop.permute.xlu0 %4705 }
0x2715   :  { %5049 = vrot.lane.b32.xlu1 %v5037_v13, %s14891_s6 }
0x2716   :  { %5083 = vrot.lane.b32.xlu0 %v5071_v2, %s14893_s1  ;;  %v14908_v2 = vld [vmem:[#allocation94_spill] sm:$0xff] }
0x2717   :  { %v11664_v49 = vpop.permute.xlu1 %4675  ;;  %v5209_v3 = vmul.f32 %v11415_v25, %v14908_v2 }
0x2718   :  { %v11668_v0 = vpop.permute.xlu0 %4709 }
0x2719   :  { %5053 = vrot.lane.b32.xlu1 %v5039_v53, %s14891_s6  ;;  %v5205_v53 = vmul.f32 %v11395_v21, %v14908_v2  ;;  %s15009_s6 = smov 2  }
0x271a   :  { %5087 = vrot.lane.b32.xlu0 %v5073_v50, %s14893_s1 }
0x271b   :  { %v11674_v36 = vpop.permute.xlu1 %4703 }
0x271c   :  { %v11678_v46 = vpop.permute.xlu0 %4737 }
0x271d   :  { %5081 = vrot.lane.b32.xlu1 %v5070_v17, %s14893_s1  ;;  %v5173_v17 = vmul.f32 %v11404_v15, %v14903_v44 }
0x271e   :  { %5115 = vrot.lane.b32.xlu0 %v5104_v55, %s14895_s7  ;;  %v5207_v55 = vmul.f32 %v11404_v15, %v14908_v2 }
0x271f   :  { %v11684_v28 = vpop.permute.xlu1 %4707 }
0x2720   :  { %v11688_v6 = vpop.permute.xlu0 %4741 }
0x2721   :  { %14896 = vst [vmem:[#allocation109_spill] sm:$0xff] %v11688_v6  ;;  %5085 = vrot.lane.b32.xlu1 %v5072_v35, %s14893_s1  ;;  %s15147_s1 = smov 28  }
0x2722   :  { %5119 = vrot.lane.b32.xlu0 %v5106_v39, %s14895_s7  ;;  %v5175_v39 = vmul.f32 %v11415_v25, %v14903_v44  ;;  %v5208_v44 = vmul.f32 %v11412_v24, %v14908_v2 }
0x2723   :  { %v11694_v45 = vpop.permute.xlu1 %4711 }
0x2724   :  { %v11698_v22 = vpop.permute.xlu0 %4745 }
0x2725   :  { %5113 = vrot.lane.b32.xlu1 %v5103_v4, %s14895_s7 }
0x2726   :  { %5147 = vrot.lane.b32.xlu0 %v5137_v10, %s14898_s2 }
0x2727   :  { %v11704_v9 = vpop.permute.xlu1 %4739 }
0x2728   :  { %v11708_v29 = vpop.permute.xlu0 %4776 }
0x2729   :  { %14899 = vst [vmem:[#allocation173_spill] sm:$0xff] %v11708_v29  ;;  %5117 = vrot.lane.b32.xlu1 %v5105_v32, %s14895_s7  ;;  %v5206_v32 = vmul.f32 %v11422_v27, %v14908_v2  ;;  %v15043_v29 = vld [vmem:[#allocation262_spill] sm:$0xff] }
0x272a   :  { %5151 = vrot.lane.b32.xlu0 %v5139_v7, %s14898_s2 }
0x272b   :  { %v11714_v26 = vpop.permute.xlu1 %4743 }
0x272c   :  { %14900 = vst [vmem:[#allocation172_spill] sm:$0xff] %v11714_v26  ;;  %v11718_v61 = vpop.permute.xlu0 %4780  ;;  %v6689_v26 = vld [vmem:[#allocation2 + $0x10] sm:$0xff] }
0x272d   :  { %14901 = vst [vmem:[#allocation174_spill] sm:$0xff] %v11718_v61  ;;  %5121 = vrot.lane.b32.xlu1 %v5107_v42, %s14895_s7  ;;  %v14913_v42 = vld [vmem:[#allocation97_spill] sm:$0xff]  ;;  %s15312_s7 = smov 13  }
0x272e   :  { %5155 = vrot.lane.b32.xlu0 %v5141_v43, %s14898_s2  ;;  %v5240_v43 = vmul.f32 %v11422_v27, %v14913_v42 }
0x272f   :  { %v11724_v63 = vpop.permute.xlu1 %4774 }
0x2730   :  { %14902 = vst [vmem:[#allocation110_spill] sm:$0xff] %v11724_v63  ;;  %v11728_v34 = vpop.permute.xlu0 %4784 }
0x2731   :  { %5149 = vrot.lane.b32.xlu1 %v5138_v19, %s14898_s2 }
0x2732   :  { %5183 = vrot.lane.b32.xlu0 %v5172_v5, %s14904_s3 }
0x2733   :  { %v11734_v31 = vpop.permute.xlu1 %4778 }
0x2734   :  { %14905 = vst [vmem:[#allocation108_spill] sm:$0xff] %v11734_v31  ;;  %v11738_v33 = vpop.permute.xlu0 %4815  ;;  %v15040_v31 = vld [vmem:[#allocation243_spill] sm:$0xff] }
0x2735   :  { %14906 = vst [vmem:[#allocation176_spill] sm:$0xff] %v11738_v33  ;;  %5153 = vrot.lane.b32.xlu1 %v5140_v12, %s14898_s2  ;;  %v5242_v12 = vmul.f32 %v11412_v24, %v14913_v42  ;;  %s15319_s2 = smov 10  }
0x2736   :  { %5187 = vrot.lane.b32.xlu0 %v5174_v56, %s14904_s3 }
0x2737   :  { %v11744_v41 = vpop.permute.xlu1 %4782 }
0x2738   :  { %v11748_v13 = vpop.permute.xlu0 %4819 }
0x2739   :  { %14907 = vst [vmem:[#allocation175_spill] sm:$0xff] %v11748_v13  ;;  %5181 = vrot.lane.b32.xlu1 %v5171_v40, %s14904_s3  ;;  %v5239_v40 = vmul.f32 %v11395_v21, %v14913_v42 }
0x273a   :  { %5215 = vrot.lane.b32.xlu0 %v5205_v53, %s6782_s28 }
0x273b   :  { %v11754_v50 = vpop.permute.xlu1 %4813 }
0x273c   :  { %14909 = vst [vmem:[#allocation120_spill] sm:$0xff] %v11754_v50  ;;  %v11758_v54 = vpop.permute.xlu0 %4823 }
0x273d   :  { %5185 = vrot.lane.b32.xlu1 %v5173_v17, %s14904_s3  ;;  %v14918_v17 = vld [vmem:[#allocation106_spill] sm:$0xff] }
0x273e   :  { %5219 = vrot.lane.b32.xlu0 %v5207_v55, %s6782_s28  ;;  %v5274_v55 = vmul.f32 %v11422_v27, %v14918_v17 }
0x273f   :  { %v11764_v35 = vpop.permute.xlu1 %4817 }
0x2740   :  { %14910 = vst [vmem:[#allocation179_spill] sm:$0xff] %v11764_v35  ;;  %v11768_v4 = vpop.permute.xlu0 %4854 }
0x2741   :  { %14911 = vst [vmem:[#allocation177_spill] sm:$0xff] %v11768_v4  ;;  %5189 = vrot.lane.b32.xlu1 %v5175_v39, %s14904_s3  ;;  %v5241_v39 = vmul.f32 %v11404_v15, %v14913_v42 }
0x2742   :  { %5223 = vrot.lane.b32.xlu0 %v5209_v3, %s6782_s28 }
0x2743   :  { %v11774_v10 = vpop.permute.xlu1 %4821 }
0x2744   :  { %v11778_v7 = vpop.permute.xlu0 %4858 }
0x2745   :  { %14912 = vst [vmem:[#allocation111_spill] sm:$0xff] %v11778_v7  ;;  %5217 = vrot.lane.b32.xlu1 %v5206_v32, %s6782_s28  ;;  %v5276_v32 = vmul.f32 %v11412_v24, %v14918_v17  ;;  %v14927_v7 = vld [vmem:[#allocation119_spill] sm:$0xff] }
0x2746   :  { %5251 = vrot.lane.b32.xlu0 %v5240_v43, %s14914_s4  ;;  %v11812_v43 = vld [vmem:[#allocation2 + $0x30] sm:$0xff] }
0x2747   :  { %v11784_v19 = vpop.permute.xlu1 %4852 }
0x2748   :  { %14915 = vst [vmem:[#allocation178_spill] sm:$0xff] %v11784_v19  ;;  %v11788_v5 = vpop.permute.xlu0 %4862  ;;  %v14935_v19 = vld [vmem:[#allocation122_spill] sm:$0xff] }
0x2749   :  { %5221 = vrot.lane.b32.xlu1 %v5208_v44, %s6782_s28  ;;  %s14928_s28 = smov 72   ;;  %v5377_v4 = vmul.f32 %v11404_v15, %v14935_v19 }
0x274a   :  { %5255 = vrot.lane.b32.xlu0 %v5242_v12, %s14914_s4  ;;  %v5243_v12 = vmul.f32 %v11415_v25, %v14913_v42 }
0x274b   :  { %v11794_v56 = vpop.permute.xlu1 %4856 }
0x274c   :  { %14916 = vst [vmem:[#allocation123_spill] sm:$0xff] %v11794_v56  ;;  %v11798_v53 = vpop.permute.xlu0 %4893  ;;  %v5342_v56 = vmul.f32 %v11422_v27, %v14927_v7 }
0x274d   :  { %14917 = vst [vmem:[#allocation182_spill] sm:$0xff] %v11798_v53  ;;  %5249 = vrot.lane.b32.xlu1 %v5239_v40, %s14914_s4 }
0x274e   :  { %5284 = vrot.lane.b32.xlu0 %v5274_v55, %s14919_s20  ;;  %v5278_v55 = vmul.f32 %v11812_v43, %v14918_v17 }
0x274f   :  { %v11804_v2 = vpop.permute.xlu1 %4860 }
0x2750   :  { %v11808_v3 = vpop.permute.xlu0 %4897 }
0x2751   :  { %14920 = vst [vmem:[#allocation180_spill] sm:$0xff] %v11808_v3  ;;  %5253 = vrot.lane.b32.xlu1 %v5241_v39, %s14914_s4  ;;  %v5275_v39 = vmul.f32 %v11404_v15, %v14918_v17 }
0x2752   :  { %5288 = vrot.lane.b32.xlu0 %v5276_v32, %s14919_s20 }
0x2753   :  { %v11816_v44 = vpop.permute.xlu1 %4891 }
0x2754   :  { %14921 = vst [vmem:[#allocation121_spill] sm:$0xff] %v11816_v44  ;;  %v11820_v40 = vpop.permute.xlu0 %4901  ;;  %v14924_v44 = vld [vmem:[#allocation98_spill] sm:$0xff] }
0x2755   :  { %5257 = vrot.lane.b32.xlu1 %v5243_v12, %s14914_s4  ;;  %v5309_v53 = vmul.f32 %v11404_v15, %v14924_v44  ;;  %v5277_v12 = vmul.f32 %v11415_v25, %v14918_v17 }
0x2756   :  { %5292 = vrot.lane.b32.xlu0 %v5278_v55, %s14919_s20 }
0x2757   :  { %v11826_v3 = vpop.permute.xlu1 %4895 }
0x2758   :  { %14922 = vst [vmem:[#allocation126_spill] sm:$0xff] %v11826_v3  ;;  %v11830_v32 = vpop.permute.xlu0 %4932  ;;  %v5311_v3 = vmul.f32 %v11415_v25, %v14924_v44 }
0x2759   :  { %14923 = vst [vmem:[#allocation185_spill] sm:$0xff] %v11830_v32  ;;  %5286 = vrot.lane.b32.xlu1 %v5275_v39, %s14919_s20  ;;  %v5308_v39 = vmul.f32 %v11422_v27, %v14924_v44 }
0x275a   :  { %5320 = vrot.lane.b32.xlu0 %v5309_v53, %s6779_s25 }
0x275b   :  { %v11836_v42 = vpop.permute.xlu1 %4899 }
0x275c   :  { %v11840_v55 = vpop.permute.xlu0 %4936 }
0x275d   :  { %14925 = vst [vmem:[#allocation181_spill] sm:$0xff] %v11840_v55  ;;  %5290 = vrot.lane.b32.xlu1 %v5277_v12, %s14919_s20  ;;  %v5310_v12 = vmul.f32 %v11412_v24, %v14924_v44  ;;  %v5344_v55 = vmul.f32 %v11412_v24, %v14927_v7 }
0x275e   :  { %5324 = vrot.lane.b32.xlu0 %v5311_v3, %s6779_s25 }
0x275f   :  { %v11846_v32 = vpop.permute.xlu1 %4930 }
0x2760   :  { %14926 = vst [vmem:[#allocation183_spill] sm:$0xff] %v11846_v32  ;;  %v11850_v53 = vpop.permute.xlu0 %4940 }
0x2761   :  { %5318 = vrot.lane.b32.xlu1 %v5308_v39, %s6779_s25  ;;  %v5312_v39 = vmul.f32 %v11812_v43, %v14924_v44 }
0x2762   :  { %5352 = vrot.lane.b32.xlu0 %v5342_v56, %s14928_s28 }
0x2763   :  { %v11856_v17 = vpop.permute.xlu1 %4934 }
0x2764   :  { %14929 = vst [vmem:[#allocation129_spill] sm:$0xff] %v11856_v17  ;;  %v11860_v3 = vpop.permute.xlu0 %4971  ;;  %v5346_v17 = vmul.f32 %v11812_v43, %v14927_v7 }
0x2765   :  { %14930 = vst [vmem:[#allocation188_spill] sm:$0xff] %v11860_v3  ;;  %5322 = vrot.lane.b32.xlu1 %v5310_v12, %s6779_s25  ;;  %v5343_v12 = vmul.f32 %v11404_v15, %v14927_v7 }
0x2766   :  { %5356 = vrot.lane.b32.xlu0 %v5344_v55, %s14928_s28 }
0x2767   :  { %v11866_v32 = vpop.permute.xlu1 %4938 }
0x2768   :  { %14931 = vst [vmem:[#allocation124_spill] sm:$0xff] %v11866_v32  ;;  %v11870_v56 = vpop.permute.xlu0 %4975 }
0x2769   :  { %14932 = vst [vmem:[#allocation184_spill] sm:$0xff] %v11870_v56  ;;  %5326 = vrot.lane.b32.xlu1 %v5312_v39, %s6779_s25  ;;  %v5345_v39 = vmul.f32 %v11415_v25, %v14927_v7  ;;  %v5379_v56 = vmul.f32 %v11415_v25, %v14935_v19  ;;  %s14942_s25 = smov 66  }
0x276a   :  { %5360 = vrot.lane.b32.xlu0 %v5346_v17, %s14928_s28 }
0x276b   :  { %v11876_v3 = vpop.permute.xlu1 %4969 }
0x276c   :  { %14933 = vst [vmem:[#allocation186_spill] sm:$0xff] %v11876_v3  ;;  %v11880_v55 = vpop.permute.xlu0 %4979 }
0x276d   :  { %14934 = vst [vmem:[#allocation132_spill] sm:$0xff] %v11880_v55  ;;  %5354 = vrot.lane.b32.xlu1 %v5343_v12, %s14928_s28  ;;  %v5376_v12 = vmul.f32 %v11422_v27, %v14935_v19 }
0x276e   :  { %5388 = vrot.lane.b32.xlu0 %v5377_v4, %s14936_s5 }
0x276f   :  { %v11886_v44 = vpop.permute.xlu1 %4973 }
0x2770   :  { %14937 = vst [vmem:[#allocation192_spill] sm:$0xff] %v11886_v44  ;;  %v11890_v17 = vpop.permute.xlu0 %5010  ;;  %v14941_v44 = vld [vmem:[#allocation125_spill] sm:$0xff] }
0x2771   :  { %14938 = vst [vmem:[#allocation127_spill] sm:$0xff] %v11890_v17  ;;  %5358 = vrot.lane.b32.xlu1 %v5345_v39, %s14928_s28  ;;  %v5410_v13 = vmul.f32 %v11422_v27, %v14941_v44  ;;  %v5378_v39 = vmul.f32 %v11412_v24, %v14935_v19  ;;  %v5412_v17 = vmul.f32 %v11412_v24, %v14941_v44 }
0x2772   :  { %5392 = vrot.lane.b32.xlu0 %v5379_v56, %s14936_s5 }
0x2773   :  { %v11896_v3 = vpop.permute.xlu1 %4977 }
0x2774   :  { %14939 = vst [vmem:[#allocation189_spill] sm:$0xff] %v11896_v3  ;;  %v11900_v4 = vpop.permute.xlu0 %5014  ;;  %v6688_v3 = vld [vmem:[#allocation2 + $0x18] sm:$0xff] }
0x2775   :  { %14940 = vst [vmem:[#allocation135_spill] sm:$0xff] %v11900_v4  ;;  %5386 = vrot.lane.b32.xlu1 %v5376_v12, %s14936_s5  ;;  %v5380_v12 = vmul.f32 %v11812_v43, %v14935_v19 }
0x2776   :  { %5420 = vrot.lane.b32.xlu0 %v5410_v13, %s14942_s25 }
0x2777   :  { %v11906_v7 = vpop.permute.xlu1 %5008 }
0x2778   :  { %14943 = vst [vmem:[#allocation197_spill] sm:$0xff] %v11906_v7  ;;  %v11910_v56 = vpop.permute.xlu0 %5018  ;;  %v5414_v7 = vmul.f32 %v11812_v43, %v14941_v44 }
0x2779   :  { %14944 = vst [vmem:[#allocation187_spill] sm:$0xff] %v11910_v56  ;;  %5390 = vrot.lane.b32.xlu1 %v5378_v39, %s14936_s5  ;;  %v5411_v39 = vmul.f32 %v11404_v15, %v14941_v44  ;;  %v15038_v56 = vld [vmem:[#allocation240_spill] sm:$0xff] }
0x277a   :  { %5424 = vrot.lane.b32.xlu0 %v5412_v17, %s14942_s25 }
0x277b   :  { %v11916_v4 = vpop.permute.xlu1 %5012 }
0x277c   :  { %14945 = vst [vmem:[#allocation194_spill] sm:$0xff] %v11916_v4  ;;  %v11920_v13 = vpop.permute.xlu0 %5047  ;;  %v14949_v4 = vld [vmem:[#allocation128_spill] sm:$0xff] }
0x277d   :  { %14946 = vst [vmem:[#allocation138_spill] sm:$0xff] %v11920_v13  ;;  %5394 = vrot.lane.b32.xlu1 %v5380_v12, %s14936_s5  ;;  %v5445_v50 = vmul.f32 %v11404_v15, %v14949_v4  ;;  %v5413_v12 = vmul.f32 %v11415_v25, %v14941_v44  ;;  %v5447_v13 = vmul.f32 %v11415_v25, %v14949_v4 }
0x277e   :  { %5428 = vrot.lane.b32.xlu0 %v5414_v7, %s14942_s25 }
0x277f   :  { %v11926_v35 = vpop.permute.xlu1 %5016 }
0x2780   :  { %14947 = vst [vmem:[#allocation200_spill] sm:$0xff] %v11926_v35  ;;  %v11930_v17 = vpop.permute.xlu0 %5051  ;;  %v15035_v35 = vld [vmem:[#allocation234_spill] sm:$0xff] }
0x2781   :  { %14948 = vst [vmem:[#allocation130_spill] sm:$0xff] %v11930_v17  ;;  %5422 = vrot.lane.b32.xlu1 %v5411_v39, %s14942_s25  ;;  %v5444_v39 = vmul.f32 %v11422_v27, %v14949_v4 }
0x2782   :  { %5456 = vrot.lane.b32.xlu0 %v5445_v50, %s14950_s18 }
0x2783   :  { %v11936_v19 = vpop.permute.xlu1 %5045 }
0x2784   :  { %14951 = vst [vmem:[#allocation190_spill] sm:$0xff] %v11936_v19  ;;  %v11940_v7 = vpop.permute.xlu0 %5079  ;;  %v14955_v19 = vld [vmem:[#allocation131_spill] sm:$0xff] }
0x2785   :  { %14952 = vst [vmem:[#allocation198_spill] sm:$0xff] %v11940_v7  ;;  %5426 = vrot.lane.b32.xlu1 %v5413_v12, %s14942_s25  ;;  %v5478_v33 = vmul.f32 %v11422_v27, %v14955_v19  ;;  %v5446_v12 = vmul.f32 %v11412_v24, %v14949_v4  ;;  %v5480_v7 = vmul.f32 %v11412_v24, %v14955_v19 }
0x2786   :  { %5460 = vrot.lane.b32.xlu0 %v5447_v13, %s14950_s18  ;;  %v5448_v27 = vmul.f32 %v11812_v43, %v14949_v4 }
0x2787   :  { %v11946_v17 = vpop.permute.xlu1 %5049 }
0x2788   :  { %14953 = vst [vmem:[#allocation142_spill] sm:$0xff] %v11946_v17  ;;  %v11950_v50 = vpop.permute.xlu0 %5083 }
0x2789   :  { %14954 = vst [vmem:[#allocation203_spill] sm:$0xff] %v11950_v50  ;;  %5454 = vrot.lane.b32.xlu1 %v5444_v39, %s14950_s18  ;;  %v5482_v39 = vmul.f32 %v11812_v43, %v14955_v19 }
0x278a   :  { %5488 = vrot.lane.b32.xlu0 %v5478_v33, %s6804_s15 }
0x278b   :  { %v11956_v44 = vpop.permute.xlu1 %5053 }
0x278c   :  { %14956 = vst [vmem:[#allocation133_spill] sm:$0xff] %v11956_v44  ;;  %v11960_v13 = vpop.permute.xlu0 %5087 }
0x278d   :  { %14957 = vst [vmem:[#allocation201_spill] sm:$0xff] %v11960_v13  ;;  %5458 = vrot.lane.b32.xlu1 %v5446_v12, %s14950_s18  ;;  %v5479_v12 = vmul.f32 %v11404_v15, %v14955_v19 }
0x278e   :  { %5492 = vrot.lane.b32.xlu0 %v5480_v7, %s6804_s15 }
0x278f   :  { %v11966_v50 = vpop.permute.xlu1 %5081 }
0x2790   :  { %14958 = vst [vmem:[#allocation148_spill] sm:$0xff] %v11966_v50  ;;  %v11970_v33 = vpop.permute.xlu0 %5115  ;;  %v14962_v50 = vld [vmem:[#allocation134_spill] sm:$0xff] }
0x2791   :  { %14959 = vst [vmem:[#allocation206_spill] sm:$0xff] %v11970_v33  ;;  %5462 = vrot.lane.b32.xlu1 %v5448_v27, %s14950_s18  ;;  %v5514_v13 = vmul.f32 %v11412_v24, %v14962_v50  ;;  %v5481_v27 = vmul.f32 %v11415_v25, %v14955_v19  ;;  %v5516_v33 = vmul.f32 %v11812_v43, %v14962_v50 }
0x2792   :  { %5496 = vrot.lane.b32.xlu0 %v5482_v39, %s6804_s15 }
0x2793   :  { %v11976_v17 = vpop.permute.xlu1 %5085 }
0x2794   :  { %14960 = vst [vmem:[#allocation196_spill] sm:$0xff] %v11976_v17  ;;  %v11980_v7 = vpop.permute.xlu0 %5119 }
0x2795   :  { %14961 = vst [vmem:[#allocation204_spill] sm:$0xff] %v11980_v7  ;;  %5490 = vrot.lane.b32.xlu1 %v5479_v12, %s6804_s15  ;;  %v5513_v12 = vmul.f32 %v11404_v15, %v14962_v50 }
0x2796   :  { %5525 = vrot.lane.b32.xlu0 %v5514_v13, %s14963_s26 }
0x2797   :  { %v11986_v4 = vpop.permute.xlu1 %5113 }
0x2798   :  { %14964 = vst [vmem:[#allocation154_spill] sm:$0xff] %v11986_v4  ;;  %v11990_v39 = vpop.permute.xlu0 %5147  ;;  %v14968_v4 = vld [vmem:[#allocation137_spill] sm:$0xff] }
0x2799   :  { %14965 = vst [vmem:[#allocation209_spill] sm:$0xff] %v11990_v39  ;;  %5494 = vrot.lane.b32.xlu1 %v5481_v27, %s6804_s15  ;;  %v5547_v17 = vmul.f32 %v11404_v15, %v14968_v4  ;;  %v5515_v27 = vmul.f32 %v11415_v25, %v14962_v50  ;;  %v5549_v39 = vmul.f32 %v11415_v25, %v14968_v4  ;;  %s14977_s15 = smov 98  }
0x279a   :  { %5529 = vrot.lane.b32.xlu0 %v5516_v33, %s14963_s26 }
0x279b   :  { %v11996_v7 = vpop.permute.xlu1 %5117 }
0x279c   :  { %14966 = vst [vmem:[#allocation136_spill] sm:$0xff] %v11996_v7  ;;  %v12000_v13 = vpop.permute.xlu0 %5151  ;;  %v5551_v7 = vmul.f32 %v11395_v21, %v14968_v4 }
0x279d   :  { %14967 = vst [vmem:[#allocation199_spill] sm:$0xff] %v12000_v13  ;;  %5523 = vrot.lane.b32.xlu1 %v5513_v12, %s14963_s26  ;;  %v5517_v12 = vmul.f32 %v11395_v21, %v14962_v50 }
0x279e   :  { %5557 = vrot.lane.b32.xlu0 %v5547_v17, %s14969_s11 }
0x279f   :  { %v12006_v19 = vpop.permute.xlu1 %5121 }
0x27a0   :  { %14970 = vst [vmem:[#allocation207_spill] sm:$0xff] %v12006_v19  ;;  %v12010_v33 = vpop.permute.xlu0 %5155 }
0x27a1   :  { %14971 = vst [vmem:[#allocation163_spill] sm:$0xff] %v12010_v33  ;;  %5527 = vrot.lane.b32.xlu1 %v5515_v27, %s14963_s26  ;;  %v5548_v27 = vmul.f32 %v11412_v24, %v14968_v4 }
0x27a2   :  { %5561 = vrot.lane.b32.xlu0 %v5549_v39, %s14969_s11 }
0x27a3   :  { %v12016_v13 = vpop.permute.xlu1 %5149 }
0x27a4   :  { %14972 = vst [vmem:[#allocation212_spill] sm:$0xff] %v12016_v13  ;;  %v12020_v17 = vpop.permute.xlu0 %5183  ;;  %v14976_v13 = vld [vmem:[#allocation140_spill] sm:$0xff] }
0x27a5   :  { %14973 = vst [vmem:[#allocation139_spill] sm:$0xff] %v12020_v17  ;;  %5531 = vrot.lane.b32.xlu1 %v5517_v12, %s14963_s26  ;;  %v5582_v19 = vmul.f32 %v11412_v24, %v14976_v13  ;;  %v5550_v12 = vmul.f32 %v11812_v43, %v14968_v4  ;;  %v5584_v17 = vmul.f32 %v11812_v43, %v14976_v13 }
0x27a6   :  { %5565 = vrot.lane.b32.xlu0 %v5551_v7, %s14969_s11 }
0x27a7   :  { %v12026_v33 = vpop.permute.xlu1 %5153 }
0x27a8   :  { %14974 = vst [vmem:[#allocation210_spill] sm:$0xff] %v12026_v33  ;;  %v12030_v39 = vpop.permute.xlu0 %5187 }
0x27a9   :  { %14975 = vst [vmem:[#allocation191_spill] sm:$0xff] %v12030_v39  ;;  %5559 = vrot.lane.b32.xlu1 %v5548_v27, %s14969_s11  ;;  %v5581_v27 = vmul.f32 %v11404_v15, %v14976_v13 }
0x27aa   :  { %5593 = vrot.lane.b32.xlu0 %v5582_v19, %s14977_s15 }
0x27ab   :  { %v12036_v50 = vpop.permute.xlu1 %5181 }
0x27ac   :  { %14978 = vst [vmem:[#allocation215_spill] sm:$0xff] %v12036_v50  ;;  %v12040_v7 = vpop.permute.xlu0 %5215  ;;  %v14982_v50 = vld [vmem:[#allocation144_spill] sm:$0xff] }
0x27ad   :  { %14979 = vst [vmem:[#allocation202_spill] sm:$0xff] %v12040_v7  ;;  %5563 = vrot.lane.b32.xlu1 %v5550_v12, %s14969_s11  ;;  %v5615_v33 = vmul.f32 %v11404_v15, %v14982_v50  ;;  %v5583_v12 = vmul.f32 %v11415_v25, %v14976_v13  ;;  %v5617_v7 = vmul.f32 %v11415_v25, %v14982_v50 }
0x27ae   :  { %5597 = vrot.lane.b32.xlu0 %v5584_v17, %s14977_s15 }
0x27af   :  { %v12046_v39 = vpop.permute.xlu1 %5185 }
0x27b0   :  { %14980 = vst [vmem:[#allocation213_spill] sm:$0xff] %v12046_v39  ;;  %v12050_v19 = vpop.permute.xlu0 %5219  ;;  %v5619_v39 = vmul.f32 %v11395_v21, %v14982_v50 }
0x27b1   :  { %14981 = vst [vmem:[#allocation222_spill] sm:$0xff] %v12050_v19  ;;  %5591 = vrot.lane.b32.xlu1 %v5581_v27, %s14977_s15  ;;  %v5585_v27 = vmul.f32 %v11395_v21, %v14976_v13 }
0x27b2   :  { %5625 = vrot.lane.b32.xlu0 %v5615_v33, %s6770_s0 }
0x27b3   :  { %v12056_v4 = vpop.permute.xlu1 %5189 }
0x27b4   :  { %14983 = vst [vmem:[#allocation218_spill] sm:$0xff] %v12056_v4  ;;  %v12060_v17 = vpop.permute.xlu0 %5223 }
0x27b5   :  { %14984 = vst [vmem:[#allocation143_spill] sm:$0xff] %v12060_v17  ;;  %5595 = vrot.lane.b32.xlu1 %v5583_v12, %s14977_s15  ;;  %v5616_v12 = vmul.f32 %v11412_v24, %v14982_v50 }
0x27b6   :  { %5629 = vrot.lane.b32.xlu0 %v5617_v7, %s6770_s0 }
0x27b7   :  { %v12066_v19 = vpop.permute.xlu1 %5217 }
0x27b8   :  { %14985 = vst [vmem:[#allocation205_spill] sm:$0xff] %v12066_v19  ;;  %v12070_v33 = vpop.permute.xlu0 %5251  ;;  %v14989_v19 = vld [vmem:[#allocation150_spill] sm:$0xff] }
0x27b9   :  { %14986 = vst [vmem:[#allocation216_spill] sm:$0xff] %v12070_v33  ;;  %5599 = vrot.lane.b32.xlu1 %v5585_v27, %s14977_s15  ;;  %v5650_v4 = vmul.f32 %v11412_v24, %v14989_v19  ;;  %v5618_v27 = vmul.f32 %v11812_v43, %v14982_v50  ;;  %v5652_v33 = vmul.f32 %v11812_v43, %v14989_v19 }
0x27ba   :  { %5633 = vrot.lane.b32.xlu0 %v5619_v39, %s6770_s0 }
0x27bb   :  { %v12076_v17 = vpop.permute.xlu1 %5221 }
0x27bc   :  { %14987 = vst [vmem:[#allocation226_spill] sm:$0xff] %v12076_v17  ;;  %v12080_v7 = vpop.permute.xlu0 %5255 }
0x27bd   :  { %14988 = vst [vmem:[#allocation225_spill] sm:$0xff] %v12080_v7  ;;  %5627 = vrot.lane.b32.xlu1 %v5616_v12, %s6770_s0  ;;  %v5649_v12 = vmul.f32 %v11404_v15, %v14989_v19 }
0x27be   :  { %5661 = vrot.lane.b32.xlu0 %v5650_v4, %s6799_s13 }
0x27bf   :  { %v12086_v13 = vpop.permute.xlu1 %5249 }
0x27c0   :  { %14990 = vst [vmem:[#allocation149_spill] sm:$0xff] %v12086_v13  ;;  %v12090_v39 = vpop.permute.xlu0 %5284  ;;  %v14994_v13 = vld [vmem:[#allocation156_spill] sm:$0xff] }
0x27c1   :  { %14991 = vst [vmem:[#allocation219_spill] sm:$0xff] %v12090_v39  ;;  %5631 = vrot.lane.b32.xlu1 %v5618_v27, %s6770_s0  ;;  %v5683_v17 = vmul.f32 %v11404_v15, %v14994_v13  ;;  %v5651_v27 = vmul.f32 %v11415_v25, %v14989_v19  ;;  %v5685_v39 = vmul.f32 %v11415_v25, %v14994_v13  ;;  %s15003_s0 = smov 86  }
0x27c2   :  { %5665 = vrot.lane.b32.xlu0 %v5652_v33, %s6799_s13 }
0x27c3   :  { %v12096_v7 = vpop.permute.xlu1 %5253 }
0x27c4   :  { %14992 = vst [vmem:[#allocation229_spill] sm:$0xff] %v12096_v7  ;;  %v12100_v4 = vpop.permute.xlu0 %5288  ;;  %v5687_v7 = vmul.f32 %v11395_v21, %v14994_v13 }
0x27c5   :  { %14993 = vst [vmem:[#allocation246_spill] sm:$0xff] %v12100_v4  ;;  %5659 = vrot.lane.b32.xlu1 %v5649_v12, %s6799_s13  ;;  %v5653_v12 = vmul.f32 %v11395_v21, %v14989_v19 }
0x27c6   :  { %5693 = vrot.lane.b32.xlu0 %v5683_v17, %s14995_s16 }
0x27c7   :  { %v12106_v50 = vpop.permute.xlu1 %5257 }
0x27c8   :  { %14996 = vst [vmem:[#allocation208_spill] sm:$0xff] %v12106_v50  ;;  %v12110_v33 = vpop.permute.xlu0 %5292 }
0x27c9   :  { %14997 = vst [vmem:[#allocation155_spill] sm:$0xff] %v12110_v33  ;;  %5663 = vrot.lane.b32.xlu1 %v5651_v27, %s6799_s13  ;;  %v5684_v27 = vmul.f32 %v11412_v24, %v14994_v13 }
0x27ca   :  { %5697 = vrot.lane.b32.xlu0 %v5685_v39, %s14995_s16 }
0x27cb   :  { %v12116_v4 = vpop.permute.xlu1 %5286 }
0x27cc   :  { %14998 = vst [vmem:[#allocation244_spill] sm:$0xff] %v12116_v4  ;;  %v12120_v17 = vpop.permute.xlu0 %5320  ;;  %v15002_v4 = vld [vmem:[#allocation167_spill] sm:$0xff] }
0x27cd   :  { %14999 = vst [vmem:[#allocation232_spill] sm:$0xff] %v12120_v17  ;;  %5667 = vrot.lane.b32.xlu1 %v5653_v12, %s6799_s13  ;;  %v5718_v50 = vmul.f32 %v11412_v24, %v15002_v4  ;;  %v5686_v12 = vmul.f32 %v11812_v43, %v14994_v13  ;;  %v5720_v17 = vmul.f32 %v11812_v43, %v15002_v4 }
0x27ce   :  { %5701 = vrot.lane.b32.xlu0 %v5687_v7, %s14995_s16 }
0x27cf   :  { %v12126_v33 = vpop.permute.xlu1 %5290 }
0x27d0   :  { %15000 = vst [vmem:[#allocation249_spill] sm:$0xff] %v12126_v33  ;;  %v12130_v39 = vpop.permute.xlu0 %5324 }
0x27d1   :  { %15001 = vst [vmem:[#allocation165_spill] sm:$0xff] %v12130_v39  ;;  %5695 = vrot.lane.b32.xlu1 %v5684_v27, %s14995_s16  ;;  %v5717_v27 = vmul.f32 %v11404_v15, %v15002_v4 }
0x27d2   :  { %5729 = vrot.lane.b32.xlu0 %v5718_v50, %s15003_s0 }
0x27d3   :  { %v12136_v19 = vpop.permute.xlu1 %5318 }
0x27d4   :  { %15004 = vst [vmem:[#allocation247_spill] sm:$0xff] %v12136_v19  ;;  %v12140_v7 = vpop.permute.xlu0 %5352  ;;  %v15008_v19 = vld [vmem:[#allocation195_spill] sm:$0xff] }
0x27d5   :  { %15005 = vst [vmem:[#allocation235_spill] sm:$0xff] %v12140_v7  ;;  %5699 = vrot.lane.b32.xlu1 %v5686_v12, %s14995_s16  ;;  %v5752_v33 = vmul.f32 %v11404_v15, %v15008_v19  ;;  %v5719_v12 = vmul.f32 %v11415_v25, %v15002_v4  ;;  %v5754_v7 = vmul.f32 %v11415_v25, %v15008_v19 }
0x27d6   :  { %5733 = vrot.lane.b32.xlu0 %v5720_v17, %s15003_s0  ;;  %v5721_v15 = vmul.f32 %v11395_v21, %v15002_v4 }
0x27d7   :  { %v12146_v39 = vpop.permute.xlu1 %5322 }
0x27d8   :  { %15006 = vst [vmem:[#allocation252_spill] sm:$0xff] %v12146_v39  ;;  %v12150_v50 = vpop.permute.xlu0 %5356 }
0x27d9   :  { %15007 = vst [vmem:[#allocation211_spill] sm:$0xff] %v12150_v50  ;;  %5727 = vrot.lane.b32.xlu1 %v5717_v27, %s15003_s0  ;;  %v5756_v27 = vmul.f32 %v11395_v21, %v15008_v19 }
0x27da   :  { %5764 = vrot.lane.b32.xlu0 %v5752_v33, %s15009_s6 }
0x27db   :  { %v12156_v13 = vpop.permute.xlu1 %5326 }
0x27dc   :  { %15010 = vst [vmem:[#allocation193_spill] sm:$0xff] %v12156_v13  ;;  %v12160_v17 = vpop.permute.xlu0 %5360 }
0x27dd   :  { %15011 = vst [vmem:[#allocation250_spill] sm:$0xff] %v12160_v17  ;;  %5731 = vrot.lane.b32.xlu1 %v5719_v12, %s15003_s0  ;;  %v5753_v12 = vmul.f32 %v11412_v24, %v15008_v19 }
0x27de   :  { %5768 = vrot.lane.b32.xlu0 %v5754_v7, %s15009_s6 }
0x27df   :  { %v12166_v50 = vpop.permute.xlu1 %5354 }
0x27e0   :  { %15012 = vst [vmem:[#allocation238_spill] sm:$0xff] %v12166_v50  ;;  %v12170_v33 = vpop.permute.xlu0 %5388  ;;  %v15016_v50 = vld [vmem:[#allocation221_spill] sm:$0xff] }
0x27e1   :  { %15013 = vst [vmem:[#allocation214_spill] sm:$0xff] %v12170_v33  ;;  %5735 = vrot.lane.b32.xlu1 %v5721_v15, %s15003_s0  ;;  %v5791_v17 = vmul.f32 %v11412_v24, %v15016_v50  ;;  %v5755_v15 = vmul.f32 %v11812_v43, %v15008_v19 }
0x27e2   :  { %5772 = vrot.lane.b32.xlu0 %v5756_v27, %s15009_s6 }
0x27e3   :  { %v12176_v39 = vpop.permute.xlu1 %5358 }
0x27e4   :  { %15014 = vst [vmem:[#allocation223_spill] sm:$0xff] %v12176_v39  ;;  %v12180_v7 = vpop.permute.xlu0 %5392  ;;  %v5793_v39 = vmul.f32 %v11812_v43, %v15016_v50 }
0x27e5   :  { %15015 = vst [vmem:[#allocation253_spill] sm:$0xff] %v12180_v7  ;;  %5766 = vrot.lane.b32.xlu1 %v5753_v12, %s15009_s6  ;;  %v5792_v12 = vmul.f32 %v11415_v25, %v15016_v50 }
0x27e6   :  { %5801 = vrot.lane.b32.xlu0 %v5791_v17, %s6794_s14  ;;  %v5794_v17 = vmul.f32 %v11395_v21, %v15016_v50  ;;  %v15027_v50 = vld [vmem:[#allocation26_spill] sm:$0xff] }
0x27e7   :  { %v12186_v4 = vpop.permute.xlu1 %5386 }
0x27e8   :  { %15017 = vst [vmem:[#allocation241_spill] sm:$0xff] %v12186_v4  ;;  %v12190_v33 = vpop.permute.xlu0 %5420 }
0x27e9   :  { %15018 = vst [vmem:[#allocation217_spill] sm:$0xff] %v12190_v33  ;;  %5770 = vrot.lane.b32.xlu1 %v5755_v15, %s15009_s6  ;;  %v15023_v15 = vld [vmem:[#allocation228_spill] sm:$0xff] }
0x27ea   :  { %5805 = vrot.lane.b32.xlu0 %v5793_v39, %s6794_s14  ;;  %v5826_v39 = vmul.f32 %v11415_v25, %v15023_v15  ;;  %v4551_v25 = vmul.f32 %v11412_v24, %v15027_v50  ;;  %v5827_v44 = vmul.f32 %v11812_v43, %v15023_v15 }
0x27eb   :  { %v12196_v7 = vpop.permute.xlu1 %5390 }
0x27ec   :  { %15019 = vst [vmem:[#allocation227_spill] sm:$0xff] %v12196_v7  ;;  %v12198_v13 = vpop.permute.xlu0 %5424  ;;  %v4590_v7 = vadd.f32 %v11596_v38, %v4551_v25 }
0x27ed   :  { %15020 = vst [vmem:[#allocation255_spill] sm:$0xff] %v12198_v13  ;;  %5774 = vrot.lane.b32.xlu1 %v5756_v27, %s15009_s6  ;;  %v12218_v27 = vld [vmem:[#allocation2] sm:$0xff] }
0x27ee   :  { %5809 = vrot.lane.b32.xlu0 %v5794_v17, %s6794_s14  ;;  %15026 = vst [vmem:[#allocation233_spill] sm:$0xff] %v12218_v27  ;;  %v5828_v13 = vmul.f32 %v12218_v27, %v15023_v15  ;;  %v12269_v61 = vmul.f32 %v12218_v27, %v15038_v56 }
0x27ef   :  { %v12204_v19 = vpop.permute.xlu1 %5394 }
0x27f0   :  { %15021 = vst [vmem:[#allocation259_spill] sm:$0xff] %v12204_v19  ;;  %v12208_v33 = vpop.permute.xlu0 %5428  ;;  %v4547_v19 = vmul.f32 %v12218_v27, %v15027_v50  ;;  %15039 = vst [vmem:[#allocation248_spill] sm:$0xff] %v12269_v61 }
0x27f1   :  { %15022 = vst [vmem:[#allocation220_spill] sm:$0xff] %v12208_v33  ;;  %5803 = vrot.lane.b32.xlu1 %v5792_v12, %s6794_s14  ;;  %v5825_v12 = vmul.f32 %v11412_v24, %v15023_v15  ;;  %v15036_v15 = vld [vmem:[#allocation237_spill] sm:$0xff] }
0x27f2   :  { %5837 = vrot.lane.b32.xlu0 %v5826_v39, %s6797_s17 }
0x27f3   :  { %v12214_v4 = vpop.permute.xlu1 %5422 }
0x27f4   :  { %15024 = vst [vmem:[#allocation230_spill] sm:$0xff] %v12214_v4  ;;  %v12216_v21 = vpop.permute.xlu0 %5456 }
0x27f5   :  { %15025 = vst [vmem:[#allocation257_spill] sm:$0xff] %v12216_v21  ;;  %5807 = vrot.lane.b32.xlu1 %v5794_v17, %s6794_s14  ;;  %v15030_v21 = vld [vmem:[#allocation231_spill] sm:$0xff]  ;;  %s15031_s14 = smov 121  }
0x27f6   :  { %5841 = vrot.lane.b32.xlu0 %v5828_v13, %s6797_s17  ;;  %v5859_v4 = vmul.f32 %v11412_v24, %v15030_v21  ;;  %v12237_v17 = vld [vmem:[#allocation2 + $0x48] sm:$0xff]  ;;  %v5861_v24 = vmul.f32 %v11812_v43, %v15030_v21  ;;  %v12251_v25 = vmul.f32 %v12218_v27, %v15030_v21 }
0x27f7   :  { %v12226_v33 = vpop.permute.xlu1 %5426  ;;  %15032 = vst [vmem:[#allocation236_spill] sm:$0xff] %v12237_v17  ;;  %v12290_v61 = vmul.f32 %v12237_v17, %v15043_v29 }
0x27f8   :  { %15028 = vst [vmem:[#allocation260_spill] sm:$0xff] %v12226_v33  ;;  %v12230_v39 = vpop.permute.xlu0 %5460 }
0x27f9   :  { %15029 = vst [vmem:[#allocation245_spill] sm:$0xff] %v12230_v39  ;;  %5835 = vrot.lane.b32.xlu1 %v5825_v12, %s6797_s17  ;;  %v4624_v12 = vadd.f32 %v11600_v60, %v4590_v7  ;;  %v12277_v7 = vmul.f32 %v12237_v17, %v15040_v31  ;;  %15047 = vst [vmem:[#allocation278_spill] sm:$0xff] %v12290_v61  ;;  %v12306_v61 = vld [vmem:[#allocation2 + $0x20] sm:$0xff] }
0x27fa   :  { %5869 = vrot.lane.b32.xlu0 %v5859_v4, %s15031_s14  ;;  %v4577_v4 = vsel %vm305_vm15, %v11578_v51, %v11564_v8  ;;  %v12273_v51 = vmul.f32 %v12218_v27, %v15040_v31 }
0x27fb   :  { %v12241_v33 = vpop.permute.xlu1 %5454  ;;  %15042 = vst [vmem:[#allocation269_spill] sm:$0xff] %v12277_v7  ;;  %v4658_v63 = vadd.f32 %v11644_v30, %v4624_v12  ;;  %v4586_v55 = vadd.f32 %v4577_v4, %v4547_v19  ;;  %v4549_v7 = vmul.f32 %v6689_v26, %v15027_v50 }
0x27fc   :  { %15033 = vst [vmem:[#allocation263_spill] sm:$0xff] %v12241_v33  ;;  %v12245_v39 = vpop.permute.xlu0 %5488  ;;  %v12259_v33 = vmul.f32 %v12218_v27, %v15035_v35  ;;  %15041 = vst [vmem:[#allocation242_spill] sm:$0xff] %v12273_v51  ;;  %v4550_v51 = vmul.f32 %v6688_v3, %v15027_v50  ;;  %v12310_v3 = vmul.f32 %v12306_v61, %v15035_v35 }
0x27fd   :  { %15034 = vst [vmem:[#allocation239_spill] sm:$0xff] %v12245_v39  ;;  %v12263_v39 = vmul.f32 %v12218_v27, %v15036_v15  ;;  %5839 = vrot.lane.b32.xlu1 %v5827_v44, %s6797_s17  ;;  %v15045_v44 = vld [vmem:[#allocation265_spill] sm:$0xff]  ;;  %v12316_v50 = vmul.f32 %v11812_v43, %v15035_v35 }
0x27fe   :  { %5873 = vrot.lane.b32.xlu0 %v5861_v24, %s15031_s14  ;;  %v12286_v24 = vmul.f32 %v12218_v27, %v15045_v44 }
0x27ff   :  { %15037 = vst [vmem:[#allocation266_spill] sm:$0xff] %v12263_v39  ;;  %v12282_v39 = vmul.f32 %v12218_v27, %v15043_v29  ;;  %v12294_v12 = vpop.permute.xlu1 %5458 }
0x2800   :  { %15046 = vst [vmem:[#allocation254_spill] sm:$0xff] %v12286_v24  ;;  %15048 = vst [vmem:[#allocation274_spill] sm:$0xff] %v12294_v12  ;;  %v12296_v6 = vpop.permute.xlu0 %5492  ;;  %v12302_v24 = vld [vmem:[#allocation2 + $0x28] sm:$0xff]  ;;  %v4580_v12 = vsel %vm305_vm15, %v11572_v14, %v11596_v38 }
0x2801   :  { %15044 = vst [vmem:[#allocation251_spill] sm:$0xff] %v12282_v39  ;;  %15049 = vst [vmem:[#allocation256_spill] sm:$0xff] %v12296_v6  ;;  %v15050_v39 = vld [vmem:[#allocation268_spill] sm:$0xff]  ;;  %v5860_v17 = vmul.f32 %v12302_v24, %v15030_v21  ;;  %v5894_v26 = vmul.f32 %v12302_v24, %v15035_v35  ;;  %5843 = vrot.lane.b32.xlu1 %v5828_v13, %s6797_s17  ;;  %v5927_v21 = vmul.f32 %v12306_v61, %v15036_v15  ;;  %s15074_s17 = smov 115  }
0x2802   :  { %v12300_v32 = vmul.f32 %v12218_v27, %v15050_v39  ;;  %5877 = vrot.lane.b32.xlu0 %v12251_v25, %s15031_s14  ;;  %v12325_v4 = vmul.f32 %v12302_v24, %v15036_v15  ;;  %v12329_v27 = vmul.f32 %v11812_v43, %v15036_v15  ;;  %v4578_v35 = vsel %vm305_vm15, %v11564_v8, %v11588_v52 }
0x2803   :  { %v4579_v13 = vsel %vm305_vm15, %v11588_v52, %v11572_v14  ;;  %v12340_v6 = vmul.f32 %v12306_v61, %v15038_v56  ;;  %v4611_v15 = vsel %vm15052_vm6, %v11582_v57, %v11606_v48  ;;  %v12348_v39 = vpop.permute.xlu1 %5462  ;;  %v12354_v52 = vmul.f32 %v12302_v24, %v15038_v56  ;;  %vm15057_vm15 = vmmov %vm15052_vm6 }
0x2804   :  { %15051 = vst [vmem:[#allocation224_spill] sm:$0xff] %v12300_v32  ;;  %v4692_v32 = vadd.f32 %v11648_v1, %v4658_v63  ;;  %15053 = vst [vmem:[#allocation258_spill] sm:$0xff] %v12348_v39  ;;  %v12350_v8 = vpop.permute.xlu0 %5496  ;;  %v12358_v63 = vmul.f32 %v11812_v43, %v15038_v56  ;;  %v4612_v14 = vsel %vm15056_vm14, %v11606_v48, %v11590_v62  ;;  %vm15062_vm6 = vcmask 211968  }
0x2805   :  { %15054 = vst [vmem:[#allocation261_spill] sm:$0xff] %v12350_v8  ;;  %v4613_v57 = vsel %vm15057_vm15, %v11590_v62, %v11616_v23  ;;  %v12369_v8 = vmul.f32 %v12306_v61, %v15040_v31  ;;  %v4587_v39 = vadd.f32 %v4578_v35, %v4547_v19  ;;  %v4588_v44 = vadd.f32 %v4579_v13, %v4549_v7  ;;  %vm15063_vm14 = vmmov %vm15059_vm0 }
0x2806   :  { %15055 = vst [vmem:[#allocation264_spill] sm:$0xff] %v12358_v63  ;;  %v4726_v38 = vadd.f32 %v11694_v45, %v4692_v32  ;;  %v4614_v56 = vsel %vm15058_vm3, %v11616_v23, %v11600_v60  ;;  %5871 = vrot.lane.b32.xlu1 %v5860_v17, %s15031_s14  ;;  %5905 = vrot.lane.b32.xlu0 %v5894_v26, %s6826_s27  ;;  %vm15064_vm15 = vcmask 949248   ;;  %vm15065_vm3 = vcmask 187392  }
0x2807   :  { %v4589_v48 = vadd.f32 %v4580_v12, %v4550_v51  ;;  %v4620_v63 = vadd.f32 %v4611_v15, %v4586_v55  ;;  %v4645_v62 = vsel %vm15059_vm0, %v11624_v58, %v11610_v11  ;;  %v4646_v32 = vsel %vm15060_vm4, %v11610_v11, %v11634_v20  ;;  %v12388_v17 = vpop.permute.xlu1 %5490  ;;  %vm15066_vm0 = vmmov %vm15064_vm15 }
0x2808   :  { %v4621_v19 = vadd.f32 %v4612_v14, %v4587_v39  ;;  %v4622_v7 = vadd.f32 %v4613_v57, %v4588_v44  ;;  %v4647_v60 = vsel %vm15061_vm5, %v11634_v20, %v11618_v47  ;;  %v4790_v23 = vsel %vm15062_vm6, %v11744_v41, %v11728_v34  ;;  %v12390_v55 = vpop.permute.xlu0 %5525  ;;  %vm15067_vm4 = vmmov %vm15066_vm0 }
0x2809   :  { %v4623_v51 = vadd.f32 %v4614_v56, %v4589_v48  ;;  %v4648_v58 = vsel %vm15063_vm14, %v11618_v47, %v11644_v30  ;;  %v4679_v11 = vsel %vm15064_vm15, %v11628_v59, %v11654_v18  ;;  %v4760_v39 = vadd.f32 %v11698_v22, %v4726_v38  ;;  %vm15068_vm5 = vmmov %vm15066_vm0 }
0x280a   :  { %v4654_v20 = vadd.f32 %v4645_v62, %v4620_v63  ;;  %v4655_v44 = vadd.f32 %v4646_v32, %v4621_v19  ;;  %v4829_v34 = vsel %vm15065_vm3, %v11774_v10, %v11758_v54  ;;  %5875 = vrot.lane.b32.xlu1 %v12251_v25, %s15031_s14  ;;  %5909 = vrot.lane.b32.xlu0 %v12259_v33, %s6826_s27  ;;  %vm15069_vm6 = vcmask 162816   ;;  %v15079_v32 = vld [vmem:[#allocation109_spill] sm:$0xff] }
0x280b   :  { %v4656_v12 = vadd.f32 %v4647_v60, %v4622_v7  ;;  %v4680_v47 = vsel %vm15066_vm0, %v11654_v18, %v11638_v16  ;;  %v4681_v59 = vsel %vm15067_vm4, %v11638_v16, %v11664_v49  ;;  %v4800_v30 = vadd.f32 %v4790_v23, %v4760_v39  ;;  %v12418_v13 = vpop.permute.xlu1 %5494 }
0x280c   :  { %v4657_v26 = vadd.f32 %v4648_v58, %v4623_v51  ;;  %v4688_v35 = vadd.f32 %v4679_v11, %v4654_v20  ;;  %v4682_v54 = vsel %vm15068_vm5, %v11664_v49, %v11648_v1  ;;  %v4868_v25 = vsel %vm15069_vm6, %v11804_v2, %v11788_v5  ;;  %v12420_v15 = vpop.permute.xlu0 %5529  ;;  %v15085_v51 = vld [vmem:[#allocation189_spill] sm:$0xff]  ;;  %v15088_v11 = vld [vmem:[#allocation110_spill] sm:$0xff]  ;;  %v15090_v20 = vld [vmem:[#allocation108_spill] sm:$0xff] }
0x280d   :  { %vm15070_vm14 = vcmask 924672   ;;  %v4839_v49 = vadd.f32 %v4829_v34, %v4800_v30  ;;  %v4689_v63 = vadd.f32 %v4680_v47, %v4655_v44  ;;  %v4690_v14 = vadd.f32 %v4681_v59, %v4656_v12  ;;  %v15092_v44 = vld [vmem:[#allocation174_spill] sm:$0xff] }
0x280e   :  { %v4713_v18 = vsel %vm15070_vm14, %v11674_v36, %v11658_v37  ;;  %vm15071_vm15 = vmmov %vm15070_vm14  ;;  %vm15073_vm0 = vcmask 138240   ;;  %5903 = vrot.lane.b32.xlu1 %v12310_v3, %s6826_s27  ;;  %5937 = vrot.lane.b32.xlu0 %v5927_v21, %s15074_s17  ;;  %v4691_v36 = vadd.f32 %v4682_v54, %v4657_v26  ;;  %vm15076_vm5 = vcmask 900096   ;;  %v15095_v26 = vld [vmem:[#allocation200_spill] sm:$0xff] }
0x280f   :  { %v4714_v16 = vsel %vm15071_vm15, %v11658_v37, %v11684_v28  ;;  %vm15072_vm3 = vmmov %vm15070_vm14  ;;  %v4907_v5 = vsel %vm15073_vm0, %v11836_v42, %v11820_v40  ;;  %v4878_v57 = vadd.f32 %v4868_v25, %v4839_v49  ;;  %v4722_v38 = vadd.f32 %v4713_v18, %v4688_v35  ;;  %v15077_v40 = vld [vmem:[#allocation124_spill] sm:$0xff]  ;;  %v12446_v3 = vpop.permute.xlu1 %5523  ;;  %v15101_v49 = vld [vmem:[#allocation179_spill] sm:$0xff] }
0x2810   :  { %v4715_v1 = vsel %vm15072_vm3, %v11684_v28, %v11668_v0  ;;  %vm15075_vm4 = vmmov %vm15072_vm3  ;;  %v4747_v28 = vsel %vm15076_vm5, %v11678_v46, %v11704_v9  ;;  %v4723_v56 = vadd.f32 %v4714_v16, %v4689_v63  ;;  %vm15078_vm6 = vcmask 113664   ;;  %v12448_v21 = vpop.permute.xlu0 %5557  ;;  %v15098_v18 = vld [vmem:[#allocation176_spill] sm:$0xff] }
0x2811   :  { %v4716_v37 = vsel %vm15075_vm4, %v11668_v0, %v11694_v45  ;;  %v4724_v48 = vadd.f32 %v4715_v1, %v4690_v14  ;;  %v4946_v62 = vsel %vm15078_vm6, %v15077_v40, %v11850_v53  ;;  %vm15080_vm14 = vmmov %vm15076_vm5  ;;  %v15081_v45 = vld [vmem:[#allocation172_spill] sm:$0xff]  ;;  %v4917_v7 = vadd.f32 %v4907_v5, %v4878_v57  ;;  %v15104_v57 = vld [vmem:[#allocation175_spill] sm:$0xff] }
0x2812   :  { %v4748_v0 = vsel %vm15080_vm14, %v11704_v9, %v15079_v32  ;;  %vm15082_vm15 = vmmov %vm15076_vm5  ;;  %v4725_v60 = vadd.f32 %v4716_v37, %v4691_v36  ;;  %v4756_v23 = vadd.f32 %v4747_v28, %v4722_v38  ;;  %v15084_v53 = vld [vmem:[#allocation132_spill] sm:$0xff]  ;;  %vm15086_vm0 = vcmask 89088   ;;  %5907 = vrot.lane.b32.xlu1 %v12316_v50, %s6826_s27  ;;  %5941 = vrot.lane.b32.xlu0 %v12329_v27, %s15074_s17  ;;  %v15087_v9 = vld [vmem:[#allocation173_spill] sm:$0xff] }
0x2813   :  { %v4749_v46 = vsel %vm15082_vm15, %v15079_v32, %v15081_v45  ;;  %vm15083_vm3 = vmmov %vm15076_vm5  ;;  %v4985_v58 = vsel %vm15086_vm0, %v15085_v51, %v15084_v53  ;;  %vm15089_vm4 = vcmask 211968   ;;  %v4956_v12 = vadd.f32 %v4946_v62, %v4917_v7  ;;  %v15094_v50 = vld [vmem:[#allocation187_spill] sm:$0xff]  ;;  %v12478_v35 = vpop.permute.xlu1 %5527  ;;  %v15099_v16 = vld [vmem:[#allocation120_spill] sm:$0xff] }
0x2814   :  { %v4750_v19 = vsel %vm15083_vm3, %v15081_v45, %v11698_v22  ;;  %v4786_v39 = vsel %vm15089_vm4, %v15088_v11, %v15087_v9  ;;  %vm15091_vm5 = vmmov %vm15089_vm4  ;;  %v4757_v47 = vadd.f32 %v4748_v0, %v4723_v56  ;;  %v4758_v59 = vadd.f32 %v4749_v46, %v4724_v48  ;;  %v12480_v54 = vpop.permute.xlu0 %5561  ;;  %v15103_v28 = vld [vmem:[#allocation266_spill] sm:$0xff]  ;;  %v15107_v56 = vld [vmem:[#allocation177_spill] sm:$0xff] }
0x2815   :  { %v4787_v22 = vsel %vm15091_vm5, %v15087_v9, %v15090_v20  ;;  %vm15093_vm6 = vmmov %vm15089_vm4  ;;  %v4759_v30 = vadd.f32 %v4750_v19, %v4725_v60  ;;  %vm15096_vm14 = vcmask 64512   ;;  %vm15100_vm3 = vcmask 187392   ;;  %v15108_v48 = vld [vmem:[#allocation178_spill] sm:$0xff]  ;;  %v15116_v9 = vld [vmem:[#allocation121_spill] sm:$0xff] }
0x2816   :  { %v4788_v34 = vsel %vm15093_vm6, %v15090_v20, %v15092_v44  ;;  %v5024_v27 = vsel %vm15096_vm14, %v15095_v26, %v15094_v50  ;;  %vm15097_vm15 = vmmov %vm15089_vm4  ;;  %v4825_v1 = vsel %vm15100_vm3, %v15099_v16, %v15098_v18  ;;  %v4995_v14 = vadd.f32 %v4985_v58, %v4956_v12  ;;  %5911 = vrot.lane.b32.xlu1 %v12259_v33, %s6826_s27  ;;  %v15110_v33 = vld [vmem:[#allocation123_spill] sm:$0xff]  ;;  %v15115_v58 = vld [vmem:[#allocation182_spill] sm:$0xff]  ;;  %s15119_s27 = smov 112  }
0x2817   :  { %v4789_v25 = vsel %vm15097_vm15, %v15092_v44, %v11744_v41  ;;  %vm15102_vm0 = vmmov %vm15100_vm3  ;;  %v4796_v5 = vadd.f32 %v4786_v39, %v4756_v23  ;;  %v4797_v36 = vadd.f32 %v4787_v22, %v4757_v47  ;;  %v4798_v37 = vadd.f32 %v4788_v34, %v4758_v59  ;;  %5945 = vrot.lane.b32.xlu0 %v15103_v28, %s15074_s17  ;;  %v12507_v7 = vpop.permute.xlu1 %5531  ;;  %v15112_v23 = vld [vmem:[#allocation111_spill] sm:$0xff]  ;;  %v15118_v39 = vld [vmem:[#allocation133_spill] sm:$0xff] }
0x2818   :  { %v4826_v63 = vsel %vm15102_vm0, %v15098_v18, %v15101_v49  ;;  %vm15105_vm4 = vmmov %vm15102_vm0  ;;  %vm15109_vm6 = vcmask 162816   ;;  %v5034_v32 = vadd.f32 %v5024_v27, %v4995_v14  ;;  %v4799_v0 = vadd.f32 %v4789_v25, %v4759_v30  ;;  %v12509_v60 = vpop.permute.xlu0 %5565  ;;  %v15120_v12 = vld [vmem:[#allocation126_spill] sm:$0xff] }
0x2819   :  { %v4827_v41 = vsel %vm15105_vm4, %v15101_v49, %v15104_v57  ;;  %vm15106_vm5 = vmmov %vm15102_vm0  ;;  %v4864_v62 = vsel %vm15109_vm6, %v15108_v48, %v15107_v56  ;;  %v4835_v45 = vadd.f32 %v4825_v1, %v4796_v5  ;;  %v4836_v46 = vadd.f32 %v4826_v63, %v4797_v36  ;;  %v15125_v49 = vld [vmem:[#allocation185_spill] sm:$0xff]  ;;  %v15126_v63 = vld [vmem:[#allocation183_spill] sm:$0xff] }
0x281a   :  { %v4828_v38 = vsel %vm15106_vm5, %v15104_v57, %v11774_v10  ;;  %vm15111_vm14 = vmmov %vm15109_vm6  ;;  %vm15117_vm0 = vcmask 138240   ;;  %v5068_v20 = vadd.f32 %v15118_v39, %v5034_v32  ;;  %v4837_v22 = vadd.f32 %v4827_v41, %v4798_v37  ;;  %5939 = vrot.lane.b32.xlu1 %v12325_v4, %s15074_s17  ;;  %v15128_v5 = vld [vmem:[#allocation129_spill] sm:$0xff]  ;;  %v15136_v32 = vld [vmem:[#allocation186_spill] sm:$0xff] }
0x281b   :  { %v4865_v19 = vsel %vm15111_vm14, %v15107_v56, %v15110_v33  ;;  %vm15113_vm15 = vmmov %vm15109_vm6  ;;  %v4903_v11 = vsel %vm15117_vm0, %v15116_v9, %v15115_v58  ;;  %v4838_v44 = vadd.f32 %v4828_v38, %v4799_v0  ;;  %v4874_v34 = vadd.f32 %v4864_v62, %v4835_v45  ;;  %5973 = vrot.lane.b32.xlu0 %v12354_v52, %s15119_s27  ;;  %v12537_v52 = vpop.permute.xlu1 %5559  ;;  %v15130_v36 = vld [vmem:[#allocation201_spill] sm:$0xff]  ;;  %v15135_v62 = vld [vmem:[#allocation188_spill] sm:$0xff] }
0x281c   :  { %v4866_v10 = vsel %vm15113_vm15, %v15110_v33, %v15112_v23  ;;  %vm15114_vm3 = vmmov %vm15109_vm6  ;;  %v12533_v30 = vmul.f32 %v12302_v24, %v15040_v31  ;;  %v5998_v50 = vmul.f32 %v11812_v43, %v15040_v31  ;;  %v4875_v27 = vadd.f32 %v4865_v19, %v4836_v46  ;;  %v12539_v16 = vpop.permute.xlu0 %5593  ;;  %v15131_v38 = vld [vmem:[#allocation181_spill] sm:$0xff]  ;;  %v15138_v45 = vld [vmem:[#allocation192_spill] sm:$0xff] }
0x281d   :  { %v4867_v53 = vsel %vm15114_vm3, %v15112_v23, %v11804_v2  ;;  %vm15121_vm4 = vmmov %vm15117_vm0  ;;  %v15122_v2 = vld [vmem:[#allocation180_spill] sm:$0xff]  ;;  %v4876_v4 = vadd.f32 %v4866_v10, %v4837_v22  ;;  %v4913_v18 = vadd.f32 %v4903_v11, %v4874_v34  ;;  %vm15127_vm14 = vcmask 113664   ;;  %v15140_v33 = vld [vmem:[#allocation207_spill] sm:$0xff] }
0x281e   :  { %v4904_v47 = vsel %vm15121_vm4, %v15115_v58, %v15120_v12  ;;  %vm15123_vm5 = vmmov %vm15117_vm0  ;;  %v4877_v25 = vadd.f32 %v4867_v53, %v4838_v44  ;;  %v4942_v14 = vsel %vm15127_vm14, %v15126_v63, %v15125_v49  ;;  %v5102_v37 = vadd.f32 %v15130_v36, %v5068_v20  ;;  %5943 = vrot.lane.b32.xlu1 %v15103_v28, %s15074_s17  ;;  %v15141_v11 = vld [vmem:[#allocation184_spill] sm:$0xff]  ;;  %v15144_v44 = vld [vmem:[#allocation127_spill] sm:$0xff] }
0x281f   :  { %v4905_v59 = vsel %vm15123_vm5, %v15120_v12, %v15122_v2  ;;  %vm15124_vm6 = vmmov %vm15117_vm0  ;;  %v4914_v57 = vadd.f32 %v4904_v47, %v4875_v27  ;;  %vm15137_vm4 = vcmask 89088   ;;  %v4952_v10 = vadd.f32 %v4942_v14, %v4913_v18  ;;  %v12568_v53 = vpop.permute.xlu1 %5563  ;;  %v15145_v34 = vld [vmem:[#allocation197_spill] sm:$0xff]  ;;  %v15148_v27 = vld [vmem:[#allocation194_spill] sm:$0xff] }
0x2820   :  { %v4906_v1 = vsel %vm15124_vm6, %v15122_v2, %v11836_v42  ;;  %vm15129_vm15 = vmmov %vm15127_vm14  ;;  %v4915_v41 = vadd.f32 %v4905_v59, %v4876_v4  ;;  %v15133_v42 = vld [vmem:[#allocation248_spill] sm:$0xff]  ;;  %v4981_v0 = vsel %vm15137_vm4, %v15136_v32, %v15135_v62  ;;  %v5136_v19 = vadd.f32 %v15140_v33, %v5102_v37  ;;  %v12570_v58 = vpop.permute.xlu0 %5597 }
0x2821   :  { %v4943_v31 = vsel %vm15129_vm15, %v15125_v49, %v15128_v5  ;;  %vm15132_vm3 = vmmov %vm15127_vm14  ;;  %5977 = vrot.lane.b32.xlu0 %v15133_v42, %s15119_s27  ;;  %v4916_v23 = vadd.f32 %v4906_v1, %v4877_v25  ;;  %vm15146_vm15 = vcmask 64512   ;;  %v4991_v2 = vadd.f32 %v4981_v0, %v4952_v10  ;;  %v15150_v25 = vld [vmem:[#allocation135_spill] sm:$0xff]  ;;  %v15165_v10 = vld [vmem:[#allocation198_spill] sm:$0xff] }
0x2822   :  { %v4944_v56 = vsel %vm15132_vm3, %v15128_v5, %v15131_v38  ;;  %vm15134_vm0 = vmmov %vm15132_vm3  ;;  %v4953_v28 = vadd.f32 %v4943_v31, %v4914_v57  ;;  %v5020_v12 = vsel %vm15146_vm15, %v15145_v34, %v15144_v44  ;;  %5971 = vrot.lane.b32.xlu1 %v12340_v6, %s15119_s27  ;;  %v15153_v1 = vld [vmem:[#allocation163_spill] sm:$0xff]  ;;  %v15154_v5 = vld [vmem:[#allocation138_spill] sm:$0xff] }
0x2823   :  { %v4945_v48 = vsel %vm15134_vm0, %v15131_v38, %v15077_v40  ;;  %vm15139_vm5 = vmmov %vm15137_vm4  ;;  %v12574_v40 = vmul.f32 %v12306_v61, %v15043_v29  ;;  %v4954_v9 = vadd.f32 %v4944_v56, %v4915_v41  ;;  %v5170_v49 = vadd.f32 %v15153_v1, %v5136_v19  ;;  %v15155_v31 = vld [vmem:[#allocation190_spill] sm:$0xff]  ;;  %v12602_v37 = vpop.permute.xlu1 %5591  ;;  %v15163_v19 = vld [vmem:[#allocation264_spill] sm:$0xff] }
0x2824   :  { %v4982_v46 = vsel %vm15139_vm5, %v15135_v62, %v15138_v45  ;;  %vm15142_vm6 = vmmov %vm15137_vm4  ;;  %v4955_v47 = vadd.f32 %v4945_v48, %v4916_v23  ;;  %v5030_v6 = vadd.f32 %v5020_v12, %v4991_v2  ;;  %vm15156_vm5 = vcmask 424960   ;;  %v12604_v57 = vpop.permute.xlu0 %5625  ;;  %v15157_v41 = vld [vmem:[#allocation142_spill] sm:$0xff]  ;;  %v15164_v23 = vld [vmem:[#allocation148_spill] sm:$0xff] }
0x2825   :  { %v4983_v20 = vsel %vm15142_vm6, %v15138_v45, %v15141_v11  ;;  %vm15143_vm14 = vmmov %vm15137_vm4  ;;  %v4992_v59 = vadd.f32 %v4982_v46, %v4953_v28  ;;  %6008 = vrot.lane.b32.xlu0 %v12369_v8, %s15147_s1  ;;  %v5055_v8 = vsel %vm15156_vm5, %v15155_v31, %v15154_v5  ;;  %v15159_v56 = vld [vmem:[#allocation130_spill] sm:$0xff]  ;;  %v15169_v2 = vld [vmem:[#allocation196_spill] sm:$0xff] }
0x2826   :  { %v4984_v22 = vsel %vm15143_vm14, %v15141_v11, %v15085_v51  ;;  %vm15149_vm3 = vmmov %vm15146_vm15  ;;  %v4993_v63 = vadd.f32 %v4983_v20, %v4954_v9  ;;  %v15162_v62 = vld [vmem:[#allocation218_spill] sm:$0xff]  ;;  %5975 = vrot.lane.b32.xlu1 %v15163_v19, %s15119_s27  ;;  %v15167_v9 = vld [vmem:[#allocation203_spill] sm:$0xff]  ;;  %v12629_v20 = vmul.f32 %v11812_v43, %v15043_v29 }
0x2827   :  { %v5021_v4 = vsel %vm15149_vm3, %v15144_v44, %v15148_v27  ;;  %vm15151_vm0 = vmmov %vm15149_vm3  ;;  %v4994_v14 = vadd.f32 %v4984_v22, %v4955_v47  ;;  %v5204_v32 = vadd.f32 %v15162_v62, %v5170_v49  ;;  %vm15166_vm3 = vcmask 400384   ;;  %v15175_v43 = vld [vmem:[#allocation143_spill] sm:$0xff] }
0x2828   :  { %v5022_v51 = vsel %vm15151_vm0, %v15148_v27, %v15150_v25  ;;  %vm15152_vm4 = vmmov %vm15151_vm0  ;;  %v5031_v0 = vadd.f32 %v5021_v4, %v4992_v59  ;;  %v5089_v28 = vsel %vm15166_vm3, %v15165_v10, %v15164_v23  ;;  %v5064_v22 = vadd.f32 %v5055_v8, %v5030_v6  ;;  %v12633_v47 = vpop.permute.xlu0 %5629  ;;  %v15172_v4 = vld [vmem:[#allocation206_spill] sm:$0xff]  ;;  %v15182_v8 = vld [vmem:[#allocation212_spill] sm:$0xff] }
0x2829   :  { %v5023_v18 = vsel %vm15152_vm4, %v15150_v25, %v15095_v26  ;;  %vm15158_vm6 = vmmov %vm15156_vm5  ;;  %v5032_v45 = vadd.f32 %v5022_v51, %v4993_v63  ;;  %6012 = vrot.lane.b32.xlu0 %v5998_v50, %s15147_s1  ;;  %v12631_v50 = vpop.permute.xlu1 %5595  ;;  %v15173_v25 = vld [vmem:[#allocation154_spill] sm:$0xff]  ;;  %v5238_v51 = vadd.f32 %v15175_v43, %v5204_v32  ;;  %v15176_v63 = vld [vmem:[#allocation136_spill] sm:$0xff] }
0x282a   :  { %v5056_v38 = vsel %vm15158_vm6, %v15154_v5, %v15157_v41  ;;  %vm15160_vm14 = vmmov %vm15156_vm5  ;;  %v5033_v46 = vadd.f32 %v5023_v18, %v4994_v14  ;;  %vm15174_vm6 = vcmask 375808   ;;  %v5098_v18 = vadd.f32 %v5089_v28, %v5064_v22  ;;  %5979 = vrot.lane.b32.xlu1 %v15133_v42, %s15119_s27  ;;  %v15178_v6 = vld [vmem:[#allocation242_spill] sm:$0xff]  ;;  %v15179_v5 = vld [vmem:[#allocation204_spill] sm:$0xff] }
0x282b   :  { %v5057_v26 = vsel %vm15160_vm14, %v15157_v41, %v15159_v56  ;;  %vm15161_vm15 = vmmov %vm15156_vm5  ;;  %v5065_v44 = vadd.f32 %v5056_v38, %v5031_v0  ;;  %v15183_v41 = vld [vmem:[#allocation209_spill] sm:$0xff]  ;;  %v15187_v10 = vld [vmem:[#allocation199_spill] sm:$0xff] }
0x282c   :  { %v5058_v48 = vsel %vm15161_vm15, %v15159_v56, %v15118_v39  ;;  %vm15168_vm0 = vmmov %vm15166_vm3  ;;  %v6036_v39 = vmul.f32 %v12302_v24, %v15043_v29  ;;  %v5066_v34 = vadd.f32 %v5057_v26, %v5032_v45  ;;  %v5123_v29 = vsel %vm15174_vm6, %v15173_v25, %v15172_v4  ;;  %v15185_v56 = vld [vmem:[#allocation208_spill] sm:$0xff]  ;;  %v12664_v45 = vpop.permute.xlu0 %5633  ;;  %v15189_v28 = vld [vmem:[#allocation210_spill] sm:$0xff] }
0x282d   :  { %v5090_v11 = vsel %vm15168_vm0, %v15164_v23, %v15167_v9  ;;  %v5067_v12 = vadd.f32 %v5058_v48, %v5033_v46  ;;  %vm15170_vm4 = vmmov %vm15168_vm0  ;;  %6016 = vrot.lane.b32.xlu0 %v15178_v6, %s15147_s1  ;;  %v5272_v26 = vadd.f32 %v15185_v56, %v5238_v51  ;;  %v5132_v42 = vadd.f32 %v5123_v29, %v5098_v18  ;;  %v12662_v0 = vpop.permute.xlu1 %5599  ;;  %v15186_v46 = vld [vmem:[#allocation265_spill] sm:$0xff]  ;;  %v15197_v25 = vld [vmem:[#allocation191_spill] sm:$0xff] }
0x282e   :  { %v5091_v59 = vsel %vm15170_vm4, %v15167_v9, %v15169_v2  ;;  %vm15171_vm5 = vmmov %vm15168_vm0  ;;  %v5099_v49 = vadd.f32 %v5090_v11, %v5065_v44  ;;  %vm15184_vm0 = vcmask 351232   ;;  %v6074_v19 = vmul.f32 %v12306_v61, %v15186_v46  ;;  %6010 = vrot.lane.b32.xlu1 %v12533_v30, %s15147_s1  ;;  %v15199_v29 = vld [vmem:[#allocation155_spill] sm:$0xff] }
0x282f   :  { %v5092_v27 = vsel %vm15171_vm5, %v15169_v2, %v15130_v36  ;;  %vm15177_vm14 = vmmov %vm15174_vm6  ;;  %v5157_v38 = vsel %vm15184_vm0, %v15183_v41, %v15182_v8  ;;  %v5100_v48 = vadd.f32 %v5091_v59, %v5066_v34  ;;  %v15193_v2 = vld [vmem:[#allocation215_spill] sm:$0xff]  ;;  %v5307_v51 = vadd.f32 %v15199_v29, %v5272_v26 }
0x2830   :  { %v5124_v14 = vsel %vm15177_vm14, %v15172_v4, %v15176_v63  ;;  %vm15180_vm15 = vmmov %vm15174_vm6  ;;  %v5101_v32 = vadd.f32 %v5092_v27, %v5067_v12  ;;  %v5166_v34 = vadd.f32 %v5157_v38, %v5132_v42  ;;  %v15192_v12 = vld [vmem:[#allocation139_spill] sm:$0xff]  ;;  %vm15194_vm14 = vcmask 326656   ;;  %v15195_v27 = vld [vmem:[#allocation213_spill] sm:$0xff] }
0x2831   :  { %v5125_v36 = vsel %vm15180_vm15, %v15176_v63, %v15179_v5  ;;  %vm15181_vm3 = vmmov %vm15174_vm6  ;;  %v5133_v23 = vadd.f32 %v5124_v14, %v5099_v49  ;;  %6049 = vrot.lane.b32.xlu0 %v6036_v39, %s6814_s24  ;;  %v5191_v59 = vsel %vm15194_vm14, %v15193_v2, %v15192_v12  ;;  %v12693_v39 = vpop.permute.xlu1 %5627  ;;  %v12695_v14 = vpop.permute.xlu0 %5661  ;;  %v15206_v38 = vld [vmem:[#allocation226_spill] sm:$0xff] }
0x2832   :  { %v5126_v31 = vsel %vm15181_vm3, %v15179_v5, %v15140_v33  ;;  %vm15188_vm4 = vmmov %vm15184_vm0  ;;  %v5134_v22 = vadd.f32 %v5125_v36, %v5100_v48  ;;  %v15201_v5 = vld [vmem:[#allocation205_spill] sm:$0xff]  ;;  %v15202_v36 = vld [vmem:[#allocation202_spill] sm:$0xff]  ;;  %v5200_v42 = vadd.f32 %v5191_v59, %v5166_v34  ;;  %6014 = vrot.lane.b32.xlu1 %v15178_v6, %s15147_s1 }
0x2833   :  { %v5158_v33 = vsel %vm15188_vm4, %v15182_v8, %v15187_v10  ;;  %vm15190_vm5 = vmmov %vm15184_vm0  ;;  %v5135_v44 = vadd.f32 %v5126_v31, %v5101_v32  ;;  %vm15203_vm4 = vcmask 302080   ;;  %v15204_v8 = vld [vmem:[#allocation222_spill] sm:$0xff]  ;;  %v15208_v48 = vld [vmem:[#allocation193_spill] sm:$0xff] }
0x2834   :  { %v5159_v9 = vsel %vm15190_vm5, %v15187_v10, %v15189_v28  ;;  %vm15191_vm6 = vmmov %vm15184_vm0  ;;  %v5167_v18 = vadd.f32 %v5158_v33, %v5133_v23  ;;  %v5225_v31 = vsel %vm15203_vm4, %v15202_v36, %v15201_v5  ;;  %v5341_v32 = vadd.f32 %v15208_v48, %v5307_v51  ;;  %v15209_v10 = vld [vmem:[#allocation251_spill] sm:$0xff] }
0x2835   :  { %v5160_v11 = vsel %vm15191_vm6, %v15189_v28, %v15153_v1  ;;  %vm15196_vm15 = vmmov %vm15194_vm14  ;;  %v5168_v49 = vadd.f32 %v5159_v9, %v5134_v22  ;;  %6053 = vrot.lane.b32.xlu0 %v15209_v10, %s6814_s24  ;;  %v15211_v28 = vld [vmem:[#allocation225_spill] sm:$0xff]  ;;  %v12719_v22 = vmul.f32 %v12302_v24, %v15186_v46 }
0x2836   :  { %v5192_v4 = vsel %vm15196_vm15, %v15192_v12, %v15195_v27  ;;  %vm15198_vm3 = vmmov %vm15194_vm14  ;;  %v5169_v63 = vadd.f32 %v5160_v11, %v5135_v44  ;;  %v15212_v9 = vld [vmem:[#allocation229_spill] sm:$0xff]  ;;  %vm15213_vm15 = vcmask 277504   ;;  %v12721_v44 = vld [vmem:[#allocation2 + $0x30] sm:$0xff]  ;;  %v5234_v12 = vadd.f32 %v5225_v31, %v5200_v42  ;;  %6047 = vrot.lane.b32.xlu1 %v12574_v40, %s6814_s24 }
0x2837   :  { %v5193_v1 = vsel %vm15198_vm3, %v15195_v27, %v15197_v25  ;;  %vm15200_vm0 = vmmov %vm15198_vm3  ;;  %v5261_v11 = vsel %vm15213_vm15, %v15212_v9, %v15211_v28  ;;  %v6076_v6 = vmul.f32 %v12721_v44, %v15186_v46  ;;  %v12725_v27 = vpop.permute.xlu1 %5631 }
0x2838   :  { %v5194_v30 = vsel %vm15200_vm0, %v15197_v25, %v15162_v62  ;;  %vm15205_vm5 = vmmov %vm15203_vm4  ;;  %v5201_v62 = vadd.f32 %v5192_v4, %v5167_v18  ;;  %v5202_v23 = vadd.f32 %v5193_v1, %v5168_v49  ;;  %v15214_v4 = vld [vmem:[#allocation216_spill] sm:$0xff]  ;;  %v15215_v25 = vld [vmem:[#allocation149_spill] sm:$0xff] }
0x2839   :  { %v5226_v41 = vsel %vm15205_vm5, %v15201_v5, %v15204_v8  ;;  %vm15207_vm6 = vmmov %vm15203_vm4  ;;  %v5203_v34 = vadd.f32 %v5194_v30, %v5169_v63  ;;  %v15218_v18 = vld [vmem:[#allocation249_spill] sm:$0xff]  ;;  %v15219_v49 = vld [vmem:[#allocation246_spill] sm:$0xff]  ;;  %6086 = vrot.lane.b32.xlu0 %v6074_v19, %s6820_s22 }
0x283a   :  { %v5227_v26 = vsel %vm15207_vm6, %v15204_v8, %v15206_v38  ;;  %vm15210_vm14 = vmmov %vm15203_vm4  ;;  %v5235_v2 = vadd.f32 %v5226_v41, %v5201_v62  ;;  %vm15220_vm4 = vcmask 637952   ;;  %v15221_v63 = vld [vmem:[#allocation250_spill] sm:$0xff]  ;;  %v15223_v41 = vld [vmem:[#allocation244_spill] sm:$0xff]  ;;  %6051 = vrot.lane.b32.xlu1 %v12629_v20, %s6814_s24 }
0x283b   :  { %v5228_v33 = vsel %vm15210_vm14, %v15206_v38, %v15175_v43  ;;  %v5236_v59 = vadd.f32 %v5227_v26, %v5202_v23  ;;  %v12727_v43 = vpop.permute.xlu0 %5665  ;;  %vm15216_vm3 = vmmov %vm15213_vm15  ;;  %v5296_v5 = vsel %vm15220_vm4, %v15219_v49, %v15218_v18  ;;  %v5375_v30 = vadd.f32 %v15221_v63, %v5341_v32  ;;  %v15224_v38 = vld [vmem:[#allocation219_spill] sm:$0xff]  ;;  %v15227_v32 = vld [vmem:[#allocation165_spill] sm:$0xff]  ;;  %v12755_v40 = vpop.permute.xlu1 %5659 }
0x283c   :  { %v5259_v1 = vsel %vm15216_vm3, %v15215_v25, %v15214_v4  ;;  %vm15217_vm0 = vmmov %vm15216_vm3  ;;  %v5237_v36 = vadd.f32 %v5228_v33, %v5203_v34  ;;  %v15228_v62 = vld [vmem:[#allocation252_spill] sm:$0xff]  ;;  %vm15229_vm15 = vcmask 613376   ;;  %v15230_v33 = vld [vmem:[#allocation259_spill] sm:$0xff] }
0x283d   :  { %v5260_v51 = vsel %vm15217_vm0, %v15214_v4, %v15212_v9  ;;  %v5270_v31 = vadd.f32 %v5261_v11, %v5236_v59  ;;  %vm15222_vm5 = vmmov %vm15217_vm0  ;;  %v5330_v23 = vsel %vm15229_vm15, %v15228_v62, %v15227_v32  ;;  %v5409_v9 = vadd.f32 %v15230_v33, %v5375_v30  ;;  %v15232_v34 = vld [vmem:[#allocation268_spill] sm:$0xff]  ;;  %v15237_v30 = vld [vmem:[#allocation223_spill] sm:$0xff]  ;;  %6090 = vrot.lane.b32.xlu0 %v6076_v6, %s6820_s22 }
0x283e   :  { %v5262_v8 = vsel %vm15222_vm5, %v15211_v28, %v15185_v56  ;;  %vm15225_vm6 = vmmov %vm15220_vm4  ;;  %v5268_v56 = vadd.f32 %v5259_v1, %v5234_v12  ;;  %v5269_v28 = vadd.f32 %v5260_v51, %v5235_v2  ;;  %v6113_v59 = vmul.f32 %v12306_v61, %v15232_v34  ;;  %v15238_v12 = vld [vmem:[#allocation211_spill] sm:$0xff]  ;;  %6055 = vrot.lane.b32.xlu1 %v15209_v10, %s6814_s24 }
0x283f   :  { %v5294_v26 = vsel %vm15225_vm6, %v15224_v38, %v15223_v41  ;;  %vm15226_vm14 = vmmov %vm15220_vm4  ;;  %v5305_v11 = vadd.f32 %v5296_v5, %v5270_v31  ;;  %v12757_v19 = vpop.permute.xlu0 %5693  ;;  %v5271_v4 = vadd.f32 %v5262_v8, %v5237_v36  ;;  %v15242_v36 = vld [vmem:[#allocation253_spill] sm:$0xff]  ;;  %v15243_v31 = vld [vmem:[#allocation227_spill] sm:$0xff] }
0x2840   :  { %v5295_v42 = vsel %vm15226_vm14, %v15223_v41, %v15219_v49  ;;  %15231 = vst [vmem:[#allocation267_spill] sm:$0xff] %v12757_v19  ;;  %vm15233_vm3 = vmmov %vm15220_vm4  ;;  %v15234_v49 = vld [vmem:[#allocation232_spill] sm:$0xff]  ;;  %v15235_v41 = vld [vmem:[#allocation247_spill] sm:$0xff]  ;;  %vm15239_vm4 = vcmask 588800   ;;  %v5303_v1 = vadd.f32 %v5294_v26, %v5268_v56  ;;  %vm15244_vm14 = vcmask 564224  }
0x2841   :  { %v5297_v25 = vsel %vm15233_vm3, %v15218_v18, %v15199_v29  ;;  %vm15236_vm0 = vmmov %vm15229_vm15  ;;  %v5364_v2 = vsel %vm15239_vm4, %v15238_v12, %v15237_v30  ;;  %v5304_v51 = vadd.f32 %v5295_v42, %v5269_v28  ;;  %v5339_v5 = vadd.f32 %v5330_v23, %v5305_v11  ;;  %v15245_v26 = vld [vmem:[#allocation220_spill] sm:$0xff]  ;;  %v15246_v28 = vld [vmem:[#allocation238_spill] sm:$0xff] }
0x2842   :  { %v5328_v38 = vsel %vm15236_vm0, %v15235_v41, %v15234_v49  ;;  %vm15240_vm5 = vmmov %vm15236_vm0  ;;  %v5398_v8 = vsel %vm15244_vm14, %v15243_v31, %v15242_v36  ;;  %v5443_v42 = vadd.f32 %v15245_v26, %v5409_v9  ;;  %v5306_v23 = vadd.f32 %v5297_v25, %v5271_v4  ;;  %v15247_v20 = vld [vmem:[#allocation235_spill] sm:$0xff]  ;;  %v12786_v41 = vpop.permute.xlu1 %5663  ;;  %v15251_v9 = vld [vmem:[#allocation260_spill] sm:$0xff]  ;;  %6088 = vrot.lane.b32.xlu1 %v12719_v22, %s6820_s22 }
0x2843   :  { %v5329_v29 = vsel %vm15240_vm5, %v15234_v49, %v15228_v62  ;;  %vm15241_vm6 = vmmov %vm15236_vm0  ;;  %v5337_v56 = vadd.f32 %v5328_v38, %v5303_v1  ;;  %v5373_v11 = vadd.f32 %v5364_v2, %v5339_v5  ;;  %v12788_v62 = vpop.permute.xlu0 %5697  ;;  %v15252_v4 = vld [vmem:[#allocation255_spill] sm:$0xff]  ;;  %v15254_v49 = vld [vmem:[#allocation258_spill] sm:$0xff] }
0x2844   :  { %v5331_v18 = vsel %vm15241_vm6, %v15227_v32, %v15208_v48  ;;  %vm15248_vm15 = vmmov %vm15239_vm4  ;;  %v5477_v38 = vadd.f32 %v15254_v49, %v5443_v42  ;;  %v5338_v1 = vadd.f32 %v5329_v29, %v5304_v51  ;;  %vm15259_vm6 = vcmask 515072   ;;  %v15263_v19 = vld [vmem:[#allocation256_spill] sm:$0xff] }
0x2845   :  { %v5362_v6 = vsel %vm15248_vm15, %v15247_v20, %v15246_v28  ;;  %vm15249_vm3 = vmmov %vm15239_vm4  ;;  %vm15253_vm4 = vcmask 539648   ;;  %v5340_v2 = vadd.f32 %v5331_v18, %v5306_v23  ;;  %v5407_v5 = vadd.f32 %v5398_v8, %v5373_v11  ;;  %v15255_v20 = vld [vmem:[#allocation269_spill] sm:$0xff] }
0x2846   :  { %v5363_v48 = vsel %vm15249_vm3, %v15246_v28, %v15238_v12  ;;  %vm15250_vm0 = vmmov %vm15249_vm3  ;;  %v5432_v25 = vsel %vm15253_vm4, %v15252_v4, %v15251_v9  ;;  %6018 = vrot.lane.b32.xlu0 %v15255_v20, %s15147_s1  ;;  %v12812_v42 = vmul.f32 %v12302_v24, %v15232_v34  ;;  %v6115_v51 = vmul.f32 %v12721_v44, %v15232_v34  ;;  %v12816_v23 = vpop.permute.xlu1 %5667 }
0x2847   :  { %v5365_v32 = vsel %vm15250_vm0, %v15237_v30, %v15221_v63  ;;  %vm15256_vm5 = vmmov %vm15244_vm14  ;;  %v15257_v63 = vld [vmem:[#allocation245_spill] sm:$0xff]  ;;  %v15258_v30 = vld [vmem:[#allocation274_spill] sm:$0xff]  ;;  %v5371_v29 = vadd.f32 %v5362_v6, %v5337_v56  ;;  %v5372_v10 = vadd.f32 %v5363_v48, %v5338_v1  ;;  %v5441_v8 = vadd.f32 %v5432_v25, %v5407_v5  ;;  %v12818_v11 = vpop.permute.xlu0 %5701 }
0x2848   :  { %v5399_v12 = vsel %vm15256_vm5, %v15242_v36, %v15230_v33  ;;  %v5466_v28 = vsel %vm15259_vm6, %v15258_v30, %v15257_v63  ;;  %v5374_v18 = vadd.f32 %v5365_v32, %v5340_v2  ;;  %v15260_v33 = vld [vmem:[#allocation214_spill] sm:$0xff]  ;;  %vm15261_vm14 = vmmov %vm15256_vm5  ;;  %vm15264_vm3 = vcmask 490496   ;;  %v15265_v56 = vld [vmem:[#allocation261_spill] sm:$0xff] }
0x2849   :  { %v5397_v36 = vsel %vm15261_vm14, %v15260_v33, %v15243_v31  ;;  %vm15262_vm15 = vmmov %vm15253_vm4  ;;  %v5500_v34 = vsel %vm15264_vm3, %v15263_v19, %v12418_v13  ;;  %v5511_v6 = vadd.f32 %v15265_v56, %v5477_v38  ;;  %v15266_v48 = vld [vmem:[#allocation241_spill] sm:$0xff]  ;;  %v5475_v1 = vadd.f32 %v5466_v28, %v5441_v8  ;;  %v15268_v31 = vld [vmem:[#allocation230_spill] sm:$0xff] }
0x284a   :  { %v5433_v20 = vsel %vm15262_vm15, %v15251_v9, %v15245_v26  ;;  %vm15267_vm0 = vmmov %vm15256_vm5  ;;  %v5408_v25 = vadd.f32 %v5399_v12, %v5374_v18  ;;  %6125 = vrot.lane.b32.xlu0 %v6113_v59, %s6783_s29  ;;  %v5431_v26 = vsel %vm15253_vm4, %v15268_v31, %v15252_v4  ;;  %v5406_v5 = vadd.f32 %v5397_v36, %v5372_v10  ;;  %v12846_v22 = vpop.permute.xlu1 %5695  ;;  %v15271_v18 = vld [vmem:[#allocation271_spill] sm:$0xff] }
0x284b   :  { %v5396_v32 = vsel %vm15267_vm0, %v15266_v48, %v15260_v33  ;;  %vm15269_vm5 = vmmov %vm15259_vm6  ;;  %vm15270_vm6 = vcmask 850944   ;;  %v5546_v2 = vadd.f32 %v12507_v7, %v5511_v6  ;;  %v5509_v28 = vadd.f32 %v5500_v34, %v5475_v1  ;;  %v12848_v59 = vpop.permute.xlu0 %5729  ;;  %v15272_v33 = vld [vmem:[#allocation257_spill] sm:$0xff]  ;;  %v15276_v6 = vld [vmem:[#allocation254_spill] sm:$0xff] }
0x284c   :  { %v5467_v9 = vsel %vm15269_vm5, %v15257_v63, %v15254_v49  ;;  %v5535_v38 = vsel %vm15270_vm6, %v12478_v35, %v12420_v15  ;;  %v5442_v12 = vadd.f32 %v5433_v20, %v5408_v25  ;;  %v6152_v4 = vmul.f32 %v12306_v61, %v15271_v18  ;;  %vm15273_vm14 = vmmov %vm15269_vm5  ;;  %6092 = vrot.lane.b32.xlu1 %v15276_v6, %s6820_s22  ;;  %v15280_v48 = vld [vmem:[#allocation217_spill] sm:$0xff] }
0x284d   :  { %v5405_v8 = vadd.f32 %v5396_v32, %v5371_v29  ;;  %v5465_v49 = vsel %vm15273_vm14, %v15272_v33, %v15258_v30  ;;  %vm15274_vm15 = vmmov %vm15264_vm3  ;;  %vm15275_vm3 = vcmask 826368   ;;  %v5440_v10 = vadd.f32 %v5431_v26, %v5406_v5 }
0x284e   :  { %v5501_v63 = vsel %vm15274_vm15, %v12418_v13, %v15265_v56  ;;  %v5569_v34 = vsel %vm15275_vm3, %v12480_v54, %v12568_v53  ;;  %v5476_v36 = vadd.f32 %v5467_v9, %v5442_v12  ;;  %v5544_v20 = vadd.f32 %v5535_v38, %v5509_v28  ;;  %6129 = vrot.lane.b32.xlu0 %v6115_v51, %s6783_s29  ;;  %vm15277_vm0 = vmmov %vm15274_vm15  ;;  %v5700_v26 = vpop.permute.xlu1 %5699  ;;  %v15285_v12 = vld [vmem:[#allocation278_spill] sm:$0xff] }
0x284f   :  { %v5499_v30 = vsel %vm15277_vm0, %v12388_v17, %v15263_v19  ;;  %vm15278_vm4 = vmmov %vm15270_vm6  ;;  %v5580_v29 = vadd.f32 %v12509_v60, %v5546_v2  ;;  %vm15279_vm5 = vcmask 801792   ;;  %vm15281_vm6 = vcmask 539648   ;;  %v5734_v9 = vpop.permute.xlu0 %5733 }
0x2850   :  { %v5536_v13 = vsel %vm15278_vm4, %v12420_v15, %v12507_v7  ;;  %v5603_v56 = vsel %vm15279_vm5, %v12631_v50, %v12570_v58  ;;  %v5430_v32 = vsel %vm15281_vm6, %v15280_v48, %v15268_v31  ;;  %v5474_v25 = vadd.f32 %v5465_v49, %v5440_v10  ;;  %vm15282_vm14 = vmmov %vm15278_vm4  ;;  %6094 = vrot.lane.b32.xlu1 %v15276_v6, %s6820_s22  ;;  %v15289_v49 = vld [vmem:[#allocation263_spill] sm:$0xff] }
0x2851   :  { %v5510_v51 = vadd.f32 %v5501_v63, %v5476_v36  ;;  %v5578_v1 = vadd.f32 %v5569_v34, %v5544_v20  ;;  %v5534_v19 = vsel %vm15282_vm14, %v12390_v55, %v12478_v35  ;;  %vm15283_vm15 = vmmov %vm15275_vm3  ;;  %v5614_v7 = vadd.f32 %v12662_v0, %v5580_v29 }
0x2852   :  { %v5570_v15 = vsel %vm15283_vm15, %v12568_v53, %v12509_v60  ;;  %vm15284_vm3 = vcmask 777216   ;;  %v5508_v31 = vadd.f32 %v5499_v30, %v5474_v25  ;;  %6057 = vrot.lane.b32.xlu0 %v15285_v12, %s6814_s24  ;;  %v5439_v35 = vadd.f32 %v5430_v32, %v5405_v8  ;;  %vm15286_vm0 = vmmov %vm15283_vm15  ;;  %v12903_v8 = vpop.permute.xlu1 %5727  ;;  %s15294_s24 = smov 16  }
0x2853   :  { %v5637_v38 = vsel %vm15284_vm3, %v12633_v47, %v12725_v27  ;;  %v5545_v2 = vadd.f32 %v5536_v13, %v5510_v51  ;;  %v5612_v5 = vadd.f32 %v5603_v56, %v5578_v1  ;;  %v5568_v60 = vsel %vm15286_vm0, %v12537_v52, %v12480_v54  ;;  %vm15287_vm4 = vmmov %vm15279_vm5  ;;  %v5765_v20 = vpop.permute.xlu0 %5764 }
0x2854   :  { %v5604_v53 = vsel %vm15287_vm4, %v12570_v58, %v12662_v0  ;;  %vm15288_vm5 = vcmask 752640   ;;  %vm15290_vm6 = vcmask 515072   ;;  %v5543_v34 = vadd.f32 %v5534_v19, %v5508_v31  ;;  %vm15291_vm14 = vmmov %vm15287_vm4  ;;  %6127 = vrot.lane.b32.xlu1 %v12812_v42, %s6783_s29 }
0x2855   :  { %v5671_v28 = vsel %vm15288_vm5, %v12786_v41, %v12727_v43  ;;  %v5464_v63 = vsel %vm15290_vm6, %v15289_v49, %v15272_v33  ;;  %v5579_v10 = vadd.f32 %v5570_v15, %v5545_v2  ;;  %v5646_v36 = vadd.f32 %v5637_v38, %v5612_v5  ;;  %vm15292_vm15 = vmmov %vm15284_vm3  ;;  %v15302_v38 = vld [vmem:[#allocation224_spill] sm:$0xff] }
0x2856   :  { %v5602_v54 = vsel %vm15291_vm14, %v12539_v16, %v12631_v50  ;;  %v5638_v58 = vsel %vm15292_vm15, %v12725_v27, %v12664_v45  ;;  %v5648_v0 = vadd.f32 %v12664_v45, %v5614_v7  ;;  %vm15293_vm3 = vcmask 728064   ;;  %6164 = vrot.lane.b32.xlu0 %v6152_v4, %s15294_s24  ;;  %vm15295_vm0 = vmmov %vm15292_vm15  ;;  %v5732_v42 = vpop.permute.xlu1 %5731  ;;  %v15297_v4 = vld [vmem:[#allocation239_spill] sm:$0xff] }
0x2857   :  { %v5705_v6 = vsel %vm15293_vm3, %v12788_v62, %v5700_v26  ;;  %v5577_v33 = vadd.f32 %v5568_v60, %v5543_v34  ;;  %v5613_v30 = vadd.f32 %v5604_v53, %v5579_v10  ;;  %v5680_v13 = vadd.f32 %v5671_v28, %v5646_v36  ;;  %vm15296_vm4 = vmmov %vm15288_vm5  ;;  %v5769_v51 = vpop.permute.xlu0 %5768  ;;  %v15305_v60 = vld [vmem:[#allocation236_spill] sm:$0xff]  ;;  %v15310_v36 = vld [vmem:[#allocation273_spill] sm:$0xff] }
0x2858   :  { %v5636_v50 = vsel %vm15295_vm0, %v12693_v39, %v12633_v47  ;;  %v5672_v27 = vsel %vm15296_vm4, %v12727_v43, %v12816_v23  ;;  %v5682_v45 = vadd.f32 %v12816_v23, %v5648_v0  ;;  %v6154_v29 = vmul.f32 %v12721_v44, %v15271_v18  ;;  %vm15299_vm6 = vmmov %vm15296_vm4  ;;  %6131 = vrot.lane.b32.xlu1 %v15302_v38, %s6783_s29 }
0x2859   :  { %v5473_v56 = vadd.f32 %v5464_v63, %v5439_v35  ;;  %v5611_v48 = vadd.f32 %v5602_v54, %v5577_v33  ;;  %v5647_v32 = vadd.f32 %v5638_v58, %v5613_v30  ;;  %v5714_v25 = vadd.f32 %v5705_v6, %v5680_v13  ;;  %vm15300_vm14 = vmmov %vm15293_vm3 }
0x285a   :  { %vm15298_vm5 = vcmask 490496   ;;  %v5670_v47 = vsel %vm15299_vm6, %v12695_v14, %v12786_v41  ;;  %v5706_v43 = vsel %vm15300_vm14, %v5700_v26, %v12818_v11  ;;  %vm15301_vm15 = vcmask 703488   ;;  %6168 = vrot.lane.b32.xlu0 %v6154_v29, %s15294_s24  ;;  %vm15304_vm0 = vmmov %vm15300_vm14  ;;  %v5736_v12 = vpop.permute.xlu1 %5735 }
0x285b   :  { %v5498_v1 = vsel %vm15298_vm5, %v15297_v4, %v12388_v17  ;;  %v5739_v23 = vsel %vm15301_vm15, %v5732_v42, %v5734_v9  ;;  %v5645_v19 = vadd.f32 %v5636_v50, %v5611_v48  ;;  %v5681_v15 = vadd.f32 %v5672_v27, %v5647_v32  ;;  %v5773_v35 = vpop.permute.xlu0 %5772  ;;  %vm15307_vm5 = vmmov %vm15301_vm15  ;;  %v15314_v50 = vld [vmem:[#allocation233_spill] sm:$0xff] }
0x285c   :  { %v5748_v7 = vadd.f32 %v5739_v23, %v5714_v25  ;;  %vm15303_vm3 = vcmask 850944   ;;  %v5704_v41 = vsel %vm15304_vm0, %v12846_v22, %v12788_v62  ;;  %v5716_v26 = vadd.f32 %v12818_v11, %v5682_v45  ;;  %vm15308_vm6 = vmmov %vm15307_vm5  ;;  %6133 = vrot.lane.b32.xlu1 %v15302_v38, %s6783_s29 }
0x285d   :  { %v5533_v17 = vsel %vm15303_vm3, %v12446_v3, %v12390_v55  ;;  %v5507_v31 = vadd.f32 %v5498_v1, %v5473_v56  ;;  %v5679_v2 = vadd.f32 %v5670_v47, %v5645_v19  ;;  %v5715_v5 = vadd.f32 %v5706_v43, %v5681_v15  ;;  %v15317_v1 = vld [vmem:[#allocation268_spill] sm:$0xff] }
0x285e   :  { %v6079_v53 = vmul.f32 %v15305_v60, %v15186_v46  ;;  %vm15306_vm4 = vcmask 826368   ;;  %v5738_v55 = vsel %vm15307_vm5, %v12848_v59, %v5732_v42  ;;  %v5740_v3 = vsel %vm15308_vm6, %v5734_v9, %v5736_v12 }
0x285f   :  { %v5567_v28 = vsel %vm15306_vm4, %v12448_v21, %v12537_v52  ;;  %v5750_v62 = vadd.f32 %v5736_v12, %v5716_v26  ;;  %v5542_v49 = vadd.f32 %v5533_v17, %v5507_v31  ;;  %v5713_v11 = vadd.f32 %v5704_v41, %v5679_v2  ;;  %v5767_v52 = vpop.permute.xlu1 %5766  ;;  %v5802_v9 = vpop.permute.xlu0 %5801  ;;  %vm15316_vm4 = vmmov %vm15307_vm5 }
0x2860   :  { %v5749_v63 = vadd.f32 %v5740_v3, %v5715_v5  ;;  %6096 = vrot.lane.b32.xlu0 %v6079_v53, %s6820_s22  ;;  %vm15309_vm14 = vcmask 801792   ;;  %v6153_v10 = vmul.f32 %v12302_v24, %v15271_v18  ;;  %v6191_v54 = vmul.f32 %v12306_v61, %v15310_v36 }
0x2861   :  { %v5601_v46 = vsel %vm15309_vm14, %v12602_v37, %v12539_v16  ;;  %v5576_v34 = vadd.f32 %v5567_v28, %v5542_v49  ;;  %v5747_v21 = vadd.f32 %v5738_v55, %v5713_v11  ;;  %vm15311_vm15 = vcmask 777216  }
0x2862   :  { %v5635_v58 = vsel %vm15311_vm15, %v12604_v57, %v12693_v39  ;;  %v5776_v0 = vsel %vm2726_vm12, %v5765_v20, %v5767_v52  ;;  %v5777_v6 = vsel %vm2726_vm12, %v5767_v52, %v5769_v51  ;;  %6166 = vrot.lane.b32.xlu1 %v6153_v10, %s15294_s24  ;;  %vm15313_vm3 = vcmask 752640   ;;  %v15315_v20 = vld [vmem:[#allocation267_spill] sm:$0xff] }
0x2863   :  { %v5610_v33 = vadd.f32 %v5601_v46, %v5576_v34  ;;  %v5787_v16 = vadd.f32 %v5777_v6, %v5747_v21  ;;  %v5669_v37 = vsel %vm15313_vm3, %v12755_v40, %v12695_v14  ;;  %v5771_v13 = vpop.permute.xlu1 %5770  ;;  %v6155_v27 = vmul.f32 %v15314_v50, %v15271_v18  ;;  %v5806_v57 = vpop.permute.xlu0 %5805 }
0x2864   :  { %6203 = vrot.lane.b32.xlu0 %v6191_v54, %s15312_s7  ;;  %v6193_v39 = vmul.f32 %v12721_v44, %v15310_v36  ;;  %v5703_v45 = vsel %vm15304_vm0, %v15315_v20, %v12846_v22  ;;  %v5778_v29 = vsel %vm2726_vm12, %v5769_v51, %v5771_v13  ;;  %v5779_v56 = vsel %vm2726_vm12, %v5771_v13, %v5773_v35 }
0x2865   :  { %v5644_v30 = vadd.f32 %v5635_v58, %v5610_v33  ;;  %v5788_v32 = vadd.f32 %v5778_v29, %v5748_v7  ;;  %v5789_v14 = vadd.f32 %v5779_v56, %v5749_v63  ;;  %v5737_v40 = vsel %vm15316_vm4, %v12903_v8, %v12848_v59  ;;  %v15318_v7 = vld [vmem:[#allocation276_spill] sm:$0xff]  ;;  %v6693_v58 = vld [vmem:[#allocation2] sm:$0xff] }
0x2866   :  { %6170 = vrot.lane.b32.xlu1 %v6155_v27, %s15294_s24  ;;  %v6118_v22 = vmul.f32 %v15305_v60, %v15317_v1  ;;  %v6192_v15 = vmul.f32 %v12302_v24, %v15310_v36  ;;  %v6230_v38 = vmul.f32 %v12306_v61, %v15318_v7  ;;  %v6194_v5 = vmul.f32 %v15314_v50, %v15310_v36 }
0x2867   :  { %v5678_v48 = vadd.f32 %v5669_v37, %v5644_v30  ;;  %v5775_v42 = vpop.permute.xlu1 %5774  ;;  %v5810_v4 = vpop.permute.xlu0 %5809  ;;  %v6157_v49 = vmul.f32 %v15305_v60, %v15271_v18  ;;  %v6231_v46 = vmul.f32 %v12302_v24, %v15318_v7  ;;  %v6196_v21 = vmul.f32 %v15305_v60, %v15310_v36 }
0x2868   :  { %6207 = vrot.lane.b32.xlu0 %v6193_v39, %s15312_s7  ;;  %v5780_v51 = vsel %vm2726_vm12, %v5773_v35, %v5775_v42  ;;  %v6232_v35 = vmul.f32 %v12721_v44, %v15318_v7  ;;  %v6694_v39 = vld [vmem:[#allocation2 + $0x48] sm:$0xff]  ;;  %vm15329_vm3 = vcmask 154624   ;;  %vm15330_vm0 = vcmask 130048  }
0x2869   :  { %v5712_v25 = vadd.f32 %v5703_v45, %v5678_v48  ;;  %v5790_v43 = vadd.f32 %v5780_v51, %v5750_v62  ;;  %v6235_v20 = vmul.f32 %v6694_v39, %v15318_v7  ;;  %vm15331_vm4 = vmmov %vm15329_vm3 }
0x286a   :  { %6172 = vrot.lane.b32.xlu1 %v6155_v27, %s15294_s24 }
0x286b   :  { %v5746_v47 = vadd.f32 %v5737_v40, %v5712_v25  ;;  %v5804_v19 = vpop.permute.xlu1 %5803  ;;  %v5824_v59 = vadd.f32 %v5810_v4, %v5790_v43  ;;  %v5838_v8 = vpop.permute.xlu0 %5837 }
0x286c   :  { %6135 = vrot.lane.b32.xlu0 %v6118_v22, %s6783_s29  ;;  %v5811_v17 = vsel %vm213_vm10, %v5802_v9, %v5804_v19  ;;  %v5812_v41 = vsel %vm213_vm10, %v5804_v19, %v5806_v57  ;;  %s15343_s29 = smov 76  }
0x286d   :  { %v5786_v23 = vadd.f32 %v5776_v0, %v5746_v47  ;;  %v5821_v31 = vadd.f32 %v5812_v41, %v5787_v16  ;;  %v6233_v0 = vmul.f32 %v6693_v58, %v15318_v7 }
0x286e   :  { %6205 = vrot.lane.b32.xlu1 %v6192_v15, %s15312_s7 }
0x286f   :  { %v5820_v26 = vadd.f32 %v5811_v17, %v5786_v23  ;;  %v5808_v2 = vpop.permute.xlu1 %5807  ;;  %v5842_v12 = vpop.permute.xlu0 %5841 }
0x2870   :  { %6242 = vrot.lane.b32.xlu0 %v6230_v38, %s15319_s2  ;;  %v5813_v61 = vsel %vm213_vm10, %v5806_v57, %v5808_v2  ;;  %v5814_v53 = vsel %vm213_vm10, %v5808_v2, %v5810_v4 }
0x2871   :  { %v5822_v28 = vadd.f32 %v5813_v61, %v5788_v32  ;;  %v5823_v55 = vadd.f32 %v5814_v53, %v5789_v14 }
0x2872   :  { %6209 = vrot.lane.b32.xlu1 %v6194_v5, %s15312_s7 }
0x2873   :  { %v5836_v3 = vpop.permute.xlu1 %5835  ;;  %v5870_v62 = vpop.permute.xlu0 %5869 }
0x2874   :  { %6246 = vrot.lane.b32.xlu0 %v6232_v35, %s15319_s2  ;;  %v5845_v11 = vsel %vm351_vm13, %v5836_v3, %v5838_v8 }
0x2875   :  { %v5854_v63 = vadd.f32 %v5845_v11, %v5820_v26 }
0x2876   :  { %6211 = vrot.lane.b32.xlu1 %v6194_v5, %s15312_s7 }
0x2877   :  { %v5840_v44 = vpop.permute.xlu1 %5839  ;;  %v5874_v34 = vpop.permute.xlu0 %5873 }
0x2878   :  { %6174 = vrot.lane.b32.xlu0 %v6157_v49, %s15294_s24  ;;  %v5846_v52 = vsel %vm351_vm13, %v5838_v8, %v5840_v44  ;;  %v5847_v10 = vsel %vm351_vm13, %v5840_v44, %v5842_v12 }
0x2879   :  { %v5855_v18 = vadd.f32 %v5846_v52, %v5821_v31  ;;  %v5856_v9 = vadd.f32 %v5847_v10, %v5822_v28 }
0x287a   :  { %6244 = vrot.lane.b32.xlu1 %v6231_v46, %s15319_s2 }
0x287b   :  { %v5844_v54 = vpop.permute.xlu1 %5843  ;;  %v5878_v6 = vpop.permute.xlu0 %5877 }
0x287c   :  { %6213 = vrot.lane.b32.xlu0 %v6196_v21, %s15312_s7  ;;  %v5848_v24 = vsel %vm351_vm13, %v5842_v12, %v5844_v54  ;;  %v5858_v33 = vadd.f32 %v5844_v54, %v5824_v59 }
0x287d   :  { %v5857_v16 = vadd.f32 %v5848_v24, %v5823_v55 }
0x287e   :  { %6248 = vrot.lane.b32.xlu1 %v6233_v0, %s15319_s2  ;;  %v5892_v60 = vadd.f32 %v5878_v6, %v5858_v33 }
0x287f   :  { %v5872_v36 = vpop.permute.xlu1 %5871  ;;  %v5906_v37 = vpop.permute.xlu0 %5905 }
0x2880   :  { %v5879_v30 = vsel %vm2842_vm1, %v5870_v62, %v5872_v36  ;;  %v5880_v13 = vsel %vm2842_vm1, %v5872_v36, %v5874_v34 }
0x2881   :  { %v5888_v50 = vadd.f32 %v5879_v30, %v5854_v63  ;;  %v5889_v27 = vadd.f32 %v5880_v13, %v5855_v18 }
0x2882   :  { %6250 = vrot.lane.b32.xlu1 %v6233_v0, %s15319_s2 }
0x2883   :  { %v5876_v57 = vpop.permute.xlu1 %5875  ;;  %v5910_v45 = vpop.permute.xlu0 %5909 }
0x2884   :  { %v5881_v29 = vsel %vm2842_vm1, %v5874_v34, %v5876_v57  ;;  %v5882_v56 = vsel %vm2842_vm1, %v5876_v57, %v5878_v6  ;;  %vm15320_vm1 = vcmask 941056  }
0x2885   :  { %v5890_v48 = vadd.f32 %v5881_v29, %v5856_v9  ;;  %v5891_v32 = vadd.f32 %v5882_v56, %v5857_v16  ;;  %vm15321_vm10 = vmmov %vm15320_vm1 }
0x2886   :  { %6252 = vrot.lane.b32.xlu1 %v6235_v20, %s15319_s2  ;;  %vm15322_vm12 = vmmov %vm15320_vm1 }
0x2887   :  { %v5904_v14 = vpop.permute.xlu1 %5903  ;;  %v5938_v40 = vpop.permute.xlu0 %5937  ;;  %vm15323_vm13 = vmmov %vm15320_vm1 }
0x2888   :  { %v5913_v25 = vsel %vm1109_vm7, %v5904_v14, %v5906_v37 }
0x2889   :  { %v5922_v42 = vadd.f32 %v5913_v25, %v5888_v50 }
0x288b   :  { %v5908_v4 = vpop.permute.xlu1 %5907  ;;  %v5942_v1 = vpop.permute.xlu0 %5941 }
0x288c   :  { %v5914_v22 = vsel %vm1109_vm7, %v5906_v37, %v5908_v4  ;;  %v5915_v51 = vsel %vm1109_vm7, %v5908_v4, %v5910_v45 }
0x288d   :  { %v5923_v47 = vadd.f32 %v5914_v22, %v5889_v27  ;;  %v5924_v43 = vadd.f32 %v5915_v51, %v5890_v48 }
0x288f   :  { %v5912_v23 = vpop.permute.xlu1 %5911  ;;  %v5946_v19 = vpop.permute.xlu0 %5945 }
0x2890   :  { %v5916_v15 = vsel %vm1109_vm7, %v5910_v45, %v5912_v23  ;;  %v5926_v59 = vadd.f32 %v5912_v23, %v5892_v60  ;;  %vm15324_vm7 = vcmask 228352  }
0x2891   :  { %v5925_v8 = vadd.f32 %v5916_v15, %v5891_v32  ;;  %vm15325_vm5 = vmmov %vm15324_vm7 }
0x2892   :  { %v5960_v7 = vadd.f32 %v5946_v19, %v5926_v59  ;;  %vm15326_vm6 = vmmov %vm15325_vm5 }
0x2893   :  { %v5940_v38 = vpop.permute.xlu1 %5939  ;;  %v5974_v17 = vpop.permute.xlu0 %5973  ;;  %vm15327_vm14 = vmmov %vm15325_vm5 }
0x2894   :  { %v5947_v41 = vsel %vm15320_vm1, %v5938_v40, %v5940_v38  ;;  %v5948_v26 = vsel %vm15321_vm10, %v5940_v38, %v5942_v1  ;;  %vm15328_vm15 = vmmov %vm15325_vm5  ;;  %vm15332_vm1 = vcmask 105472  }
0x2895   :  { %v5956_v31 = vadd.f32 %v5947_v41, %v5922_v42  ;;  %v5957_v2 = vadd.f32 %v5948_v26, %v5923_v47  ;;  %vm15333_vm10 = vmmov %vm15330_vm0 }
0x2897   :  { %v5944_v5 = vpop.permute.xlu1 %5943  ;;  %v5978_v12 = vpop.permute.xlu0 %5977 }
0x2898   :  { %v5949_v35 = vsel %vm15322_vm12, %v5942_v1, %v5944_v5  ;;  %v5950_v61 = vsel %vm15323_vm13, %v5944_v5, %v5946_v19  ;;  %vm15334_vm12 = vmmov %vm15332_vm1  ;;  %vm15335_vm13 = vcmask 80896  }
0x2899   :  { %v5958_v53 = vadd.f32 %v5949_v35, %v5924_v43  ;;  %v5959_v28 = vadd.f32 %v5950_v61, %v5925_v8 }
0x289b   :  { %v5972_v55 = vpop.permute.xlu1 %5971  ;;  %v6009_v3 = vpop.permute.xlu0 %6008 }
0x289c   :  { %v5981_v62 = vsel %vm2958_vm2, %v5972_v55, %v5974_v17 }
0x289d   :  { %v5990_v49 = vadd.f32 %v5981_v62, %v5956_v31 }
0x289f   :  { %v5976_v11 = vpop.permute.xlu1 %5975  ;;  %v6013_v63 = vpop.permute.xlu0 %6012 }
0x28a0   :  { %v5982_v44 = vsel %vm2958_vm2, %v5974_v17, %v5976_v11  ;;  %v5983_v46 = vsel %vm2958_vm2, %v5976_v11, %v5978_v12 }
0x28a1   :  { %v5991_v34 = vadd.f32 %v5982_v44, %v5957_v2  ;;  %v5992_v21 = vadd.f32 %v5983_v46, %v5958_v53 }
0x28a3   :  { %v5980_v52 = vpop.permute.xlu1 %5979  ;;  %v6017_v10 = vpop.permute.xlu0 %6016 }
0x28a4   :  { %v5984_v18 = vsel %vm2958_vm2, %v5978_v12, %v5980_v52  ;;  %v5994_v9 = vadd.f32 %v5980_v52, %v5960_v7 }
0x28a5   :  { %v5993_v54 = vadd.f32 %v5984_v18, %v5959_v28 }
0x28a7   :  { %v6011_v58 = vpop.permute.xlu1 %6010  ;;  %v13043_v0 = vpop.permute.xlu0 %6049 }
0x28a8   :  { %v6021_v6 = vsel %vm15324_vm7, %v6011_v58, %v6013_v63  ;;  %v6020_v38 = vsel %vm15327_vm14, %v6009_v3, %v6011_v58  ;;  %vm15336_vm7 = vmmov %vm15329_vm3 }
0x28a9   :  { %v13046_v24 = vadd.f32 %v6021_v6, %v5991_v34  ;;  %v6030_v26 = vadd.f32 %v6020_v38, %v5990_v49  ;;  %vm15340_vm14 = vmmov %vm15332_vm1 }
0x28ab   :  { %v6015_v33 = vpop.permute.xlu1 %6014  ;;  %v6054_v16 = vpop.permute.xlu0 %6053 }
0x28ac   :  { %v6023_v60 = vsel %vm15325_vm5, %v6015_v33, %v6017_v10  ;;  %v6022_v31 = vsel %vm15328_vm15, %v6013_v63, %v6015_v33  ;;  %vm15337_vm5 = vmmov %vm15335_vm13 }
0x28ad   :  { %v13049_v36 = vadd.f32 %v6023_v60, %v5993_v54  ;;  %v6032_v28 = vadd.f32 %v6022_v31, %v5992_v21  ;;  %vm15342_vm15 = vmmov %vm15337_vm5 }
0x28af   :  { %v6048_v37 = vpop.permute.xlu1 %6047  ;;  %v6087_v30 = vpop.permute.xlu0 %6086 }
0x28b0   :  { %v6059_v41 = vsel %vm844_vm11, %v6048_v37, %v13043_v0 }
0x28b1   :  { %v6069_v5 = vadd.f32 %v6059_v41, %v6030_v26 }
0x28b3   :  { %v13051_v13 = vpop.permute.xlu1 %6051  ;;  %v13053_v50 = vpop.permute.xlu0 %6090 }
0x28b4   :  { %v6061_v61 = vsel %vm844_vm11, %v13051_v13, %v6054_v16 }
0x28b5   :  { %v6071_v49 = vadd.f32 %v6061_v61, %v6032_v28 }
0x28b7   :  { %v6056_v27 = vpop.permute.xlu1 %6055 }
0x28b8   :  { %v6019_v57 = vpop.permute.xlu0 %6018  ;;  %v6062_v58 = vsel %vm844_vm11, %v6054_v16, %v6056_v27  ;;  %v6060_v16 = vsel %vm844_vm11, %v13043_v0, %v13051_v13 }
0x28b9   :  { %v6024_v39 = vsel %vm15326_vm6, %v6017_v10, %v6019_v57  ;;  %v6072_v57 = vadd.f32 %v6062_v58, %v13049_v36  ;;  %vm15338_vm6 = vmmov %vm15330_vm0 }
0x28ba   :  { %v6034_v20 = vadd.f32 %v6024_v39, %v5994_v9 }
0x28bb   :  { %v13056_v45 = vpop.permute.xlu1 %6088 }
0x28bc   :  { %v6126_v29 = vpop.permute.xlu0 %6125  ;;  %v6098_v2 = vsel %vm65_vm9, %v6087_v30, %v13056_v45  ;;  %v6099_v36 = vsel %vm65_vm9, %v13056_v45, %v13053_v50 }
0x28bd   :  { %v6108_v55 = vadd.f32 %v6098_v2, %v6069_v5 }
0x28bf   :  { %v6093_v56 = vpop.permute.xlu1 %6092 }
0x28c0   :  { %v13058_v48 = vpop.permute.xlu0 %6129  ;;  %v6100_v3 = vsel %vm65_vm9, %v13053_v50, %v6093_v56 }
0x28c1   :  { %v6110_v34 = vadd.f32 %v6100_v3, %v6071_v49 }
0x28c3   :  { %v6095_v32 = vpop.permute.xlu1 %6094 }
0x28c4   :  { %v6058_v14 = vpop.permute.xlu0 %6057  ;;  %v6101_v30 = vsel %vm65_vm9, %v6093_v56, %v6095_v32 }
0x28c5   :  { %v6063_v40 = vsel %vm844_vm11, %v6056_v27, %v6058_v14  ;;  %vm15339_vm11 = vmmov %vm15329_vm3 }
0x28c6   :  { %v6073_v25 = vadd.f32 %v6063_v40, %v6034_v20  ;;  %v6111_v40 = vadd.f32 %v6101_v30, %v6072_v57 }
0x28c7   :  { %v13061_v42 = vpop.permute.xlu1 %6127 }
0x28c8   :  { %v6165_v4 = vpop.permute.xlu0 %6164  ;;  %v6137_v53 = vsel %vm15329_vm3, %v6126_v29, %v13061_v42  ;;  %v6138_v0 = vsel %vm15339_vm11, %v13061_v42, %v13058_v48  ;;  %vm15344_vm3 = vmmov %vm15332_vm1 }
0x28c9   :  { %v6147_v11 = vadd.f32 %v6137_v53, %v6108_v55 }
0x28cb   :  { %v6132_v1 = vpop.permute.xlu1 %6131 }
0x28cc   :  { %v13063_v22 = vpop.permute.xlu0 %6168  ;;  %v6139_v44 = vsel %vm15331_vm4, %v13058_v48, %v6132_v1 }
0x28cd   :  { %v6149_v18 = vadd.f32 %v6139_v44, %v6110_v34 }
0x28cf   :  { %v13065_v51 = vpop.permute.xlu1 %6133 }
0x28d0   :  { %v6140_v27 = vsel %vm15336_vm7, %v6132_v1, %v13065_v51  ;;  %vm15352_vm7 = vcmask 261120  }
0x28d1   :  { %vm15355_vm11 = vmmov %vm15352_vm7 }
0x28d2   :  { %v6097_v47 = vpop.permute.xlu0 %6096 }
0x28d3   :  { %v6102_v43 = vsel %vm65_vm9, %v6095_v32, %v6097_v47  ;;  %v6070_v32 = vadd.f32 %v6060_v16, %v13046_v24  ;;  %vm15341_vm9 = vmmov %vm15330_vm0 }
0x28d4   :  { %v13068_v23 = vadd.f32 %v6102_v43, %v6073_v25  ;;  %v6167_v19 = vpop.permute.xlu1 %6166 }
0x28d5   :  { %v6176_v62 = vsel %vm15330_vm0, %v6165_v4, %v6167_v19  ;;  %v6150_v4 = vadd.f32 %v6140_v27, %v6111_v40  ;;  %v6109_v1 = vadd.f32 %v6099_v36, %v6070_v32  ;;  %v6177_v45 = vsel %vm15341_vm9, %v6167_v19, %v13063_v22  ;;  %vm15345_vm0 = vmmov %vm15337_vm5  ;;  %v15365_v32 = vld [vmem:[#allocation114_spill] sm:$0xff] }
0x28d6   :  { %v6204_v59 = vpop.permute.xlu0 %6203  ;;  %v6186_v52 = vadd.f32 %v6176_v62, %v6147_v11 }
0x28d7   :  { %v6148_v43 = vadd.f32 %v6138_v0, %v6109_v1 }
0x28d8   :  { %v6171_v15 = vpop.permute.xlu1 %6170 }
0x28d9   :  { %v6178_v21 = vsel %vm15333_vm10, %v13063_v22, %v6171_v15  ;;  %v6187_v48 = vadd.f32 %v6177_v45, %v6148_v43  ;;  %vm15349_vm10 = vmmov %vm15344_vm3  ;;  %v15368_v43 = vld [vmem:[#allocation63_spill] sm:$0xff] }
0x28da   :  { %v6208_v7 = vpop.permute.xlu0 %6207  ;;  %v6188_v60 = vadd.f32 %v6178_v21, %v6149_v18 }
0x28dc   :  { %v13070_v8 = vpop.permute.xlu1 %6172 }
0x28dd   :  { %v6179_v56 = vsel %vm15338_vm6, %v6171_v15, %v13070_v8 }
0x28de   :  { %v13078_v35 = vpop.permute.xlu0 %6135  ;;  %v6189_v50 = vadd.f32 %v6179_v56, %v6150_v4 }
0x28e0   :  { %v6206_v17 = vpop.permute.xlu1 %6205 }
0x28e1   :  { %v6215_v46 = vsel %vm15332_vm1, %v6204_v59, %v6206_v17  ;;  %v6216_v59 = vsel %vm15344_vm3, %v6206_v17, %v6208_v7  ;;  %vm15348_vm1 = vmmov %vm15338_vm6  ;;  %vm15359_vm3 = vcmask 654336  }
0x28e2   :  { %v6243_v10 = vpop.permute.xlu0 %6242  ;;  %v6225_v9 = vadd.f32 %v6215_v46, %v6186_v52  ;;  %v6226_v41 = vadd.f32 %v6216_v59, %v6187_v48  ;;  %vm15354_vm6 = vmmov %vm15348_vm1  ;;  %v15369_v59 = vld [vmem:[#allocation75_spill] sm:$0xff] }
0x28e4   :  { %v6210_v12 = vpop.permute.xlu1 %6209 }
0x28e5   :  { %v6217_v6 = vsel %vm15334_vm12, %v6208_v7, %v6210_v12  ;;  %v6141_v7 = vsel %vm15331_vm4, %v13065_v51, %v13078_v35  ;;  %vm15350_vm12 = vmmov %vm15345_vm0  ;;  %vm15361_vm4 = vcmask 785408  }
0x28e6   :  { %v6227_v39 = vadd.f32 %v6217_v6, %v6188_v60  ;;  %v6247_v20 = vpop.permute.xlu0 %6246  ;;  %v6151_v31 = vadd.f32 %v6141_v7, %v13068_v23 }
0x28e8   :  { %v13087_v63 = vpop.permute.xlu1 %6211 }
0x28e9   :  { %v6218_v13 = vsel %vm15340_vm14, %v6210_v12, %v13087_v63  ;;  %vm15356_vm14 = vcmask 523264  }
0x28ea   :  { %v6228_v15 = vadd.f32 %v6218_v13, %v6189_v50  ;;  %v6175_v19 = vpop.permute.xlu0 %6174  ;;  %v15367_v13 = vld [vmem:[#allocation116_spill] sm:$0xff] }
0x28eb   :  { %v6180_v26 = vsel %vm15348_vm1, %v13070_v8, %v6175_v19 }
0x28ec   :  { %v6245_v54 = vpop.permute.xlu1 %6244  ;;  %v6190_v12 = vadd.f32 %v6180_v26, %v6151_v31  ;;  %v15372_v31 = vld [vmem:[#allocation118_spill] sm:$0xff] }
0x28ed   :  { %v6254_v33 = vsel %vm15335_vm13, %v6243_v10, %v6245_v54  ;;  %v6255_v38 = vsel %vm15345_vm0, %v6245_v54, %v6247_v20  ;;  %vm15351_vm13 = vmmov %vm15348_vm1  ;;  %vm15363_vm1 = vcmask 932864  }
0x28ee   :  { %v13097_v37 = vadd.f32 %v6254_v33, %v6225_v9  ;;  %v6265_v22 = vadd.f32 %v6255_v38, %v6226_v41  ;;  %v6214_v17 = vpop.permute.xlu0 %6213  ;;  %vm15360_vm0 = vmmov %vm15359_vm3 }
0x28ef   :  { %v6219_v5 = vsel %vm15349_vm10, %v13087_v63, %v6214_v17  ;;  %v15371_v17 = vld [vmem:[#allocation41_spill] sm:$0xff] }
0x28f0   :  { %v6249_v29 = vpop.permute.xlu1 %6248  ;;  %6270 = vrot.lane.b32.xlu0 %v13097_v37, %s6832_s23  ;;  %v6229_v53 = vadd.f32 %v6219_v5, %v6190_v12 }
0x28f1   :  { %v6256_v14 = vsel %vm15337_vm5, %v6247_v20, %v6249_v29  ;;  %vm15353_vm5 = vcmask 392192  }
0x28f2   :  { %v6266_v25 = vadd.f32 %v6256_v14, %v6227_v39  ;;  %vm15357_vm9 = vmmov %vm15353_vm5 }
0x28f4   :  { %v6251_v47 = vpop.permute.xlu1 %6250  ;;  %6296 = vrot.lane.b32.xlu0 %v6266_v25, %s6798_s12  ;;  %6293 = vrot.lane.b32.xlu1 %v6266_v25, %s15119_s27  ;;  %s15346_s12 = smov 74  }
0x28f5   :  { %v6257_v24 = vsel %vm15342_vm15, %v6249_v29, %v6251_v47  ;;  %vm15358_vm15 = vmmov %vm15356_vm14 }
0x28f6   :  { %v6267_v42 = vadd.f32 %v6257_v24, %v6228_v15 }
0x28f8   :  { %6299 = vrot.lane.b32.xlu0 %v6266_v25, %s15343_s29  ;;  %6273 = vrot.lane.b32.xlu1 %v13097_v37, %s6799_s13  ;;  %s15347_s13 = smov 38   ;;  %v6253_v2 = vpop.permute.xlu1 %6252 }
0x28f9   :  { %v6258_v61 = vsel %vm15350_vm12, %v6251_v47, %v6253_v2  ;;  %v15366_v47 = vld [vmem:[#allocation115_spill] sm:$0xff] }
0x28fa   :  { %v6268_v51 = vadd.f32 %v6258_v61, %v6229_v53 }
0x28fc   :  { %6305 = vrot.lane.b32.xlu0 %v6267_v42, %s6807_s30  ;;  %6303 = vrot.lane.b32.xlu1 %v6266_v25, %s6807_s30  ;;  %v15364_v25 = vld [vmem:[#allocation39_spill] sm:$0xff]  ;;  %s6890_s30 = smov [#allocation8]  }
0x2900   :  { %6276 = vrot.lane.b32.xlu1 %v13097_v37, %s15346_s12  ;;  %6280 = vrot.lane.b32.xlu0 %v6265_v22, %s6810_s10 }
0x2904   :  { %6309 = vrot.lane.b32.xlu1 %v6267_v42, %s14904_s3  ;;  %6283 = vrot.lane.b32.xlu0 %v6265_v22, %s15347_s13 }
0x2908   :  { %6312 = vrot.lane.b32.xlu1 %v6267_v42, %s6820_s22  ;;  %6286 = vrot.lane.b32.xlu0 %v6265_v22, %s6833_s21 }
0x290c   :  { %6315 = vrot.lane.b32.xlu1 %v6267_v42, %s6889_s9  ;;  %6319 = vrot.lane.b32.xlu0 %v6267_v42, %s6888_s19  ;;  %v15370_v42 = vld [vmem:[#allocation117_spill] sm:$0xff]  ;;  %s6449_s9 = sshll.u32 %s6890_s30, 4  ;;  %s6450_s9 = int_to_ptr.vmem [resolvable:$true] %s6449_s9 }
0x290d   :  { %s6737_s22 = scalar_lea.vmem %s6450_s9, 512  ;;  %p6742_p11 = scmp.lt.s32.totalorder %s6450_s9, %s6450_s9 }
0x290e   :  { %p6738_p10 = scmp.ne.s32.totalorder %s6450_s9, %s6737_s22  ;;  %p6743_p12 = scmp.lt.s32.totalorder %s6737_s22, %s6737_s22 }
0x2910   :  { %6289 = vrot.lane.b32.xlu0 %v6265_v22, %s15009_s6  ;;  %6321 = vrot.lane.b32.xlu1 %v6268_v51, %s6888_s19  ;;  %v15373_v51 = vld [vmem:[#allocation76_spill] sm:$0xff]  ;;  %p6744_p13 = por %p6743_p12, %p6742_p11 }
0x2912   :  { %p6745_p0 = pnand %p6744_p13, %p6738_p10 }
0x2962   :  { %v6271_v23 = vpop.permute.xlu0 %6270 }
0x2963   :  { %v6325_v52 = vsel %vm15351_vm13, %v13097_v37, %v6271_v23 }
0x2966   :  { %v6294_v8 = vpop.permute.xlu1 %6293  ;;  %v6297_v35 = vpop.permute.xlu0 %6296 }
0x2967   :  { %v6332_v9 = vsel %vm15354_vm6, %v6294_v8, %v6297_v35  ;;  %v15374_v8 = vld [vmem:[#allocation77_spill] sm:$0xff] }
0x296a   :  { %v6274_v28 = vpop.permute.xlu1 %6273  ;;  %v6300_v55 = vpop.permute.xlu0 %6299 }
0x296b   :  { %v6326_v10 = vsel %vm15352_vm7, %v6325_v52, %v6274_v28  ;;  %v6333_v6 = vsel %vm15355_vm11, %v6332_v9, %v6300_v55  ;;  %v15378_v9 = vld [vmem:[#allocation78_spill] sm:$0xff] }
0x296e   :  { %v6304_v3 = vpop.permute.xlu1 %6303  ;;  %v6306_v62 = vpop.permute.xlu0 %6305 }
0x296f   :  { %v6307_v21 = vsel %vm680_vm8, %v6304_v3, %v6306_v62  ;;  %vm15362_vm8 = vmmov %vm15361_vm4 }
0x2970   :  { %v6334_v60 = vsel %vm15357_vm9, %v6333_v6, %v6307_v21  ;;  %v15377_v21 = vld [vmem:[#allocation44_spill] sm:$0xff] }
0x2972   :  { %v6277_v49 = vpop.permute.xlu1 %6276  ;;  %v6281_v11 = vpop.permute.xlu0 %6280 }
0x2973   :  { %v6327_v18 = vsel %vm15353_vm5, %v6326_v10, %v6277_v49  ;;  %v15375_v49 = vld [vmem:[#allocation67_spill] sm:$0xff] }
0x2974   :  { %v6328_v33 = vsel %vm15356_vm14, %v6327_v18, %v6281_v11 }
0x2976   :  { %v6310_v63 = vpop.permute.xlu1 %6309  ;;  %v6284_v44 = vpop.permute.xlu0 %6283 }
0x2977   :  { %v6335_v30 = vsel %vm15358_vm15, %v6334_v60, %v6310_v63  ;;  %v6329_v37 = vsel %vm15359_vm3, %v6328_v33, %v6284_v44  ;;  %v15376_v63 = vld [vmem:[#allocation42_spill] sm:$0xff] }
0x297a   :  { %v6313_v46 = vpop.permute.xlu1 %6312  ;;  %v6287_v34 = vpop.permute.xlu0 %6286 }
0x297b   :  { %v6336_v57 = vsel %vm15360_vm0, %v6335_v30, %v6313_v46  ;;  %v6330_v39 = vsel %vm15361_vm4, %v6329_v37, %v6287_v34  ;;  %v15379_v30 = vld [vmem:[#allocation65_spill] sm:$0xff] }
0x297e   :  { %v6316_v54 = vpop.permute.xlu1 %6315  ;;  %v6320_v58 = vpop.permute.xlu0 %6319 }
0x297f   :  { %v6337_v16 = vsel %vm15362_vm8, %v6336_v57, %v6316_v54 }
0x2982   :  { %v6322_v20 = vpop.permute.xlu1 %6321  ;;  %v6290_v29 = vpop.permute.xlu0 %6289 }
0x2983   :  { %v6323_v27 = vsel %vm15363_vm1, %v6320_v58, %v6322_v20  ;;  %v6331_v14 = vsel %vm2958_vm2, %v6330_v39, %v6290_v29  ;;  %v15380_v29 = vld [vmem:[#allocation69_spill] sm:$0xff] }
0x2984   :  { %v6338_v40 = vsel %vm2958_vm2, %v6337_v16, %v6323_v27  ;;  %v6339_v36 = vadd.f32 %v6331_v14, %v15364_v25 }
0x2985   :  { %v6340_v56 = vadd.f32 %v6338_v40, %v15364_v25 }
0x2986   :  { %v6344_v4 = vrot.slane %v6339_v36, %v15365_v32  ;;  %v6356_v0 = vrot.slane %v6339_v36, %v15366_v47  ;;  %v6368_v1 = vrot.slane %v6339_v36, %v15367_v13  ;;  %v6380_v38 = vrot.slane %v6339_v36, %v15370_v42 }
0x2987   :  { %v6348_v50 = vrot.slane %v6340_v56, %v15365_v32  ;;  %v6360_v45 = vrot.slane %v6340_v56, %v15366_v47  ;;  %v6372_v24 = vrot.slane %v6340_v56, %v15367_v13  ;;  %v6384_v19 = vrot.slane %v6340_v56, %v15370_v42 }
0x2988   :  { %v6349_v15 = vmul.f32 %v6344_v4, %v15368_v43  ;;  %v6361_v48 = vmul.f32 %v6356_v0, %v15369_v59  ;;  %v6373_v26 = vmul.f32 %v6368_v1, %v15371_v17  ;;  %v6392_v2 = vrot.slane %v6339_v36, %v15372_v31  ;;  %v6695_v4 = vld [vmem:[#allocation3 + $0x10] sm:$0xff]  ;;  %v6696_v0 = vld [vmem:[#allocation3 + $0x18] sm:$0xff] }
0x2989   :  { %v6350_v41 = vmul.f32 %v6348_v50, %v15368_v43  ;;  %v6362_v22 = vmul.f32 %v6360_v45, %v15369_v59  ;;  %v6374_v12 = vmul.f32 %v6372_v24, %v15371_v17  ;;  %v6396_v61 = vrot.slane %v6340_v56, %v15372_v31 }
0x298a   :  { %v6363_v7 = vadd.f32 %v6361_v48, %v6349_v15  ;;  %v6385_v23 = vmul.f32 %v6380_v38, %v15373_v51  ;;  %v6404_v35 = vrot.slane %v6339_v36, %v15374_v8  ;;  %v6386_v55 = vmul.f32 %v6384_v19, %v15373_v51 }
0x298b   :  { %v6364_v5 = vadd.f32 %v6362_v22, %v6350_v41  ;;  %v6408_v3 = vrot.slane %v6340_v56, %v15374_v8  ;;  %v6397_v11 = vmul.f32 %v6392_v2, %v15375_v49  ;;  %v6416_v44 = vrot.slane %v6339_v36, %v15376_v63 }
0x298c   :  { %v6375_v53 = vadd.f32 %v6373_v26, %v6363_v7  ;;  %v6398_v34 = vmul.f32 %v6396_v61, %v15375_v49  ;;  %v6420_v52 = vrot.slane %v6340_v56, %v15376_v63  ;;  %v6409_v18 = vmul.f32 %v6404_v35, %v15377_v21 }
0x298d   :  { %v6376_v28 = vadd.f32 %v6374_v12, %v6364_v5  ;;  %v6428_v54 = vrot.slane %v6339_v36, %v15378_v9  ;;  %v6410_v6 = vmul.f32 %v6408_v3, %v15377_v21  ;;  %v6432_v33 = vrot.slane %v6340_v56, %v15378_v9  ;;  %v15381_v36 = vld [vmem:[#allocation79_spill] sm:$0xff] }
0x298e   :  { %v6387_v62 = vadd.f32 %v6385_v23, %v6375_v53  ;;  %v6421_v37 = vmul.f32 %v6416_v44, %v15379_v30  ;;  %v6422_v39 = vmul.f32 %v6420_v52, %v15379_v30 }
0x298f   :  { %v6388_v46 = vadd.f32 %v6386_v55, %v6376_v28  ;;  %v6433_v16 = vmul.f32 %v6428_v54, %v15380_v29  ;;  %v6434_v14 = vmul.f32 %v6432_v33, %v15380_v29 }
0x2990   :  { %v6399_v10 = vadd.f32 %v6397_v11, %v6387_v62 }
0x2991   :  { %v6400_v58 = vadd.f32 %v6398_v34, %v6388_v46 }
0x2992   :  { %v6411_v60 = vadd.f32 %v6409_v18, %v6399_v10 }
0x2993   :  { %v6412_v57 = vadd.f32 %v6410_v6, %v6400_v58 }
0x2994   :  { %v6423_v20 = vadd.f32 %v6421_v37, %v6411_v60 }
0x2995   :  { %v6424_v27 = vadd.f32 %v6422_v39, %v6412_v57 }
0x2996   :  { %v6435_v40 = vadd.f32 %v6433_v16, %v6423_v20 }
0x2997   :  { %v6436_v25 = vadd.f32 %v6434_v14, %v6424_v27 }
0x2998   :  { %v6437_v32 = vadd.f32 %v6435_v40, %v15381_v36 }
0x2999   :  { %v6438_v56 = vadd.f32 %v6436_v25, %v15381_v36 }
0x299a   :  { %v6439_v47 = vmul.f32 %v6695_v4, %v6437_v32 }
0x299b   :  { %v6440_v13 = vmul.f32 %v6696_v0, %v6438_v56 }
0x299c   :  { %6442 = vst [vmem:[#allocation8 + $0x10] sm:$0xff] %v6439_v47 }
0x299d   :  { %6443 = vst [vmem:[#allocation8 + $0x18] sm:$0xff] %v6440_v13 }
0x299e   :  { %6748 = shalt.err (!%p6745_p0)
}
0x299f   :  { %s15382_s10 = smov 256  }
0x29a0   :  { %6455 = dma.vmem_to_hbm [thread:$0]  %s6450_s9, 512, %s13219_s8, [#allocation5], %s15382_s10, %s15382_s10, %s15294_s24  }
0x29a1   :  { %6761 = dma.done.wait [#allocation5], 512  }
0x29a2   :  { %6762 = vsyncadd [#allocation5], 4294966784 }
0x29a3   :  { %6459 = vsyncpa [#allocation4], 1 }
0x29a4   :  { %6460 = vsyncpa [#allocation7], 1 }
0x29a5   :  { %6461 = vsyncpa [#allocation5], 1 }

</bundles_post_ra>
